<compile_context>
chip_gen: v6e
topology: v6e:2x2x1
jax: 0.10.0
libtpu: 0.0.40
codegen_flags: <defaults>
</compile_context>

<pallas_src>
import functools

import jax
import jax.numpy as jnp
from jax.experimental import pallas as pl
from jax.experimental.pallas import tpu as pltpu

_LN_EPS = 1e-5


# --------------------------------------------------------------------------- #
# helpers
# --------------------------------------------------------------------------- #
@functools.lru_cache(maxsize=None)
def _vmem_limit_bytes():
    """Generation-aware VMEM budget (~96 MiB on v5e/v6e, ~48 MiB on v7x)."""
    try:
        cap = int(pltpu.get_tpu_info().vmem_capacity_bytes)
    except Exception:  # pragma: no cover - conservative fallback
        cap = 64 * 1024 * 1024
    return max(32 * 1024 * 1024, min(int(cap * 0.75), 100 * 1024 * 1024))


def _compiler_params(semantics):
    return pltpu.CompilerParams(dimension_semantics=semantics,
                                vmem_limit_bytes=_vmem_limit_bytes())


def _resident(shape):
    """Whole-array block that stays put across the grid (weights/biases)."""
    zeros = (0,) * len(shape)
    return pl.BlockSpec(shape, lambda *_: zeros)


def _choose_tile(S, B, d_model, target_m=512):
    """Tokens per grid step: target ts*B >= 512 (MXU fill), ts*B % 8 == 0,
    ts % 8 == 0 whenever we actually tile, S padded to a multiple of ts."""
    tgt = max(1, target_m // max(B, 1))
    ts = min(S, tgt)
    # keep the f32 FF intermediate (ts*B, 4*d_model) within a loose VMEM budget
    while ts > 8 and ts * B * 4 * d_model * 4 > (24 << 20):
        ts = max(8, ts // 2)
    if ts < S:
        ts = max(8, (ts // 8) * 8)
    while (ts * B) % 8:
        ts += 1
    s_pad = -(-S // ts) * ts
    return ts, s_pad


def _choose_vocab_tile(V, cap=512):
    if V <= cap:
        return V
    for tv in range(cap, 127, -128):
        if V % tv == 0:
            return tv
    # TODO(synk): pad the vocab dim instead of keeping the weight resident.
    return V


def _layer_norm(x, gamma, beta):
    mu = jnp.mean(x, axis=-1, keepdims=True)
    var = jnp.mean(jnp.square(x - mu), axis=-1, keepdims=True)
    return (x - mu) * jax.lax.rsqrt(var + _LN_EPS) * gamma + beta


def _gelu_tanh(x):
    # tanh-approx GELU; transcendental goes to the EUP slot. Stays in f32.
    c = 0.7978845608028654  # sqrt(2/pi)
    return 0.5 * x * (1.0 + jnp.tanh(c * (x + 0.044715 * x * x * x)))


# --------------------------------------------------------------------------- #
# kernel 1: one DecoderBlock on a flat (ts*B, D) activation tile.
#   block 0 additionally applies the model's final_layer_norm first (fused).
#   x = LN1(in); x = in + MHA(x, x, x); x = x + FF(LN2(x))
# --------------------------------------------------------------------------- #
def decoder_block_kernel(n_heads, batch, apply_input_ln, *refs):
    x_ref = refs[0]
    idx = 1
    if apply_input_ln:
        lnf_g, lnf_b = refs[1:3]
        idx = 3
    (ln1_g, ln1_b, wq, wk, wv, bq, bk, bv, wo, bo,
     ln2_g, ln2_b, w1, b1, w2, b2) = refs[idx:idx + 16]
    o_ref = refs[idx + 16]

    x = x_ref[...]                                   # (M, D) f32, M = ts*B
    if apply_input_ln:
        x = _layer_norm(x, lnf_g[...], lnf_b[...])   # reference applies it early

    M, D = x.shape
    B = batch
    TS = M // B
    H = n_heads
    hd = D // H
    scale = 1.0 / float(hd) ** 0.5

    # ---- pre-attention layer norm + QKV projections (flat 2-D MXU matmuls) --
    h = _layer_norm(x, ln1_g[...], ln1_b[...]).astype(jnp.bfloat16)
    q = jnp.dot(h, wq[...], preferred_element_type=jnp.float32) + bq[...]
    k = jnp.dot(h, wk[...], preferred_element_type=jnp.float32) + bk[...]
    v = jnp.dot(h, wv[...], preferred_element_type=jnp.float32) + bv[...]

    # ---- multi-head attention over the batch axis (PyTorch batch_first=False)
    # Rearrange once to head-major (TS*H, B, hd) so the whole attention is a
    # single batched einsum pair with one leading batch dim (no per-head loop,
    # no lane-axis slicing / concatenation).
    def to_heads(t):                                 # (M, D) -> (TS*H, B, hd)
        t = t.reshape(TS, B, H, hd)
        t = jnp.transpose(t, (0, 2, 1, 3))           # (TS, H, B, hd)
        return t.reshape(TS * H, B, hd)

    qh = to_heads(q * scale).astype(jnp.bfloat16)
    kh = to_heads(k).astype(jnp.bfloat16)
    vh = to_heads(v).astype(jnp.bfloat16)

    s = jnp.einsum('nbd,ncd->nbc', qh, kh,
                   preferred_element_type=jnp.float32)          # (TS*H, B, B)
    s = s - jnp.max(s, axis=-1, keepdims=True)
    e = jnp.exp(s)                                              # f32 softmax
    p = e / jnp.sum(e, axis=-1, keepdims=True)
    o = jnp.einsum('nbc,ncd->nbd', p.astype(jnp.bfloat16), vh,
                   preferred_element_type=jnp.float32)          # (TS*H, B, hd)
    o = jnp.transpose(o.reshape(TS, H, B, hd), (0, 2, 1, 3)).reshape(M, D)

    attn = jnp.dot(o.astype(jnp.bfloat16), wo[...],
                   preferred_element_type=jnp.float32) + bo[...]
    x1 = x + attn                                               # f32 residual

    # ---- feed-forward block (Linear -> GELU -> Linear; dropout = identity) --
    hf = _layer_norm(x1, ln2_g[...], ln2_b[...]).astype(jnp.bfloat16)
    f = jnp.dot(hf, w1[...], preferred_element_type=jnp.float32) + b1[...]
    f = _gelu_tanh(f)                                           # f32 elementwise
    f = jnp.dot(f.astype(jnp.bfloat16), w2[...],
                preferred_element_type=jnp.float32) + b2[...]
    o_ref[...] = x1 + f


def run_decoder_block(x2d, block_params, n_heads, batch, ts, input_ln=None):
    MB, D = x2d.shape
    s_pad = MB // batch
    m_blk = ts * batch
    extra = tuple(input_ln) if input_ln is not None else ()
    operands = (x2d,) + extra + tuple(block_params)

    in_specs = [pl.BlockSpec((m_blk, D), lambda i: (i, 0))]
    in_specs += [_resident(p.shape) for p in operands[1:]]

    return pl.pallas_call(
        functools.partial(decoder_block_kernel, n_heads, batch,
                          input_ln is not None),
        out_shape=jax.ShapeDtypeStruct((MB, D), jnp.float32),
        grid=(s_pad // ts,),
        in_specs=in_specs,
        out_specs=pl.BlockSpec((m_blk, D), lambda i: (i, 0)),
        compiler_params=_compiler_params(("parallel",)),
    )(*operands)


# --------------------------------------------------------------------------- #
# kernel 2: logits = x @ W_logits, vocab-tiled, emitted directly as (B, S, V)
# --------------------------------------------------------------------------- #
def logits_kernel(batch, x_ref, w_ref, o_ref):
    M, _ = x_ref.shape
    tv = w_ref.shape[1]
    ts = M // batch
    x = x_ref[...].astype(jnp.bfloat16)
    out = jnp.dot(x, w_ref[...], preferred_element_type=jnp.float32)  # (M, tv)
    # in-tile (seq, batch) -> (batch, seq) swap so the output is already (B,S,V)
    o_ref[...] = jnp.swapaxes(out.reshape(ts, batch, tv), 0, 1)


def run_logits(x2d, w_logits, batch, ts, tv):
    MB, D = x2d.shape
    s_pad = MB // batch
    V = w_logits.shape[-1]
    if V % tv:
        tv = V
    m_blk = ts * batch
    grid = (s_pad // ts, V // tv)
    return pl.pallas_call(
        functools.partial(logits_kernel, batch),
        out_shape=jax.ShapeDtypeStruct((batch, s_pad, V), jnp.float32),
        grid=grid,
        in_specs=[pl.BlockSpec((m_blk, D), lambda i, j: (i, 0)),
                  pl.BlockSpec((D, tv), lambda i, j: (0, j))],
        out_specs=pl.BlockSpec((batch, ts, tv), lambda i, j: (0, i, j)),
        compiler_params=_compiler_params(("parallel", "parallel")),
    )(x2d, w_logits)


# --------------------------------------------------------------------------- #
# parameter init (deterministic; shapes match the nn.Module; matmul weights
# stored bf16 in (in, out) order, LN params / biases / residual kept in f32)
# --------------------------------------------------------------------------- #
def init_gpt_params(key, vocab_size, context_size, n_layers, d_model, n_heads):
    del n_heads
    keys = jax.random.split(key, 4 + n_layers)

    def normal(k, shape, scale=0.02):
        return (scale * jax.random.normal(k, shape)).astype(jnp.float32)

    def bf16_w(k, shape):               # shape given as (out, in), stored (in, out)
        return normal(k, shape).T.astype(jnp.bfloat16)

    wte = normal(keys[0], (vocab_size, d_model)).at[0].set(0.0)   # padding_idx=0
    wpe = normal(keys[1], (context_size, d_model))
    lnf_g = jnp.ones((1, d_model), jnp.float32)
    lnf_b = jnp.zeros((1, d_model), jnp.float32)
    w_logits = bf16_w(keys[2], (vocab_size, d_model))             # (D, V)

    d4 = 4 * d_model
    blocks = []
    for li in range(n_layers):
        bkeys = jax.random.split(keys[4 + li], 8)
        blocks.append((
            jnp.ones((1, d_model), jnp.float32),                  # ln1 gamma
            jnp.zeros((1, d_model), jnp.float32),                 # ln1 beta
            bf16_w(bkeys[0], (d_model, d_model)),                 # Wq  (in, out)
            bf16_w(bkeys[1], (d_model, d_model)),                 # Wk
            bf16_w(bkeys[2], (d_model, d_model)),                 # Wv
            jnp.zeros((1, d_model), jnp.float32),                 # bq
            jnp.zeros((1, d_model), jnp.float32),                 # bk
            jnp.zeros((1, d_model), jnp.float32),                 # bv
            bf16_w(bkeys[3], (d_model, d_model)),                 # Wo
            jnp.zeros((1, d_model), jnp.float32),                 # bo
            jnp.ones((1, d_model), jnp.float32),                  # ln2 gamma
            jnp.zeros((1, d_model), jnp.float32),                 # ln2 beta
            bf16_w(bkeys[4], (d4, d_model)),                      # W1 (D, 4D)
            normal(bkeys[5], (1, d4)),                            # b1
            bf16_w(bkeys[6], (d_model, d4)),                      # W2 (4D, D)
            normal(bkeys[7], (1, d_model)),                       # b2
        ))
    return dict(wte=wte, wpe=wpe, lnf_g=lnf_g, lnf_b=lnf_b,
                w_logits=w_logits, blocks=blocks)


# --------------------------------------------------------------------------- #
# full forward (embedding gather + pos add are plain-JAX glue that fuses; no
# XLA transposes of the activation / logits tensors)
# --------------------------------------------------------------------------- #
def gpt_forward(tokens, params, n_heads):
    B, S = tokens.shape
    D = params["wte"].shape[-1]
    V = params["w_logits"].shape[-1]
    ts, s_pad = _choose_tile(S, B, D)
    tv = _choose_vocab_tile(V)

    # gather directly in (S, B, D) order; pos add fuses into the gather output
    x = jnp.take(params["wte"], tokens.T, axis=0) + params["wpe"][:S][:, None, :]
    if s_pad != S:
        x = jnp.pad(x, ((0, s_pad - S), (0, 0), (0, 0)))
    x = x.reshape(s_pad * B, D).astype(jnp.float32)   # flat lane-dense layout

    for li, blk in enumerate(params["blocks"]):
        input_ln = (params["lnf_g"], params["lnf_b"]) if li == 0 else None
        x = run_decoder_block(x, blk, n_heads, B, ts, input_ln)

    logits = run_logits(x, params["w_logits"], B, ts, tv)   # (B, s_pad, V)
    return logits[:, :S, :]


if __name__ == "__main__":
    vocab_size = 32
    context_size = 16
    n_layers = 2
    d_model = 32
    n_heads = 4
    batch, seq = 2, 8

    key = jax.random.PRNGKey(0)
    pkey, tkey = jax.random.split(key)
    params = init_gpt_params(pkey, vocab_size, context_size,
                             n_layers, d_model, n_heads)
    tokens = jax.random.randint(tkey, (batch, seq), 0, vocab_size,
                                dtype=jnp.int32)

    fwd = jax.jit(lambda toks, prm: gpt_forward(toks, prm, n_heads))
    logits = fwd(tokens, params)
    logits = jax.block_until_ready(logits)
    assert logits.shape == (batch, seq, vocab_size), logits.shape
    assert bool(jnp.all(jnp.isfinite(logits)))
    print("KERNEL_OK")
</pallas_src>

<mosaic_0001>
module attributes {stable_mosaic.version = 11 : i64} {
  func.func @decoder_block_kernel(%arg0: i32, %arg1: memref<16x32xf32, #tpu.memory_space<vmem>>, %arg2: memref<1x32xf32, #tpu.memory_space<vmem>>, %arg3: memref<1x32xf32, #tpu.memory_space<vmem>>, %arg4: memref<1x32xf32, #tpu.memory_space<vmem>>, %arg5: memref<1x32xf32, #tpu.memory_space<vmem>>, %arg6: memref<32x32xbf16, #tpu.memory_space<vmem>>, %arg7: memref<32x32xbf16, #tpu.memory_space<vmem>>, %arg8: memref<32x32xbf16, #tpu.memory_space<vmem>>, %arg9: memref<1x32xf32, #tpu.memory_space<vmem>>, %arg10: memref<1x32xf32, #tpu.memory_space<vmem>>, %arg11: memref<1x32xf32, #tpu.memory_space<vmem>>, %arg12: memref<32x32xbf16, #tpu.memory_space<vmem>>, %arg13: memref<1x32xf32, #tpu.memory_space<vmem>>, %arg14: memref<1x32xf32, #tpu.memory_space<vmem>>, %arg15: memref<1x32xf32, #tpu.memory_space<vmem>>, %arg16: memref<32x128xbf16, #tpu.memory_space<vmem>>, %arg17: memref<1x128xf32, #tpu.memory_space<vmem>>, %arg18: memref<128x32xbf16, #tpu.memory_space<vmem>>, %arg19: memref<1x32xf32, #tpu.memory_space<vmem>>, %arg20: memref<16x32xf32, #tpu.memory_space<vmem>>) attributes {dimension_semantics = [#tpu.dimension_semantics<parallel>], iteration_bounds = array<i64: 1>, scalar_prefetch = 0 : i64, scratch_operands = 0 : i64, tpu.core_type = #tpu.core_type<tc>, window_params = [{transform_indices = @transform_0, window_bounds = array<i64: 16, 32>}, {pipeline_mode = #tpu.pipeline_mode<synchronous>, transform_indices = @transform_1, window_bounds = array<i64: 1, 32>}, {pipeline_mode = #tpu.pipeline_mode<synchronous>, transform_indices = @transform_2, window_bounds = array<i64: 1, 32>}, {pipeline_mode = #tpu.pipeline_mode<synchronous>, transform_indices = @transform_3, window_bounds = array<i64: 1, 32>}, {pipeline_mode = #tpu.pipeline_mode<synchronous>, transform_indices = @transform_4, window_bounds = array<i64: 1, 32>}, {pipeline_mode = #tpu.pipeline_mode<synchronous>, transform_indices = @transform_5, window_bounds = array<i64: 32, 32>}, {pipeline_mode = #tpu.pipeline_mode<synchronous>, transform_indices = @transform_6, window_bounds = array<i64: 32, 32>}, {pipeline_mode = #tpu.pipeline_mode<synchronous>, transform_indices = @transform_7, window_bounds = array<i64: 32, 32>}, {pipeline_mode = #tpu.pipeline_mode<synchronous>, transform_indices = @transform_8, window_bounds = array<i64: 1, 32>}, {pipeline_mode = #tpu.pipeline_mode<synchronous>, transform_indices = @transform_9, window_bounds = array<i64: 1, 32>}, {pipeline_mode = #tpu.pipeline_mode<synchronous>, transform_indices = @transform_10, window_bounds = array<i64: 1, 32>}, {pipeline_mode = #tpu.pipeline_mode<synchronous>, transform_indices = @transform_11, window_bounds = array<i64: 32, 32>}, {pipeline_mode = #tpu.pipeline_mode<synchronous>, transform_indices = @transform_12, window_bounds = array<i64: 1, 32>}, {pipeline_mode = #tpu.pipeline_mode<synchronous>, transform_indices = @transform_13, window_bounds = array<i64: 1, 32>}, {pipeline_mode = #tpu.pipeline_mode<synchronous>, transform_indices = @transform_14, window_bounds = array<i64: 1, 32>}, {pipeline_mode = #tpu.pipeline_mode<synchronous>, transform_indices = @transform_15, window_bounds = array<i64: 32, 128>}, {pipeline_mode = #tpu.pipeline_mode<synchronous>, transform_indices = @transform_16, window_bounds = array<i64: 1, 128>}, {pipeline_mode = #tpu.pipeline_mode<synchronous>, transform_indices = @transform_17, window_bounds = array<i64: 128, 32>}, {pipeline_mode = #tpu.pipeline_mode<synchronous>, transform_indices = @transform_18, window_bounds = array<i64: 1, 32>}, {transform_indices = @transform_19, window_bounds = array<i64: 16, 32>}]} {
    %c0 = arith.constant 0 : index
    %c0_0 = arith.constant 0 : index
    %0 = vector.load %arg1[%c0, %c0_0] : memref<16x32xf32, #tpu.memory_space<vmem>>, vector<16x32xf32>
    %c0_1 = arith.constant 0 : index
    %c0_2 = arith.constant 0 : index
    %1 = vector.load %arg2[%c0_1, %c0_2] : memref<1x32xf32, #tpu.memory_space<vmem>>, vector<1x32xf32>
    %c0_3 = arith.constant 0 : index
    %c0_4 = arith.constant 0 : index
    %2 = vector.load %arg3[%c0_3, %c0_4] : memref<1x32xf32, #tpu.memory_space<vmem>>, vector<1x32xf32>
    %cst = arith.constant dense<0.000000e+00> : vector<16xf32>
    %3 = vector.multi_reduction <add>, %0, %cst [1] : vector<16x32xf32> to vector<16xf32>
    %4 = vector.shape_cast %3 : vector<16xf32> to vector<16x1xf32>
    %cst_5 = arith.constant 3.200000e+01 : f32
    %5 = vector.broadcast %cst_5 : f32 to vector<16x1xf32>
    %6 = arith.divf %4, %5 : vector<16x1xf32>
    %7 = vector.broadcast %6 : vector<16x1xf32> to vector<16x32xf32>
    %8 = arith.subf %0, %7 : vector<16x32xf32>
    %9 = arith.mulf %8, %8 : vector<16x32xf32>
    %cst_6 = arith.constant dense<0.000000e+00> : vector<16xf32>
    %10 = vector.multi_reduction <add>, %9, %cst_6 [1] : vector<16x32xf32> to vector<16xf32>
    %11 = vector.shape_cast %10 : vector<16xf32> to vector<16x1xf32>
    %cst_7 = arith.constant 3.200000e+01 : f32
    %12 = vector.broadcast %cst_7 : f32 to vector<16x1xf32>
    %13 = arith.divf %11, %12 : vector<16x1xf32>
    %14 = vector.broadcast %6 : vector<16x1xf32> to vector<16x32xf32>
    %15 = arith.subf %0, %14 : vector<16x32xf32>
    %cst_8 = arith.constant 9.99999974E-6 : f32
    %16 = vector.broadcast %cst_8 : f32 to vector<16x1xf32>
    %17 = arith.addf %13, %16 : vector<16x1xf32>
    %18 = math.rsqrt %17 : vector<16x1xf32>
    %19 = vector.broadcast %18 : vector<16x1xf32> to vector<16x32xf32>
    %20 = arith.mulf %15, %19 : vector<16x32xf32>
    %21 = vector.broadcast %1 : vector<1x32xf32> to vector<16x32xf32>
    %22 = arith.mulf %20, %21 : vector<16x32xf32>
    %23 = vector.broadcast %2 : vector<1x32xf32> to vector<16x32xf32>
    %24 = arith.addf %22, %23 : vector<16x32xf32>
    %c0_9 = arith.constant 0 : index
    %c0_10 = arith.constant 0 : index
    %25 = vector.load %arg4[%c0_9, %c0_10] : memref<1x32xf32, #tpu.memory_space<vmem>>, vector<1x32xf32>
    %c0_11 = arith.constant 0 : index
    %c0_12 = arith.constant 0 : index
    %26 = vector.load %arg5[%c0_11, %c0_12] : memref<1x32xf32, #tpu.memory_space<vmem>>, vector<1x32xf32>
    %cst_13 = arith.constant dense<0.000000e+00> : vector<16xf32>
    %27 = vector.multi_reduction <add>, %24, %cst_13 [1] : vector<16x32xf32> to vector<16xf32>
    %28 = vector.shape_cast %27 : vector<16xf32> to vector<16x1xf32>
    %cst_14 = arith.constant 3.200000e+01 : f32
    %29 = vector.broadcast %cst_14 : f32 to vector<16x1xf32>
    %30 = arith.divf %28, %29 : vector<16x1xf32>
    %31 = vector.broadcast %30 : vector<16x1xf32> to vector<16x32xf32>
    %32 = arith.subf %24, %31 : vector<16x32xf32>
    %33 = arith.mulf %32, %32 : vector<16x32xf32>
    %cst_15 = arith.constant dense<0.000000e+00> : vector<16xf32>
    %34 = vector.multi_reduction <add>, %33, %cst_15 [1] : vector<16x32xf32> to vector<16xf32>
    %35 = vector.shape_cast %34 : vector<16xf32> to vector<16x1xf32>
    %cst_16 = arith.constant 3.200000e+01 : f32
    %36 = vector.broadcast %cst_16 : f32 to vector<16x1xf32>
    %37 = arith.divf %35, %36 : vector<16x1xf32>
    %38 = vector.broadcast %30 : vector<16x1xf32> to vector<16x32xf32>
    %39 = arith.subf %24, %38 : vector<16x32xf32>
    %cst_17 = arith.constant 9.99999974E-6 : f32
    %40 = vector.broadcast %cst_17 : f32 to vector<16x1xf32>
    %41 = arith.addf %37, %40 : vector<16x1xf32>
    %42 = math.rsqrt %41 : vector<16x1xf32>
    %43 = vector.broadcast %42 : vector<16x1xf32> to vector<16x32xf32>
    %44 = arith.mulf %39, %43 : vector<16x32xf32>
    %45 = vector.broadcast %25 : vector<1x32xf32> to vector<16x32xf32>
    %46 = arith.mulf %44, %45 : vector<16x32xf32>
    %47 = vector.broadcast %26 : vector<1x32xf32> to vector<16x32xf32>
    %48 = arith.addf %46, %47 : vector<16x32xf32>
    %49 = arith.truncf %48 : vector<16x32xf32> to vector<16x32xbf16>
    %c0_18 = arith.constant 0 : index
    %c0_19 = arith.constant 0 : index
    %50 = vector.load %arg6[%c0_18, %c0_19] : memref<32x32xbf16, #tpu.memory_space<vmem>>, vector<32x32xbf16>
    %cst_20 = arith.constant dense<0.000000e+00> : vector<16x32xf32>
    %51 = tpu.matmul %49, %50, %cst_20 {dimension_numbers = #tpu.dot_dimension_numbers<[1], [0], [0], [1], [0, 0, 1, 1], [], []>} : vector<16x32xbf16>, vector<32x32xbf16>, vector<16x32xf32> -> vector<16x32xf32>
    %c0_21 = arith.constant 0 : index
    %c0_22 = arith.constant 0 : index
    %52 = vector.load %arg9[%c0_21, %c0_22] : memref<1x32xf32, #tpu.memory_space<vmem>>, vector<1x32xf32>
    %53 = vector.broadcast %52 : vector<1x32xf32> to vector<16x32xf32>
    %54 = arith.addf %51, %53 : vector<16x32xf32>
    %c0_23 = arith.constant 0 : index
    %c0_24 = arith.constant 0 : index
    %55 = vector.load %arg7[%c0_23, %c0_24] : memref<32x32xbf16, #tpu.memory_space<vmem>>, vector<32x32xbf16>
    %cst_25 = arith.constant dense<0.000000e+00> : vector<16x32xf32>
    %56 = tpu.matmul %49, %55, %cst_25 {dimension_numbers = #tpu.dot_dimension_numbers<[1], [0], [0], [1], [0, 0, 1, 1], [], []>} : vector<16x32xbf16>, vector<32x32xbf16>, vector<16x32xf32> -> vector<16x32xf32>
    %c0_26 = arith.constant 0 : index
    %c0_27 = arith.constant 0 : index
    %57 = vector.load %arg10[%c0_26, %c0_27] : memref<1x32xf32, #tpu.memory_space<vmem>>, vector<1x32xf32>
    %58 = vector.broadcast %57 : vector<1x32xf32> to vector<16x32xf32>
    %59 = arith.addf %56, %58 : vector<16x32xf32>
    %c0_28 = arith.constant 0 : index
    %c0_29 = arith.constant 0 : index
    %60 = vector.load %arg8[%c0_28, %c0_29] : memref<32x32xbf16, #tpu.memory_space<vmem>>, vector<32x32xbf16>
    %cst_30 = arith.constant dense<0.000000e+00> : vector<16x32xf32>
    %61 = tpu.matmul %49, %60, %cst_30 {dimension_numbers = #tpu.dot_dimension_numbers<[1], [0], [0], [1], [0, 0, 1, 1], [], []>} : vector<16x32xbf16>, vector<32x32xbf16>, vector<16x32xf32> -> vector<16x32xf32>
    %c0_31 = arith.constant 0 : index
    %c0_32 = arith.constant 0 : index
    %62 = vector.load %arg11[%c0_31, %c0_32] : memref<1x32xf32, #tpu.memory_space<vmem>>, vector<1x32xf32>
    %63 = vector.broadcast %62 : vector<1x32xf32> to vector<16x32xf32>
    %64 = arith.addf %61, %63 : vector<16x32xf32>
    %cst_33 = arith.constant 0.353553385 : f32
    %65 = vector.broadcast %cst_33 : f32 to vector<16x32xf32>
    %66 = arith.mulf %54, %65 : vector<16x32xf32>
    %67 = vector.shape_cast %66 : vector<16x32xf32> to vector<8x2x4x8xf32>
    %68 = tpu.transpose %67, [0, 2, 1, 3] : vector<8x2x4x8xf32> -> vector<8x4x2x8xf32>
    %69 = vector.shape_cast %68 : vector<8x4x2x8xf32> to vector<32x2x8xf32>
    %70 = arith.truncf %69 : vector<32x2x8xf32> to vector<32x2x8xbf16>
    %71 = vector.shape_cast %59 : vector<16x32xf32> to vector<8x2x4x8xf32>
    %72 = tpu.transpose %71, [0, 2, 1, 3] : vector<8x2x4x8xf32> -> vector<8x4x2x8xf32>
    %73 = vector.shape_cast %72 : vector<8x4x2x8xf32> to vector<32x2x8xf32>
    %74 = arith.truncf %73 : vector<32x2x8xf32> to vector<32x2x8xbf16>
    %75 = vector.shape_cast %64 : vector<16x32xf32> to vector<8x2x4x8xf32>
    %76 = tpu.transpose %75, [0, 2, 1, 3] : vector<8x2x4x8xf32> -> vector<8x4x2x8xf32>
    %77 = vector.shape_cast %76 : vector<8x4x2x8xf32> to vector<32x2x8xf32>
    %78 = arith.truncf %77 : vector<32x2x8xf32> to vector<32x2x8xbf16>
    "tpu.trace_start"() <{level = 10 : i32, message = "nbd,ncd->nbc"}> : () -> ()
    %cst_34 = arith.constant dense<0.000000e+00> : vector<32x2x2xf32>
    %79 = tpu.matmul %70, %74, %cst_34 {dimension_numbers = #tpu.dot_dimension_numbers<[2], [2], [1], [1], [0, 0, 0, 1, 1, 1], [0], [0]>} : vector<32x2x8xbf16>, vector<32x2x8xbf16>, vector<32x2x2xf32> -> vector<32x2x2xf32>
    "tpu.trace_stop"() : () -> ()
    %cst_35 = arith.constant dense<0xFF800000> : vector<32x2xf32>
    %80 = vector.multi_reduction <maximumf>, %79, %cst_35 [2] : vector<32x2x2xf32> to vector<32x2xf32>
    %81 = vector.shape_cast %80 : vector<32x2xf32> to vector<32x2x1xf32>
    %82 = vector.broadcast %81 : vector<32x2x1xf32> to vector<32x2x2xf32>
    %83 = arith.subf %79, %82 : vector<32x2x2xf32>
    %84 = math.exp %83 : vector<32x2x2xf32>
    %cst_36 = arith.constant dense<0.000000e+00> : vector<32x2xf32>
    %85 = vector.multi_reduction <add>, %84, %cst_36 [2] : vector<32x2x2xf32> to vector<32x2xf32>
    %86 = vector.shape_cast %85 : vector<32x2xf32> to vector<32x2x1xf32>
    %87 = vector.broadcast %86 : vector<32x2x1xf32> to vector<32x2x2xf32>
    %88 = arith.divf %84, %87 : vector<32x2x2xf32>
    %89 = arith.truncf %88 : vector<32x2x2xf32> to vector<32x2x2xbf16>
    "tpu.trace_start"() <{level = 10 : i32, message = "nbc,ncd->nbd"}> : () -> ()
    %cst_37 = arith.constant dense<0.000000e+00> : vector<32x2x8xf32>
    %90 = tpu.matmul %89, %78, %cst_37 {dimension_numbers = #tpu.dot_dimension_numbers<[2], [1], [1], [2], [0, 0, 0, 1, 1, 2], [0], [0]>} : vector<32x2x2xbf16>, vector<32x2x8xbf16>, vector<32x2x8xf32> -> vector<32x2x8xf32>
    "tpu.trace_stop"() : () -> ()
    %91 = vector.shape_cast %90 : vector<32x2x8xf32> to vector<8x4x2x8xf32>
    %92 = tpu.transpose %91, [0, 2, 1, 3] : vector<8x4x2x8xf32> -> vector<8x2x4x8xf32>
    %93 = vector.shape_cast %92 : vector<8x2x4x8xf32> to vector<16x32xf32>
    %94 = arith.truncf %93 : vector<16x32xf32> to vector<16x32xbf16>
    %c0_38 = arith.constant 0 : index
    %c0_39 = arith.constant 0 : index
    %95 = vector.load %arg12[%c0_38, %c0_39] : memref<32x32xbf16, #tpu.memory_space<vmem>>, vector<32x32xbf16>
    %cst_40 = arith.constant dense<0.000000e+00> : vector<16x32xf32>
    %96 = tpu.matmul %94, %95, %cst_40 {dimension_numbers = #tpu.dot_dimension_numbers<[1], [0], [0], [1], [0, 0, 1, 1], [], []>} : vector<16x32xbf16>, vector<32x32xbf16>, vector<16x32xf32> -> vector<16x32xf32>
    %c0_41 = arith.constant 0 : index
    %c0_42 = arith.constant 0 : index
    %97 = vector.load %arg13[%c0_41, %c0_42] : memref<1x32xf32, #tpu.memory_space<vmem>>, vector<1x32xf32>
    %98 = vector.broadcast %97 : vector<1x32xf32> to vector<16x32xf32>
    %99 = arith.addf %96, %98 : vector<16x32xf32>
    %100 = arith.addf %24, %99 : vector<16x32xf32>
    %c0_43 = arith.constant 0 : index
    %c0_44 = arith.constant 0 : index
    %101 = vector.load %arg14[%c0_43, %c0_44] : memref<1x32xf32, #tpu.memory_space<vmem>>, vector<1x32xf32>
    %c0_45 = arith.constant 0 : index
    %c0_46 = arith.constant 0 : index
    %102 = vector.load %arg15[%c0_45, %c0_46] : memref<1x32xf32, #tpu.memory_space<vmem>>, vector<1x32xf32>
    %cst_47 = arith.constant dense<0.000000e+00> : vector<16xf32>
    %103 = vector.multi_reduction <add>, %100, %cst_47 [1] : vector<16x32xf32> to vector<16xf32>
    %104 = vector.shape_cast %103 : vector<16xf32> to vector<16x1xf32>
    %cst_48 = arith.constant 3.200000e+01 : f32
    %105 = vector.broadcast %cst_48 : f32 to vector<16x1xf32>
    %106 = arith.divf %104, %105 : vector<16x1xf32>
    %107 = vector.broadcast %106 : vector<16x1xf32> to vector<16x32xf32>
    %108 = arith.subf %100, %107 : vector<16x32xf32>
    %109 = arith.mulf %108, %108 : vector<16x32xf32>
    %cst_49 = arith.constant dense<0.000000e+00> : vector<16xf32>
    %110 = vector.multi_reduction <add>, %109, %cst_49 [1] : vector<16x32xf32> to vector<16xf32>
    %111 = vector.shape_cast %110 : vector<16xf32> to vector<16x1xf32>
    %cst_50 = arith.constant 3.200000e+01 : f32
    %112 = vector.broadcast %cst_50 : f32 to vector<16x1xf32>
    %113 = arith.divf %111, %112 : vector<16x1xf32>
    %114 = vector.broadcast %106 : vector<16x1xf32> to vector<16x32xf32>
    %115 = arith.subf %100, %114 : vector<16x32xf32>
    %cst_51 = arith.constant 9.99999974E-6 : f32
    %116 = vector.broadcast %cst_51 : f32 to vector<16x1xf32>
    %117 = arith.addf %113, %116 : vector<16x1xf32>
    %118 = math.rsqrt %117 : vector<16x1xf32>
    %119 = vector.broadcast %118 : vector<16x1xf32> to vector<16x32xf32>
    %120 = arith.mulf %115, %119 : vector<16x32xf32>
    %121 = vector.broadcast %101 : vector<1x32xf32> to vector<16x32xf32>
    %122 = arith.mulf %120, %121 : vector<16x32xf32>
    %123 = vector.broadcast %102 : vector<1x32xf32> to vector<16x32xf32>
    %124 = arith.addf %122, %123 : vector<16x32xf32>
    %125 = arith.truncf %124 : vector<16x32xf32> to vector<16x32xbf16>
    %c0_52 = arith.constant 0 : index
    %c0_53 = arith.constant 0 : index
    %126 = vector.load %arg16[%c0_52, %c0_53] : memref<32x128xbf16, #tpu.memory_space<vmem>>, vector<32x128xbf16>
    %cst_54 = arith.constant dense<0.000000e+00> : vector<16x128xf32>
    %127 = tpu.matmul %125, %126, %cst_54 {dimension_numbers = #tpu.dot_dimension_numbers<[1], [0], [0], [1], [0, 0, 1, 1], [], []>} : vector<16x32xbf16>, vector<32x128xbf16>, vector<16x128xf32> -> vector<16x128xf32>
    %c0_55 = arith.constant 0 : index
    %c0_56 = arith.constant 0 : index
    %128 = vector.load %arg17[%c0_55, %c0_56] : memref<1x128xf32, #tpu.memory_space<vmem>>, vector<1x128xf32>
    %129 = vector.broadcast %128 : vector<1x128xf32> to vector<16x128xf32>
    %130 = arith.addf %127, %129 : vector<16x128xf32>
    %cst_57 = arith.constant 5.000000e-01 : f32
    %131 = vector.broadcast %cst_57 : f32 to vector<16x128xf32>
    %132 = arith.mulf %131, %130 : vector<16x128xf32>
    %cst_58 = arith.constant 4.471500e-02 : f32
    %133 = vector.broadcast %cst_58 : f32 to vector<16x128xf32>
    %134 = arith.mulf %133, %130 : vector<16x128xf32>
    %135 = arith.mulf %134, %130 : vector<16x128xf32>
    %136 = arith.mulf %135, %130 : vector<16x128xf32>
    %137 = arith.addf %130, %136 : vector<16x128xf32>
    %cst_59 = arith.constant 0.797884583 : f32
    %138 = vector.broadcast %cst_59 : f32 to vector<16x128xf32>
    %139 = arith.mulf %138, %137 : vector<16x128xf32>
    %140 = math.tanh %139 : vector<16x128xf32>
    %cst_60 = arith.constant 1.000000e+00 : f32
    %141 = vector.broadcast %cst_60 : f32 to vector<16x128xf32>
    %142 = arith.addf %141, %140 : vector<16x128xf32>
    %143 = arith.mulf %132, %142 : vector<16x128xf32>
    %144 = arith.truncf %143 : vector<16x128xf32> to vector<16x128xbf16>
    %c0_61 = arith.constant 0 : index
    %c0_62 = arith.constant 0 : index
    %145 = vector.load %arg18[%c0_61, %c0_62] : memref<128x32xbf16, #tpu.memory_space<vmem>>, vector<128x32xbf16>
    %cst_63 = arith.constant dense<0.000000e+00> : vector<16x32xf32>
    %146 = tpu.matmul %144, %145, %cst_63 {dimension_numbers = #tpu.dot_dimension_numbers<[1], [0], [0], [1], [0, 0, 1, 1], [], []>} : vector<16x128xbf16>, vector<128x32xbf16>, vector<16x32xf32> -> vector<16x32xf32>
    %c0_64 = arith.constant 0 : index
    %c0_65 = arith.constant 0 : index
    %147 = vector.load %arg19[%c0_64, %c0_65] : memref<1x32xf32, #tpu.memory_space<vmem>>, vector<1x32xf32>
    %148 = vector.broadcast %147 : vector<1x32xf32> to vector<16x32xf32>
    %149 = arith.addf %146, %148 : vector<16x32xf32>
    %150 = arith.addf %100, %149 : vector<16x32xf32>
    %c0_66 = arith.constant 0 : index
    %c0_67 = arith.constant 0 : index
    %151 = vector.load %arg20[%c0_66, %c0_67] : memref<16x32xf32, #tpu.memory_space<vmem>>, vector<16x32xf32>
    tpu.vector_store %arg20[%c0_66, %c0_67], %150 {strides = array<i32>} : memref<16x32xf32, #tpu.memory_space<vmem>>, vector<16x32xf32>,
    return
  }
  func.func @transform_0(%arg0: i32) -> (i32, i32) {
    %c0_i32 = arith.constant 0 : i32
    %c0_i32_0 = arith.constant 0 : i32
    return %arg0, %c0_i32 : i32, i32
  }
  func.func @transform_1(%arg0: i32) -> (i32, i32) {
    %c0_i32 = arith.constant 0 : i32
    %c0_i32_0 = arith.constant 0 : i32
    %c0_i32_1 = arith.constant 0 : i32
    return %c0_i32, %c0_i32_0 : i32, i32
  }
  func.func @transform_2(%arg0: i32) -> (i32, i32) {
    %c0_i32 = arith.constant 0 : i32
    %c0_i32_0 = arith.constant 0 : i32
    %c0_i32_1 = arith.constant 0 : i32
    return %c0_i32, %c0_i32_0 : i32, i32
  }
  func.func @transform_3(%arg0: i32) -> (i32, i32) {
    %c0_i32 = arith.constant 0 : i32
    %c0_i32_0 = arith.constant 0 : i32
    %c0_i32_1 = arith.constant 0 : i32
    return %c0_i32, %c0_i32_0 : i32, i32
  }
  func.func @transform_4(%arg0: i32) -> (i32, i32) {
    %c0_i32 = arith.constant 0 : i32
    %c0_i32_0 = arith.constant 0 : i32
    %c0_i32_1 = arith.constant 0 : i32
    return %c0_i32, %c0_i32_0 : i32, i32
  }
  func.func @transform_5(%arg0: i32) -> (i32, i32) {
    %c0_i32 = arith.constant 0 : i32
    %c0_i32_0 = arith.constant 0 : i32
    %c0_i32_1 = arith.constant 0 : i32
    return %c0_i32, %c0_i32_0 : i32, i32
  }
  func.func @transform_6(%arg0: i32) -> (i32, i32) {
    %c0_i32 = arith.constant 0 : i32
    %c0_i32_0 = arith.constant 0 : i32
    %c0_i32_1 = arith.constant 0 : i32
    return %c0_i32, %c0_i32_0 : i32, i32
  }
  func.func @transform_7(%arg0: i32) -> (i32, i32) {
    %c0_i32 = arith.constant 0 : i32
    %c0_i32_0 = arith.constant 0 : i32
    %c0_i32_1 = arith.constant 0 : i32
    return %c0_i32, %c0_i32_0 : i32, i32
  }
  func.func @transform_8(%arg0: i32) -> (i32, i32) {
    %c0_i32 = arith.constant 0 : i32
    %c0_i32_0 = arith.constant 0 : i32
    %c0_i32_1 = arith.constant 0 : i32
    return %c0_i32, %c0_i32_0 : i32, i32
  }
  func.func @transform_9(%arg0: i32) -> (i32, i32) {
    %c0_i32 = arith.constant 0 : i32
    %c0_i32_0 = arith.constant 0 : i32
    %c0_i32_1 = arith.constant 0 : i32
    return %c0_i32, %c0_i32_0 : i32, i32
  }
  func.func @transform_10(%arg0: i32) -> (i32, i32) {
    %c0_i32 = arith.constant 0 : i32
    %c0_i32_0 = arith.constant 0 : i32
    %c0_i32_1 = arith.constant 0 : i32
    return %c0_i32, %c0_i32_0 : i32, i32
  }
  func.func @transform_11(%arg0: i32) -> (i32, i32) {
    %c0_i32 = arith.constant 0 : i32
    %c0_i32_0 = arith.constant 0 : i32
    %c0_i32_1 = arith.constant 0 : i32
    return %c0_i32, %c0_i32_0 : i32, i32
  }
  func.func @transform_12(%arg0: i32) -> (i32, i32) {
    %c0_i32 = arith.constant 0 : i32
    %c0_i32_0 = arith.constant 0 : i32
    %c0_i32_1 = arith.constant 0 : i32
    return %c0_i32, %c0_i32_0 : i32, i32
  }
  func.func @transform_13(%arg0: i32) -> (i32, i32) {
    %c0_i32 = arith.constant 0 : i32
    %c0_i32_0 = arith.constant 0 : i32
    %c0_i32_1 = arith.constant 0 : i32
    return %c0_i32, %c0_i32_0 : i32, i32
  }
  func.func @transform_14(%arg0: i32) -> (i32, i32) {
    %c0_i32 = arith.constant 0 : i32
    %c0_i32_0 = arith.constant 0 : i32
    %c0_i32_1 = arith.constant 0 : i32
    return %c0_i32, %c0_i32_0 : i32, i32
  }
  func.func @transform_15(%arg0: i32) -> (i32, i32) {
    %c0_i32 = arith.constant 0 : i32
    %c0_i32_0 = arith.constant 0 : i32
    %c0_i32_1 = arith.constant 0 : i32
    return %c0_i32, %c0_i32_0 : i32, i32
  }
  func.func @transform_16(%arg0: i32) -> (i32, i32) {
    %c0_i32 = arith.constant 0 : i32
    %c0_i32_0 = arith.constant 0 : i32
    %c0_i32_1 = arith.constant 0 : i32
    return %c0_i32, %c0_i32_0 : i32, i32
  }
  func.func @transform_17(%arg0: i32) -> (i32, i32) {
    %c0_i32 = arith.constant 0 : i32
    %c0_i32_0 = arith.constant 0 : i32
    %c0_i32_1 = arith.constant 0 : i32
    return %c0_i32, %c0_i32_0 : i32, i32
  }
  func.func @transform_18(%arg0: i32) -> (i32, i32) {
    %c0_i32 = arith.constant 0 : i32
    %c0_i32_0 = arith.constant 0 : i32
    %c0_i32_1 = arith.constant 0 : i32
    return %c0_i32, %c0_i32_0 : i32, i32
  }
  func.func @transform_19(%arg0: i32) -> (i32, i32) {
    %c0_i32 = arith.constant 0 : i32
    %c0_i32_0 = arith.constant 0 : i32
    return %arg0, %c0_i32 : i32, i32
  }
}

module attributes {stable_mosaic.version = 11 : i64} {
  func.func @logits_kernel(%arg0: i32, %arg1: i32, %arg2: memref<16x32xf32, #tpu.memory_space<vmem>>, %arg3: memref<32x32xbf16, #tpu.memory_space<vmem>>, %arg4: memref<2x8x32xf32, #tpu.memory_space<vmem>>) attributes {dimension_semantics = [#tpu.dimension_semantics<parallel>, #tpu.dimension_semantics<parallel>], iteration_bounds = array<i64: 1, 1>, scalar_prefetch = 0 : i64, scratch_operands = 0 : i64, tpu.core_type = #tpu.core_type<tc>, window_params = [{transform_indices = @transform_0, window_bounds = array<i64: 16, 32>}, {transform_indices = @transform_1, window_bounds = array<i64: 32, 32>}, {transform_indices = @transform_2, window_bounds = array<i64: 2, 8, 32>}]} {
    %c0 = arith.constant 0 : index
    %c0_0 = arith.constant 0 : index
    %0 = vector.load %arg2[%c0, %c0_0] : memref<16x32xf32, #tpu.memory_space<vmem>>, vector<16x32xf32>
    %1 = arith.truncf %0 : vector<16x32xf32> to vector<16x32xbf16>
    %c0_1 = arith.constant 0 : index
    %c0_2 = arith.constant 0 : index
    %2 = vector.load %arg3[%c0_1, %c0_2] : memref<32x32xbf16, #tpu.memory_space<vmem>>, vector<32x32xbf16>
    %cst = arith.constant dense<0.000000e+00> : vector<16x32xf32>
    %3 = tpu.matmul %1, %2, %cst {dimension_numbers = #tpu.dot_dimension_numbers<[1], [0], [0], [1], [0, 0, 1, 1], [], []>} : vector<16x32xbf16>, vector<32x32xbf16>, vector<16x32xf32> -> vector<16x32xf32>
    %4 = vector.shape_cast %3 : vector<16x32xf32> to vector<8x2x32xf32>
    %5 = tpu.transpose %4, [1, 0, 2] : vector<8x2x32xf32> -> vector<2x8x32xf32>
    %c0_3 = arith.constant 0 : index
    %c0_4 = arith.constant 0 : index
    %c0_5 = arith.constant 0 : index
    %6 = vector.load %arg4[%c0_3, %c0_4, %c0_5] : memref<2x8x32xf32, #tpu.memory_space<vmem>>, vector<2x8x32xf32>
    tpu.vector_store %arg4[%c0_3, %c0_4, %c0_5], %5 {strides = array<i32>} : memref<2x8x32xf32, #tpu.memory_space<vmem>>, vector<2x8x32xf32>,
    return
  }
  func.func @transform_0(%arg0: i32, %arg1: i32) -> (i32, i32) {
    %c0_i32 = arith.constant 0 : i32
    %c0_i32_0 = arith.constant 0 : i32
    return %arg0, %c0_i32 : i32, i32
  }
  func.func @transform_1(%arg0: i32, %arg1: i32) -> (i32, i32) {
    %c0_i32 = arith.constant 0 : i32
    %c0_i32_0 = arith.constant 0 : i32
    return %c0_i32, %arg1 : i32, i32
  }
  func.func @transform_2(%arg0: i32, %arg1: i32) -> (i32, i32, i32) {
    %c0_i32 = arith.constant 0 : i32
    %c0_i32_0 = arith.constant 0 : i32
    return %c0_i32, %arg0, %arg1 : i32, i32, i32
  }
}

module attributes {stable_mosaic.version = 11 : i64} {
  func.func @decoder_block_kernel(%arg0: i32, %arg1: memref<16x32xf32, #tpu.memory_space<vmem>>, %arg2: memref<1x32xf32, #tpu.memory_space<vmem>>, %arg3: memref<1x32xf32, #tpu.memory_space<vmem>>, %arg4: memref<32x32xbf16, #tpu.memory_space<vmem>>, %arg5: memref<32x32xbf16, #tpu.memory_space<vmem>>, %arg6: memref<32x32xbf16, #tpu.memory_space<vmem>>, %arg7: memref<1x32xf32, #tpu.memory_space<vmem>>, %arg8: memref<1x32xf32, #tpu.memory_space<vmem>>, %arg9: memref<1x32xf32, #tpu.memory_space<vmem>>, %arg10: memref<32x32xbf16, #tpu.memory_space<vmem>>, %arg11: memref<1x32xf32, #tpu.memory_space<vmem>>, %arg12: memref<1x32xf32, #tpu.memory_space<vmem>>, %arg13: memref<1x32xf32, #tpu.memory_space<vmem>>, %arg14: memref<32x128xbf16, #tpu.memory_space<vmem>>, %arg15: memref<1x128xf32, #tpu.memory_space<vmem>>, %arg16: memref<128x32xbf16, #tpu.memory_space<vmem>>, %arg17: memref<1x32xf32, #tpu.memory_space<vmem>>, %arg18: memref<16x32xf32, #tpu.memory_space<vmem>>) attributes {dimension_semantics = [#tpu.dimension_semantics<parallel>], iteration_bounds = array<i64: 1>, scalar_prefetch = 0 : i64, scratch_operands = 0 : i64, tpu.core_type = #tpu.core_type<tc>, window_params = [{transform_indices = @transform_0, window_bounds = array<i64: 16, 32>}, {pipeline_mode = #tpu.pipeline_mode<synchronous>, transform_indices = @transform_1, window_bounds = array<i64: 1, 32>}, {pipeline_mode = #tpu.pipeline_mode<synchronous>, transform_indices = @transform_2, window_bounds = array<i64: 1, 32>}, {pipeline_mode = #tpu.pipeline_mode<synchronous>, transform_indices = @transform_3, window_bounds = array<i64: 32, 32>}, {pipeline_mode = #tpu.pipeline_mode<synchronous>, transform_indices = @transform_4, window_bounds = array<i64: 32, 32>}, {pipeline_mode = #tpu.pipeline_mode<synchronous>, transform_indices = @transform_5, window_bounds = array<i64: 32, 32>}, {pipeline_mode = #tpu.pipeline_mode<synchronous>, transform_indices = @transform_6, window_bounds = array<i64: 1, 32>}, {pipeline_mode = #tpu.pipeline_mode<synchronous>, transform_indices = @transform_7, window_bounds = array<i64: 1, 32>}, {pipeline_mode = #tpu.pipeline_mode<synchronous>, transform_indices = @transform_8, window_bounds = array<i64: 1, 32>}, {pipeline_mode = #tpu.pipeline_mode<synchronous>, transform_indices = @transform_9, window_bounds = array<i64: 32, 32>}, {pipeline_mode = #tpu.pipeline_mode<synchronous>, transform_indices = @transform_10, window_bounds = array<i64: 1, 32>}, {pipeline_mode = #tpu.pipeline_mode<synchronous>, transform_indices = @transform_11, window_bounds = array<i64: 1, 32>}, {pipeline_mode = #tpu.pipeline_mode<synchronous>, transform_indices = @transform_12, window_bounds = array<i64: 1, 32>}, {pipeline_mode = #tpu.pipeline_mode<synchronous>, transform_indices = @transform_13, window_bounds = array<i64: 32, 128>}, {pipeline_mode = #tpu.pipeline_mode<synchronous>, transform_indices = @transform_14, window_bounds = array<i64: 1, 128>}, {pipeline_mode = #tpu.pipeline_mode<synchronous>, transform_indices = @transform_15, window_bounds = array<i64: 128, 32>}, {pipeline_mode = #tpu.pipeline_mode<synchronous>, transform_indices = @transform_16, window_bounds = array<i64: 1, 32>}, {transform_indices = @transform_17, window_bounds = array<i64: 16, 32>}]} {
    %c0 = arith.constant 0 : index
    %c0_0 = arith.constant 0 : index
    %0 = vector.load %arg1[%c0, %c0_0] : memref<16x32xf32, #tpu.memory_space<vmem>>, vector<16x32xf32>
    %c0_1 = arith.constant 0 : index
    %c0_2 = arith.constant 0 : index
    %1 = vector.load %arg2[%c0_1, %c0_2] : memref<1x32xf32, #tpu.memory_space<vmem>>, vector<1x32xf32>
    %c0_3 = arith.constant 0 : index
    %c0_4 = arith.constant 0 : index
    %2 = vector.load %arg3[%c0_3, %c0_4] : memref<1x32xf32, #tpu.memory_space<vmem>>, vector<1x32xf32>
    %cst = arith.constant dense<0.000000e+00> : vector<16xf32>
    %3 = vector.multi_reduction <add>, %0, %cst [1] : vector<16x32xf32> to vector<16xf32>
    %4 = vector.shape_cast %3 : vector<16xf32> to vector<16x1xf32>
    %cst_5 = arith.constant 3.200000e+01 : f32
    %5 = vector.broadcast %cst_5 : f32 to vector<16x1xf32>
    %6 = arith.divf %4, %5 : vector<16x1xf32>
    %7 = vector.broadcast %6 : vector<16x1xf32> to vector<16x32xf32>
    %8 = arith.subf %0, %7 : vector<16x32xf32>
    %9 = arith.mulf %8, %8 : vector<16x32xf32>
    %cst_6 = arith.constant dense<0.000000e+00> : vector<16xf32>
    %10 = vector.multi_reduction <add>, %9, %cst_6 [1] : vector<16x32xf32> to vector<16xf32>
    %11 = vector.shape_cast %10 : vector<16xf32> to vector<16x1xf32>
    %cst_7 = arith.constant 3.200000e+01 : f32
    %12 = vector.broadcast %cst_7 : f32 to vector<16x1xf32>
    %13 = arith.divf %11, %12 : vector<16x1xf32>
    %14 = vector.broadcast %6 : vector<16x1xf32> to vector<16x32xf32>
    %15 = arith.subf %0, %14 : vector<16x32xf32>
    %cst_8 = arith.constant 9.99999974E-6 : f32
    %16 = vector.broadcast %cst_8 : f32 to vector<16x1xf32>
    %17 = arith.addf %13, %16 : vector<16x1xf32>
    %18 = math.rsqrt %17 : vector<16x1xf32>
    %19 = vector.broadcast %18 : vector<16x1xf32> to vector<16x32xf32>
    %20 = arith.mulf %15, %19 : vector<16x32xf32>
    %21 = vector.broadcast %1 : vector<1x32xf32> to vector<16x32xf32>
    %22 = arith.mulf %20, %21 : vector<16x32xf32>
    %23 = vector.broadcast %2 : vector<1x32xf32> to vector<16x32xf32>
    %24 = arith.addf %22, %23 : vector<16x32xf32>
    %25 = arith.truncf %24 : vector<16x32xf32> to vector<16x32xbf16>
    %c0_9 = arith.constant 0 : index
    %c0_10 = arith.constant 0 : index
    %26 = vector.load %arg4[%c0_9, %c0_10] : memref<32x32xbf16, #tpu.memory_space<vmem>>, vector<32x32xbf16>
    %cst_11 = arith.constant dense<0.000000e+00> : vector<16x32xf32>
    %27 = tpu.matmul %25, %26, %cst_11 {dimension_numbers = #tpu.dot_dimension_numbers<[1], [0], [0], [1], [0, 0, 1, 1], [], []>} : vector<16x32xbf16>, vector<32x32xbf16>, vector<16x32xf32> -> vector<16x32xf32>
    %c0_12 = arith.constant 0 : index
    %c0_13 = arith.constant 0 : index
    %28 = vector.load %arg7[%c0_12, %c0_13] : memref<1x32xf32, #tpu.memory_space<vmem>>, vector<1x32xf32>
    %29 = vector.broadcast %28 : vector<1x32xf32> to vector<16x32xf32>
    %30 = arith.addf %27, %29 : vector<16x32xf32>
    %c0_14 = arith.constant 0 : index
    %c0_15 = arith.constant 0 : index
    %31 = vector.load %arg5[%c0_14, %c0_15] : memref<32x32xbf16, #tpu.memory_space<vmem>>, vector<32x32xbf16>
    %cst_16 = arith.constant dense<0.000000e+00> : vector<16x32xf32>
    %32 = tpu.matmul %25, %31, %cst_16 {dimension_numbers = #tpu.dot_dimension_numbers<[1], [0], [0], [1], [0, 0, 1, 1], [], []>} : vector<16x32xbf16>, vector<32x32xbf16>, vector<16x32xf32> -> vector<16x32xf32>
    %c0_17 = arith.constant 0 : index
    %c0_18 = arith.constant 0 : index
    %33 = vector.load %arg8[%c0_17, %c0_18] : memref<1x32xf32, #tpu.memory_space<vmem>>, vector<1x32xf32>
    %34 = vector.broadcast %33 : vector<1x32xf32> to vector<16x32xf32>
    %35 = arith.addf %32, %34 : vector<16x32xf32>
    %c0_19 = arith.constant 0 : index
    %c0_20 = arith.constant 0 : index
    %36 = vector.load %arg6[%c0_19, %c0_20] : memref<32x32xbf16, #tpu.memory_space<vmem>>, vector<32x32xbf16>
    %cst_21 = arith.constant dense<0.000000e+00> : vector<16x32xf32>
    %37 = tpu.matmul %25, %36, %cst_21 {dimension_numbers = #tpu.dot_dimension_numbers<[1], [0], [0], [1], [0, 0, 1, 1], [], []>} : vector<16x32xbf16>, vector<32x32xbf16>, vector<16x32xf32> -> vector<16x32xf32>
    %c0_22 = arith.constant 0 : index
    %c0_23 = arith.constant 0 : index
    %38 = vector.load %arg9[%c0_22, %c0_23] : memref<1x32xf32, #tpu.memory_space<vmem>>, vector<1x32xf32>
    %39 = vector.broadcast %38 : vector<1x32xf32> to vector<16x32xf32>
    %40 = arith.addf %37, %39 : vector<16x32xf32>
    %cst_24 = arith.constant 0.353553385 : f32
    %41 = vector.broadcast %cst_24 : f32 to vector<16x32xf32>
    %42 = arith.mulf %30, %41 : vector<16x32xf32>
    %43 = vector.shape_cast %42 : vector<16x32xf32> to vector<8x2x4x8xf32>
    %44 = tpu.transpose %43, [0, 2, 1, 3] : vector<8x2x4x8xf32> -> vector<8x4x2x8xf32>
    %45 = vector.shape_cast %44 : vector<8x4x2x8xf32> to vector<32x2x8xf32>
    %46 = arith.truncf %45 : vector<32x2x8xf32> to vector<32x2x8xbf16>
    %47 = vector.shape_cast %35 : vector<16x32xf32> to vector<8x2x4x8xf32>
    %48 = tpu.transpose %47, [0, 2, 1, 3] : vector<8x2x4x8xf32> -> vector<8x4x2x8xf32>
    %49 = vector.shape_cast %48 : vector<8x4x2x8xf32> to vector<32x2x8xf32>
    %50 = arith.truncf %49 : vector<32x2x8xf32> to vector<32x2x8xbf16>
    %51 = vector.shape_cast %40 : vector<16x32xf32> to vector<8x2x4x8xf32>
    %52 = tpu.transpose %51, [0, 2, 1, 3] : vector<8x2x4x8xf32> -> vector<8x4x2x8xf32>
    %53 = vector.shape_cast %52 : vector<8x4x2x8xf32> to vector<32x2x8xf32>
    %54 = arith.truncf %53 : vector<32x2x8xf32> to vector<32x2x8xbf16>
    "tpu.trace_start"() <{level = 10 : i32, message = "nbd,ncd->nbc"}> : () -> ()
    %cst_25 = arith.constant dense<0.000000e+00> : vector<32x2x2xf32>
    %55 = tpu.matmul %46, %50, %cst_25 {dimension_numbers = #tpu.dot_dimension_numbers<[2], [2], [1], [1], [0, 0, 0, 1, 1, 1], [0], [0]>} : vector<32x2x8xbf16>, vector<32x2x8xbf16>, vector<32x2x2xf32> -> vector<32x2x2xf32>
    "tpu.trace_stop"() : () -> ()
    %cst_26 = arith.constant dense<0xFF800000> : vector<32x2xf32>
    %56 = vector.multi_reduction <maximumf>, %55, %cst_26 [2] : vector<32x2x2xf32> to vector<32x2xf32>
    %57 = vector.shape_cast %56 : vector<32x2xf32> to vector<32x2x1xf32>
    %58 = vector.broadcast %57 : vector<32x2x1xf32> to vector<32x2x2xf32>
    %59 = arith.subf %55, %58 : vector<32x2x2xf32>
    %60 = math.exp %59 : vector<32x2x2xf32>
    %cst_27 = arith.constant dense<0.000000e+00> : vector<32x2xf32>
    %61 = vector.multi_reduction <add>, %60, %cst_27 [2] : vector<32x2x2xf32> to vector<32x2xf32>
    %62 = vector.shape_cast %61 : vector<32x2xf32> to vector<32x2x1xf32>
    %63 = vector.broadcast %62 : vector<32x2x1xf32> to vector<32x2x2xf32>
    %64 = arith.divf %60, %63 : vector<32x2x2xf32>
    %65 = arith.truncf %64 : vector<32x2x2xf32> to vector<32x2x2xbf16>
    "tpu.trace_start"() <{level = 10 : i32, message = "nbc,ncd->nbd"}> : () -> ()
    %cst_28 = arith.constant dense<0.000000e+00> : vector<32x2x8xf32>
    %66 = tpu.matmul %65, %54, %cst_28 {dimension_numbers = #tpu.dot_dimension_numbers<[2], [1], [1], [2], [0, 0, 0, 1, 1, 2], [0], [0]>} : vector<32x2x2xbf16>, vector<32x2x8xbf16>, vector<32x2x8xf32> -> vector<32x2x8xf32>
    "tpu.trace_stop"() : () -> ()
    %67 = vector.shape_cast %66 : vector<32x2x8xf32> to vector<8x4x2x8xf32>
    %68 = tpu.transpose %67, [0, 2, 1, 3] : vector<8x4x2x8xf32> -> vector<8x2x4x8xf32>
    %69 = vector.shape_cast %68 : vector<8x2x4x8xf32> to vector<16x32xf32>
    %70 = arith.truncf %69 : vector<16x32xf32> to vector<16x32xbf16>
    %c0_29 = arith.constant 0 : index
    %c0_30 = arith.constant 0 : index
    %71 = vector.load %arg10[%c0_29, %c0_30] : memref<32x32xbf16, #tpu.memory_space<vmem>>, vector<32x32xbf16>
    %cst_31 = arith.constant dense<0.000000e+00> : vector<16x32xf32>
    %72 = tpu.matmul %70, %71, %cst_31 {dimension_numbers = #tpu.dot_dimension_numbers<[1], [0], [0], [1], [0, 0, 1, 1], [], []>} : vector<16x32xbf16>, vector<32x32xbf16>, vector<16x32xf32> -> vector<16x32xf32>
    %c0_32 = arith.constant 0 : index
    %c0_33 = arith.constant 0 : index
    %73 = vector.load %arg11[%c0_32, %c0_33] : memref<1x32xf32, #tpu.memory_space<vmem>>, vector<1x32xf32>
    %74 = vector.broadcast %73 : vector<1x32xf32> to vector<16x32xf32>
    %75 = arith.addf %72, %74 : vector<16x32xf32>
    %76 = arith.addf %0, %75 : vector<16x32xf32>
    %c0_34 = arith.constant 0 : index
    %c0_35 = arith.constant 0 : index
    %77 = vector.load %arg12[%c0_34, %c0_35] : memref<1x32xf32, #tpu.memory_space<vmem>>, vector<1x32xf32>
    %c0_36 = arith.constant 0 : index
    %c0_37 = arith.constant 0 : index
    %78 = vector.load %arg13[%c0_36, %c0_37] : memref<1x32xf32, #tpu.memory_space<vmem>>, vector<1x32xf32>
    %cst_38 = arith.constant dense<0.000000e+00> : vector<16xf32>
    %79 = vector.multi_reduction <add>, %76, %cst_38 [1] : vector<16x32xf32> to vector<16xf32>
    %80 = vector.shape_cast %79 : vector<16xf32> to vector<16x1xf32>
    %cst_39 = arith.constant 3.200000e+01 : f32
    %81 = vector.broadcast %cst_39 : f32 to vector<16x1xf32>
    %82 = arith.divf %80, %81 : vector<16x1xf32>
    %83 = vector.broadcast %82 : vector<16x1xf32> to vector<16x32xf32>
    %84 = arith.subf %76, %83 : vector<16x32xf32>
    %85 = arith.mulf %84, %84 : vector<16x32xf32>
    %cst_40 = arith.constant dense<0.000000e+00> : vector<16xf32>
    %86 = vector.multi_reduction <add>, %85, %cst_40 [1] : vector<16x32xf32> to vector<16xf32>
    %87 = vector.shape_cast %86 : vector<16xf32> to vector<16x1xf32>
    %cst_41 = arith.constant 3.200000e+01 : f32
    %88 = vector.broadcast %cst_41 : f32 to vector<16x1xf32>
    %89 = arith.divf %87, %88 : vector<16x1xf32>
    %90 = vector.broadcast %82 : vector<16x1xf32> to vector<16x32xf32>
    %91 = arith.subf %76, %90 : vector<16x32xf32>
    %cst_42 = arith.constant 9.99999974E-6 : f32
    %92 = vector.broadcast %cst_42 : f32 to vector<16x1xf32>
    %93 = arith.addf %89, %92 : vector<16x1xf32>
    %94 = math.rsqrt %93 : vector<16x1xf32>
    %95 = vector.broadcast %94 : vector<16x1xf32> to vector<16x32xf32>
    %96 = arith.mulf %91, %95 : vector<16x32xf32>
    %97 = vector.broadcast %77 : vector<1x32xf32> to vector<16x32xf32>
    %98 = arith.mulf %96, %97 : vector<16x32xf32>
    %99 = vector.broadcast %78 : vector<1x32xf32> to vector<16x32xf32>
    %100 = arith.addf %98, %99 : vector<16x32xf32>
    %101 = arith.truncf %100 : vector<16x32xf32> to vector<16x32xbf16>
    %c0_43 = arith.constant 0 : index
    %c0_44 = arith.constant 0 : index
    %102 = vector.load %arg14[%c0_43, %c0_44] : memref<32x128xbf16, #tpu.memory_space<vmem>>, vector<32x128xbf16>
    %cst_45 = arith.constant dense<0.000000e+00> : vector<16x128xf32>
    %103 = tpu.matmul %101, %102, %cst_45 {dimension_numbers = #tpu.dot_dimension_numbers<[1], [0], [0], [1], [0, 0, 1, 1], [], []>} : vector<16x32xbf16>, vector<32x128xbf16>, vector<16x128xf32> -> vector<16x128xf32>
    %c0_46 = arith.constant 0 : index
    %c0_47 = arith.constant 0 : index
    %104 = vector.load %arg15[%c0_46, %c0_47] : memref<1x128xf32, #tpu.memory_space<vmem>>, vector<1x128xf32>
    %105 = vector.broadcast %104 : vector<1x128xf32> to vector<16x128xf32>
    %106 = arith.addf %103, %105 : vector<16x128xf32>
    %cst_48 = arith.constant 5.000000e-01 : f32
    %107 = vector.broadcast %cst_48 : f32 to vector<16x128xf32>
    %108 = arith.mulf %107, %106 : vector<16x128xf32>
    %cst_49 = arith.constant 4.471500e-02 : f32
    %109 = vector.broadcast %cst_49 : f32 to vector<16x128xf32>
    %110 = arith.mulf %109, %106 : vector<16x128xf32>
    %111 = arith.mulf %110, %106 : vector<16x128xf32>
    %112 = arith.mulf %111, %106 : vector<16x128xf32>
    %113 = arith.addf %106, %112 : vector<16x128xf32>
    %cst_50 = arith.constant 0.797884583 : f32
    %114 = vector.broadcast %cst_50 : f32 to vector<16x128xf32>
    %115 = arith.mulf %114, %113 : vector<16x128xf32>
    %116 = math.tanh %115 : vector<16x128xf32>
    %cst_51 = arith.constant 1.000000e+00 : f32
    %117 = vector.broadcast %cst_51 : f32 to vector<16x128xf32>
    %118 = arith.addf %117, %116 : vector<16x128xf32>
    %119 = arith.mulf %108, %118 : vector<16x128xf32>
    %120 = arith.truncf %119 : vector<16x128xf32> to vector<16x128xbf16>
    %c0_52 = arith.constant 0 : index
    %c0_53 = arith.constant 0 : index
    %121 = vector.load %arg16[%c0_52, %c0_53] : memref<128x32xbf16, #tpu.memory_space<vmem>>, vector<128x32xbf16>
    %cst_54 = arith.constant dense<0.000000e+00> : vector<16x32xf32>
    %122 = tpu.matmul %120, %121, %cst_54 {dimension_numbers = #tpu.dot_dimension_numbers<[1], [0], [0], [1], [0, 0, 1, 1], [], []>} : vector<16x128xbf16>, vector<128x32xbf16>, vector<16x32xf32> -> vector<16x32xf32>
    %c0_55 = arith.constant 0 : index
    %c0_56 = arith.constant 0 : index
    %123 = vector.load %arg17[%c0_55, %c0_56] : memref<1x32xf32, #tpu.memory_space<vmem>>, vector<1x32xf32>
    %124 = vector.broadcast %123 : vector<1x32xf32> to vector<16x32xf32>
    %125 = arith.addf %122, %124 : vector<16x32xf32>
    %126 = arith.addf %76, %125 : vector<16x32xf32>
    %c0_57 = arith.constant 0 : index
    %c0_58 = arith.constant 0 : index
    %127 = vector.load %arg18[%c0_57, %c0_58] : memref<16x32xf32, #tpu.memory_space<vmem>>, vector<16x32xf32>
    tpu.vector_store %arg18[%c0_57, %c0_58], %126 {strides = array<i32>} : memref<16x32xf32, #tpu.memory_space<vmem>>, vector<16x32xf32>,
    return
  }
  func.func @transform_0(%arg0: i32) -> (i32, i32) {
    %c0_i32 = arith.constant 0 : i32
    %c0_i32_0 = arith.constant 0 : i32
    return %arg0, %c0_i32 : i32, i32
  }
  func.func @transform_1(%arg0: i32) -> (i32, i32) {
    %c0_i32 = arith.constant 0 : i32
    %c0_i32_0 = arith.constant 0 : i32
    %c0_i32_1 = arith.constant 0 : i32
    return %c0_i32, %c0_i32_0 : i32, i32
  }
  func.func @transform_2(%arg0: i32) -> (i32, i32) {
    %c0_i32 = arith.constant 0 : i32
    %c0_i32_0 = arith.constant 0 : i32
    %c0_i32_1 = arith.constant 0 : i32
    return %c0_i32, %c0_i32_0 : i32, i32
  }
  func.func @transform_3(%arg0: i32) -> (i32, i32) {
    %c0_i32 = arith.constant 0 : i32
    %c0_i32_0 = arith.constant 0 : i32
    %c0_i32_1 = arith.constant 0 : i32
    return %c0_i32, %c0_i32_0 : i32, i32
  }
  func.func @transform_4(%arg0: i32) -> (i32, i32) {
    %c0_i32 = arith.constant 0 : i32
    %c0_i32_0 = arith.constant 0 : i32
    %c0_i32_1 = arith.constant 0 : i32
    return %c0_i32, %c0_i32_0 : i32, i32
  }
  func.func @transform_5(%arg0: i32) -> (i32, i32) {
    %c0_i32 = arith.constant 0 : i32
    %c0_i32_0 = arith.constant 0 : i32
    %c0_i32_1 = arith.constant 0 : i32
    return %c0_i32, %c0_i32_0 : i32, i32
  }
  func.func @transform_6(%arg0: i32) -> (i32, i32) {
    %c0_i32 = arith.constant 0 : i32
    %c0_i32_0 = arith.constant 0 : i32
    %c0_i32_1 = arith.constant 0 : i32
    return %c0_i32, %c0_i32_0 : i32, i32
  }
  func.func @transform_7(%arg0: i32) -> (i32, i32) {
    %c0_i32 = arith.constant 0 : i32
    %c0_i32_0 = arith.constant 0 : i32
    %c0_i32_1 = arith.constant 0 : i32
    return %c0_i32, %c0_i32_0 : i32, i32
  }
  func.func @transform_8(%arg0: i32) -> (i32, i32) {
    %c0_i32 = arith.constant 0 : i32
    %c0_i32_0 = arith.constant 0 : i32
    %c0_i32_1 = arith.constant 0 : i32
    return %c0_i32, %c0_i32_0 : i32, i32
  }
  func.func @transform_9(%arg0: i32) -> (i32, i32) {
    %c0_i32 = arith.constant 0 : i32
    %c0_i32_0 = arith.constant 0 : i32
    %c0_i32_1 = arith.constant 0 : i32
    return %c0_i32, %c0_i32_0 : i32, i32
  }
  func.func @transform_10(%arg0: i32) -> (i32, i32) {
    %c0_i32 = arith.constant 0 : i32
    %c0_i32_0 = arith.constant 0 : i32
    %c0_i32_1 = arith.constant 0 : i32
    return %c0_i32, %c0_i32_0 : i32, i32
  }
  func.func @transform_11(%arg0: i32) -> (i32, i32) {
    %c0_i32 = arith.constant 0 : i32
    %c0_i32_0 = arith.constant 0 : i32
    %c0_i32_1 = arith.constant 0 : i32
    return %c0_i32, %c0_i32_0 : i32, i32
  }
  func.func @transform_12(%arg0: i32) -> (i32, i32) {
    %c0_i32 = arith.constant 0 : i32
    %c0_i32_0 = arith.constant 0 : i32
    %c0_i32_1 = arith.constant 0 : i32
    return %c0_i32, %c0_i32_0 : i32, i32
  }
  func.func @transform_13(%arg0: i32) -> (i32, i32) {
    %c0_i32 = arith.constant 0 : i32
    %c0_i32_0 = arith.constant 0 : i32
    %c0_i32_1 = arith.constant 0 : i32
    return %c0_i32, %c0_i32_0 : i32, i32
  }
  func.func @transform_14(%arg0: i32) -> (i32, i32) {
    %c0_i32 = arith.constant 0 : i32
    %c0_i32_0 = arith.constant 0 : i32
    %c0_i32_1 = arith.constant 0 : i32
    return %c0_i32, %c0_i32_0 : i32, i32
  }
  func.func @transform_15(%arg0: i32) -> (i32, i32) {
    %c0_i32 = arith.constant 0 : i32
    %c0_i32_0 = arith.constant 0 : i32
    %c0_i32_1 = arith.constant 0 : i32
    return %c0_i32, %c0_i32_0 : i32, i32
  }
  func.func @transform_16(%arg0: i32) -> (i32, i32) {
    %c0_i32 = arith.constant 0 : i32
    %c0_i32_0 = arith.constant 0 : i32
    %c0_i32_1 = arith.constant 0 : i32
    return %c0_i32, %c0_i32_0 : i32, i32
  }
  func.func @transform_17(%arg0: i32) -> (i32, i32) {
    %c0_i32 = arith.constant 0 : i32
    %c0_i32_0 = arith.constant 0 : i32
    return %arg0, %c0_i32 : i32, i32
  }
}

</mosaic_0001>

<bundles_post_ra>
// kernel: _lambda_.5
= control target key start
LH: loop header
LB: loop body
LE: loop exit
PB: predicated region body
PF: predicated region fallthrough
CT: control target
= control target key end

     0   :  { %v266_v1 = vmov 0.0   ;;  %vm267_vm0 = vmmov 0   ;;  %s306_s0 = inlined_call_operand.vmem [shape: f32[16,32], index: 0, kind: input, shape index: {}]   ;;  %s307_s1 = inlined_call_operand.vmem [shape: bf16[32,32], index: 1, kind: input, shape index: {}]   ;;  %s308_s2 = inlined_call_operand.hbm [shape: f32[2,8,32], index: 2, kind: output, shape index: {}]  }
   0x1   :  { %v242_v0 = vld [vmem:[%s307_s1 + $0x8] sm:$0xff]   ;;  %227 = vmatprep.subr.bf16.mxu0 %v266_v1  ;;  %v243_v2 = vld [vmem:[%s307_s1] sm:$0xff]   ;;  %231 = vmatprep.mubr.msk.bf16.mxu0 %vm267_vm0, %v266_v1 }
   0x2   :  { %228 = vmatpush3.bf16.msra.mxu0 %v242_v0  ;;  %v13_v3 = vld [vmem:[%s306_s0] sm:$0xff]  ;;  %v14_v4 = vld [vmem:[%s306_s0 + $0x8] sm:$0xff] }
   0x3   :  { %7 = vsyncpa [#allocation3], 0  ;;  %229 = vmatprep.subr.bf16.mxu0 %v266_v1  ;;  %v15_v5 = vpack.c.bf16 %v14_v4, %v13_v3  ;;  %vm32_vm1 = vcmask 261120   ;;  %v268_v6 = vmov 1983009808   ;;  %v83_v8 = vlaneseq  ;;  %s270_s0 = smov [#allocation2]  }
   0x4   :  { %v81_v7 = vunpack.c.l.s4 %v268_v6  ;;  %v269_v12 = vmov 1934713408   ;;  %s208_s1 = sshll.u32 %s270_s0, 4  ;;  %s209_s1 = int_to_ptr.vmem [resolvable:$true] %s208_s1 }
   0x5   :  { %v84_v10 = vshrl.u32 %v83_v8, 7  ;;  %v123_v13 = vunpack.c.l.s4 %v269_v12  ;;  %s244_s17 = scalar_lea.vmem %s209_s1, 256  ;;  %p249_p1 = scmp.lt.s32.totalorder %s209_s1, %s209_s1 }
   0x6   :  { %230 = vmatpush3.bf16.msra.mxu0 %v243_v2  ;;  %v82_v9 = vunpack.c.0.s8 %v81_v7  ;;  %p245_p0 = scmp.ne.s32.totalorder %s209_s1, %s244_s17  ;;  %p250_p2 = scmp.lt.s32.totalorder %s244_s17, %s244_s17 }
   0x7   :  { %v124_v17 = vunpack.c.0.s8 %v123_v13 }
   0x8   :  { %v85_v11 = vsub.s32 %v82_v9, %v84_v10  ;;  %p251_p3 = por %p250_p2, %p249_p1 }
   0x9   :  { %232 = vmatmul.mubr.msk.bf16.vlgmr.msra.gmra.mxu0 %vm32_vm1, %v15_v5  ;;  %v127_v25 = vsub.s32 %v124_v17, %v84_v10 }
   0xa   :  { %p252_p4 = pnand %p251_p3, %p245_p0 }
  0xc9   :  { %v70_v14 = vpop.f32.mrf.mxu0 }
  0xca   :  { %v79_v15 = vcombine.high %v70_v14, %v70_v14  ;;  %v86_v16 = vrot.slane %v70_v14, %v85_v11 }
  0xcb   :  { %v233_v18 = vpop.f32.mrf.mxu0 }
  0xcc   :  { %v93_v19 = vrot.slane %v79_v15, %v85_v11  ;;  %v94_v20 = vcombine.high %v86_v16, %v86_v16 }
  0xcd   :  { %v73_v21 = vpop.f32.mrf.mxu0 }
  0xce   :  { %v95_v22 = vcombine.high %v93_v19, %v93_v19  ;;  %v96_v23 = vcombine.high %v73_v21, %v73_v21  ;;  %v103_v24 = vrot.slane %v73_v21, %v85_v11  ;;  %v121_v27 = vcombine.low %v86_v16, %v94_v20 }
  0xcf   :  { %v234_v26 = vpop.f32.mrf.mxu0 }
  0xd0   :  { %v130_v28 = vcombine.low %v93_v19, %v95_v22  ;;  %v110_v29 = vrot.slane %v96_v23, %v85_v11  ;;  %v111_v30 = vcombine.high %v103_v24, %v103_v24  ;;  %v128_v34 = vrot.slane %v121_v27, %v127_v25 }
  0xd2   :  { %v137_v31 = vrot.slane %v130_v28, %v127_v25  ;;  %v112_v32 = vcombine.high %v110_v29, %v110_v29  ;;  %v139_v33 = vcombine.low %v103_v24, %v111_v30 }
  0xd4   :  { %v148_v35 = vcombine.low %v110_v29, %v112_v32  ;;  %v165_v36 = vcombine.low %v128_v34, %v137_v31  ;;  %v222_v37 = vcombine.high %v128_v34, %v137_v31  ;;  %v146_v38 = vrot.slane %v139_v33, %v127_v25 }
  0xd6   :  { %v155_v39 = vrot.slane %v148_v35, %v127_v25  ;;  %v173_v42 = vrot.slane %v165_v36, %v85_v11  ;;  %v190_v43 = vrot.slane %v222_v37, %v85_v11 }
  0xd8   :  { %v166_v40 = vcombine.low %v146_v38, %v155_v39  ;;  %v223_v41 = vcombine.high %v146_v38, %v155_v39 }
  0xda   :  { %v180_v44 = vrot.slane %v166_v40, %v85_v11  ;;  %v197_v45 = vrot.slane %v223_v41, %v85_v11 }
  0xdc   :  { %v181_v46 = vcombine.low %v173_v42, %v180_v44  ;;  %v198_v47 = vcombine.low %v190_v43, %v197_v45 }
  0xde   :  { %201 = vst.msk [vmem:[#allocation2] sm:$0xff] %vm32_vm1, %v181_v46  ;;  %202 = vst.msk [vmem:[#allocation2 + $0x8] sm:$0xff] %vm32_vm1, %v198_v47 }
  0xdf   :  { %255 = shalt.err (!%p252_p4)
}
  0xe0   :  { %s271_s18 = smov 128   ;;  %s272_s19 = smov 8  }
  0xe1   :  { %214 = dma.vmem_to_hbm [thread:$0]  %s209_s1, 256, %s308_s2, [#allocation3], %s271_s18, %s271_s18, %s272_s19  }
  0xe2   :  { %264 = dma.done.wait [#allocation3], 256  }
  0xe3   :  { %265 = vsyncadd [#allocation3], 4294967040 }
  0xe4   :  { %218 = vsyncpa [#allocation3], 1 }

// kernel: _lambda_.3
= control target key start
LH: loop header
LB: loop body
LE: loop exit
PB: predicated region body
PF: predicated region fallthrough
CT: control target
= control target key end

     0   :  { %vm67_vm0 = vcmask 261120   ;;  %v6592_v42 = vmov 0.0   ;;  %vm6593_vm1 = vmmov 0   ;;  %s6595_s29 = smov 120   ;;  %vm1685_vm2 = vcmask 64512   ;;  %s6601_s22 = smov 24   ;;  %s8069_s0 = inlined_call_operand.vmem [shape: f32[16,32], index: 0, kind: input, shape index: {}]   ;;  %s8070_s1 = inlined_call_operand.vmem [shape: f32[1,32], index: 1, kind: input, shape index: {}]   ;;  %s8071_s2 = inlined_call_operand.vmem [shape: f32[1,32], index: 2, kind: input, shape index: {}]   ;;  %s8072_s5 = inlined_call_operand.vmem [shape: bf16[32,32], index: 5, kind: input, shape index: {}]   ;;  %s8073_s6 = inlined_call_operand.vmem [shape: bf16[32,32], index: 6, kind: input, shape index: {}]   ;;  %s8074_s7 = inlined_call_operand.vmem [shape: bf16[32,32], index: 7, kind: input, shape index: {}]   ;;  %s8075_s3 = inlined_call_operand.vmem [shape: f32[1,32], index: 3, kind: input, shape index: {}]   ;;  %s8076_s4 = inlined_call_operand.vmem [shape: f32[1,32], index: 4, kind: input, shape index: {}]   ;;  %s8077_s8 = inlined_call_operand.vmem [shape: f32[1,32], index: 8, kind: input, shape index: {}]   ;;  %s8078_s9 = inlined_call_operand.vmem [shape: f32[1,32], index: 9, kind: input, shape index: {}]   ;;  %s8079_s10 = inlined_call_operand.vmem [shape: f32[1,32], index: 10, kind: input, shape index: {}]   ;;  %s8080_s11 = inlined_call_operand.vmem [shape: bf16[32,32], index: 11, kind: input, shape index: {}]   ;;  %s8081_s12 = inlined_call_operand.vmem [shape: f32[1,32], index: 12, kind: input, shape index: {}]   ;;  %s8082_s15 = inlined_call_operand.vmem [shape: bf16[32,128], index: 15, kind: input, shape index: {}]   ;;  %s8083_s13 = inlined_call_operand.vmem [shape: f32[1,32], index: 13, kind: input, shape index: {}]   ;;  %s8084_s14 = inlined_call_operand.vmem [shape: f32[1,32], index: 14, kind: input, shape index: {}]   ;;  %s8085_s17 = inlined_call_operand.vmem [shape: bf16[128,32], index: 17, kind: input, shape index: {}]   ;;  %s8086_s16 = inlined_call_operand.vmem [shape: f32[1,128], index: 16, kind: input, shape index: {}]   ;;  %s8087_s18 = inlined_call_operand.vmem [shape: f32[1,32], index: 18, kind: input, shape index: {}]   ;;  %s8088_s19 = inlined_call_operand.vmem [shape: f32[16,32], index: 19, kind: output, shape index: {}]  }
   0x1   :  { %8091 = sst [smem:[#allocation2_spill]] %s8069_s0  ;;  %5961 = vmatprep.subr.bf16.mxu0 %v6592_v42  ;;  %5965 = vmatprep.mubr.msk.bf16.mxu0 %vm6593_vm1, %v6592_v42  ;;  %v5708_v53 = vld [vmem:[%s8075_s3] ss:$0 sm:$0xff]  ;;  %v6432_v61 = vld [vmem:[%s8073_s6 + $0x8] sm:$0xff]   ;;  %vm3158_vm3 = vcmask 9216   ;;  %vm3547_vm4 = vcmask 1040384  }
   0x2   :  { %8092 = sst [smem:[#allocation3_spill]] %s8070_s1  ;;  %5985 = vmatprep.subr.bf16.mxu1 %v6592_v42  ;;  %5987 = vmatprep.mubr.msk.bf16.mxu1 %vm6593_vm1, %v6592_v42  ;;  %v5709_v57 = vld [vmem:[%s8076_s4] ss:$0 sm:$0xff]  ;;  %vm3543_vm5 = vcmask 15360   ;;  %s6600_s1 = smov 8   ;;  %vm5379_vm6 = vcmask 130048  }
   0x3   :  { %8093 = sst [smem:[#allocation4_spill]] %s8071_s2  ;;  %v6433_v63 = vld [vmem:[%s8073_s6] sm:$0xff]   ;;  %vm5382_vm7 = vcmask 195584  }
   0x4   :  { %8094 = sst [smem:[#allocation5_spill]] %s8072_s5 }
   0x5   :  { %s8095_s20 = sld [smem:[#allocation2_spill]] }
   0x6   :  { %s8096_s23 = sld [smem:[#allocation3_spill]] }
   0x7   :  { %s8097_s5 = sld [smem:[#allocation4_spill]] }
   0x8   :  { %s8098_s28 = sld [smem:[#allocation5_spill]] }
   0xb   :  { %v63_v0 = vld [vmem:[%s8095_s20] sm:$0xff]  ;;  %v64_v1 = vld [vmem:[%s8095_s20 + $0x8] sm:$0xff] }
   0xc   :  { %v68_v2 = vsel %vm67_vm0, %v63_v0, 0.0  ;;  %v71_v3 = vsel %vm67_vm0, %v64_v1, 0.0  ;;  %v5706_v21 = vld [vmem:[%s8096_s23] ss:$0 sm:$0xff] }
   0xd   :  { %69 = vadd.xlane.f32.xlu0 %v68_v2  ;;  %v5707_v23 = vld [vmem:[%s8097_s5] ss:$0 sm:$0xff] }
   0xe   :  { %v6430_v43 = vld [vmem:[%s8098_s28 + $0x8] sm:$0xff]   ;;  %v6431_v44 = vld [vmem:[%s8098_s28] sm:$0xff]   ;;  %s6594_s28 = smov 112  }
   0xf   :  { %5962 = vmatpush3.bf16.msra.mxu0 %v6430_v43 }
  0x10   :  { %5963 = vmatprep.subr.bf16.mxu0 %v6592_v42 }
  0x11   :  { %72 = vadd.xlane.f32.xlu0 %v71_v3 }
  0x13   :  { %5964 = vmatpush3.bf16.msra.mxu0 %v6431_v44 }
  0x14   :  { %5969 = vmatprep.subr.bf16.mxu0 %v6592_v42 }
  0x96   :  { %v70_v4 = vpop.xlane.xlu0 %69 }
  0x97   :  { %v75_v5 = vmul.f32 0.03125, %v70_v4 }
  0x99   :  { %v77_v6 = vsub.f32 %v63_v0, %v75_v5  ;;  %v6434_v0 = vld [vmem:[%s8074_s7 + $0x8] sm:$0xff]   ;;  %v5710_v5 = vld [vmem:[%s8077_s8] ss:$0 sm:$0xff]  ;;  %s6596_s8 = smov 104  }
  0x9a   :  { %v73_v7 = vpop.xlane.xlu0 %72 }
  0x9b   :  { %v76_v8 = vmul.f32 0.03125, %v73_v7  ;;  %v79_v9 = vmul.f32 %v77_v6, %v77_v6  ;;  %v5714_v7 = vld [vmem:[%s8078_s9] ss:$0 sm:$0xff] }
  0x9d   :  { %v78_v10 = vsub.f32 %v64_v1, %v76_v8  ;;  %v81_v11 = vsel %vm67_vm0, %v79_v9, 0.0  ;;  %v6435_v1 = vld [vmem:[%s8074_s7] sm:$0xff]  }
  0x9e   :  { %82 = vadd.xlane.f32.xlu1 %v81_v11 }
  0x9f   :  { %v80_v12 = vmul.f32 %v78_v10, %v78_v10 }
  0xa1   :  { %v84_v13 = vsel %vm67_vm0, %v80_v12, 0.0 }
  0xa2   :  { %85 = vadd.xlane.f32.xlu1 %v84_v13 }
 0x127   :  { %v83_v14 = vpop.xlane.xlu1 %82 }
 0x128   :  { %v87_v15 = vmul.f32 0.03125, %v83_v14 }
 0x12a   :  { %v89_v16 = vadd.f32 1e-05, %v87_v15 }
 0x12b   :  { %v86_v17 = vpop.xlane.xlu1 %85 }
 0x12c   :  { %6448 = vrsqrt.f32 %v89_v16  ;;  %v88_v18 = vmul.f32 0.03125, %v86_v17 }
 0x12e   :  { %v90_v19 = vadd.f32 1e-05, %v88_v18 }
 0x130   :  { %6450 = vrsqrt.f32 %v90_v19 }
 0x139   :  { %v6449_v20 = vpop.eup %6448 }
 0x13a   :  { %v93_v22 = vmul.f32 %v6449_v20, %v77_v6 }
 0x13c   :  { %v101_v24 = vmul.f32 %v5706_v21, %v93_v22 }
 0x13d   :  { %v6451_v25 = vpop.eup %6450 }
 0x13e   :  { %v6718_v26 = vadd.f32 %v5707_v23, %v101_v24  ;;  %v94_v27 = vmul.f32 %v6451_v25, %v78_v10  ;;  %v378_v25 = vlaneseq }
 0x140   :  { %v113_v28 = vsel %vm67_vm0, %v6718_v26, 0.0  ;;  %v102_v29 = vmul.f32 %v5706_v21, %v94_v27 }
 0x141   :  { %114 = vadd.xlane.f32.xlu0 %v113_v28 }
 0x142   :  { %v6722_v30 = vadd.f32 %v5707_v23, %v102_v29  ;;  %v6597_v23 = vmov 1983009808  }
 0x143   :  { %v376_v24 = vunpack.c.l.s4 %v6597_v23 }
 0x144   :  { %v116_v31 = vsel %vm67_vm0, %v6722_v30, 0.0 }
 0x145   :  { %117 = vadd.xlane.f32.xlu1 %v116_v31  ;;  %v377_v29 = vunpack.c.0.s8 %v376_v24  ;;  %v379_v31 = vshrl.u32 %v378_v25, 7 }
 0x1ca   :  { %v115_v32 = vpop.xlane.xlu0 %114 }
 0x1cb   :  { %v119_v33 = vmul.f32 0.03125, %v115_v32  ;;  %v6598_v32 = vmov 1934713408  }
 0x1cd   :  { %v121_v34 = vsub.f32 %v6718_v26, %v119_v33  ;;  %v408_v33 = vunpack.c.l.s4 %v6598_v32 }
 0x1ce   :  { %v118_v35 = vpop.xlane.xlu1 %117 }
 0x1cf   :  { %v120_v36 = vmul.f32 0.03125, %v118_v35  ;;  %v123_v37 = vmul.f32 %v121_v34, %v121_v34 }
 0x1d1   :  { %v122_v38 = vsub.f32 %v6722_v30, %v120_v36  ;;  %v125_v39 = vsel %vm67_vm0, %v123_v37, 0.0  ;;  %v6819_v36 = vsub.s32 %v377_v29, %v379_v31 }
 0x1d2   :  { %126 = vadd.xlane.f32.xlu0 %v125_v39  ;;  %v409_v39 = vunpack.c.0.s8 %v408_v33 }
 0x1d3   :  { %v124_v40 = vmul.f32 %v122_v38, %v122_v38 }
 0x1d5   :  { %v128_v41 = vsel %vm67_vm0, %v124_v40, 0.0 }
 0x1d6   :  { %129 = vadd.xlane.f32.xlu1 %v128_v41 }
 0x25b   :  { %v127_v45 = vpop.xlane.xlu0 %126 }
 0x25c   :  { %v131_v46 = vmul.f32 0.03125, %v127_v45 }
 0x25e   :  { %v133_v47 = vadd.f32 1e-05, %v131_v46  ;;  %v6829_v46 = vsub.s32 %v409_v39, %v379_v31 }
 0x25f   :  { %v130_v48 = vpop.xlane.xlu1 %129 }
 0x260   :  { %6452 = vrsqrt.f32 %v133_v47  ;;  %v132_v49 = vmul.f32 0.03125, %v130_v48 }
 0x262   :  { %v134_v50 = vadd.f32 1e-05, %v132_v49 }
 0x264   :  { %6454 = vrsqrt.f32 %v134_v50 }
 0x26d   :  { %v6453_v51 = vpop.eup %6452 }
 0x26e   :  { %v137_v52 = vmul.f32 %v6453_v51, %v121_v34 }
 0x270   :  { %v145_v56 = vmul.f32 %v5708_v53, %v137_v52 }
 0x271   :  { %v6455_v54 = vpop.eup %6454 }
 0x272   :  { %v138_v55 = vmul.f32 %v6455_v54, %v122_v38  ;;  %v153_v59 = vadd.f32 %v5709_v57, %v145_v56 }
 0x274   :  { %v146_v58 = vmul.f32 %v5708_v53, %v138_v55 }
 0x276   :  { %v154_v60 = vadd.f32 %v5709_v57, %v146_v58 }
 0x278   :  { %v155_v62 = vpack.c.bf16 %v154_v60, %v153_v59 }
 0x27a   :  { %5966 = vmatmul.mubr.msk.bf16.vlgmr.msra.gmra.mxu0 %vm67_vm0, %v155_v62 }
 0x27b   :  { %5970 = vmatpush3.bf16.msra.mxu0 %v6432_v61  ;;  %5973 = vmatprep.mubr.msk.bf16.mxu0 %vm6593_vm1, %v6592_v42 }
 0x27c   :  { %5971 = vmatprep.subr.bf16.mxu0 %v6592_v42 }
 0x27f   :  { %5972 = vmatpush3.bf16.msra.mxu0 %v6433_v63 }
 0x280   :  { %5977 = vmatprep.subr.bf16.mxu0 %v6592_v42 }
 0x282   :  { %5974 = vmatmul.mubr.msk.bf16.vlgmr.msra.gmra.mxu0 %vm67_vm0, %v155_v62 }
 0x283   :  { %5978 = vmatpush3.bf16.msra.mxu0 %v6434_v0  ;;  %5981 = vmatprep.mubr.msk.bf16.mxu0 %vm6593_vm1, %v6592_v42 }
 0x284   :  { %5979 = vmatprep.subr.bf16.mxu0 %v6592_v42 }
 0x287   :  { %5980 = vmatpush3.bf16.msra.mxu0 %v6435_v1 }
 0x288   :  { %5991 = vmatprep.subr.bf16.mxu0 %v6592_v42 }
 0x28a   :  { %5982 = vmatmul.mubr.msk.bf16.vlgmr.msra.gmra.mxu0 %vm67_vm0, %v155_v62 }
 0x28b   :  { %5993 = vmatprep.mubr.msk.bf16.mxu0 %vm6593_vm1, %v6592_v42 }
 0x33a   :  { %v216_v2 = vpop.f32.mrf.mxu0 }
 0x33b   :  { %v217_v9 = vadd.f32 %v5710_v5, %v216_v2 }
 0x33c   :  { %v5967_v3 = vpop.f32.mrf.mxu0 }
 0x33d   :  { %v6787_v13 = vmul.f32 0.35355338, %v217_v9 }
 0x33e   :  { %v219_v4 = vpop.f32.mrf.mxu0 }
 0x33f   :  { %v220_v19 = vadd.f32 %v5710_v5, %v219_v4 }
 0x340   :  { %v5968_v6 = vpop.f32.mrf.mxu0 }
 0x341   :  { %v6807_v21 = vmul.f32 0.35355338, %v220_v19 }
 0x342   :  { %v280_v8 = vpop.f32.mrf.mxu0 }
 0x343   :  { %v6781_v10 = vadd.f32 %v5714_v7, %v280_v8 }
 0x344   :  { %v5975_v11 = vpop.f32.mrf.mxu0 }
 0x345   :  { %805 = vrot.lane.b32.xlu1 %v6781_v10, %s6594_s28  ;;  %799 = vrot.lane.b32.xlu0 %v6781_v10, %s6595_s29 }
 0x346   :  { %v283_v12 = vpop.f32.mrf.mxu0 }
 0x347   :  { %v6795_v16 = vadd.f32 %v5714_v7, %v283_v12 }
 0x348   :  { %v5976_v14 = vpop.f32.mrf.mxu0 }
 0x349   :  { %811 = vrot.lane.b32.xlu1 %v6781_v10, %s6596_s8  ;;  %361 = vrot.lane.b32.xlu0 %v6787_v13, %s6594_s28 }
 0x34a   :  { %v6793_v15 = vpop.f32.mrf.mxu0 }
 0x34c   :  { %v5983_v17 = vpop.f32.mrf.mxu0 }
 0x34d   :  { %355 = vrot.lane.b32.xlu1 %v6787_v13, %s6595_s29  ;;  %801 = vrot.lane.b32.xlu0 %v6795_v16, %s6595_s29 }
 0x34e   :  { %v6801_v18 = vpop.f32.mrf.mxu0 }
 0x350   :  { %v5984_v20 = vpop.f32.mrf.mxu0 }
 0x351   :  { %367 = vrot.lane.b32.xlu1 %v6787_v13, %s6596_s8  ;;  %813 = vrot.lane.b32.xlu0 %v6795_v16, %s6596_s8 }
 0x355   :  { %807 = vrot.lane.b32.xlu1 %v6795_v16, %s6594_s28  ;;  %363 = vrot.lane.b32.xlu0 %v6807_v21, %s6594_s28 }
 0x359   :  { %357 = vrot.lane.b32.xlu1 %v6807_v21, %s6595_s29 }
 0x35d   :  { %369 = vrot.lane.b32.xlu1 %v6807_v21, %s6596_s8 }
 0x3b7   :  { %v806_v22 = vpop.permute.xlu1 %805  ;;  %v800_v27 = vpop.permute.xlu0 %799 }
 0x3b8   :  { %v817_v37 = vcombine.low %v6781_v10, %v806_v22  ;;  %v818_v3 = vcombine.high %v6781_v10, %v806_v22 }
 0x3ba   :  { %v825_v44 = vrot.slane %v817_v37, %v6819_v36  ;;  %v6854_v17 = vrot.slane %v818_v3, %v6819_v36 }
 0x3bb   :  { %v812_v28 = vpop.permute.xlu1 %811  ;;  %v6822_v38 = vpop.permute.xlu0 %361 }
 0x3bc   :  { %v833_v34 = vcombine.low %v800_v27, %v812_v28  ;;  %v373_v41 = vcombine.low %v6787_v13, %v6822_v38  ;;  %v834_v62 = vcombine.high %v800_v27, %v812_v28  ;;  %v374_v33 = vcombine.high %v6787_v13, %v6822_v38 }
 0x3be   :  { %v841_v40 = vrot.slane %v833_v34, %v6819_v36  ;;  %v381_v48 = vrot.slane %v373_v41, %v6819_v36  ;;  %v6848_v8 = vrot.slane %v834_v62, %v6819_v36  ;;  %v6879_v13 = vrot.slane %v374_v33, %v6819_v36 }
 0x3bf   :  { %v6817_v35 = vpop.permute.xlu1 %355  ;;  %v6910_v3 = vpop.permute.xlu0 %801 }
 0x3c0   :  { %v849_v47 = vcombine.low %v825_v44, %v841_v40  ;;  %v850_v54 = vcombine.high %v825_v44, %v841_v40  ;;  %v865_v23 = vcombine.low %v6854_v17, %v6848_v8 }
 0x3c2   :  { %v857_v51 = vrot.slane %v849_v47, %v6829_v46  ;;  %v864_v57 = vrot.slane %v850_v54, %v6829_v46  ;;  %v873_v37 = vrot.slane %v865_v23, %v6829_v46 }
 0x3c3   :  { %v368_v43 = vpop.permute.xlu1 %367  ;;  %v6928_v23 = vpop.permute.xlu0 %813 }
 0x3c4   :  { %v389_v45 = vcombine.low %v6817_v35, %v368_v43  ;;  %v952_v53 = vcombine.high %v857_v51, %v6592_v42  ;;  %v951_v59 = vrot.slane %v857_v51, %v6819_v36  ;;  %v985_v63 = vcombine.high %v864_v57, %v6592_v42 }
 0x3c5   :  { %v984_v10 = vrot.slane %v864_v57, %v6819_v36  ;;  %v390_v29 = vcombine.high %v6817_v35, %v368_v43  ;;  %v1018_v38 = vcombine.high %v873_v37, %v6592_v42 }
 0x3c6   :  { %v397_v49 = vrot.slane %v389_v45, %v6819_v36  ;;  %v959_v56 = vrot.slane %v952_v53, %v6819_v36  ;;  %v992_v11 = vrot.slane %v985_v63, %v6819_v36  ;;  %v866_v63 = vcombine.high %v6854_v17, %v6848_v8 }
 0x3c7   :  { %v6874_v44 = vrot.slane %v390_v29, %v6819_v36  ;;  %v1025_v57 = vrot.slane %v1018_v38, %v6819_v36 }
 0x3c8   :  { %v405_v50 = vcombine.low %v381_v48, %v397_v49  ;;  %v960_v61 = vcombine.low %v951_v59, %v959_v56  ;;  %v961_v2 = vcombine.high %v951_v59, %v959_v56  ;;  %v406_v4 = vcombine.high %v381_v48, %v397_v49 }
 0x3c9   :  { %v993_v25 = vcombine.low %v984_v10, %v992_v11  ;;  %v421_v51 = vcombine.low %v6879_v13, %v6874_v44  ;;  %v880_v8 = vrot.slane %v866_v63, %v6829_v46 }
 0x3ca   :  { %v413_v52 = vrot.slane %v405_v50, %v6829_v46  ;;  %v968_v0 = vrot.slane %v960_v61, %v6829_v46  ;;  %v975_v9 = vrot.slane %v961_v2, %v6829_v46  ;;  %v420_v19 = vrot.slane %v406_v4, %v6829_v46 }
 0x3cb   :  { %v1001_v40 = vrot.slane %v993_v25, %v6829_v46  ;;  %v994_v50 = vcombine.high %v984_v10, %v992_v11 }
 0x3cc   :  { %v508_v55 = vcombine.high %v413_v52, %v6592_v42  ;;  %v507_v60 = vrot.slane %v413_v52, %v6819_v36  ;;  %v1209_v5 = vpack.c.bf16 %v968_v0, %v968_v0  ;;  %v976_v6 = vcombine.high %v968_v0, %v6592_v42 }
 0x3cd   :  { %v977_v24 = vcombine.high %v975_v9, %v6592_v42  ;;  %v1211_v28 = vpack.c.bf16 %v975_v9, %v975_v9  ;;  %v541_v32 = vcombine.high %v420_v19, %v6592_v42  ;;  %v540_v45 = vrot.slane %v420_v19, %v6819_v36  ;;  %v6918_v9 = vpop.permute.xlu1 %807 }
 0x3ce   :  { %v515_v58 = vrot.slane %v508_v55, %v6819_v36  ;;  %v1690_v12 = vsel %vm1685_vm2, %v1209_v5, 0  ;;  %v1210_v14 = vpack.c.bf16 %v976_v6, %v976_v6  ;;  %v1009_v48 = vcombine.high %v1001_v40, %v6592_v42 }
 0x3cf   :  { %5986 = vmatpush3.bf16.xpose.msra.mxu1 %v1690_v12  ;;  %v1212_v39 = vpack.c.bf16 %v977_v24, %v977_v24  ;;  %v1782_v41 = vsel %vm1685_vm2, %v1211_v28, 0  ;;  %v548_v43 = vrot.slane %v541_v32, %v6819_v36  ;;  %v1213_v49 = vpack.c.bf16 %v1001_v40, %v1001_v40 }
 0x3d0   :  { %v516_v1 = vcombine.low %v507_v60, %v515_v58  ;;  %v1736_v20 = vsel %vm1685_vm2, %v1210_v14, 0  ;;  %5997 = vmatprep.subr.bf16.mxu1 %v6592_v42  ;;  %v517_v31 = vcombine.high %v507_v60, %v515_v58  ;;  %v1214_v55 = vpack.c.bf16 %v1009_v48, %v1009_v48 }
 0x3d1   :  { %5992 = vmatpush3.bf16.xpose.msra.mxu0 %v1736_v20  ;;  %v1828_v47 = vsel %vm1685_vm2, %v1212_v39, 0  ;;  %v549_v52 = vcombine.low %v540_v45, %v548_v43  ;;  %v1008_v56 = vrot.slane %v994_v50, %v6829_v46  ;;  %v1017_v58 = vrot.slane %v873_v37, %v6819_v36  ;;  %v6939_v32 = vpop.permute.xlu1 %357 }
 0x3d2   :  { %v524_v7 = vrot.slane %v516_v1, %v6829_v46  ;;  %6003 = vmatprep.subr.bf16.mxu0 %v6592_v42  ;;  %v531_v35 = vrot.slane %v517_v31, %v6829_v46  ;;  %v1874_v59 = vsel %vm1685_vm2, %v1213_v49, 0  ;;  %v429_v60 = vrot.slane %v421_v51, %v6829_v46 }
 0x3d3   :  { %v557_v61 = vrot.slane %v549_v52, %v6829_v46  ;;  %v1920_v0 = vsel %vm1685_vm2, %v1214_v55, 0  ;;  %v1010_v1 = vcombine.high %v1008_v56, %v6592_v42  ;;  %v1026_v2 = vcombine.low %v1017_v58, %v1025_v57  ;;  %v6967_v52 = vpop.permute.xlu0 %363 }
 0x3d4   :  { %v532_v22 = vcombine.high %v524_v7, %v6592_v42  ;;  %v765_v27 = vpack.c.bf16 %v524_v7, %v524_v7  ;;  %v533_v53 = vcombine.high %v531_v35, %v6592_v42  ;;  %v767_v54 = vpack.c.bf16 %v531_v35, %v531_v35 }
 0x3d5   :  { %v1215_v4 = vpack.c.bf16 %v1008_v56, %v1008_v56  ;;  %v550_v5 = vcombine.high %v540_v45, %v548_v43  ;;  %v574_v6 = vcombine.high %v429_v60, %v6592_v42  ;;  %v565_v7 = vcombine.high %v557_v61, %v6592_v42  ;;  %v6962_v50 = vpop.permute.xlu1 %369 }
 0x3d6   :  { %v766_v34 = vpack.c.bf16 %v532_v22, %v532_v22  ;;  %5988 = vmatmul.mubr.msk.bf16.vlgmr.msra.gmra.mxu1 %vm1685_vm2, %v765_v27  ;;  %v768_v62 = vpack.c.bf16 %v533_v53, %v533_v53  ;;  %v769_v11 = vpack.c.bf16 %v557_v61, %v557_v61  ;;  %v1216_v12 = vpack.c.bf16 %v1010_v1, %v1010_v1 }
 0x3d7   :  { %5998 = vmatpush3.bf16.xpose.msra.mxu1 %v1782_v41  ;;  %5999 = vmatprep.mubr.msk.bf16.mxu1 %vm6593_vm1, %v6592_v42  ;;  %v1034_v14 = vrot.slane %v1026_v2, %v6829_v46  ;;  %v1966_v17 = vsel %vm1685_vm2, %v1215_v4, 0  ;;  %v564_v10 = vrot.slane %v550_v5, %v6829_v46  ;;  %v581_v19 = vrot.slane %v574_v6, %v6819_v36 }
 0x3d8   :  { %5994 = vmatmul.mubr.msk.bf16.vlgmr.msra.gmra.mxu0 %vm1685_vm2, %v766_v34  ;;  %6009 = vmatprep.subr.bf16.mxu1 %v6592_v42  ;;  %v770_v20 = vpack.c.bf16 %v565_v7, %v565_v7  ;;  %v1051_v22 = vcombine.high %v880_v8, %v6592_v42  ;;  %v881_v24 = vcombine.low %v6795_v16, %v6918_v9  ;;  %v2012_v27 = vsel %vm1685_vm2, %v1216_v12, 0 }
 0x3d9   :  { %6004 = vmatpush3.bf16.xpose.msra.mxu0 %v1828_v47  ;;  %6005 = vmatprep.mubr.msk.bf16.mxu0 %vm6593_vm1, %v6592_v42  ;;  %v573_v25 = vrot.slane %v429_v60, %v6819_v36  ;;  %v1042_v28 = vcombine.high %v1034_v14, %v6592_v42  ;;  %v1027_v29 = vcombine.high %v1017_v58, %v1025_v57 }
 0x3da   :  { %6015 = vmatprep.subr.bf16.mxu0 %v6592_v42  ;;  %v422_v31 = vcombine.high %v6879_v13, %v6874_v44  ;;  %v1217_v33 = vpack.c.bf16 %v1034_v14, %v1034_v14  ;;  %v897_v37 = vcombine.low %v6910_v3, %v6928_v23  ;;  %v566_v39 = vcombine.high %v564_v10, %v6592_v42 }
 0x3db   :  { %v582_v34 = vcombine.low %v573_v25, %v581_v19  ;;  %v771_v40 = vpack.c.bf16 %v564_v10, %v564_v10  ;;  %v6948_v41 = vrot.slane %v881_v24, %v6819_v36  ;;  %v1218_v44 = vpack.c.bf16 %v1042_v28, %v1042_v28 }
 0x3dc   :  { %v1041_v35 = vrot.slane %v1027_v29, %v6829_v46  ;;  %v1058_v43 = vrot.slane %v1051_v22, %v6819_v36  ;;  %v1050_v13 = vrot.slane %v880_v8, %v6819_v36  ;;  %v436_v38 = vrot.slane %v422_v31, %v6829_v46 }
 0x3dd   :  { %v2058_v45 = vsel %vm1685_vm2, %v1217_v33, 0  ;;  %v590_v47 = vrot.slane %v582_v34, %v6829_v46  ;;  %v6958_v48 = vrot.slane %v897_v37, %v6819_v36  ;;  %v772_v49 = vpack.c.bf16 %v566_v39, %v566_v39 }
 0x3de   :  { %6000 = vmatmul.mubr.msk.bf16.vlgmr.msra.gmra.mxu1 %vm1685_vm2, %v767_v54  ;;  %v2104_v53 = vsel %vm1685_vm2, %v1218_v44, 0  ;;  %v1043_v54 = vcombine.high %v1041_v35, %v6592_v42  ;;  %v1059_v55 = vcombine.low %v1050_v13, %v1058_v43  ;;  %v607_v56 = vcombine.high %v436_v38, %v6592_v42 }
 0x3df   :  { %6010 = vmatpush3.bf16.xpose.msra.mxu1 %v1874_v59  ;;  %6011 = vmatprep.mubr.msk.bf16.mxu1 %vm6593_vm1, %v6592_v42  ;;  %v913_v51 = vcombine.low %v6948_v41, %v6958_v48  ;;  %v1219_v57 = vpack.c.bf16 %v1041_v35, %v1041_v35  ;;  %v583_v58 = vcombine.high %v573_v25, %v581_v19 }
 0x3e0   :  { %6021 = vmatprep.subr.bf16.mxu1 %v6592_v42  ;;  %6006 = vmatmul.mubr.msk.bf16.vlgmr.msra.gmra.mxu0 %vm1685_vm2, %v768_v62  ;;  %v453_v59 = vcombine.low %v6939_v32, %v6962_v50  ;;  %v598_v60 = vcombine.high %v590_v47, %v6592_v42  ;;  %v437_v61 = vcombine.low %v6807_v21, %v6967_v52 }
 0x3e1   :  { %6016 = vmatpush3.bf16.xpose.msra.mxu0 %v1920_v0  ;;  %6017 = vmatprep.mubr.msk.bf16.mxu0 %vm6593_vm1, %v6592_v42  ;;  %v773_v62 = vpack.c.bf16 %v590_v47, %v590_v47  ;;  %v921_v63 = vrot.slane %v913_v51, %v6829_v46  ;;  %v1220_v0 = vpack.c.bf16 %v1043_v54, %v1043_v54  ;;  %v2150_v4 = vsel %vm1685_vm2, %v1219_v57, 0 }
 0x3e2   :  { %6027 = vmatprep.subr.bf16.mxu0 %v6592_v42  ;;  %v1067_v1 = vrot.slane %v1059_v55, %v6829_v46  ;;  %v614_v2 = vrot.slane %v607_v56, %v6819_v36  ;;  %v597_v5 = vrot.slane %v583_v58, %v6829_v46  ;;  %v6988_v6 = vrot.slane %v453_v59, %v6819_v36 }
 0x3e3   :  { %v774_v7 = vpack.c.bf16 %v598_v60, %v598_v60  ;;  %v606_v8 = vrot.slane %v436_v38, %v6819_v36  ;;  %v1084_v12 = vcombine.high %v921_v63, %v6592_v42  ;;  %v2196_v14 = vsel %vm1685_vm2, %v1220_v0, 0 }
 0x3e4   :  { %v1060_v10 = vcombine.high %v1050_v13, %v1058_v43  ;;  %v1221_v19 = vpack.c.bf16 %v1067_v1, %v1067_v1  ;;  %v599_v24 = vcombine.high %v597_v5, %v6592_v42  ;;  %v775_v25 = vpack.c.bf16 %v597_v5, %v597_v5 }
 0x3e5   :  { %v1091_v29 = vrot.slane %v1084_v12, %v6819_v36  ;;  %v1083_v31 = vrot.slane %v921_v63, %v6819_v36  ;;  %v616_v38 = vcombine.high %v606_v8, %v614_v2  ;;  %v882_v57 = vcombine.high %v6795_v16, %v6918_v9 }
 0x3e6   :  { %6012 = vmatmul.mubr.msk.bf16.vlgmr.msra.gmra.mxu1 %vm1685_vm2, %v769_v11  ;;  %v6994_v11 = vrot.slane %v437_v61, %v6819_v36  ;;  %v1074_v28 = vrot.slane %v1060_v10, %v6829_v46  ;;  %v2242_v33 = vsel %vm1685_vm2, %v1221_v19, 0  ;;  %v776_v39 = vpack.c.bf16 %v599_v24, %v599_v24 }
 0x3e7   :  { %6022 = vmatpush3.bf16.xpose.msra.mxu1 %v1966_v17  ;;  %6023 = vmatprep.mubr.msk.bf16.mxu1 %vm6593_vm1, %v6592_v42  ;;  %v1075_v17 = vcombine.high %v1067_v1, %v6592_v42  ;;  %v1092_v43 = vcombine.low %v1083_v31, %v1091_v29  ;;  %v630_v54 = vrot.slane %v616_v38, %v6829_v46 }
 0x3e8   :  { %6033 = vmatprep.subr.bf16.mxu1 %v6592_v42  ;;  %6018 = vmatmul.mubr.msk.bf16.vlgmr.msra.gmra.mxu0 %vm1685_vm2, %v770_v20  ;;  %v615_v20 = vcombine.low %v606_v8, %v614_v2  ;;  %v469_v22 = vcombine.low %v6994_v11, %v6988_v6  ;;  %v1076_v35 = vcombine.high %v1074_v28, %v6592_v42 }
 0x3e9   :  { %6028 = vmatpush3.bf16.xpose.msra.mxu0 %v2012_v27  ;;  %6029 = vmatprep.mubr.msk.bf16.mxu0 %vm6593_vm1, %v6592_v42  ;;  %v1222_v27 = vpack.c.bf16 %v1075_v17, %v1075_v17  ;;  %v1223_v13 = vpack.c.bf16 %v1074_v28, %v1074_v28  ;;  %v1100_v51 = vrot.slane %v1092_v43, %v6829_v46 }
 0x3ea   :  { %6039 = vmatprep.subr.bf16.mxu0 %v6592_v42  ;;  %v623_v34 = vrot.slane %v615_v20, %v6829_v46  ;;  %v477_v37 = vrot.slane %v469_v22, %v6829_v46  ;;  %v898_v63 = vcombine.high %v6910_v3, %v6928_v23  ;;  %v470_v9 = vcombine.high %v6994_v11, %v6988_v6 }
 0x3eb   :  { %v2288_v44 = vsel %vm1685_vm2, %v1222_v27, 0  ;;  %v1108_v61 = vcombine.high %v1100_v51, %v6592_v42  ;;  %v1225_v16 = vpack.c.bf16 %v1100_v51, %v1100_v51  ;;  %v632_v1 = vcombine.high %v630_v54, %v6592_v42 }
 0x3ec   :  { %v631_v47 = vcombine.high %v623_v34, %v6592_v42  ;;  %v639_v59 = vrot.slane %v477_v37, %v6819_v36  ;;  %v7052_v2 = vrot.slane %v882_v57, %v6819_v36  ;;  %v484_v11 = vrot.slane %v470_v9, %v6829_v46 }
 0x3ed   :  { %v1226_v5 = vpack.c.bf16 %v1108_v61, %v1108_v61  ;;  %v2426_v6 = vsel %vm1685_vm2, %v1225_v16, 0  ;;  %v454_v22 = vcombine.high %v6939_v32, %v6962_v50 }
 0x3ee   :  { %6024 = vmatmul.mubr.msk.bf16.vlgmr.msra.gmra.mxu1 %vm1685_vm2, %v771_v40  ;;  %v914_v40 = vcombine.high %v6948_v41, %v6958_v48  ;;  %v777_v48 = vpack.c.bf16 %v623_v34, %v623_v34  ;;  %v778_v56 = vpack.c.bf16 %v631_v47, %v631_v47  ;;  %v673_v27 = vcombine.high %v484_v11, %v6592_v42 }
 0x3ef   :  { %6034 = vmatpush3.bf16.xpose.msra.mxu1 %v2058_v45  ;;  %6035 = vmatprep.mubr.msk.bf16.mxu1 %vm6593_vm1, %v6592_v42  ;;  %v640_v45 = vcombine.high %v477_v37, %v6592_v42  ;;  %v2472_v10 = vsel %vm1685_vm2, %v1226_v5, 0  ;;  %v7084_v50 = vrot.slane %v454_v22, %v6819_v36 }
 0x3f0   :  { %6045 = vmatprep.subr.bf16.mxu1 %v6592_v42  ;;  %6030 = vmatmul.mubr.msk.bf16.vlgmr.msra.gmra.mxu0 %vm1685_vm2, %v772_v49  ;;  %v928_v41 = vrot.slane %v914_v40, %v6829_v46  ;;  %v1224_v49 = vpack.c.bf16 %v1076_v35, %v1076_v35  ;;  %v680_v40 = vrot.slane %v673_v27, %v6819_v36 }
 0x3f1   :  { %6040 = vmatpush3.bf16.xpose.msra.mxu0 %v2104_v53  ;;  %6041 = vmatprep.mubr.msk.bf16.mxu0 %vm6593_vm1, %v6592_v42  ;;  %v2334_v53 = vsel %vm1685_vm2, %v1223_v13, 0  ;;  %v647_v55 = vrot.slane %v640_v45, %v6819_v36  ;;  %v672_v35 = vrot.slane %v484_v11, %v6819_v36 }
 0x3f2   :  { %6051 = vmatprep.subr.bf16.mxu0 %v6592_v42  ;;  %v1117_v58 = vcombine.high %v928_v41, %v6592_v42  ;;  %v2380_v60 = vsel %vm1685_vm2, %v1224_v49, 0  ;;  %v1116_v8 = vrot.slane %v928_v41, %v6819_v36 }
 0x3f3   :  { %v648_v0 = vcombine.low %v639_v59, %v647_v55  ;;  %v681_v41 = vcombine.low %v672_v35, %v680_v40  ;;  %v682_v9 = vcombine.high %v672_v35, %v680_v40 }
 0x3f4   :  { %v1124_v23 = vrot.slane %v1117_v58, %v6819_v36 }
 0x3f5   :  { %v656_v12 = vrot.slane %v648_v0, %v6829_v46  ;;  %v689_v58 = vrot.slane %v681_v41, %v6829_v46 }
 0x3f6   :  { %6036 = vmatmul.mubr.msk.bf16.vlgmr.msra.gmra.mxu1 %vm1685_vm2, %v773_v62  ;;  %v1093_v62 = vcombine.high %v1083_v31, %v1091_v29  ;;  %v1125_v20 = vcombine.low %v1116_v8, %v1124_v23  ;;  %v438_v31 = vcombine.high %v6807_v21, %v6967_v52  ;;  %v1126_v38 = vcombine.high %v1116_v8, %v1124_v23 }
 0x3f7   :  { %6046 = vmatpush3.bf16.xpose.msra.mxu1 %v2150_v4  ;;  %6047 = vmatprep.mubr.msk.bf16.mxu1 %vm6593_vm1, %v6592_v42  ;;  %v779_v4 = vpack.c.bf16 %v630_v54, %v630_v54  ;;  %v664_v28 = vcombine.high %v656_v12, %v6592_v42 }
 0x3f8   :  { %6057 = vmatprep.subr.bf16.mxu1 %v6592_v42  ;;  %6042 = vmatmul.mubr.msk.bf16.vlgmr.msra.gmra.mxu0 %vm1685_vm2, %v774_v7  ;;  %v1107_v3 = vrot.slane %v1093_v62, %v6829_v46  ;;  %v7057_v7 = vrot.slane %v898_v63, %v6819_v36  ;;  %v1133_v32 = vrot.slane %v1125_v20, %v6829_v46 }
 0x3f9   :  { %6052 = vmatpush3.bf16.xpose.msra.mxu0 %v2196_v14  ;;  %6053 = vmatprep.mubr.msk.bf16.mxu0 %vm6593_vm1, %v6592_v42  ;;  %v780_v14 = vpack.c.bf16 %v632_v1, %v632_v1  ;;  %v7094_v52 = vrot.slane %v438_v31, %v6819_v36  ;;  %v697_v1 = vcombine.high %v689_v58, %v6592_v42 }
 0x3fa   :  { %6063 = vmatprep.subr.bf16.mxu0 %v6592_v42  ;;  %v929_v17 = vcombine.low %v7052_v2, %v7057_v7  ;;  %v1109_v19 = vcombine.high %v1107_v3, %v6592_v42  ;;  %v1227_v24 = vpack.c.bf16 %v1107_v3, %v1107_v3  ;;  %v1141_v13 = vcombine.high %v1133_v32, %v6592_v42 }
 0x3fb   :  { %v1229_v45 = vpack.c.bf16 %v1133_v32, %v1133_v32  ;;  %v485_v47 = vcombine.low %v7094_v52, %v7084_v50  ;;  %v486_v20 = vcombine.high %v7094_v52, %v7084_v50 }
 0x3fc   :  { %v937_v29 = vrot.slane %v929_v17, %v6829_v46  ;;  %v1228_v34 = vpack.c.bf16 %v1109_v19, %v1109_v19  ;;  %v2518_v37 = vsel %vm1685_vm2, %v1227_v24, 0  ;;  %v1230_v51 = vpack.c.bf16 %v1141_v13, %v1141_v13 }
 0x3fd   :  { %v493_v57 = vrot.slane %v485_v47, %v6829_v46 }
 0x3fe   :  { %6048 = vmatmul.mubr.msk.bf16.vlgmr.msra.gmra.mxu1 %vm1685_vm2, %v775_v25  ;;  %v649_v25 = vcombine.high %v639_v59, %v647_v55  ;;  %v1150_v21 = vcombine.high %v937_v29, %v6592_v42  ;;  %v2564_v43 = vsel %vm1685_vm2, %v1228_v34, 0  ;;  %v1149_v55 = vrot.slane %v937_v29, %v6819_v36 }
 0x3ff   :  { %6058 = vmatpush3.bf16.xpose.msra.mxu1 %v2242_v33  ;;  %6059 = vmatprep.mubr.msk.bf16.mxu1 %vm6593_vm1, %v6592_v42  ;;  %v781_v33 = vpack.c.bf16 %v656_v12, %v656_v12  ;;  %v2656_v61 = vsel %vm1685_vm2, %v1230_v51, 0  ;;  %v706_v0 = vcombine.high %v493_v57, %v6592_v42  ;;  %v705_v12 = vrot.slane %v493_v57, %v6819_v36 }
 0x400   :  { %6069 = vmatprep.subr.bf16.mxu1 %v6592_v42  ;;  %6054 = vmatmul.mubr.msk.bf16.vlgmr.msra.gmra.mxu0 %vm1685_vm2, %v776_v39  ;;  %v663_v39 = vrot.slane %v649_v25, %v6829_v46  ;;  %v1157_v54 = vrot.slane %v1150_v21, %v6819_v36  ;;  %v500_v34 = vrot.slane %v486_v20, %v6829_v46 }
 0x401   :  { %6064 = vmatpush3.bf16.xpose.msra.mxu0 %v2288_v44  ;;  %6065 = vmatprep.mubr.msk.bf16.mxu0 %vm6593_vm1, %v6592_v42  ;;  %v782_v44 = vpack.c.bf16 %v664_v28, %v664_v28  ;;  %v713_v8 = vrot.slane %v706_v0, %v6819_v36 }
 0x402   :  { %6075 = vmatprep.subr.bf16.mxu0 %v6592_v42  ;;  %v783_v49 = vpack.c.bf16 %v663_v39, %v663_v39  ;;  %v1158_v63 = vcombine.low %v1149_v55, %v1157_v54  ;;  %v739_v52 = vcombine.high %v500_v34, %v6592_v42 }
 0x403   :  { %v714_v22 = vcombine.low %v705_v12, %v713_v8  ;;  %v715_v21 = vcombine.high %v705_v12, %v713_v8 }
 0x404   :  { %v1166_v3 = vrot.slane %v1158_v63, %v6829_v46  ;;  %v746_v41 = vrot.slane %v739_v52, %v6819_v36 }
 0x405   :  { %v722_v32 = vrot.slane %v714_v22, %v6829_v46  ;;  %v729_v47 = vrot.slane %v715_v21, %v6829_v46 }
 0x406   :  { %6060 = vmatmul.mubr.msk.bf16.vlgmr.msra.gmra.mxu1 %vm1685_vm2, %v777_v48  ;;  %v665_v48 = vcombine.high %v663_v39, %v6592_v42  ;;  %v1174_v17 = vcombine.high %v1166_v3, %v6592_v42  ;;  %v1233_v19 = vpack.c.bf16 %v1166_v3, %v1166_v3 }
 0x407   :  { %6070 = vmatpush3.bf16.xpose.msra.mxu1 %v2334_v53  ;;  %6071 = vmatprep.mubr.msk.bf16.mxu1 %vm6593_vm1, %v6592_v42  ;;  %v1140_v53 = vrot.slane %v1126_v38, %v6829_v46  ;;  %v730_v35 = vcombine.high %v722_v32, %v6592_v42  ;;  %v731_v57 = vcombine.high %v729_v47, %v6592_v42 }
 0x408   :  { %6081 = vmatprep.subr.bf16.mxu1 %v6592_v42  ;;  %6066 = vmatmul.mubr.msk.bf16.vlgmr.msra.gmra.mxu0 %vm1685_vm2, %v778_v56  ;;  %v2610_v56 = vsel %vm1685_vm2, %v1229_v45, 0  ;;  %v784_v59 = vpack.c.bf16 %v665_v48, %v665_v48  ;;  %v1234_v27 = vpack.c.bf16 %v1174_v17, %v1174_v17 }
 0x409   :  { %6076 = vmatpush3.bf16.xpose.msra.mxu0 %v2380_v60  ;;  %6077 = vmatprep.mubr.msk.bf16.mxu0 %vm6593_vm1, %v6592_v42  ;;  %v930_v60 = vcombine.high %v7052_v2, %v7057_v7  ;;  %v1142_v62 = vcombine.high %v1140_v53, %v6592_v42  ;;  %v1231_v16 = vpack.c.bf16 %v1140_v53, %v1140_v53 }
 0x40a   :  { %6087 = vmatprep.subr.bf16.mxu0 %v6592_v42  ;;  %v696_v7 = vrot.slane %v682_v9, %v6829_v46  ;;  %v790_v48 = vpack.c.bf16 %v730_v35, %v730_v35  ;;  %v792_v63 = vpack.c.bf16 %v731_v57, %v731_v57 }
 0x40b   :  { %v944_v2 = vrot.slane %v930_v60, %v6829_v46  ;;  %v1232_v5 = vpack.c.bf16 %v1142_v62, %v1142_v62  ;;  %v2702_v23 = vsel %vm1685_vm2, %v1231_v16, 0 }
 0x40c   :  { %v698_v24 = vcombine.high %v696_v7, %v6592_v42  ;;  %v787_v25 = vpack.c.bf16 %v696_v7, %v696_v7 }
 0x40d   :  { %v1183_v11 = vcombine.high %v944_v2, %v6592_v42  ;;  %v1182_v31 = vrot.slane %v944_v2, %v6819_v36 }
 0x40e   :  { %6072 = vmatmul.mubr.msk.bf16.vlgmr.msra.gmra.mxu1 %vm1685_vm2, %v779_v4  ;;  %v785_v4 = vpack.c.bf16 %v689_v58, %v689_v58  ;;  %v788_v50 = vpack.c.bf16 %v698_v24, %v698_v24  ;;  %v791_v58 = vpack.c.bf16 %v729_v47, %v729_v47 }
 0x40f   :  { %6082 = vmatpush3.bf16.xpose.msra.mxu1 %v2426_v6  ;;  %6083 = vmatprep.mubr.msk.bf16.mxu1 %vm6593_vm1, %v6592_v42  ;;  %v786_v6 = vpack.c.bf16 %v697_v1, %v697_v1  ;;  %v1190_v29 = vrot.slane %v1183_v11, %v6819_v36 }
 0x410   :  { %6093 = vmatprep.subr.bf16.mxu1 %v6592_v42  ;;  %6078 = vmatmul.mubr.msk.bf16.vlgmr.msra.gmra.mxu0 %vm1685_vm2, %v780_v14  ;;  %v2748_v14 = vsel %vm1685_vm2, %v1232_v5, 0 }
 0x411   :  { %6088 = vmatpush3.bf16.xpose.msra.mxu0 %v2472_v10  ;;  %6089 = vmatprep.mubr.msk.bf16.mxu0 %vm6593_vm1, %v6592_v42  ;;  %v1159_v10 = vcombine.high %v1149_v55, %v1157_v54  ;;  %v1191_v40 = vcombine.low %v1182_v31, %v1190_v29  ;;  %v1192_v54 = vcombine.high %v1182_v31, %v1190_v29 }
 0x412   :  { %6099 = vmatprep.subr.bf16.mxu0 %v6592_v42 }
 0x413   :  { %v1173_v28 = vrot.slane %v1159_v10, %v6829_v46  ;;  %v1199_v38 = vrot.slane %v1191_v40, %v6829_v46  ;;  %v1206_v60 = vrot.slane %v1192_v54, %v6829_v46 }
 0x415   :  { %v1175_v39 = vcombine.high %v1173_v28, %v6592_v42  ;;  %v1207_v53 = vcombine.high %v1199_v38, %v6592_v42  ;;  %v1237_v55 = vpack.c.bf16 %v1199_v38, %v1199_v38  ;;  %v1208_v9 = vcombine.high %v1206_v60, %v6592_v42 }
 0x416   :  { %6084 = vmatmul.mubr.msk.bf16.vlgmr.msra.gmra.mxu1 %vm1685_vm2, %v781_v33  ;;  %v2794_v33 = vsel %vm1685_vm2, %v1233_v19, 0  ;;  %v1239_v0 = vpack.c.bf16 %v1206_v60, %v1206_v60 }
 0x417   :  { %6094 = vmatpush3.bf16.xpose.msra.mxu1 %v2518_v37  ;;  %6095 = vmatprep.mubr.msk.bf16.mxu1 %vm6593_vm1, %v6592_v42  ;;  %v2840_v37 = vsel %vm1685_vm2, %v1234_v27, 0  ;;  %v1236_v13 = vpack.c.bf16 %v1175_v39, %v1175_v39  ;;  %v1240_v5 = vpack.c.bf16 %v1208_v9, %v1208_v9 }
 0x418   :  { %6105 = vmatprep.subr.bf16.mxu1 %v6592_v42  ;;  %6090 = vmatmul.mubr.msk.bf16.vlgmr.msra.gmra.mxu0 %vm1685_vm2, %v782_v44  ;;  %v1235_v44 = vpack.c.bf16 %v1173_v28, %v1173_v28  ;;  %v3070_v3 = vsel %vm1685_vm2, %v1239_v0, 0 }
 0x419   :  { %6100 = vmatpush3.bf16.xpose.msra.mxu0 %v2564_v43  ;;  %6101 = vmatprep.mubr.msk.bf16.mxu0 %vm6593_vm1, %v6592_v42  ;;  %v789_v43 = vpack.c.bf16 %v722_v32, %v722_v32  ;;  %v2932_v51 = vsel %vm1685_vm2, %v1236_v13, 0  ;;  %v3116_v8 = vsel %vm1685_vm2, %v1240_v5, 0 }
 0x41a   :  { %6111 = vmatprep.subr.bf16.mxu0 %v6592_v42  ;;  %v2886_v45 = vsel %vm1685_vm2, %v1235_v44, 0  ;;  %v7232_v44 = vld [vmem:[%s8079_s10] ss:$0 sm:$0xff] }
 0x41e   :  { %6096 = vmatmul.mubr.msk.bf16.vlgmr.msra.gmra.mxu1 %vm1685_vm2, %v783_v49  ;;  %v738_v49 = vrot.slane %v500_v34, %v6819_v36 }
 0x41f   :  { %6106 = vmatpush3.bf16.xpose.msra.mxu1 %v2610_v56  ;;  %6107 = vmatprep.mubr.msk.bf16.mxu1 %vm6593_vm1, %v6592_v42 }
 0x420   :  { %6117 = vmatprep.subr.bf16.mxu1 %v6592_v42  ;;  %6102 = vmatmul.mubr.msk.bf16.vlgmr.msra.gmra.mxu0 %vm1685_vm2, %v784_v59  ;;  %v747_v56 = vcombine.low %v738_v49, %v746_v41  ;;  %v1238_v59 = vpack.c.bf16 %v1207_v53, %v1207_v53  ;;  %v748_v1 = vcombine.high %v738_v49, %v746_v41 }
 0x421   :  { %6112 = vmatpush3.bf16.xpose.msra.mxu0 %v2656_v61  ;;  %6113 = vmatprep.mubr.msk.bf16.mxu0 %vm6593_vm1, %v6592_v42  ;;  %v2978_v61 = vsel %vm1685_vm2, %v1237_v55, 0 }
 0x422   :  { %6123 = vmatprep.subr.bf16.mxu0 %v6592_v42  ;;  %v755_v62 = vrot.slane %v747_v56, %v6829_v46  ;;  %v3024_v16 = vsel %vm1685_vm2, %v1238_v59, 0 }
 0x424   :  { %v763_v2 = vcombine.high %v755_v62, %v6592_v42 }
 0x426   :  { %6108 = vmatmul.mubr.msk.bf16.vlgmr.msra.gmra.mxu1 %vm1685_vm2, %v785_v4  ;;  %v793_v4 = vpack.c.bf16 %v755_v62, %v755_v62  ;;  %v794_v7 = vpack.c.bf16 %v763_v2, %v763_v2 }
 0x427   :  { %6118 = vmatpush3.bf16.xpose.msra.mxu1 %v2702_v23  ;;  %6119 = vmatprep.mubr.msk.bf16.mxu1 %vm6593_vm1, %v6592_v42  ;;  %v762_v23 = vrot.slane %v748_v1, %v6829_v46 }
 0x428   :  { %6129 = vmatprep.subr.bf16.mxu1 %v6592_v42  ;;  %6114 = vmatmul.mubr.msk.bf16.vlgmr.msra.gmra.mxu0 %vm1685_vm2, %v786_v6 }
 0x429   :  { %6124 = vmatpush3.bf16.xpose.msra.mxu0 %v2748_v14  ;;  %6125 = vmatprep.mubr.msk.bf16.mxu0 %vm6593_vm1, %v6592_v42  ;;  %v764_v6 = vcombine.high %v762_v23, %v6592_v42  ;;  %v795_v11 = vpack.c.bf16 %v762_v23, %v762_v23 }
 0x42a   :  { %6135 = vmatprep.subr.bf16.mxu0 %v6592_v42 }
 0x42b   :  { %v796_v12 = vpack.c.bf16 %v764_v6, %v764_v6 }
 0x42e   :  { %6120 = vmatmul.mubr.msk.bf16.vlgmr.msra.gmra.mxu1 %vm1685_vm2, %v787_v25 }
 0x42f   :  { %6130 = vmatpush3.bf16.xpose.msra.mxu1 %v2794_v33  ;;  %6131 = vmatprep.mubr.msk.bf16.mxu1 %vm6593_vm1, %v6592_v42 }
 0x430   :  { %6141 = vmatprep.subr.bf16.mxu1 %v6592_v42  ;;  %6126 = vmatmul.mubr.msk.bf16.vlgmr.msra.gmra.mxu0 %vm1685_vm2, %v788_v50 }
 0x431   :  { %6136 = vmatpush3.bf16.xpose.msra.mxu0 %v2840_v37  ;;  %6137 = vmatprep.mubr.msk.bf16.mxu0 %vm6593_vm1, %v6592_v42 }
 0x432   :  { %6147 = vmatprep.subr.bf16.mxu0 %v6592_v42 }
 0x436   :  { %6132 = vmatmul.mubr.msk.bf16.vlgmr.msra.gmra.mxu1 %vm1685_vm2, %v789_v43  ;;  %v7238_v43 = vadd.f32 %v7232_v44, %v6793_v15 }
 0x437   :  { %6142 = vmatpush3.bf16.xpose.msra.mxu1 %v2886_v45  ;;  %6143 = vmatprep.mubr.msk.bf16.mxu1 %vm6593_vm1, %v6592_v42 }
 0x438   :  { %6153 = vmatprep.subr.bf16.mxu1 %v6592_v42  ;;  %6138 = vmatmul.mubr.msk.bf16.vlgmr.msra.gmra.mxu0 %vm1685_vm2, %v790_v48 }
 0x439   :  { %6148 = vmatpush3.bf16.xpose.msra.mxu0 %v2932_v51  ;;  %6149 = vmatprep.mubr.msk.bf16.mxu0 %vm6593_vm1, %v6592_v42 }
 0x43a   :  { %6159 = vmatprep.subr.bf16.mxu0 %v6592_v42 }
 0x43e   :  { %6144 = vmatmul.mubr.msk.bf16.vlgmr.msra.gmra.mxu1 %vm1685_vm2, %v791_v58 }
 0x43f   :  { %6154 = vmatpush3.bf16.xpose.msra.mxu1 %v2978_v61  ;;  %6155 = vmatprep.mubr.msk.bf16.mxu1 %vm6593_vm1, %v6592_v42 }
 0x440   :  { %6165 = vmatprep.subr.bf16.mxu1 %v6592_v42  ;;  %6150 = vmatmul.mubr.msk.bf16.vlgmr.msra.gmra.mxu0 %vm1685_vm2, %v792_v63 }
 0x441   :  { %6160 = vmatpush3.bf16.xpose.msra.mxu0 %v3024_v16  ;;  %6161 = vmatprep.mubr.msk.bf16.mxu0 %vm6593_vm1, %v6592_v42 }
 0x442   :  { %6171 = vmatprep.subr.bf16.mxu0 %v6592_v42 }
 0x446   :  { %6156 = vmatmul.mubr.msk.bf16.vlgmr.msra.gmra.mxu1 %vm1685_vm2, %v793_v4 }
 0x447   :  { %6166 = vmatpush3.bf16.xpose.msra.mxu1 %v3070_v3  ;;  %6167 = vmatprep.mubr.msk.bf16.mxu1 %vm6593_vm1, %v6592_v42 }
 0x448   :  { %6177 = vmatprep.subr.bf16.mxu1 %v6592_v42  ;;  %6162 = vmatmul.mubr.msk.bf16.vlgmr.msra.gmra.mxu0 %vm1685_vm2, %v794_v7 }
 0x449   :  { %6172 = vmatpush3.bf16.xpose.msra.mxu0 %v3116_v8  ;;  %6173 = vmatprep.mubr.msk.bf16.mxu0 %vm6593_vm1, %v6592_v42 }
 0x44a   :  { %6183 = vmatprep.subr.bf16.mxu0 %v6592_v42 }
 0x44e   :  { %6168 = vmatmul.mubr.msk.bf16.vlgmr.msra.gmra.mxu1 %vm1685_vm2, %v795_v11 }
 0x44f   :  { %6179 = vmatprep.mubr.msk.bf16.mxu1 %vm6593_vm1, %v6592_v42 }
 0x450   :  { %6174 = vmatmul.mubr.msk.bf16.vlgmr.msra.gmra.mxu0 %vm1685_vm2, %v796_v12 }
 0x451   :  { %6185 = vmatprep.mubr.msk.bf16.mxu0 %vm6593_vm1, %v6592_v42 }
 0x496   :  { %v7213_v14 = vpop.f32.mrf.mxu1 }
 0x497   :  { %v3159_v17 = vsel %vm3158_vm3, %v7213_v14, -inf }
 0x498   :  { %v5989_v10 = vpop.f32.mrf.mxu1  ;;  %3160 = vmax.xlane.f32.xlu0 %v3159_v17  ;;  %v7217_v19 = vpop.f32.mrf.mxu0 }
 0x499   :  { %v3162_v20 = vsel %vm3158_vm3, %v7217_v19, -inf }
 0x49a   :  { %v1729_v22 = vpop.f32.mrf.mxu1  ;;  %3163 = vmax.xlane.f32.xlu1 %v3162_v20  ;;  %v5995_v24 = vpop.f32.mrf.mxu0 }
 0x49c   :  { %v5990_v25 = vpop.f32.mrf.mxu1  ;;  %v1775_v27 = vpop.f32.mrf.mxu0 }
 0x49e   :  { %v5996_v28 = vpop.f32.mrf.mxu0  ;;  %v7221_v29 = vpop.f32.mrf.mxu1 }
 0x49f   :  { %v3165_v31 = vsel %vm3158_vm3, %v7221_v29, -inf }
 0x4a0   :  { %v6001_v33 = vpop.f32.mrf.mxu1  ;;  %3166 = vmax.xlane.f32.xlu0 %v3165_v31  ;;  %v7225_v34 = vpop.f32.mrf.mxu0 }
 0x4a1   :  { %v3168_v37 = vsel %vm3158_vm3, %v7225_v34, -inf }
 0x4a2   :  { %v1821_v32 = vpop.f32.mrf.mxu1  ;;  %v6007_v50 = vpop.f32.mrf.mxu0 }
 0x4a4   :  { %v6002_v39 = vpop.f32.mrf.mxu1  ;;  %3169 = vmax.xlane.f32.xlu0 %v3168_v37  ;;  %v1867_v40 = vpop.f32.mrf.mxu0 }
 0x4a6   :  { %v7234_v21 = vpop.f32.mrf.mxu1  ;;  %v6008_v52 = vpop.f32.mrf.mxu0 }
 0x4a8   :  { %v6013_v35 = vpop.f32.mrf.mxu1  ;;  %v7240_v13 = vpop.f32.mrf.mxu0 }
 0x4a9   :  { %v3174_v31 = vsel %vm3158_vm3, %v7240_v13, -inf  ;;  %v3171_v35 = vsel %vm3158_vm3, %v7234_v21, -inf }
 0x4aa   :  { %v1913_v38 = vpop.f32.mrf.mxu1  ;;  %v6019_v45 = vpop.f32.mrf.mxu0 }
 0x4ab   :  { %1249 = vrot.lane.b32.xlu1 %v7238_v43, %s6594_s28 }
 0x4ac   :  { %v6014_v47 = vpop.f32.mrf.mxu1  ;;  %v1959_v41 = vpop.f32.mrf.mxu0 }
 0x4ae   :  { %v7244_v48 = vpop.f32.mrf.mxu1  ;;  %v6020_v49 = vpop.f32.mrf.mxu0 }
 0x4af   :  { %1255 = vrot.lane.b32.xlu1 %v7238_v43, %s6596_s8  ;;  %v3177_v49 = vsel %vm3158_vm3, %v7244_v48, -inf }
 0x4b0   :  { %v6025_v51 = vpop.f32.mrf.mxu1  ;;  %v7248_v53 = vpop.f32.mrf.mxu0 }
 0x4b1   :  { %v3180_v39 = vsel %vm3158_vm3, %v7248_v53, -inf }
 0x4b2   :  { %v2005_v15 = vpop.f32.mrf.mxu1  ;;  %v6031_v54 = vpop.f32.mrf.mxu0 }
 0x4b4   :  { %v6026_v55 = vpop.f32.mrf.mxu1  ;;  %v2051_v56 = vpop.f32.mrf.mxu0 }
 0x4b6   :  { %v7250_v57 = vpop.f32.mrf.mxu1  ;;  %v6032_v58 = vpop.f32.mrf.mxu0 }
 0x4b7   :  { %v3183_v56 = vsel %vm3158_vm3, %v7250_v57, -inf }
 0x4b8   :  { %v6037_v59 = vpop.f32.mrf.mxu1  ;;  %v7252_v60 = vpop.f32.mrf.mxu0 }
 0x4ba   :  { %v2097_v61 = vpop.f32.mrf.mxu1  ;;  %1243 = vrot.lane.b32.xlu0 %v7238_v43, %s6595_s29  ;;  %v6043_v62 = vpop.f32.mrf.mxu0 }
 0x4bc   :  { %v6038_v63 = vpop.f32.mrf.mxu1  ;;  %v2143_v16 = vpop.f32.mrf.mxu0 }
 0x4be   :  { %v7256_v9 = vpop.f32.mrf.mxu1  ;;  %v6044_v0 = vpop.f32.mrf.mxu0 }
 0x4bf   :  { %v3189_v63 = vsel %vm3158_vm3, %v7256_v9, -inf  ;;  %v7290_v0 = vadd.f32 %v7232_v44, %v6801_v18 }
 0x4c0   :  { %v6049_v1 = vpop.f32.mrf.mxu1  ;;  %v7258_v2 = vpop.f32.mrf.mxu0 }
 0x4c2   :  { %v2189_v4 = vpop.f32.mrf.mxu1  ;;  %v6055_v5 = vpop.f32.mrf.mxu0 }
 0x4c4   :  { %v6050_v3 = vpop.f32.mrf.mxu1  ;;  %v2235_v23 = vpop.f32.mrf.mxu0 }
 0x4c6   :  { %v7260_v7 = vpop.f32.mrf.mxu1  ;;  %v6056_v8 = vpop.f32.mrf.mxu0 }
 0x4c7   :  { %v3195_v3 = vsel %vm3158_vm3, %v7260_v7, -inf }
 0x4c8   :  { %v6061_v6 = vpop.f32.mrf.mxu1  ;;  %v7262_v11 = vpop.f32.mrf.mxu0 }
 0x4ca   :  { %v2281_v12 = vpop.f32.mrf.mxu1  ;;  %v6067_v17 = vpop.f32.mrf.mxu0 }
 0x4cc   :  { %v6062_v10 = vpop.f32.mrf.mxu1  ;;  %v2327_v20 = vpop.f32.mrf.mxu0 }
 0x4ce   :  { %v7264_v22 = vpop.f32.mrf.mxu1  ;;  %v6068_v24 = vpop.f32.mrf.mxu0 }
 0x4cf   :  { %v3201_v18 = vsel %vm3158_vm3, %v7264_v22, -inf }
 0x4d0   :  { %v6073_v25 = vpop.f32.mrf.mxu1  ;;  %v7266_v27 = vpop.f32.mrf.mxu0 }
 0x4d2   :  { %v2373_v28 = vpop.f32.mrf.mxu1  ;;  %v6079_v33 = vpop.f32.mrf.mxu0 }
 0x4d3   :  { %3175 = vmax.xlane.f32.xlu1 %v3174_v31 }
 0x4d4   :  { %v6074_v32 = vpop.f32.mrf.mxu1  ;;  %v2419_v50 = vpop.f32.mrf.mxu0 }
 0x4d6   :  { %v7270_v37 = vpop.f32.mrf.mxu1  ;;  %v6080_v40 = vpop.f32.mrf.mxu0 }
 0x4d7   :  { %3181 = vmax.xlane.f32.xlu1 %v3180_v39  ;;  %v3207_v24 = vsel %vm3158_vm3, %v7270_v37, -inf }
 0x4d8   :  { %v6085_v52 = vpop.f32.mrf.mxu1  ;;  %v7276_v38 = vpop.f32.mrf.mxu0 }
 0x4d9   :  { %3172 = vmax.xlane.f32.xlu0 %v3171_v35 }
 0x4da   :  { %v2465_v45 = vpop.f32.mrf.mxu1  ;;  %v6091_v47 = vpop.f32.mrf.mxu0 }
 0x4dc   :  { %v6086_v41 = vpop.f32.mrf.mxu1  ;;  %v2511_v51 = vpop.f32.mrf.mxu0 }
 0x4dd   :  { %3178 = vmax.xlane.f32.xlu0 %v3177_v49 }
 0x4de   :  { %v7280_v15 = vpop.f32.mrf.mxu1  ;;  %v6092_v54 = vpop.f32.mrf.mxu0 }
 0x4df   :  { %v3213_v32 = vsel %vm3158_vm3, %v7280_v15, -inf }
 0x4e0   :  { %v6097_v55 = vpop.f32.mrf.mxu1  ;;  %v7284_v58 = vpop.f32.mrf.mxu0 }
 0x4e1   :  { %3184 = vmax.xlane.f32.xlu0 %v3183_v56 }
 0x4e2   :  { %v2557_v59 = vpop.f32.mrf.mxu1  ;;  %v6103_v61 = vpop.f32.mrf.mxu0 }
 0x4e4   :  { %v6098_v62 = vpop.f32.mrf.mxu1  ;;  %v2603_v16 = vpop.f32.mrf.mxu0 }
 0x4e5   :  { %3190 = vmax.xlane.f32.xlu0 %v3189_v63 }
 0x4e6   :  { %v7292_v1 = vpop.f32.mrf.mxu1  ;;  %v6104_v4 = vpop.f32.mrf.mxu0 }
 0x4e7   :  { %v3219_v35 = vsel %vm3158_vm3, %v7292_v1, -inf }
 0x4e8   :  { %v6109_v5 = vpop.f32.mrf.mxu1  ;;  %1245 = vrot.lane.b32.xlu1 %v7290_v0, %s6595_s29  ;;  %v7298_v23 = vpop.f32.mrf.mxu0 }
 0x4e9   :  { %3196 = vmax.xlane.f32.xlu0 %v3195_v3 }
 0x4ea   :  { %v2649_v8 = vpop.f32.mrf.mxu1  ;;  %v6115_v6 = vpop.f32.mrf.mxu0 }
 0x4ec   :  { %v6110_v12 = vpop.f32.mrf.mxu1  ;;  %v2695_v44 = vpop.f32.mrf.mxu0 }
 0x4ed   :  { %3202 = vmax.xlane.f32.xlu0 %v3201_v18 }
 0x4ee   :  { %v7302_v17 = vpop.f32.mrf.mxu1  ;;  %v6116_v10 = vpop.f32.mrf.mxu0 }
 0x4ef   :  { %v3225_v51 = vsel %vm3158_vm3, %v7302_v17, -inf }
 0x4f0   :  { %v6121_v20 = vpop.f32.mrf.mxu1  ;;  %v7306_v25 = vpop.f32.mrf.mxu0 }
 0x4f1   :  { %3208 = vmax.xlane.f32.xlu0 %v3207_v24  ;;  %v3186_v24 = vsel %vm3158_vm3, %v7252_v60, -inf }
 0x4f2   :  { %v2741_v28 = vpop.f32.mrf.mxu1  ;;  %v6127_v31 = vpop.f32.mrf.mxu0 }
 0x4f4   :  { %v6122_v33 = vpop.f32.mrf.mxu1  ;;  %v2787_v50 = vpop.f32.mrf.mxu0 }
 0x4f5   :  { %3214 = vmax.xlane.f32.xlu0 %v3213_v32  ;;  %v3192_v50 = vsel %vm3158_vm3, %v7258_v2, -inf }
 0x4f6   :  { %v7310_v39 = vpop.f32.mrf.mxu1  ;;  %v6128_v40 = vpop.f32.mrf.mxu0 }
 0x4f8   :  { %v6133_v52 = vpop.f32.mrf.mxu1  ;;  %v7314_v45 = vpop.f32.mrf.mxu0 }
 0x4f9   :  { %3220 = vmax.xlane.f32.xlu0 %v3219_v35  ;;  %v3234_v61 = vsel %vm3158_vm3, %v7314_v45, -inf }
 0x4fa   :  { %v2833_v47 = vpop.f32.mrf.mxu1  ;;  %v6139_v41 = vpop.f32.mrf.mxu0 }
 0x4fc   :  { %v6134_v49 = vpop.f32.mrf.mxu1  ;;  %v2879_v54 = vpop.f32.mrf.mxu0 }
 0x4fd   :  { %3226 = vmax.xlane.f32.xlu0 %v3225_v51  ;;  %v3198_v49 = vsel %vm3158_vm3, %v7262_v11, -inf }
 0x4fe   :  { %v7318_v55 = vpop.f32.mrf.mxu1  ;;  %v6140_v56 = vpop.f32.mrf.mxu0 }
 0x500   :  { %v6145_v59 = vpop.f32.mrf.mxu1  ;;  %v7322_v62 = vpop.f32.mrf.mxu0 }
 0x501   :  { %3235 = vmax.xlane.f32.xlu0 %v3234_v61  ;;  %v3240_v5 = vsel %vm3158_vm3, %v7322_v62, -inf  ;;  %v3204_v59 = vsel %vm3158_vm3, %v7266_v27, -inf  ;;  %v3210_v61 = vsel %vm3158_vm3, %v7276_v38, -inf }
 0x502   :  { %v2925_v63 = vpop.f32.mrf.mxu1  ;;  %v6151_v16 = vpop.f32.mrf.mxu0 }
 0x503   :  { %v3216_v63 = vsel %vm3158_vm3, %v7284_v58, -inf }
 0x504   :  { %v6146_v4 = vpop.f32.mrf.mxu1  ;;  %v2971_v3 = vpop.f32.mrf.mxu0 }
 0x505   :  { %3241 = vmax.xlane.f32.xlu0 %v3240_v5  ;;  %v3222_v3 = vsel %vm3158_vm3, %v7298_v23, -inf }
 0x506   :  { %v7326_v8 = vpop.f32.mrf.mxu1  ;;  %v6152_v6 = vpop.f32.mrf.mxu0 }
 0x508   :  { %v6157_v12 = vpop.f32.mrf.mxu1  ;;  %v7328_v18 = vpop.f32.mrf.mxu0 }
 0x509   :  { %v3246_v10 = vsel %vm3158_vm3, %v7328_v18, -inf }
 0x50a   :  { %v3017_v44 = vpop.f32.mrf.mxu1  ;;  %3247 = vmax.xlane.f32.xlu0 %v3246_v10  ;;  %v6163_v20 = vpop.f32.mrf.mxu0  ;;  %v3228_v10 = vsel %vm3158_vm3, %v7306_v25, -inf }
 0x50c   :  { %v6158_v28 = vpop.f32.mrf.mxu1  ;;  %3187 = vmax.xlane.f32.xlu1 %v3186_v24  ;;  %v3063_v31 = vpop.f32.mrf.mxu0 }
 0x50e   :  { %v7334_v33 = vpop.f32.mrf.mxu1  ;;  %v6164_v32 = vpop.f32.mrf.mxu0 }
 0x510   :  { %v6169_v40 = vpop.f32.mrf.mxu1  ;;  %3193 = vmax.xlane.f32.xlu1 %v3192_v50  ;;  %v7338_v52 = vpop.f32.mrf.mxu0 }
 0x511   :  { %v3252_v47 = vsel %vm3158_vm3, %v7338_v52, -inf  ;;  %v3237_v40 = vsel %vm3158_vm3, %v7318_v55, -inf }
 0x512   :  { %v3109_v35 = vpop.f32.mrf.mxu1  ;;  %3253 = vmax.xlane.f32.xlu0 %v3252_v47  ;;  %v6175_v41 = vpop.f32.mrf.mxu0 }
 0x514   :  { %v6170_v51 = vpop.f32.mrf.mxu1  ;;  %3199 = vmax.xlane.f32.xlu1 %v3198_v49  ;;  %v3155_v54 = vpop.f32.mrf.mxu0 }
 0x516   :  { %v6176_v56 = vpop.f32.mrf.mxu0 }
 0x518   :  { %3205 = vmax.xlane.f32.xlu1 %v3204_v59 }
 0x51c   :  { %3211 = vmax.xlane.f32.xlu1 %v3210_v61 }
 0x520   :  { %3217 = vmax.xlane.f32.xlu1 %v3216_v63 }
 0x521   :  { %v3161_v16 = vpop.xlane.xlu0 %3160 }
 0x522   :  { %v3255_v4 = vsub.f32 %v7213_v14, %v3161_v16  ;;  %v3231_v14 = vsel %vm3158_vm3, %v7310_v39, -inf }
 0x523   :  { %v3164_v5 = vpop.xlane.xlu1 %3163 }
 0x524   :  { %v3287_v6 = vmul.f32 1.442695, %v3255_v4  ;;  %v3256_v12 = vsub.f32 %v7217_v19, %v3164_v5  ;;  %3223 = vmax.xlane.f32.xlu1 %v3222_v3 }
 0x526   :  { %6456 = vpow2.f32 %v3287_v6  ;;  %v3289_v44 = vmul.f32 1.442695, %v3256_v12  ;;  %v3249_v6 = vsel %vm3158_vm3, %v7334_v33, -inf }
 0x527   :  { %v1250_v28 = vpop.permute.xlu1 %1249 }
 0x528   :  { %3229 = vmax.xlane.f32.xlu1 %v3228_v10  ;;  %6458 = vpow2.f32 %v3289_v44  ;;  %v1261_v50 = vcombine.low %v7238_v43, %v1250_v28  ;;  %v1262_v35 = vcombine.high %v7238_v43, %v1250_v28 }
 0x529   :  { %v3167_v20 = vpop.xlane.xlu0 %3166 }
 0x52a   :  { %v3257_v24 = vsub.f32 %v7221_v29, %v3167_v20  ;;  %v7367_v56 = vrot.slane %v1261_v50, %v6819_v36  ;;  %v7372_v59 = vrot.slane %v1262_v35, %v6819_v36 }
 0x52b   :  { %v1256_v29 = vpop.permute.xlu1 %1255 }
 0x52c   :  { %v3291_v31 = vmul.f32 1.442695, %v3257_v24  ;;  %3232 = vmax.xlane.f32.xlu1 %v3231_v14 }
 0x52d   :  { %v3170_v32 = vpop.xlane.xlu0 %3169 }
 0x52e   :  { %6460 = vpow2.f32 %v3291_v31  ;;  %v3258_v19 = vsub.f32 %v7225_v34, %v3170_v32  ;;  %v3243_v34 = vsel %vm3158_vm3, %v7326_v8, -inf }
 0x530   :  { %v3293_v47 = vmul.f32 1.442695, %v3258_v19  ;;  %3238 = vmax.xlane.f32.xlu1 %v3237_v40 }
 0x531   :  { %v1244_v41 = vpop.permute.xlu0 %1243 }
 0x532   :  { %6462 = vpow2.f32 %v3293_v47  ;;  %v1277_v49 = vcombine.low %v1244_v41, %v1256_v29  ;;  %v1278_v51 = vcombine.high %v1244_v41, %v1256_v29 }
 0x533   :  { %v7364_v54 = vpop.eup %6456 }
 0x534   :  { %v7375_v43 = vrot.slane %v1277_v49, %v6819_v36  ;;  %v7378_v61 = vrot.slane %v1278_v51, %v6819_v36  ;;  %3244 = vmax.xlane.f32.xlu1 %v3243_v34  ;;  %v3351_v63 = vsel %vm3158_vm3, %v7364_v54, 0.0 }
 0x535   :  { %3352 = vadd.xlane.f32.xlu0 %v3351_v63  ;;  %v7392_v12 = vpop.eup %6458 }
 0x536   :  { %v1293_v16 = vcombine.low %v7367_v56, %v7375_v43  ;;  %v1294_v4 = vcombine.high %v7367_v56, %v7375_v43  ;;  %v3354_v24 = vsel %vm3158_vm3, %v7392_v12, 0.0 }
 0x538   :  { %v1301_v44 = vrot.slane %v1293_v16, %v6829_v46  ;;  %3250 = vmax.xlane.f32.xlu1 %v3249_v6 }
 0x53a   :  { %v1396_v10 = vcombine.high %v1301_v44, %v6592_v42  ;;  %v7401_v28 = vrot.slane %v1301_v44, %v6819_v36 }
 0x53b   :  { %v7396_v20 = vpop.eup %6460 }
 0x53c   :  { %3355 = vadd.xlane.f32.xlu1 %v3354_v24  ;;  %v3357_v14 = vsel %vm3158_vm3, %v7396_v20, 0.0  ;;  %v7406_v31 = vrot.slane %v1396_v10, %v6819_v36 }
 0x53d   :  { %3358 = vadd.xlane.f32.xlu0 %v3357_v14 }
 0x53e   :  { %v1404_v32 = vcombine.low %v7401_v28, %v7406_v31  ;;  %v1405_v19 = vcombine.high %v7401_v28, %v7406_v31 }
 0x53f   :  { %v7412_v50 = vpop.eup %6462 }
 0x540   :  { %v3360_v40 = vsel %vm3158_vm3, %v7412_v50, 0.0  ;;  %v1412_v35 = vrot.slane %v1404_v32, %v6829_v46 }
 0x541   :  { %3361 = vadd.xlane.f32.xlu0 %v3360_v40 }
 0x542   :  { %v1653_v47 = vpack.c.bf16 %v1412_v35, %v1412_v35  ;;  %v1420_v29 = vcombine.high %v1412_v35, %v6592_v42 }
 0x544   :  { %v3549_v41 = vsel %vm3547_vm4, %v1653_v47, 0  ;;  %v1654_v49 = vpack.c.bf16 %v1420_v29, %v1420_v29 }
 0x545   :  { %6178 = vmatpush3.bf16.msra.mxu1 %v3549_v41 }
 0x546   :  { %v3595_v51 = vsel %vm3547_vm4, %v1654_v49, 0  ;;  %6189 = vmatprep.subr.bf16.mxu1 %v6592_v42 }
 0x547   :  { %6184 = vmatpush3.bf16.msra.mxu0 %v3595_v51 }
 0x548   :  { %6195 = vmatprep.subr.bf16.mxu0 %v6592_v42 }
 0x55c   :  { %v3176_v34 = vpop.xlane.xlu1 %3175 }
 0x55d   :  { %v3260_v63 = vsub.f32 %v7240_v13, %v3176_v34 }
 0x55f   :  { %v3297_v16 = vmul.f32 1.442695, %v3260_v63 }
 0x560   :  { %v3182_v6 = vpop.xlane.xlu1 %3181 }
 0x561   :  { %6464 = vpow2.f32 %v3297_v16  ;;  %v3262_v44 = vsub.f32 %v7248_v53, %v3182_v6 }
 0x562   :  { %v3173_v10 = vpop.xlane.xlu0 %3172 }
 0x563   :  { %v3301_v24 = vmul.f32 1.442695, %v3262_v44  ;;  %v3259_v14 = vsub.f32 %v7234_v21, %v3173_v10 }
 0x565   :  { %6466 = vpow2.f32 %v3301_v24  ;;  %v3295_v32 = vmul.f32 1.442695, %v3259_v14 }
 0x566   :  { %v3179_v40 = vpop.xlane.xlu0 %3178 }
 0x567   :  { %6468 = vpow2.f32 %v3295_v32  ;;  %v3261_v35 = vsub.f32 %v7244_v48, %v3179_v40 }
 0x569   :  { %v3299_v47 = vmul.f32 1.442695, %v3261_v35 }
 0x56a   :  { %v3185_v29 = vpop.xlane.xlu0 %3184 }
 0x56b   :  { %6470 = vpow2.f32 %v3299_v47  ;;  %v3263_v13 = vsub.f32 %v7250_v57, %v3185_v29 }
 0x56d   :  { %v3303_v41 = vmul.f32 1.442695, %v3263_v13 }
 0x56e   :  { %v7427_v49 = vpop.eup %6464  ;;  %v3191_v51 = vpop.xlane.xlu0 %3190 }
 0x56f   :  { %6472 = vpow2.f32 %v3303_v41  ;;  %v3265_v53 = vsub.f32 %v7256_v9, %v3191_v51  ;;  %v3366_v21 = vsel %vm3158_vm3, %v7427_v49, 0.0 }
 0x570   :  { %3367 = vadd.xlane.f32.xlu0 %v3366_v21 }
 0x571   :  { %v3307_v34 = vmul.f32 1.442695, %v3265_v53 }
 0x572   :  { %v7432_v63 = vpop.eup %6466  ;;  %v3197_v48 = vpop.xlane.xlu0 %3196 }
 0x573   :  { %6474 = vpow2.f32 %v3307_v34  ;;  %v3267_v16 = vsub.f32 %v7260_v7, %v3197_v48  ;;  %v3372_v57 = vsel %vm3158_vm3, %v7432_v63, 0.0 }
 0x574   :  { %v7437_v6 = vpop.eup %6468  ;;  %3373 = vadd.xlane.f32.xlu0 %v3372_v57 }
 0x575   :  { %v3311_v44 = vmul.f32 1.442695, %v3267_v16  ;;  %v3363_v9 = vsel %vm3158_vm3, %v7437_v6, 0.0  ;;  %v7467_v16 = vpop.permute.xlu1 %1245 }
 0x576   :  { %v3203_v10 = vpop.xlane.xlu0 %3202  ;;  %3364 = vadd.xlane.f32.xlu1 %v3363_v9 }
 0x577   :  { %6476 = vpow2.f32 %v3311_v44  ;;  %v3269_v24 = vsub.f32 %v7264_v22, %v3203_v10 }
 0x578   :  { %v7442_v14 = vpop.eup %6470 }
 0x579   :  { %v3315_v32 = vmul.f32 1.442695, %v3269_v24  ;;  %v3369_v7 = vsel %vm3158_vm3, %v7442_v14, 0.0 }
 0x57a   :  { %v3209_v40 = vpop.xlane.xlu0 %3208  ;;  %3370 = vadd.xlane.f32.xlu1 %v3369_v7 }
 0x57b   :  { %6478 = vpow2.f32 %v3315_v32  ;;  %v3271_v35 = vsub.f32 %v7270_v37, %v3209_v40 }
 0x57c   :  { %v7447_v47 = vpop.eup %6472 }
 0x57d   :  { %v3319_v29 = vmul.f32 1.442695, %v3271_v35  ;;  %v3375_v13 = vsel %vm3158_vm3, %v7447_v47, 0.0 }
 0x57e   :  { %3376 = vadd.xlane.f32.xlu1 %v3375_v13  ;;  %v3215_v9 = vpop.xlane.xlu0 %3214 }
 0x57f   :  { %6480 = vpow2.f32 %v3319_v29 }
 0x580   :  { %v7451_v22 = vpop.eup %6474 }
 0x581   :  { %v3381_v41 = vsel %vm3158_vm3, %v7451_v22, 0.0 }
 0x582   :  { %3382 = vadd.xlane.f32.xlu1 %v3381_v41  ;;  %v7471_v35 = vpop.xlane.xlu0 %3220 }
 0x583   :  { %v3275_v3 = vsub.f32 %v7292_v1, %v7471_v35 }
 0x584   :  { %v7455_v51 = vpop.eup %6476 }
 0x585   :  { %v3387_v53 = vsel %vm3158_vm3, %v7455_v51, 0.0  ;;  %v3327_v1 = vmul.f32 1.442695, %v3275_v3 }
 0x586   :  { %3388 = vadd.xlane.f32.xlu1 %v3387_v53  ;;  %v7477_v53 = vpop.xlane.xlu0 %3226 }
 0x587   :  { %v3277_v35 = vsub.f32 %v7302_v17, %v7477_v53 }
 0x588   :  { %v7459_v37 = vpop.eup %6478 }
 0x589   :  { %v3393_v21 = vsel %vm3158_vm3, %v7459_v37, 0.0 }
 0x58a   :  { %3394 = vadd.xlane.f32.xlu1 %v3393_v21 }
 0x58c   :  { %v7463_v34 = vpop.eup %6480 }
 0x58d   :  { %v3399_v48 = vsel %vm3158_vm3, %v7463_v34, 0.0 }
 0x58e   :  { %3400 = vadd.xlane.f32.xlu1 %v3399_v48 }
 0x595   :  { %v3188_v57 = vpop.xlane.xlu1 %3187 }
 0x596   :  { %v3264_v44 = vsub.f32 %v7252_v60, %v3188_v57 }
 0x598   :  { %v3305_v10 = vmul.f32 1.442695, %v3264_v44 }
 0x599   :  { %v3194_v24 = vpop.xlane.xlu1 %3193 }
 0x59a   :  { %6482 = vpow2.f32 %v3305_v10  ;;  %v3266_v32 = vsub.f32 %v7258_v2, %v3194_v24  ;;  %v3273_v24 = vsub.f32 %v7280_v15, %v3215_v9 }
 0x59c   :  { %v3309_v7 = vmul.f32 1.442695, %v3266_v32  ;;  %v3236_v32 = vpop.xlane.xlu0 %3235 }
 0x59d   :  { %v3200_v40 = vpop.xlane.xlu1 %3199 }
 0x59e   :  { %6484 = vpow2.f32 %v3309_v7  ;;  %v3268_v29 = vsub.f32 %v7262_v11, %v3200_v40 }
 0x59f   :  { %1257 = vrot.lane.b32.xlu1 %v7290_v0, %s6596_s8 }
 0x5a0   :  { %v3313_v13 = vmul.f32 1.442695, %v3268_v29 }
 0x5a1   :  { %v3206_v41 = vpop.xlane.xlu1 %3205 }
 0x5a2   :  { %6486 = vpow2.f32 %v3313_v13  ;;  %v3270_v60 = vsub.f32 %v7266_v27, %v3206_v41  ;;  %v3242_v41 = vpop.xlane.xlu0 %3241 }
 0x5a4   :  { %v3317_v21 = vmul.f32 1.442695, %v3270_v60 }
 0x5a5   :  { %v3212_v48 = vpop.xlane.xlu1 %3211 }
 0x5a6   :  { %6488 = vpow2.f32 %v3317_v21  ;;  %v3272_v2 = vsub.f32 %v7276_v38, %v3212_v48  ;;  %v3323_v38 = vmul.f32 1.442695, %v3273_v24 }
 0x5a7   :  { %v7480_v57 = vpop.eup %6482 }
 0x5a8   :  { %v3321_v44 = vmul.f32 1.442695, %v3272_v2  ;;  %v3378_v11 = vsel %vm3158_vm3, %v7480_v57, 0.0 }
 0x5a9   :  { %v7484_v10 = vpop.xlane.xlu1 %3217  ;;  %3379 = vadd.xlane.f32.xlu0 %v3378_v11  ;;  %v3248_v11 = vpop.xlane.xlu0 %3247 }
 0x5aa   :  { %6490 = vpow2.f32 %v3321_v44 }
 0x5ab   :  { %v7487_v27 = vpop.eup %6484  ;;  %6492 = vpow2.f32 %v3323_v38 }
 0x5ac   :  { %v3384_v7 = vsel %vm3158_vm3, %v7487_v27, 0.0 }
 0x5ad   :  { %v3224_v40 = vpop.xlane.xlu1 %3223  ;;  %3385 = vadd.xlane.f32.xlu0 %v3384_v7 }
 0x5ae   :  { %v3276_v29 = vsub.f32 %v7298_v23, %v3224_v40  ;;  %v3280_v23 = vsub.f32 %v7314_v45, %v3236_v32  ;;  %v3284_v32 = vsub.f32 %v7328_v18, %v3248_v11 }
 0x5af   :  { %v7492_v13 = vpop.eup %6486 }
 0x5b0   :  { %v3390_v60 = vsel %vm3158_vm3, %v7492_v13, 0.0  ;;  %v3329_v15 = vmul.f32 1.442695, %v3276_v29  ;;  %v3282_v29 = vsub.f32 %v7322_v62, %v3242_v41  ;;  %v3345_v62 = vmul.f32 1.442695, %v3284_v32 }
 0x5b1   :  { %v3230_v21 = vpop.xlane.xlu1 %3229  ;;  %3391 = vadd.xlane.f32.xlu0 %v3390_v60  ;;  %v3254_v60 = vpop.xlane.xlu0 %3253 }
 0x5b2   :  { %v3278_v9 = vsub.f32 %v7306_v25, %v3230_v21  ;;  %6494 = vpow2.f32 %v3329_v15  ;;  %v3337_v25 = vmul.f32 1.442695, %v3280_v23  ;;  %v3341_v45 = vmul.f32 1.442695, %v3282_v29 }
 0x5b3   :  { %v7497_v48 = vpop.eup %6488  ;;  %v3286_v41 = vsub.f32 %v7338_v52, %v3254_v60  ;;  %v1419_v52 = vrot.slane %v1405_v19, %v6829_v46 }
 0x5b4   :  { %v3396_v2 = vsel %vm3158_vm3, %v7497_v48, 0.0  ;;  %v3333_v24 = vmul.f32 1.442695, %v3278_v9 }
 0x5b5   :  { %v7501_v44 = vpop.xlane.xlu1 %3232  ;;  %3397 = vadd.xlane.f32.xlu0 %v3396_v2  ;;  %v1308_v2 = vrot.slane %v1294_v4, %v6829_v46  ;;  %v1655_v28 = vpack.c.bf16 %v1419_v52, %v1419_v52 }
 0x5b6   :  { %6496 = vpow2.f32 %v3333_v24 }
 0x5b7   :  { %v7504_v7 = vpop.eup %6490  ;;  %6498 = vpow2.f32 %v3337_v25  ;;  %v1429_v11 = vcombine.high %v1308_v2, %v6592_v42  ;;  %v3349_v25 = vmul.f32 1.442695, %v3286_v41 }
 0x5b8   :  { %v3402_v40 = vsel %vm3158_vm3, %v7504_v7, 0.0  ;;  %v7514_v9 = vpop.eup %6492 }
 0x5b9   :  { %v7508_v38 = vpop.xlane.xlu1 %3238  ;;  %3403 = vadd.xlane.f32.xlu0 %v3402_v40  ;;  %v3405_v24 = vsel %vm3158_vm3, %v7514_v9, 0.0 }
 0x5bd   :  { %v7511_v21 = vpop.xlane.xlu1 %3244 }
 0x5be   :  { %v3353_v15 = vpop.xlane.xlu0 %3352 }
 0x5bf   :  { %6500 = vrcp.f32 %v3353_v15  ;;  %v7525_v40 = vpop.eup %6494 }
 0x5c0   :  { %6502 = vpow2.f32 %v3341_v45  ;;  %v3414_v56 = vsel %vm3158_vm3, %v7525_v40, 0.0  ;;  %v7539_v45 = vrot.slane %v1429_v11, %v6819_v36 }
 0x5c1   :  { %v7520_v23 = vpop.xlane.xlu1 %3250  ;;  %6504 = vpow2.f32 %v3345_v62  ;;  %v7544_v62 = vrot.slane %v1308_v2, %v6819_v36  ;;  %v3641_v2 = vsel %vm3547_vm4, %v1655_v28, 0 }
 0x5c3   :  { %3406 = vadd.xlane.f32.xlu1 %v3405_v24  ;;  %v7530_v43 = vpop.eup %6496  ;;  %v1437_v19 = vcombine.low %v7544_v62, %v7539_v45 }
 0x5c4   :  { %v3420_v60 = vsel %vm3158_vm3, %v7530_v43, 0.0  ;;  %v7541_v32 = vpop.eup %6498 }
 0x5c5   :  { %v3356_v18 = vpop.xlane.xlu1 %3355  ;;  %v3426_v31 = vsel %vm3158_vm3, %v7541_v32, 0.0 }
 0x5c6   :  { %v3359_v29 = vpop.xlane.xlu0 %3358  ;;  %6506 = vrcp.f32 %v3356_v18 }
 0x5c7   :  { %3415 = vadd.xlane.f32.xlu1 %v3414_v56  ;;  %6508 = vrcp.f32 %v3359_v29 }
 0x5c8   :  { %6510 = vpow2.f32 %v3349_v25  ;;  %v1445_v25 = vrot.slane %v1437_v19, %v6829_v46 }
 0x5ca   :  { %v3362_v4 = vpop.xlane.xlu0 %3361 }
 0x5cb   :  { %6512 = vrcp.f32 %v3362_v4  ;;  %3421 = vadd.xlane.f32.xlu1 %v3420_v60  ;;  %v3274_v60 = vsub.f32 %v7284_v58, %v7484_v10 }
 0x5cc   :  { %v6501_v15 = vpop.eup %6500 }
 0x5cd   :  { %v3448_v41 = vmul.f32 %v6501_v15, %v7364_v54  ;;  %v7551_v24 = vpop.eup %6502  ;;  %v1421_v54 = vcombine.high %v1419_v52, %v6592_v42  ;;  %v3325_v5 = vmul.f32 1.442695, %v3274_v60 }
 0x5ce   :  { %v3432_v11 = vsel %vm3158_vm3, %v7551_v24, 0.0  ;;  %v7563_v29 = vpop.eup %6504 }
 0x5cf   :  { %3427 = vadd.xlane.f32.xlu1 %v3426_v31  ;;  %1251 = vrot.lane.b32.xlu0 %v7290_v0, %s6594_s28  ;;  %v3511_v18 = vpack.c.bf16 %v3448_v41, %v3448_v41  ;;  %v1656_v15 = vpack.c.bf16 %v1421_v54, %v1421_v54  ;;  %v3438_v41 = vsel %vm3158_vm3, %v7563_v29, 0.0  ;;  %v1657_v31 = vpack.c.bf16 %v1445_v25, %v1445_v25 }
 0x5d0   :  { %6514 = vpow2.f32 %v3325_v5  ;;  %v3281_v5 = vsub.f32 %v7318_v55, %v7508_v38 }
 0x5d1   :  { %6180 = vmatmul.mubr.msk.bf16.vlgmr.msra.gmra.mxu1 %vm3543_vm5, %v3511_v18  ;;  %v3687_v58 = vsel %vm3547_vm4, %v1656_v15, 0  ;;  %6516 = vpow2.f32 %v3327_v1 }
 0x5d2   :  { %6190 = vmatpush3.bf16.msra.mxu1 %v3641_v2  ;;  %6191 = vmatprep.mubr.msk.bf16.mxu1 %vm6593_vm1, %v6592_v42  ;;  %v3339_v53 = vmul.f32 1.442695, %v3281_v5 }
 0x5d3   :  { %3433 = vadd.xlane.f32.xlu1 %v3432_v11  ;;  %6201 = vmatprep.subr.bf16.mxu1 %v6592_v42  ;;  %v6507_v56 = vpop.eup %6506 }
 0x5d4   :  { %v6509_v4 = vpop.eup %6508  ;;  %v3450_v52 = vmul.f32 %v6507_v56, %v7392_v12  ;;  %v1453_v12 = vcombine.high %v1445_v25, %v6592_v42 }
 0x5d5   :  { %v3452_v28 = vmul.f32 %v6509_v4, %v7396_v20  ;;  %v7572_v19 = vpop.eup %6510  ;;  %v3733_v20 = vsel %vm3547_vm4, %v1657_v31, 0  ;;  %v3331_v4 = vmul.f32 1.442695, %v3277_v35 }
 0x5d6   :  { %v3512_v18 = vpack.c.bf16 %v3450_v52, %v3450_v52  ;;  %v3444_v10 = vsel %vm3158_vm3, %v7572_v19, 0.0  ;;  %v1658_v25 = vpack.c.bf16 %v1453_v12, %v1453_v12  ;;  %v3285_v52 = vsub.f32 %v7334_v33, %v7520_v23 }
 0x5d7   :  { %3439 = vadd.xlane.f32.xlu1 %v3438_v41  ;;  %v3513_v11 = vpack.c.bf16 %v3452_v28, %v3452_v28  ;;  %6518 = vpow2.f32 %v3331_v4  ;;  %v8099_v33 = vcombine.low %v7372_v59, %v7378_v61 }
 0x5d8   :  { %v6513_v2 = vpop.eup %6512  ;;  %6186 = vmatmul.mubr.msk.bf16.vlgmr.msra.gmra.mxu0 %vm3543_vm5, %v3512_v18  ;;  %v3779_v3 = vsel %vm3547_vm4, %v1658_v25, 0  ;;  %v3347_v55 = vmul.f32 1.442695, %v3285_v52 }
 0x5d9   :  { %6196 = vmatpush3.bf16.msra.mxu0 %v3687_v58  ;;  %6192 = vmatmul.mubr.msk.bf16.vlgmr.msra.gmra.mxu1 %vm3543_vm5, %v3513_v11  ;;  %v3454_v54 = vmul.f32 %v6513_v2, %v7412_v50  ;;  %v3279_v50 = vsub.f32 %v7310_v39, %v7501_v44  ;;  %v3283_v39 = vsub.f32 %v7326_v8, %v7511_v21 }
 0x5da   :  { %6202 = vmatpush3.bf16.msra.mxu1 %v3733_v20  ;;  %6197 = vmatprep.mubr.msk.bf16.mxu0 %vm6593_vm1, %v6592_v42  ;;  %v1317_v23 = vrot.slane %v8099_v33, %v6829_v46  ;;  %v1438_v58 = vcombine.high %v7544_v62, %v7539_v45 }
 0x5db   :  { %3445 = vadd.xlane.f32.xlu1 %v3444_v10  ;;  %6207 = vmatprep.subr.bf16.mxu0 %v6592_v42  ;;  %v3514_v56 = vpack.c.bf16 %v3454_v54, %v3454_v54  ;;  %v3335_v17 = vmul.f32 1.442695, %v3279_v50  ;;  %v3343_v60 = vmul.f32 1.442695, %v3283_v39 }
 0x5dc   :  { %6203 = vmatprep.mubr.msk.bf16.mxu1 %vm6593_vm1, %v6592_v42  ;;  %6213 = vmatprep.subr.bf16.mxu1 %v6592_v42  ;;  %v1462_v11 = vcombine.high %v1317_v23, %v6592_v42  ;;  %v1452_v35 = vrot.slane %v1438_v58, %v6829_v46  ;;  %v1461_v45 = vrot.slane %v1317_v23, %v6819_v36 }
 0x5dd   :  { %6520 = vpow2.f32 %v3335_v17  ;;  %v7603_v44 = vpop.eup %6514 }
 0x5de   :  { %6522 = vpow2.f32 %v3339_v53  ;;  %v3408_v15 = vsel %vm3158_vm3, %v7603_v44, 0.0  ;;  %v7609_v41 = vpop.eup %6516  ;;  %v1469_v1 = vrot.slane %v1462_v11, %v6819_v36  ;;  %v1454_v4 = vcombine.high %v1452_v35, %v6592_v42 }
 0x5df   :  { %6524 = vpow2.f32 %v3343_v60  ;;  %v3411_v38 = vsel %vm3158_vm3, %v7609_v41, 0.0  ;;  %v1659_v33 = vpack.c.bf16 %v1452_v35, %v1452_v35 }
 0x5e0   :  { %6198 = vmatmul.mubr.msk.bf16.vlgmr.msra.gmra.mxu0 %vm3543_vm5, %v3514_v56  ;;  %6526 = vpow2.f32 %v3347_v55  ;;  %v1470_v50 = vcombine.low %v1461_v45, %v1469_v1  ;;  %v1660_v53 = vpack.c.bf16 %v1454_v4, %v1454_v4  ;;  %v1471_v35 = vcombine.high %v1461_v45, %v1469_v1 }
 0x5e1   :  { %6208 = vmatpush3.bf16.msra.mxu0 %v3779_v3  ;;  %6209 = vmatprep.mubr.msk.bf16.mxu0 %vm6593_vm1, %v6592_v42 }
 0x5e2   :  { %6219 = vmatprep.subr.bf16.mxu0 %v6592_v42  ;;  %v1478_v39 = vrot.slane %v1470_v50, %v6829_v46  ;;  %v3871_v55 = vsel %vm3547_vm4, %v1660_v53, 0 }
 0x5e4   :  { %v7613_v28 = vpop.eup %6518 }
 0x5e5   :  { %v3417_v8 = vsel %vm3158_vm3, %v7613_v28, 0.0 }
 0x5ea   :  { %v7617_v21 = vpop.eup %6520 }
 0x5eb   :  { %v3423_v18 = vsel %vm3158_vm3, %v7617_v21, 0.0  ;;  %v7625_v2 = vpop.eup %6522 }
 0x5ec   :  { %v3429_v20 = vsel %vm3158_vm3, %v7625_v2, 0.0  ;;  %v7632_v10 = vpop.eup %6524 }
 0x5ed   :  { %v3435_v25 = vsel %vm3158_vm3, %v7632_v10, 0.0  ;;  %v7638_v56 = vpop.eup %6526 }
 0x5ee   :  { %3409 = vadd.xlane.f32.xlu0 %v3408_v15  ;;  %v3441_v3 = vsel %vm3158_vm3, %v7638_v56, 0.0 }
 0x5f2   :  { %3412 = vadd.xlane.f32.xlu0 %v3411_v38  ;;  %v1486_v38 = vcombine.high %v1478_v39, %v6592_v42 }
 0x5f6   :  { %3418 = vadd.xlane.f32.xlu0 %v3417_v8 }
 0x5f9   :  { %v3368_v31 = vpop.xlane.xlu0 %3367 }
 0x5fa   :  { %6528 = vrcp.f32 %v3368_v31  ;;  %3424 = vadd.xlane.f32.xlu0 %v3423_v18  ;;  %v1662_v18 = vpack.c.bf16 %v1486_v38, %v1486_v38 }
 0x5fd   :  { %v3374_v12 = vpop.xlane.xlu0 %3373 }
 0x5fe   :  { %6530 = vrcp.f32 %v3374_v12  ;;  %3430 = vadd.xlane.f32.xlu0 %v3429_v20  ;;  %v8100_v12 = vcombine.high %v7372_v59, %v7378_v61  ;;  %v1661_v61 = vpack.c.bf16 %v1478_v39, %v1478_v39 }
 0x5ff   :  { %v3365_v54 = vpop.xlane.xlu1 %3364 }
 0x600   :  { %6532 = vrcp.f32 %v3365_v54  ;;  %v1324_v20 = vrot.slane %v8100_v12, %v6829_v46  ;;  %v3825_v54 = vsel %vm3547_vm4, %v1659_v33, 0 }
 0x602   :  { %3436 = vadd.xlane.f32.xlu0 %v3435_v25  ;;  %v1495_v59 = vcombine.high %v1324_v20, %v6592_v42 }
 0x603   :  { %v3371_v62 = vpop.xlane.xlu1 %3370 }
 0x604   :  { %6534 = vrcp.f32 %v3371_v62 }
 0x606   :  { %3442 = vadd.xlane.f32.xlu0 %v3441_v3  ;;  %v3917_v3 = vsel %vm3547_vm4, %v1661_v61, 0 }
 0x607   :  { %v6529_v17 = vpop.eup %6528  ;;  %v3377_v60 = vpop.xlane.xlu1 %3376 }
 0x608   :  { %v3458_v5 = vmul.f32 %v6529_v17, %v7427_v49  ;;  %6536 = vrcp.f32 %v3377_v60  ;;  %v1485_v17 = vrot.slane %v1471_v35, %v6829_v46 }
 0x60a   :  { %v3516_v52 = vpack.c.bf16 %v3458_v5, %v3458_v5  ;;  %v1494_v5 = vrot.slane %v1324_v20, %v6819_v36  ;;  %v1663_v45 = vpack.c.bf16 %v1485_v17, %v1485_v17 }
 0x60b   :  { %v6531_v15 = vpop.eup %6530  ;;  %v3383_v58 = vpop.xlane.xlu1 %3382 }
 0x60c   :  { %6210 = vmatmul.mubr.msk.bf16.vlgmr.msra.gmra.mxu0 %vm3543_vm5, %v3516_v52  ;;  %v3462_v23 = vmul.f32 %v6531_v15, %v7432_v63  ;;  %6538 = vrcp.f32 %v3383_v58  ;;  %v3963_v63 = vsel %vm3547_vm4, %v1662_v18, 0  ;;  %v4009_v15 = vsel %vm3547_vm4, %v1663_v45, 0 }
 0x60d   :  { %v6533_v8 = vpop.eup %6532  ;;  %6220 = vmatpush3.bf16.msra.mxu0 %v3871_v55  ;;  %6221 = vmatprep.mubr.msk.bf16.mxu0 %vm6593_vm1, %v6592_v42 }
 0x60e   :  { %v3456_v49 = vmul.f32 %v6533_v8, %v7437_v6  ;;  %6231 = vmatprep.subr.bf16.mxu0 %v6592_v42  ;;  %v3518_v25 = vpack.c.bf16 %v3462_v23, %v3462_v23 }
 0x60f   :  { %v3389_v50 = vpop.xlane.xlu1 %3388 }
 0x610   :  { %v3515_v31 = vpack.c.bf16 %v3456_v49, %v3456_v49  ;;  %6540 = vrcp.f32 %v3389_v50 }
 0x611   :  { %v6535_v11 = vpop.eup %6534 }
 0x612   :  { %6204 = vmatmul.mubr.msk.bf16.vlgmr.msra.gmra.mxu1 %vm3543_vm5, %v3515_v31  ;;  %v3460_v6 = vmul.f32 %v6535_v11, %v7442_v14  ;;  %v1502_v14 = vrot.slane %v1495_v59, %v6819_v36  ;;  %v1487_v59 = vcombine.high %v1485_v17, %v6592_v42 }
 0x613   :  { %6214 = vmatpush3.bf16.msra.mxu1 %v3825_v54  ;;  %6215 = vmatprep.mubr.msk.bf16.mxu1 %vm6593_vm1, %v6592_v42  ;;  %v3395_v52 = vpop.xlane.xlu1 %3394 }
 0x614   :  { %6222 = vmatmul.mubr.msk.bf16.vlgmr.msra.gmra.mxu0 %vm3543_vm5, %v3518_v25  ;;  %6225 = vmatprep.subr.bf16.mxu1 %v6592_v42  ;;  %v3517_v62 = vpack.c.bf16 %v3460_v6, %v3460_v6  ;;  %v1503_v53 = vcombine.low %v1494_v5, %v1502_v14  ;;  %6542 = vrcp.f32 %v3395_v52  ;;  %v1504_v8 = vcombine.high %v1494_v5, %v1502_v14 }
 0x615   :  { %6232 = vmatpush3.bf16.msra.mxu0 %v3963_v63  ;;  %6233 = vmatprep.mubr.msk.bf16.mxu0 %vm6593_vm1, %v6592_v42  ;;  %v6537_v4 = vpop.eup %6536 }
 0x616   :  { %6243 = vmatprep.subr.bf16.mxu0 %v6592_v42  ;;  %v3464_v1 = vmul.f32 %v6537_v4, %v7447_v47  ;;  %v1511_v55 = vrot.slane %v1503_v53, %v6829_v46  ;;  %v1518_v31 = vrot.slane %v1504_v8, %v6829_v46 }
 0x617   :  { %v3401_v6 = vpop.xlane.xlu1 %3400 }
 0x618   :  { %v3519_v39 = vpack.c.bf16 %v3464_v1, %v3464_v1  ;;  %v1665_v38 = vpack.c.bf16 %v1511_v55, %v1511_v55  ;;  %v1667_v11 = vpack.c.bf16 %v1518_v31, %v1518_v31  ;;  %v1519_v17 = vcombine.high %v1511_v55, %v6592_v42 }
 0x619   :  { %v6539_v60 = vpop.eup %6538 }
 0x61a   :  { %6216 = vmatmul.mubr.msk.bf16.vlgmr.msra.gmra.mxu1 %vm3543_vm5, %v3517_v62  ;;  %v3468_v47 = vmul.f32 %v6539_v60, %v7451_v22  ;;  %v4101_v23 = vsel %vm3547_vm4, %v1665_v38, 0  ;;  %v4193_v12 = vsel %vm3547_vm4, %v1667_v11, 0  ;;  %v1666_v52 = vpack.c.bf16 %v1519_v17, %v1519_v17 }
 0x61b   :  { %6226 = vmatpush3.bf16.msra.mxu1 %v3917_v3  ;;  %6227 = vmatprep.mubr.msk.bf16.mxu1 %vm6593_vm1, %v6592_v42  ;;  %v7704_v4 = vpop.permute.xlu1 %1257 }
 0x61c   :  { %6237 = vmatprep.subr.bf16.mxu1 %v6592_v42  ;;  %v3521_v49 = vpack.c.bf16 %v3468_v47, %v3468_v47  ;;  %v1341_v5 = vcombine.low %v7467_v16, %v7704_v4 }
 0x61d   :  { %v6541_v33 = vpop.eup %6540 }
 0x61e   :  { %v3472_v18 = vmul.f32 %v6541_v33, %v7455_v51 }
 0x620   :  { %v3523_v22 = vpack.c.bf16 %v3472_v18, %v3472_v18 }
 0x621   :  { %v6543_v58 = vpop.eup %6542 }
 0x622   :  { %6228 = vmatmul.mubr.msk.bf16.vlgmr.msra.gmra.mxu1 %vm3543_vm5, %v3519_v39  ;;  %v3476_v54 = vmul.f32 %v6543_v58, %v7459_v37  ;;  %v1664_v37 = vpack.c.bf16 %v1487_v59, %v1487_v59  ;;  %v1349_v39 = vrot.slane %v1341_v5, %v6819_v36 }
 0x623   :  { %6238 = vmatpush3.bf16.msra.mxu1 %v4009_v15  ;;  %6239 = vmatprep.mubr.msk.bf16.mxu1 %vm6593_vm1, %v6592_v42 }
 0x624   :  { %6249 = vmatprep.subr.bf16.mxu1 %v6592_v42  ;;  %v3525_v51 = vpack.c.bf16 %v3476_v54, %v3476_v54  ;;  %v4055_v1 = vsel %vm3547_vm4, %v1664_v37, 0 }
 0x62a   :  { %6240 = vmatmul.mubr.msk.bf16.vlgmr.msra.gmra.mxu1 %vm3543_vm5, %v3521_v49 }
 0x62b   :  { %6250 = vmatpush3.bf16.msra.mxu1 %v4101_v23  ;;  %6251 = vmatprep.mubr.msk.bf16.mxu1 %vm6593_vm1, %v6592_v42  ;;  %v4147_v23 = vsel %vm3547_vm4, %v1666_v52, 0 }
 0x62c   :  { %6261 = vmatprep.subr.bf16.mxu1 %v6592_v42 }
 0x632   :  { %6252 = vmatmul.mubr.msk.bf16.vlgmr.msra.gmra.mxu1 %vm3543_vm5, %v3523_v22  ;;  %v3380_v20 = vpop.xlane.xlu0 %3379 }
 0x633   :  { %6262 = vmatpush3.bf16.msra.mxu1 %v4193_v12  ;;  %6544 = vrcp.f32 %v3380_v20  ;;  %6263 = vmatprep.mubr.msk.bf16.mxu1 %vm6593_vm1, %v6592_v42 }
 0x634   :  { %6273 = vmatprep.subr.bf16.mxu1 %v6592_v42 }
 0x636   :  { %v3386_v25 = vpop.xlane.xlu0 %3385 }
 0x637   :  { %6546 = vrcp.f32 %v3386_v25 }
 0x63a   :  { %6264 = vmatmul.mubr.msk.bf16.vlgmr.msra.gmra.mxu1 %vm3543_vm5, %v3525_v51  ;;  %v3392_v63 = vpop.xlane.xlu0 %3391 }
 0x63b   :  { %6275 = vmatprep.mubr.msk.bf16.mxu1 %vm6593_vm1, %v6592_v42  ;;  %6548 = vrcp.f32 %v3392_v63 }
 0x63c   :  { %6550 = vrcp.f32 %v3401_v6 }
 0x63e   :  { %v3398_v61 = vpop.xlane.xlu0 %3397 }
 0x63f   :  { %6552 = vrcp.f32 %v3398_v61 }
 0x640   :  { %v6545_v35 = vpop.eup %6544 }
 0x641   :  { %v3466_v62 = vmul.f32 %v6545_v35, %v7480_v57 }
 0x642   :  { %v3404_v50 = vpop.xlane.xlu0 %3403 }
 0x643   :  { %v3520_v3 = vpack.c.bf16 %v3466_v62, %v3466_v62  ;;  %6554 = vrcp.f32 %v3404_v50 }
 0x644   :  { %v6547_v14 = vpop.eup %6546 }
 0x645   :  { %6234 = vmatmul.mubr.msk.bf16.vlgmr.msra.gmra.mxu0 %vm3543_vm5, %v3520_v3  ;;  %v3470_v53 = vmul.f32 %v6547_v14, %v7487_v27  ;;  %v1520_v27 = vcombine.high %v1518_v31, %v6592_v42 }
 0x646   :  { %6244 = vmatpush3.bf16.msra.mxu0 %v4055_v1  ;;  %v7711_v45 = vpop.permute.xlu0 %1251  ;;  %6245 = vmatprep.mubr.msk.bf16.mxu0 %vm6593_vm1, %v6592_v42 }
 0x647   :  { %v1325_v57 = vcombine.low %v7290_v0, %v7711_v45  ;;  %6255 = vmatprep.subr.bf16.mxu0 %v6592_v42  ;;  %v3522_v47 = vpack.c.bf16 %v3470_v53, %v3470_v53  ;;  %v1668_v12 = vpack.c.bf16 %v1520_v27, %v1520_v27 }
 0x648   :  { %v6549_v38 = vpop.eup %6548 }
 0x649   :  { %v1333_v60 = vrot.slane %v1325_v57, %v6819_v36  ;;  %v3474_v11 = vmul.f32 %v6549_v38, %v7492_v13  ;;  %v6551_v31 = vpop.eup %6550  ;;  %v4239_v6 = vsel %vm3547_vm4, %v1668_v12, 0 }
 0x64a   :  { %v3480_v35 = vmul.f32 %v6551_v31, %v7463_v34 }
 0x64b   :  { %v1357_v15 = vcombine.low %v1333_v60, %v1349_v39  ;;  %v1358_v55 = vcombine.high %v1333_v60, %v1349_v39  ;;  %v3524_v54 = vpack.c.bf16 %v3474_v11, %v3474_v11 }
 0x64c   :  { %v3407_v8 = vpop.xlane.xlu1 %3406  ;;  %v6553_v63 = vpop.eup %6552  ;;  %v3527_v53 = vpack.c.bf16 %v3480_v35, %v3480_v35 }
 0x64d   :  { %v1365_v49 = vrot.slane %v1357_v15, %v6829_v46  ;;  %v1372_v33 = vrot.slane %v1358_v55, %v6829_v46  ;;  %6246 = vmatmul.mubr.msk.bf16.vlgmr.msra.gmra.mxu0 %vm3543_vm5, %v3522_v47  ;;  %6556 = vrcp.f32 %v3407_v8  ;;  %v3478_v50 = vmul.f32 %v6553_v63, %v7497_v48 }
 0x64e   :  { %6256 = vmatpush3.bf16.msra.mxu0 %v4147_v23  ;;  %6257 = vmatprep.mubr.msk.bf16.mxu0 %vm6593_vm1, %v6592_v42 }
 0x64f   :  { %v1528_v18 = vcombine.high %v1365_v49, %v6592_v42  ;;  %6267 = vmatprep.subr.bf16.mxu0 %v6592_v42  ;;  %v1527_v22 = vrot.slane %v1365_v49, %v6819_v36  ;;  %v1561_v58 = vcombine.high %v1372_v33, %v6592_v42  ;;  %v7745_v62 = vrot.slane %v1372_v33, %v6819_v36 }
 0x650   :  { %v6555_v57 = vpop.eup %6554  ;;  %v3526_v34 = vpack.c.bf16 %v3478_v50, %v3478_v50 }
 0x651   :  { %v1535_v20 = vrot.slane %v1528_v18, %v6819_v36  ;;  %v7739_v61 = vrot.slane %v1561_v58, %v6819_v36  ;;  %v3482_v55 = vmul.f32 %v6555_v57, %v7504_v7  ;;  %v1326_v7 = vcombine.high %v7290_v0, %v7711_v45  ;;  %v3416_v58 = vpop.xlane.xlu1 %3415 }
 0x653   :  { %v1536_v25 = vcombine.low %v1527_v22, %v1535_v20  ;;  %v1537_v51 = vcombine.high %v1527_v22, %v1535_v20  ;;  %v1569_v17 = vcombine.low %v7745_v62, %v7739_v61  ;;  %v3528_v49 = vpack.c.bf16 %v3482_v55, %v3482_v55 }
 0x654   :  { %v1340_v18 = vrot.slane %v1326_v7, %v6819_v36 }
 0x655   :  { %6258 = vmatmul.mubr.msk.bf16.vlgmr.msra.gmra.mxu0 %vm3543_vm5, %v3524_v54  ;;  %v1544_v59 = vrot.slane %v1536_v25, %v6829_v46  ;;  %v1551_v13 = vrot.slane %v1537_v51, %v6829_v46  ;;  %v1577_v15 = vrot.slane %v1569_v17, %v6829_v46  ;;  %v3422_v45 = vpop.xlane.xlu1 %3421 }
 0x656   :  { %6268 = vmatpush3.bf16.msra.mxu0 %v4239_v6  ;;  %6269 = vmatprep.mubr.msk.bf16.mxu0 %vm6593_vm1, %v6592_v42 }
 0x657   :  { %v1669_v37 = vpack.c.bf16 %v1544_v59, %v1544_v59  ;;  %6279 = vmatprep.subr.bf16.mxu0 %v6592_v42  ;;  %v1552_v3 = vcombine.high %v1544_v59, %v6592_v42  ;;  %v1671_v1 = vpack.c.bf16 %v1551_v13, %v1551_v13  ;;  %v1553_v52 = vcombine.high %v1551_v13, %v6592_v42 }
 0x658   :  { %v1673_v8 = vpack.c.bf16 %v1577_v15, %v1577_v15 }
 0x659   :  { %v4285_v14 = vsel %vm3547_vm4, %v1669_v37, 0  ;;  %v1670_v5 = vpack.c.bf16 %v1552_v3, %v1552_v3  ;;  %v4377_v48 = vsel %vm3547_vm4, %v1671_v1, 0  ;;  %v1672_v38 = vpack.c.bf16 %v1553_v52, %v1553_v52 }
 0x65a   :  { %6274 = vmatpush3.bf16.msra.mxu1 %v4285_v14  ;;  %v6557_v60 = vpop.eup %6556  ;;  %v4469_v27 = vsel %vm3547_vm4, %v1673_v8, 0 }
 0x65b   :  { %v4331_v39 = vsel %vm3547_vm4, %v1670_v5, 0  ;;  %6285 = vmatprep.subr.bf16.mxu1 %v6592_v42  ;;  %v3484_v47 = vmul.f32 %v6557_v60, %v7514_v9  ;;  %v4423_v23 = vsel %vm3547_vm4, %v1672_v38, 0  ;;  %v1342_v9 = vcombine.high %v7467_v16, %v7704_v4  ;;  %v3428_v5 = vpop.xlane.xlu1 %3427 }
 0x65c   :  { %v1585_v16 = vcombine.high %v1577_v15, %v6592_v42  ;;  %v1570_v4 = vcombine.high %v7745_v62, %v7739_v61 }
 0x65d   :  { %6270 = vmatmul.mubr.msk.bf16.vlgmr.msra.gmra.mxu0 %vm3543_vm5, %v3526_v34  ;;  %6276 = vmatmul.mubr.msk.bf16.vlgmr.msra.gmra.mxu1 %vm3543_vm5, %v3527_v53  ;;  %v3529_v33 = vpack.c.bf16 %v3484_v47, %v3484_v47  ;;  %v1356_v11 = vrot.slane %v1342_v9, %v6819_v36 }
 0x65e   :  { %6280 = vmatpush3.bf16.msra.mxu0 %v4331_v39  ;;  %6286 = vmatpush3.bf16.msra.mxu1 %v4377_v48  ;;  %v1674_v59 = vpack.c.bf16 %v1585_v16, %v1585_v16  ;;  %v1584_v13 = vrot.slane %v1570_v4, %v6829_v46 }
 0x65f   :  { %6281 = vmatprep.mubr.msk.bf16.mxu0 %vm6593_vm1, %v6592_v42  ;;  %6287 = vmatprep.mubr.msk.bf16.mxu1 %vm6593_vm1, %v6592_v42  ;;  %v1373_v12 = vcombine.low %v1340_v18, %v1356_v11  ;;  %v1374_v14 = vcombine.high %v1340_v18, %v1356_v11  ;;  %v3434_v38 = vpop.xlane.xlu1 %3433 }
 0x660   :  { %6291 = vmatprep.subr.bf16.mxu0 %v6592_v42  ;;  %6297 = vmatprep.subr.bf16.mxu1 %v6592_v42  ;;  %v4515_v61 = vsel %vm3547_vm4, %v1674_v59, 0  ;;  %v1675_v17 = vpack.c.bf16 %v1584_v13, %v1584_v13 }
 0x661   :  { %v1381_v31 = vrot.slane %v1373_v12, %v6829_v46  ;;  %v1388_v39 = vrot.slane %v1374_v14, %v6829_v46 }
 0x663   :  { %v1594_v0 = vcombine.high %v1381_v31, %v6592_v42  ;;  %v1593_v35 = vrot.slane %v1381_v31, %v6819_v36  ;;  %v1627_v47 = vcombine.high %v1388_v39, %v6592_v42  ;;  %v3440_v4 = vpop.xlane.xlu1 %3439 }
 0x665   :  { %6282 = vmatmul.mubr.msk.bf16.vlgmr.msra.gmra.mxu0 %vm3543_vm5, %v3528_v49  ;;  %6288 = vmatmul.mubr.msk.bf16.vlgmr.msra.gmra.mxu1 %vm3543_vm5, %v3529_v33  ;;  %v1601_v63 = vrot.slane %v1594_v0, %v6819_v36  ;;  %v7823_v31 = vrot.slane %v1627_v47, %v6819_v36 }
 0x666   :  { %6292 = vmatpush3.bf16.msra.mxu0 %v4423_v23  ;;  %6298 = vmatpush3.bf16.msra.mxu1 %v4469_v27 }
 0x667   :  { %6293 = vmatprep.mubr.msk.bf16.mxu0 %vm6593_vm1, %v6592_v42  ;;  %6303 = vmatprep.subr.bf16.mxu0 %v6592_v42  ;;  %v1602_v1 = vcombine.low %v1593_v35, %v1601_v63  ;;  %v1603_v27 = vcombine.high %v1593_v35, %v1601_v63 }
 0x668   :  { %6299 = vmatprep.mubr.msk.bf16.mxu1 %vm6593_vm1, %v6592_v42  ;;  %6309 = vmatprep.subr.bf16.mxu1 %v6592_v42 }
 0x669   :  { %v1610_v52 = vrot.slane %v1602_v1, %v6829_v46 }
 0x66b   :  { %v1677_v33 = vpack.c.bf16 %v1610_v52, %v1610_v52  ;;  %v1618_v23 = vcombine.high %v1610_v52, %v6592_v42 }
 0x66d   :  { %v1678_v12 = vpack.c.bf16 %v1618_v23, %v1618_v23 }
 0x66f   :  { %v4699_v63 = vsel %vm3547_vm4, %v1678_v12, 0 }
 0x677   :  { %v3410_v22 = vpop.xlane.xlu0 %3409 }
 0x678   :  { %6558 = vrcp.f32 %v3410_v22 }
 0x679   :  { %6560 = vrcp.f32 %v3416_v58  ;;  %v4653_v58 = vsel %vm3547_vm4, %v1677_v33, 0 }
 0x67b   :  { %v3413_v20 = vpop.xlane.xlu0 %3412 }
 0x67c   :  { %6562 = vrcp.f32 %v3413_v20  ;;  %v1617_v20 = vrot.slane %v1603_v27, %v6829_v46 }
 0x67e   :  { %v1619_v59 = vcombine.high %v1617_v20, %v6592_v42 }
 0x67f   :  { %v3419_v54 = vpop.xlane.xlu0 %3418 }
 0x680   :  { %6564 = vrcp.f32 %v3419_v54 }
 0x681   :  { %6566 = vrcp.f32 %v3422_v45 }
 0x683   :  { %v3425_v51 = vpop.xlane.xlu0 %3424 }
 0x684   :  { %6568 = vrcp.f32 %v3425_v51 }
 0x685   :  { %v6559_v25 = vpop.eup %6558  ;;  %6570 = vrcp.f32 %v3428_v5 }
 0x686   :  { %v3486_v6 = vmul.f32 %v6559_v25, %v7603_v44  ;;  %v6561_v37 = vpop.eup %6560  ;;  %v1586_v44 = vcombine.high %v1584_v13, %v6592_v42 }
 0x687   :  { %v3490_v57 = vmul.f32 %v6561_v37, %v7525_v40  ;;  %v3431_v60 = vpop.xlane.xlu0 %3430 }
 0x688   :  { %v3530_v50 = vpack.c.bf16 %v3486_v6, %v3486_v6  ;;  %v1676_v48 = vpack.c.bf16 %v1586_v44, %v1586_v44  ;;  %6572 = vrcp.f32 %v3431_v60  ;;  %v1679_v6 = vpack.c.bf16 %v1617_v20, %v1617_v20 }
 0x689   :  { %v6563_v3 = vpop.eup %6562  ;;  %v3532_v40 = vpack.c.bf16 %v3490_v57, %v3490_v57  ;;  %6574 = vrcp.f32 %v3434_v38 }
 0x68a   :  { %6294 = vmatmul.mubr.msk.bf16.vlgmr.msra.gmra.mxu0 %vm3543_vm5, %v3530_v50  ;;  %v3488_v62 = vmul.f32 %v6563_v3, %v7609_v41  ;;  %v4561_v41 = vsel %vm3547_vm4, %v1675_v17, 0  ;;  %v4607_v49 = vsel %vm3547_vm4, %v1676_v48, 0  ;;  %v1680_v17 = vpack.c.bf16 %v1619_v59, %v1619_v59 }
 0x68b   :  { %6304 = vmatpush3.bf16.msra.mxu0 %v4515_v61  ;;  %6305 = vmatprep.mubr.msk.bf16.mxu0 %vm6593_vm1, %v6592_v42  ;;  %v3437_v11 = vpop.xlane.xlu0 %3436 }
 0x68c   :  { %v3531_v34 = vpack.c.bf16 %v3488_v62, %v3488_v62  ;;  %6315 = vmatprep.subr.bf16.mxu0 %v6592_v42  ;;  %6576 = vrcp.f32 %v3437_v11  ;;  %v4745_v62 = vsel %vm3547_vm4, %v1679_v6, 0 }
 0x68d   :  { %v6565_v53 = vpop.eup %6564  ;;  %6578 = vrcp.f32 %v3440_v4 }
 0x68e   :  { %6300 = vmatmul.mubr.msk.bf16.vlgmr.msra.gmra.mxu1 %vm3543_vm5, %v3531_v34  ;;  %v3492_v15 = vmul.f32 %v6565_v53, %v7613_v28  ;;  %v6567_v55 = vpop.eup %6566  ;;  %v3446_v34 = vpop.xlane.xlu1 %3445 }
 0x68f   :  { %6310 = vmatpush3.bf16.msra.mxu1 %v4561_v41  ;;  %6311 = vmatprep.mubr.msk.bf16.mxu1 %vm6593_vm1, %v6592_v42  ;;  %v3494_v28 = vmul.f32 %v6567_v55, %v7530_v43  ;;  %v7828_v43 = vrot.slane %v1388_v39, %v6819_v36  ;;  %v3443_v5 = vpop.xlane.xlu0 %3442 }
 0x690   :  { %6321 = vmatprep.subr.bf16.mxu1 %v6592_v42  ;;  %v3533_v9 = vpack.c.bf16 %v3492_v15, %v3492_v15  ;;  %6580 = vrcp.f32 %v3443_v5 }
 0x691   :  { %v7810_v8 = vpop.f32.mrf.mxu1  ;;  %v6569_v18 = vpop.eup %6568  ;;  %v3534_v0 = vpack.c.bf16 %v3494_v28, %v3494_v28  ;;  %v1635_v13 = vcombine.low %v7828_v43, %v7823_v31  ;;  %v1636_v48 = vcombine.high %v7828_v43, %v7823_v31  ;;  %6582 = vrcp.f32 %v3446_v34 }
 0x692   :  { %6306 = vmatmul.mubr.msk.bf16.vlgmr.msra.gmra.mxu0 %vm3543_vm5, %v3532_v40  ;;  %v3496_v45 = vmul.f32 %v6569_v18, %v7617_v21  ;;  %v6571_v16 = vpop.eup %6570  ;;  %v4791_v40 = vsel %vm3547_vm4, %v1680_v17, 0 }
 0x693   :  { %6316 = vmatpush3.bf16.msra.mxu0 %v4607_v49  ;;  %v6181_v7 = vpop.f32.mrf.mxu1  ;;  %6317 = vmatprep.mubr.msk.bf16.mxu0 %vm6593_vm1, %v6592_v42  ;;  %v3498_v37 = vmul.f32 %v6571_v16, %v7541_v32  ;;  %v1643_v44 = vrot.slane %v1635_v13, %v6829_v46 }
 0x694   :  { %6327 = vmatprep.subr.bf16.mxu0 %v6592_v42  ;;  %v3535_v50 = vpack.c.bf16 %v3496_v45, %v3496_v45 }
 0x695   :  { %v3588_v22 = vpop.f32.mrf.mxu1  ;;  %v6573_v14 = vpop.eup %6572  ;;  %v3536_v32 = vpack.c.bf16 %v3498_v37, %v3498_v37  ;;  %v1681_v15 = vpack.c.bf16 %v1643_v44, %v1643_v44  ;;  %v1651_v55 = vcombine.high %v1643_v44, %v6592_v42 }
 0x696   :  { %6312 = vmatmul.mubr.msk.bf16.vlgmr.msra.gmra.mxu1 %vm3543_vm5, %v3533_v9  ;;  %v3500_v53 = vmul.f32 %v6573_v14, %v7625_v2  ;;  %v6575_v60 = vpop.eup %6574 }
 0x697   :  { %6322 = vmatpush3.bf16.msra.mxu1 %v4653_v58  ;;  %v6182_v54 = vpop.f32.mrf.mxu1  ;;  %6323 = vmatprep.mubr.msk.bf16.mxu1 %vm6593_vm1, %v6592_v42  ;;  %v3502_v2 = vmul.f32 %v6575_v60, %v7551_v24  ;;  %v4837_v7 = vsel %vm3547_vm4, %v1681_v15, 0  ;;  %v1682_v28 = vpack.c.bf16 %v1651_v55, %v1651_v55  ;;  %v1650_v24 = vrot.slane %v1636_v48, %v6829_v46 }
 0x698   :  { %6333 = vmatprep.subr.bf16.mxu1 %v6592_v42  ;;  %v3631_v25 = vpop.f32.mrf.mxu0  ;;  %v3537_v38 = vpack.c.bf16 %v3500_v53, %v3500_v53 }
 0x699   :  { %v3677_v51 = vpop.f32.mrf.mxu1  ;;  %v6577_v33 = vpop.eup %6576  ;;  %v3538_v18 = vpack.c.bf16 %v3502_v2, %v3502_v2  ;;  %v4883_v58 = vsel %vm3547_vm4, %v1682_v28, 0  ;;  %v1683_v12 = vpack.c.bf16 %v1650_v24, %v1650_v24  ;;  %v1652_v20 = vcombine.high %v1650_v24, %v6592_v42 }
 0x69a   :  { %6318 = vmatmul.mubr.msk.bf16.vlgmr.msra.gmra.mxu0 %vm3543_vm5, %v3534_v0  ;;  %v5017_v35 = vcombine.low %v7810_v8, %v3677_v51  ;;  %v6187_v21 = vpop.f32.mrf.mxu0  ;;  %v3504_v11 = vmul.f32 %v6577_v33, %v7632_v10  ;;  %v6579_v22 = vpop.eup %6578 }
 0x69b   :  { %6328 = vmatpush3.bf16.msra.mxu0 %v4699_v63  ;;  %6329 = vmatprep.mubr.msk.bf16.mxu0 %vm6593_vm1, %v6592_v42  ;;  %v6193_v3 = vpop.f32.mrf.mxu1  ;;  %v3506_v31 = vmul.f32 %v6579_v22, %v7563_v29  ;;  %v4929_v43 = vsel %vm3547_vm4, %v1683_v12, 0  ;;  %v1684_v0 = vpack.c.bf16 %v1652_v20, %v1652_v20 }
 0x69c   :  { %6339 = vmatprep.subr.bf16.mxu0 %v6592_v42  ;;  %v3634_v1 = vpop.f32.mrf.mxu0  ;;  %v7858_v8 = vrot.slane %v5017_v35, %v6819_v36  ;;  %v3539_v54 = vpack.c.bf16 %v3504_v11, %v3504_v11 }
 0x69d   :  { %v3680_v61 = vpop.f32.mrf.mxu1  ;;  %v6581_v10 = vpop.eup %6580  ;;  %v3540_v16 = vpack.c.bf16 %v3506_v31, %v3506_v31  ;;  %v4975_v29 = vsel %vm3547_vm4, %v1684_v0, 0 }
 0x69e   :  { %6324 = vmatmul.mubr.msk.bf16.vlgmr.msra.gmra.mxu1 %vm3543_vm5, %v3535_v50  ;;  %v6188_v57 = vpop.f32.mrf.mxu0  ;;  %v6583_v45 = vpop.eup %6582  ;;  %v3508_v4 = vmul.f32 %v6581_v10, %v7638_v56 }
 0x69f   :  { %6334 = vmatpush3.bf16.msra.mxu1 %v4745_v62  ;;  %6335 = vmatprep.mubr.msk.bf16.mxu1 %vm6593_vm1, %v6592_v42  ;;  %v6194_v39 = vpop.f32.mrf.mxu1 }
 0x6a0   :  { %6345 = vmatprep.subr.bf16.mxu1 %v6592_v42  ;;  %v3723_v41 = vpop.f32.mrf.mxu0  ;;  %v3541_v51 = vpack.c.bf16 %v3508_v4, %v3508_v4 }
 0x6a1   :  { %v5025_v52 = vcombine.low %v3631_v25, %v3723_v41  ;;  %v3510_v25 = vmul.f32 %v6583_v45, %v7572_v19 }
 0x6a2   :  { %6330 = vmatmul.mubr.msk.bf16.vlgmr.msra.gmra.mxu0 %vm3543_vm5, %v3536_v32  ;;  %v6199_v47 = vpop.f32.mrf.mxu0 }
 0x6a3   :  { %6340 = vmatpush3.bf16.msra.mxu0 %v4791_v40  ;;  %6341 = vmatprep.mubr.msk.bf16.mxu0 %vm6593_vm1, %v6592_v42  ;;  %v7861_v49 = vrot.slane %v5025_v52, %v6819_v36  ;;  %v3542_v56 = vpack.c.bf16 %v3510_v25, %v3510_v25 }
 0x6a4   :  { %6351 = vmatprep.subr.bf16.mxu0 %v6592_v42  ;;  %v3726_v23 = vpop.f32.mrf.mxu0 }
 0x6a5   :  { %v5033_v27 = vcombine.low %v7858_v8, %v7861_v49 }
 0x6a6   :  { %6336 = vmatmul.mubr.msk.bf16.vlgmr.msra.gmra.mxu1 %vm3543_vm5, %v3537_v38  ;;  %v6200_v9 = vpop.f32.mrf.mxu0 }
 0x6a7   :  { %6346 = vmatpush3.bf16.msra.mxu1 %v4837_v7  ;;  %6347 = vmatprep.mubr.msk.bf16.mxu1 %vm6593_vm1, %v6592_v42  ;;  %v5040_v39 = vrot.slane %v5033_v27, %v6829_v46 }
 0x6a8   :  { %6357 = vmatprep.subr.bf16.mxu1 %v6592_v42 }
 0x6aa   :  { %6342 = vmatmul.mubr.msk.bf16.vlgmr.msra.gmra.mxu0 %vm3543_vm5, %v3538_v18 }
 0x6ab   :  { %6352 = vmatpush3.bf16.msra.mxu0 %v4883_v58  ;;  %6353 = vmatprep.mubr.msk.bf16.mxu0 %vm6593_vm1, %v6592_v42 }
 0x6ac   :  { %6363 = vmatprep.subr.bf16.mxu0 %v6592_v42 }
 0x6ae   :  { %6348 = vmatmul.mubr.msk.bf16.vlgmr.msra.gmra.mxu1 %vm3543_vm5, %v3539_v54 }
 0x6af   :  { %6358 = vmatpush3.bf16.msra.mxu1 %v4929_v43  ;;  %6359 = vmatprep.mubr.msk.bf16.mxu1 %vm6593_vm1, %v6592_v42 }
 0x6b0   :  { %6369 = vmatprep.subr.bf16.mxu1 %v6592_v42 }
 0x6b2   :  { %6354 = vmatmul.mubr.msk.bf16.vlgmr.msra.gmra.mxu0 %vm3543_vm5, %v3540_v16 }
 0x6b3   :  { %6364 = vmatpush3.bf16.msra.mxu0 %v4975_v29  ;;  %6365 = vmatprep.mubr.msk.bf16.mxu0 %vm6593_vm1, %v6592_v42 }
 0x6b4   :  { %6377 = vmatprep.subr.bf16.mxu0 %v6592_v42 }
 0x6b6   :  { %6360 = vmatmul.mubr.msk.bf16.vlgmr.msra.gmra.mxu1 %vm3543_vm5, %v3541_v51 }
 0x6b7   :  { %6373 = vmatprep.mubr.msk.bf16.mxu1 %vm6593_vm1, %v6592_v42 }
 0x6ba   :  { %6366 = vmatmul.mubr.msk.bf16.vlgmr.msra.gmra.mxu0 %vm3543_vm5, %v3542_v56 }
 0x6bb   :  { %6381 = vmatprep.mubr.msk.bf16.mxu0 %vm6593_vm1, %v6592_v42 }
 0x6cc   :  { %v3815_v63 = vpop.f32.mrf.mxu0 }
 0x6ce   :  { %v6211_v6 = vpop.f32.mrf.mxu0 }
 0x6d0   :  { %v3818_v59 = vpop.f32.mrf.mxu0 }
 0x6d2   :  { %v3769_v13 = vpop.f32.mrf.mxu1  ;;  %v6212_v35 = vpop.f32.mrf.mxu0 }
 0x6d4   :  { %v6205_v19 = vpop.f32.mrf.mxu1  ;;  %v3907_v21 = vpop.f32.mrf.mxu0 }
 0x6d5   :  { %v5050_v37 = vcombine.low %v3815_v63, %v3907_v21 }
 0x6d6   :  { %v3772_v50 = vpop.f32.mrf.mxu1  ;;  %v6223_v3 = vpop.f32.mrf.mxu0 }
 0x6d7   :  { %v5057_v44 = vrot.slane %v5050_v37, %v6819_v36 }
 0x6d8   :  { %v6206_v14 = vpop.f32.mrf.mxu1  ;;  %v3910_v5 = vpop.f32.mrf.mxu0 }
 0x6da   :  { %v3861_v1 = vpop.f32.mrf.mxu1  ;;  %v6224_v61 = vpop.f32.mrf.mxu0 }
 0x6db   :  { %v5042_v62 = vcombine.low %v3769_v13, %v3861_v1 }
 0x6dc   :  { %v6217_v17 = vpop.f32.mrf.mxu1 }
 0x6dd   :  { %v5049_v57 = vrot.slane %v5042_v62, %v6819_v36 }
 0x6de   :  { %v3864_v32 = vpop.f32.mrf.mxu1 }
 0x6df   :  { %v5058_v34 = vcombine.low %v5049_v57, %v5057_v44 }
 0x6e0   :  { %v6218_v53 = vpop.f32.mrf.mxu1 }
 0x6e1   :  { %v5065_v60 = vrot.slane %v5058_v34, %v6829_v46 }
 0x6e2   :  { %v3953_v41 = vpop.f32.mrf.mxu1 }
 0x6e3   :  { %v5217_v48 = vcombine.low %v5040_v39, %v5065_v60  ;;  %v5786_v52 = vcombine.high %v5040_v39, %v5065_v60 }
 0x6e4   :  { %v6229_v40 = vpop.f32.mrf.mxu1 }
 0x6e5   :  { %v7906_v15 = vrot.slane %v5217_v48, %v6819_v36  ;;  %v7909_v55 = vrot.slane %v5786_v52, %v6819_v36 }
 0x6e6   :  { %v3956_v47 = vpop.f32.mrf.mxu1 }
 0x6e7   :  { %v5250_v2 = vcombine.high %v7906_v15, %v7909_v55  ;;  %v5249_v38 = vcombine.low %v7906_v15, %v7909_v55 }
 0x6e8   :  { %v6230_v8 = vpop.f32.mrf.mxu1 }
 0x6ea   :  { %v4045_v49 = vpop.f32.mrf.mxu1 }
 0x6eb   :  { %v5067_v33 = vcombine.low %v3953_v41, %v4045_v49 }
 0x6ec   :  { %v6241_v23 = vpop.f32.mrf.mxu1 }
 0x6ed   :  { %v5074_v4 = vrot.slane %v5067_v33, %v6819_v36 }
 0x6ee   :  { %v4048_v27 = vpop.f32.mrf.mxu1 }
 0x6f0   :  { %v6242_v7 = vpop.f32.mrf.mxu1 }
 0x6f1   :  { %v7924_v7 = vrot.slane %v5250_v2, %v6829_v46 }
 0x6f2   :  { %v4137_v28 = vpop.f32.mrf.mxu1 }
 0x6f4   :  { %v6253_v24 = vpop.f32.mrf.mxu1 }
 0x6f5   :  { %v7933_v24 = vrot.slane %v5249_v38, %v6829_v46 }
 0x6f6   :  { %v4140_v9 = vpop.f32.mrf.mxu1 }
 0x6f8   :  { %v6254_v18 = vpop.f32.mrf.mxu1 }
 0x6fa   :  { %v4229_v11 = vpop.f32.mrf.mxu1 }
 0x6fb   :  { %v5092_v22 = vcombine.low %v4137_v28, %v4229_v11 }
 0x6fc   :  { %v6265_v58 = vpop.f32.mrf.mxu1 }
 0x6fd   :  { %v5099_v3 = vrot.slane %v5092_v22, %v6819_v36 }
 0x6fe   :  { %v4232_v12 = vpop.f32.mrf.mxu1 }
 0x700   :  { %v6266_v20 = vpop.f32.mrf.mxu1 }
 0x705   :  { %v3999_v31 = vpop.f32.mrf.mxu0 }
 0x707   :  { %v6235_v54 = vpop.f32.mrf.mxu0 }
 0x709   :  { %v4002_v10 = vpop.f32.mrf.mxu0 }
 0x70b   :  { %v6236_v43 = vpop.f32.mrf.mxu0 }
 0x70d   :  { %v4091_v0 = vpop.f32.mrf.mxu0 }
 0x70e   :  { %v5075_v45 = vcombine.low %v3999_v31, %v4091_v0 }
 0x70f   :  { %v6247_v16 = vpop.f32.mrf.mxu0 }
 0x710   :  { %v5082_v29 = vrot.slane %v5075_v45, %v6819_v36 }
 0x711   :  { %v4094_v25 = vpop.f32.mrf.mxu0 }
 0x712   :  { %v5083_v51 = vcombine.low %v5074_v4, %v5082_v29 }
 0x713   :  { %v6248_v56 = vpop.f32.mrf.mxu0 }
 0x714   :  { %v5090_v44 = vrot.slane %v5083_v51, %v6829_v46 }
 0x715   :  { %v4183_v63 = vpop.f32.mrf.mxu0 }
 0x717   :  { %v6259_v6 = vpop.f32.mrf.mxu0 }
 0x719   :  { %v4186_v59 = vpop.f32.mrf.mxu0 }
 0x71b   :  { %v6260_v13 = vpop.f32.mrf.mxu0 }
 0x71d   :  { %v4275_v35 = vpop.f32.mrf.mxu0  ;;  %v4321_v19 = vpop.f32.mrf.mxu1 }
 0x71e   :  { %v5100_v21 = vcombine.low %v4183_v63, %v4275_v35 }
 0x71f   :  { %v6271_v37 = vpop.f32.mrf.mxu0  ;;  %v6277_v50 = vpop.f32.mrf.mxu1 }
 0x720   :  { %v5107_v14 = vrot.slane %v5100_v21, %v6819_v36 }
 0x721   :  { %v4278_v5 = vpop.f32.mrf.mxu0  ;;  %v4324_v1 = vpop.f32.mrf.mxu1 }
 0x722   :  { %v5108_v61 = vcombine.low %v5099_v3, %v5107_v14 }
 0x723   :  { %v6272_v62 = vpop.f32.mrf.mxu0  ;;  %v6278_v17 = vpop.f32.mrf.mxu1 }
 0x724   :  { %v5115_v57 = vrot.slane %v5108_v61, %v6829_v46 }
 0x725   :  { %v4367_v32 = vpop.f32.mrf.mxu0  ;;  %v4413_v34 = vpop.f32.mrf.mxu1 }
 0x726   :  { %v5233_v53 = vcombine.low %v5090_v44, %v5115_v57  ;;  %v5787_v39 = vcombine.high %v5090_v44, %v5115_v57  ;;  %v5117_v60 = vcombine.low %v4321_v19, %v4413_v34 }
 0x727   :  { %v6283_v41 = vpop.f32.mrf.mxu0  ;;  %v6289_v48 = vpop.f32.mrf.mxu1 }
 0x728   :  { %v5240_v52 = vrot.slane %v5233_v53, %v6819_v36  ;;  %v5248_v40 = vrot.slane %v5787_v39, %v6819_v36  ;;  %v5124_v55 = vrot.slane %v5117_v60, %v6819_v36 }
 0x729   :  { %v4370_v47 = vpop.f32.mrf.mxu0  ;;  %v4416_v8 = vpop.f32.mrf.mxu1 }
 0x72a   :  { %v5266_v49 = vcombine.high %v5240_v52, %v5248_v40  ;;  %v5265_v33 = vcombine.low %v5240_v52, %v5248_v40 }
 0x72b   :  { %v6284_v23 = vpop.f32.mrf.mxu0  ;;  %v6290_v27 = vpop.f32.mrf.mxu1 }
 0x72c   :  { %v7927_v28 = vrot.slane %v5266_v49, %v6829_v46  ;;  %v7936_v9 = vrot.slane %v5265_v33, %v6829_v46 }
 0x72e   :  { %v5283_v18 = vcombine.low %v7924_v7, %v7927_v28  ;;  %v5281_v11 = vcombine.low %v7933_v24, %v7936_v9  ;;  %v5282_v2 = vcombine.high %v7933_v24, %v7936_v9  ;;  %v5284_v22 = vcombine.high %v7924_v7, %v7927_v28  ;;  %v5790_v24 = vld [vmem:[%s8081_s12] ss:$0 sm:$0xff] }
 0x74a   :  { %v4459_v58 = vpop.f32.mrf.mxu0 }
 0x74b   :  { %v5125_v12 = vcombine.low %v4367_v32, %v4459_v58 }
 0x74c   :  { %v6295_v15 = vpop.f32.mrf.mxu0 }
 0x74d   :  { %v5132_v38 = vrot.slane %v5125_v12, %v6819_v36 }
 0x74e   :  { %v4462_v20 = vpop.f32.mrf.mxu0  ;;  %v4505_v31 = vpop.f32.mrf.mxu1 }
 0x74f   :  { %v5133_v54 = vcombine.low %v5124_v55, %v5132_v38 }
 0x750   :  { %v6296_v10 = vpop.f32.mrf.mxu0  ;;  %v6301_v43 = vpop.f32.mrf.mxu1 }
 0x752   :  { %v4508_v0 = vpop.f32.mrf.mxu1  ;;  %v4551_v45 = vpop.f32.mrf.mxu0 }
 0x753   :  { %v5140_v0 = vrot.slane %v5133_v54, %v6829_v46 }
 0x754   :  { %v6302_v16 = vpop.f32.mrf.mxu1  ;;  %v6307_v4 = vpop.f32.mrf.mxu0 }
 0x756   :  { %v4554_v29 = vpop.f32.mrf.mxu0  ;;  %v4597_v25 = vpop.f32.mrf.mxu1 }
 0x757   :  { %v5142_v39 = vcombine.low %v4505_v31, %v4597_v25 }
 0x758   :  { %v6308_v51 = vpop.f32.mrf.mxu0  ;;  %v6313_v56 = vpop.f32.mrf.mxu1 }
 0x759   :  { %v5149_v47 = vrot.slane %v5142_v39, %v6819_v36 }
 0x75a   :  { %v4600_v63 = vpop.f32.mrf.mxu1  ;;  %v4643_v6 = vpop.f32.mrf.mxu0 }
 0x75b   :  { %v5150_v32 = vcombine.low %v4551_v45, %v4643_v6 }
 0x75c   :  { %v6314_v59 = vpop.f32.mrf.mxu1  ;;  %v6319_v13 = vpop.f32.mrf.mxu0 }
 0x75d   :  { %v5157_v48 = vrot.slane %v5150_v32, %v6819_v36 }
 0x75e   :  { %v4646_v35 = vpop.f32.mrf.mxu0  ;;  %v4689_v19 = vpop.f32.mrf.mxu1 }
 0x75f   :  { %v5158_v33 = vcombine.low %v5149_v47, %v5157_v48 }
 0x760   :  { %v6320_v21 = vpop.f32.mrf.mxu0  ;;  %v6325_v37 = vpop.f32.mrf.mxu1 }
 0x761   :  { %v5165_v38 = vrot.slane %v5158_v33, %v6829_v46 }
 0x762   :  { %v4692_v50 = vpop.f32.mrf.mxu1  ;;  %v4735_v3 = vpop.f32.mrf.mxu0 }
 0x763   :  { %v5285_v25 = vcombine.low %v5140_v0, %v5165_v38  ;;  %v5788_v63 = vcombine.high %v5140_v0, %v5165_v38 }
 0x764   :  { %v6326_v14 = vpop.f32.mrf.mxu1  ;;  %v6331_v5 = vpop.f32.mrf.mxu0 }
 0x765   :  { %v5292_v37 = vrot.slane %v5285_v25, %v6819_v36  ;;  %v5300_v54 = vrot.slane %v5788_v63, %v6819_v36 }
 0x766   :  { %v4738_v1 = vpop.f32.mrf.mxu0  ;;  %v4781_v61 = vpop.f32.mrf.mxu1 }
 0x767   :  { %v5167_v55 = vcombine.low %v4689_v19, %v4781_v61 }
 0x768   :  { %v6332_v62 = vpop.f32.mrf.mxu0  ;;  %v6337_v17 = vpop.f32.mrf.mxu1 }
 0x769   :  { %v5174_v4 = vrot.slane %v5167_v55, %v6819_v36  ;;  %v5318_v62 = vcombine.high %v5292_v37, %v5300_v54  ;;  %v5317_v17 = vcombine.low %v5292_v37, %v5300_v54  ;;  %v6439_v37 = vld [vmem:[%s8082_s15] sm:$0xff]  }
 0x76a   :  { %v4784_v44 = vpop.f32.mrf.mxu1  ;;  %v4827_v57 = vpop.f32.mrf.mxu0 }
 0x76b   :  { %v5175_v58 = vcombine.low %v4735_v3, %v4827_v57  ;;  %v6436_v44 = vld [vmem:[%s8080_s11 + $0x8] sm:$0xff]   ;;  %v5325_v39 = vrot.slane %v5317_v17, %v6829_v46  ;;  %v5794_v17 = vld [vmem:[%s8083_s13] ss:$0 sm:$0xff] }
 0x76c   :  { %v6338_v34 = vpop.f32.mrf.mxu1  ;;  %v6343_v53 = vpop.f32.mrf.mxu0  ;;  %6370 = vmatpush3.bf16.msra.mxu1 %v6436_v44 }
 0x76d   :  { %v5182_v10 = vrot.slane %v5175_v58, %v6819_v36  ;;  %6371 = vmatprep.subr.bf16.mxu1 %v6592_v42  ;;  %v5332_v34 = vrot.slane %v5318_v62, %v6829_v46 }
 0x76e   :  { %v4830_v60 = vpop.f32.mrf.mxu0  ;;  %v4873_v41 = vpop.f32.mrf.mxu1 }
 0x76f   :  { %v5183_v6 = vcombine.low %v5174_v4, %v5182_v10 }
 0x770   :  { %v6344_v52 = vpop.f32.mrf.mxu0  ;;  %v6349_v40 = vpop.f32.mrf.mxu1 }
 0x771   :  { %v5190_v50 = vrot.slane %v5183_v6, %v6829_v46 }
 0x772   :  { %v4876_v8 = vpop.f32.mrf.mxu1  ;;  %v4919_v49 = vpop.f32.mrf.mxu0 }
 0x774   :  { %v6350_v23 = vpop.f32.mrf.mxu1  ;;  %v6355_v27 = vpop.f32.mrf.mxu0 }
 0x776   :  { %v4922_v12 = vpop.f32.mrf.mxu0  ;;  %v4965_v15 = vpop.f32.mrf.mxu1 }
 0x777   :  { %v5192_v43 = vcombine.low %v4873_v41, %v4965_v15 }
 0x778   :  { %v6356_v20 = vpop.f32.mrf.mxu0  ;;  %v6361_v31 = vpop.f32.mrf.mxu1 }
 0x779   :  { %v5199_v59 = vrot.slane %v5192_v43, %v6819_v36 }
 0x77a   :  { %v4968_v45 = vpop.f32.mrf.mxu1  ;;  %v5011_v16 = vpop.f32.mrf.mxu0 }
 0x77b   :  { %v5200_v29 = vcombine.low %v4919_v49, %v5011_v16 }
 0x77c   :  { %v6362_v51 = vpop.f32.mrf.mxu1  ;;  %v6367_v56 = vpop.f32.mrf.mxu0 }
 0x77d   :  { %v5207_v13 = vrot.slane %v5200_v29, %v6819_v36 }
 0x77e   :  { %v5014_v35 = vpop.f32.mrf.mxu0 }
 0x77f   :  { %v5208_v19 = vcombine.low %v5199_v59, %v5207_v13 }
 0x780   :  { %v6368_v21 = vpop.f32.mrf.mxu0 }
 0x781   :  { %v5215_v3 = vrot.slane %v5208_v19, %v6829_v46  ;;  %v6438_v21 = vld [vmem:[%s8082_s15 + $0x8] sm:$0xff]  }
 0x782   :  { %6378 = vmatpush3.bf16.msra.mxu0 %v6438_v21 }
 0x783   :  { %v5301_v14 = vcombine.low %v5190_v50, %v5215_v3  ;;  %v5789_v5 = vcombine.high %v5190_v50, %v5215_v3  ;;  %6379 = vmatprep.subr.bf16.mxu0 %v6592_v42 }
 0x785   :  { %v5308_v1 = vrot.slane %v5301_v14, %v6819_v36  ;;  %v5316_v61 = vrot.slane %v5789_v5, %v6819_v36  ;;  %v6437_v36 = vld [vmem:[%s8080_s11] sm:$0xff]   ;;  %s6599_s11 = smov 16  }
 0x786   :  { %6372 = vmatpush3.bf16.msra.mxu1 %v6437_v36  ;;  %6380 = vmatpush3.bf16.msra.mxu0 %v6439_v37 }
 0x787   :  { %v5334_v57 = vcombine.high %v5308_v1, %v5316_v61  ;;  %v5333_v32 = vcombine.low %v5308_v1, %v5316_v61  ;;  %6385 = vmatprep.subr.bf16.mxu1 %v6592_v42 }
 0x789   :  { %v5348_v53 = vrot.slane %v5334_v57, %v6829_v46  ;;  %v5341_v60 = vrot.slane %v5333_v32, %v6829_v46 }
 0x78b   :  { %v5351_v41 = vcombine.low %v5332_v34, %v5348_v53  ;;  %v5350_v48 = vcombine.high %v5325_v39, %v5341_v60  ;;  %v5349_v52 = vcombine.low %v5325_v39, %v5341_v60  ;;  %v5352_v40 = vcombine.high %v5332_v34, %v5348_v53  ;;  %v5795_v34 = vld [vmem:[%s8084_s14] ss:$0 sm:$0xff] }
 0x78d   :  { %v6420_v47 = vpack.i.bf16 %v5351_v41, %v5283_v18  ;;  %v6415_v8 = vpack.i.bf16 %v5350_v48, %v5282_v2  ;;  %v6425_v46 = vpack.i.bf16 %v5352_v40, %v5284_v22  ;;  %v6440_v41 = vld [vmem:[%s8085_s17 + $0x38] sm:$0xff]   ;;  %v6441_v48 = vld [vmem:[%s8085_s17 + $0x30] sm:$0xff]   ;;  %v6443_v40 = vld [vmem:[%s8085_s17 + $0x20] sm:$0xff]  }
 0x78f   :  { %6421 = vrot.lane.b32.xlu1 %v6420_v47, %s6599_s11  ;;  %6416 = vrot.lane.b32.xlu0 %v6415_v8, %s6600_s1  ;;  %v6444_v47 = vld [vmem:[%s8085_s17 + $0x18] sm:$0xff]   ;;  %v6445_v8 = vld [vmem:[%s8085_s17 + $0x10] sm:$0xff]  }
 0x793   :  { %6426 = vrot.lane.b32.xlu1 %v6425_v46, %s6601_s22  ;;  %v6446_v46 = vld [vmem:[%s8085_s17 + $0x8] sm:$0xff]  }
 0x801   :  { %v6422_v49 = vpop.permute.xlu1 %6421  ;;  %v6417_v33 = vpop.permute.xlu0 %6416 }
 0x802   :  { %v6419_v23 = vunpack.i.h.bf16 %v6417_v33  ;;  %v6418_v27 = vunpack.i.l.bf16 %v6417_v33  ;;  %v6424_v58 = vunpack.i.h.bf16 %v6422_v49  ;;  %v6423_v18 = vunpack.i.l.bf16 %v6422_v49  ;;  %v6447_v49 = vld [vmem:[%s8085_s17] sm:$0xff]  }
 0x803   :  { %v5796_v33 = vld [vmem:[%s8086_s16] ss:$0 sm:$0xff] }
 0x804   :  { %v5377_v2 = vsel %vm1685_vm2, %v5281_v11, %v6418_v27  ;;  %v5378_v7 = vsel %vm1685_vm2, %v5349_v52, %v6419_v23  ;;  %v6442_v52 = vld [vmem:[%s8085_s17 + $0x28] sm:$0xff]  }
 0x805   :  { %v6427_v28 = vpop.permute.xlu1 %6426  ;;  %v5380_v15 = vsel %vm5379_vm6, %v5377_v2, %v6423_v18  ;;  %v5381_v55 = vsel %vm5379_vm6, %v5378_v7, %v6424_v58 }
 0x806   :  { %v6429_v22 = vunpack.i.h.bf16 %v6427_v28  ;;  %v6428_v12 = vunpack.i.l.bf16 %v6427_v28 }
 0x808   :  { %v5383_v38 = vsel %vm5382_vm7, %v5380_v15, %v6428_v12  ;;  %v5384_v20 = vsel %vm5382_vm7, %v5381_v55, %v6429_v22 }
 0x809   :  { %v5385_v31 = vpack.c.bf16 %v5384_v20, %v5383_v38 }
 0x80b   :  { %6374 = vmatmul.mubr.msk.bf16.vlgmr.msra.gmra.mxu1 %vm67_vm0, %v5385_v31 }
 0x80c   :  { %6401 = vmatprep.mubr.msk.bf16.mxu1 %vm6593_vm1, %v6592_v42  ;;  %6386 = vmatpush3.bf16.msra.mxu1 %v6440_v41 }
 0x80d   :  { %6387 = vmatprep.subr.bf16.mxu1 %v6592_v42 }
 0x810   :  { %6388 = vmatpush3.bf16.msra.mxu1 %v6441_v48 }
 0x811   :  { %6389 = vmatprep.subr.bf16.mxu1 %v6592_v42 }
 0x814   :  { %6390 = vmatpush3.bf16.msra.mxu1 %v6442_v52 }
 0x815   :  { %6391 = vmatprep.subr.bf16.mxu1 %v6592_v42 }
 0x818   :  { %6392 = vmatpush3.bf16.msra.mxu1 %v6443_v40 }
 0x819   :  { %6393 = vmatprep.subr.bf16.mxu1 %v6592_v42 }
 0x81c   :  { %6394 = vmatpush3.bf16.msra.mxu1 %v6444_v47 }
 0x81d   :  { %6395 = vmatprep.subr.bf16.mxu1 %v6592_v42 }
 0x820   :  { %6396 = vmatpush3.bf16.msra.mxu1 %v6445_v8 }
 0x821   :  { %6397 = vmatprep.subr.bf16.mxu1 %v6592_v42 }
 0x824   :  { %6398 = vmatpush3.bf16.msra.mxu1 %v6446_v46 }
 0x825   :  { %6399 = vmatprep.subr.bf16.mxu1 %v6592_v42 }
 0x828   :  { %6400 = vmatpush3.bf16.msra.mxu1 %v6447_v49 }
 0x8cb   :  { %v5446_v9 = vpop.f32.mrf.mxu1 }
 0x8cc   :  { %v5447_v11 = vadd.f32 %v5790_v24, %v5446_v9 }
 0x8cd   :  { %v6375_v10 = vpop.f32.mrf.mxu1 }
 0x8ce   :  { %v7995_v43 = vadd.f32 %v5447_v11, %v6718_v26 }
 0x8cf   :  { %v5449_v0 = vpop.f32.mrf.mxu1 }
 0x8d0   :  { %v5450_v45 = vadd.f32 %v5790_v24, %v5449_v0  ;;  %v5457_v16 = vsel %vm67_vm0, %v7995_v43, 0.0 }
 0x8d1   :  { %5458 = vadd.xlane.f32.xlu1 %v5457_v16  ;;  %v6376_v4 = vpop.f32.mrf.mxu1 }
 0x8d2   :  { %v8000_v29 = vadd.f32 %v5450_v45, %v6722_v30 }
 0x8d4   :  { %v5460_v25 = vsel %vm67_vm0, %v8000_v29, 0.0 }
 0x8d5   :  { %5461 = vadd.xlane.f32.xlu0 %v5460_v25 }
 0x95a   :  { %v5459_v51 = vpop.xlane.xlu1 %5458 }
 0x95b   :  { %v5463_v56 = vmul.f32 0.03125, %v5459_v51 }
 0x95d   :  { %v5465_v63 = vsub.f32 %v7995_v43, %v5463_v56  ;;  %v5800_v56 = vld [vmem:[%s8087_s18] ss:$0 sm:$0xff] }
 0x95e   :  { %v5462_v26 = vpop.xlane.xlu0 %5461 }
 0x95f   :  { %v5464_v6 = vmul.f32 0.03125, %v5462_v26  ;;  %v5467_v59 = vmul.f32 %v5465_v63, %v5465_v63 }
 0x961   :  { %v5466_v13 = vsub.f32 %v8000_v29, %v5464_v6  ;;  %v5469_v35 = vsel %vm67_vm0, %v5467_v59, 0.0 }
 0x962   :  { %5470 = vadd.xlane.f32.xlu0 %v5469_v35 }
 0x963   :  { %v5468_v19 = vmul.f32 %v5466_v13, %v5466_v13 }
 0x965   :  { %v5472_v30 = vsel %vm67_vm0, %v5468_v19, 0.0 }
 0x966   :  { %5473 = vadd.xlane.f32.xlu0 %v5472_v30 }
 0x9eb   :  { %v5471_v54 = vpop.xlane.xlu0 %5470 }
 0x9ec   :  { %v5475_v50 = vmul.f32 0.03125, %v5471_v54 }
 0x9ee   :  { %v5477_v3 = vadd.f32 1e-05, %v5475_v50 }
 0x9ef   :  { %v5474_v14 = vpop.xlane.xlu0 %5473 }
 0x9f0   :  { %6584 = vrsqrt.f32 %v5477_v3  ;;  %v5476_v5 = vmul.f32 0.03125, %v5474_v14 }
 0x9f2   :  { %v5478_v1 = vadd.f32 1e-05, %v5476_v5 }
 0x9f4   :  { %6586 = vrsqrt.f32 %v5478_v1 }
 0x9fd   :  { %v6585_v61 = vpop.eup %6584 }
 0x9fe   :  { %v5481_v62 = vmul.f32 %v6585_v61, %v5465_v63 }
 0xa00   :  { %v5489_v57 = vmul.f32 %v5794_v17, %v5481_v62 }
 0xa01   :  { %v6587_v44 = vpop.eup %6586 }
 0xa02   :  { %v5482_v32 = vmul.f32 %v6587_v44, %v5466_v13  ;;  %v5497_v60 = vadd.f32 %v5795_v34, %v5489_v57 }
 0xa04   :  { %v5490_v53 = vmul.f32 %v5794_v17, %v5482_v32 }
 0xa06   :  { %v5498_v39 = vadd.f32 %v5795_v34, %v5490_v53 }
 0xa08   :  { %v5499_v36 = vpack.c.bf16 %v5498_v39, %v5497_v60 }
 0xa0a   :  { %6382 = vmatmul.mubr.msk.bf16.vlgmr.msra.gmra.mxu0 %vm67_vm0, %v5499_v36 }
 0xaca   :  { %v5560_v23 = vpop.f32.mrf.mxu0 }
 0xacb   :  { %v5561_v27 = vadd.f32 %v5796_v33, %v5560_v23 }
 0xacc   :  { %v6383_v58 = vpop.f32.mrf.mxu0 }
 0xacd   :  { %v5569_v18 = vmul.f32 0.044715, %v5561_v27  ;;  %v5567_v0 = vmul.f32 0.5, %v5561_v27 }
 0xace   :  { %v5563_v2 = vpop.f32.mrf.mxu0 }
 0xacf   :  { %v5571_v7 = vmul.f32 %v5569_v18, %v5561_v27  ;;  %v5564_v28 = vadd.f32 %v5796_v33, %v5563_v2 }
 0xad0   :  { %v6384_v22 = vpop.f32.mrf.mxu0 }
 0xad1   :  { %v5573_v12 = vmul.f32 %v5571_v7, %v5561_v27  ;;  %v5570_v15 = vmul.f32 0.044715, %v5564_v28  ;;  %v5568_v45 = vmul.f32 0.5, %v5564_v28 }
 0xad3   :  { %v5575_v55 = vadd.f32 %v5573_v12, %v5561_v27  ;;  %v5572_v38 = vmul.f32 %v5570_v15, %v5564_v28 }
 0xad5   :  { %v5577_v20 = vmul.f32 0.7978846, %v5575_v55  ;;  %v5574_v31 = vmul.f32 %v5572_v38, %v5564_v28 }
 0xad7   :  { %6588 = vtanh.f32 %v5577_v20  ;;  %v5576_v42 = vadd.f32 %v5574_v31, %v5564_v28 }
 0xad9   :  { %v5578_v24 = vmul.f32 0.7978846, %v5576_v42 }
 0xadb   :  { %6590 = vtanh.f32 %v5578_v24 }
 0xae4   :  { %v6589_v9 = vpop.eup %6588 }
 0xae5   :  { %v5581_v11 = vadd.f32 1.0, %v6589_v9 }
 0xae7   :  { %v5583_v4 = vmul.f32 %v5581_v11, %v5567_v0 }
 0xae8   :  { %v6591_v10 = vpop.eup %6590 }
 0xae9   :  { %v5582_v16 = vadd.f32 1.0, %v6591_v10 }
 0xaeb   :  { %v5584_v25 = vmul.f32 %v5582_v16, %v5568_v45 }
 0xaed   :  { %v5585_v51 = vpack.c.bf16 %v5584_v25, %v5583_v4 }
 0xaef   :  { %6402 = vmatmul.mubr.bf16.vlgmr.msra.gmra.mxu1 %v5585_v51 }
 0xbaf   :  { %v5691_v63 = vpop.f32.mrf.mxu1 }
 0xbb0   :  { %v5692_v26 = vadd.f32 %v5800_v56, %v5691_v63 }
 0xbb1   :  { %v6403_v6 = vpop.f32.mrf.mxu1 }
 0xbb2   :  { %v5698_v59 = vadd.f32 %v5692_v26, %v7995_v43 }
 0xbb3   :  { %v5694_v13 = vpop.f32.mrf.mxu1 }
 0xbb4   :  { %5700 = vst.msk [vmem:[%s8088_s19] sm:$0xff] %vm67_vm0, %v5698_v59  ;;  %v5695_v35 = vadd.f32 %v5800_v56, %v5694_v13 }
 0xbb5   :  { %v6404_v19 = vpop.f32.mrf.mxu1 }
 0xbb6   :  { %v5699_v30 = vadd.f32 %v5695_v35, %v8000_v29 }
 0xbb8   :  { %5701 = vst.msk [vmem:[%s8088_s19 + $0x8] sm:$0xff] %vm67_vm0, %v5699_v30 }

// kernel: _lambda_.4
= control target key start
LH: loop header
LB: loop body
LE: loop exit
PB: predicated region body
PF: predicated region fallthrough
CT: control target
= control target key end

     0   :  { %vm61_vm0 = vcmask 261120   ;;  %v6538_v14 = vmov 0.0   ;;  %vm6539_vm1 = vmmov 0   ;;  %s6540_s18 = smov 112   ;;  %s6541_s19 = smov 120   ;;  %v328_v61 = vlaneseq  ;;  %s7991_s0 = inlined_call_operand.vmem [shape: f32[16,32], index: 0, kind: input, shape index: {}]   ;;  %s7992_s3 = inlined_call_operand.vmem [shape: bf16[32,32], index: 3, kind: input, shape index: {}]   ;;  %s7993_s4 = inlined_call_operand.vmem [shape: bf16[32,32], index: 4, kind: input, shape index: {}]   ;;  %s7994_s5 = inlined_call_operand.vmem [shape: bf16[32,32], index: 5, kind: input, shape index: {}]   ;;  %s7995_s1 = inlined_call_operand.vmem [shape: f32[1,32], index: 1, kind: input, shape index: {}]   ;;  %s7996_s2 = inlined_call_operand.vmem [shape: f32[1,32], index: 2, kind: input, shape index: {}]   ;;  %s7997_s6 = inlined_call_operand.vmem [shape: f32[1,32], index: 6, kind: input, shape index: {}]   ;;  %s7998_s7 = inlined_call_operand.vmem [shape: f32[1,32], index: 7, kind: input, shape index: {}]   ;;  %s7999_s8 = inlined_call_operand.vmem [shape: f32[1,32], index: 8, kind: input, shape index: {}]   ;;  %s8000_s9 = inlined_call_operand.vmem [shape: bf16[32,32], index: 9, kind: input, shape index: {}]   ;;  %s8001_s10 = inlined_call_operand.vmem [shape: f32[1,32], index: 10, kind: input, shape index: {}]   ;;  %s8002_s13 = inlined_call_operand.vmem [shape: bf16[32,128], index: 13, kind: input, shape index: {}]   ;;  %s8003_s11 = inlined_call_operand.vmem [shape: f32[1,32], index: 11, kind: input, shape index: {}]   ;;  %s8004_s12 = inlined_call_operand.vmem [shape: f32[1,32], index: 12, kind: input, shape index: {}]   ;;  %s8005_s15 = inlined_call_operand.vmem [shape: bf16[128,32], index: 15, kind: input, shape index: {}]   ;;  %s8006_s14 = inlined_call_operand.vmem [shape: f32[1,128], index: 14, kind: input, shape index: {}]   ;;  %s8007_s16 = inlined_call_operand.vmem [shape: f32[1,32], index: 16, kind: input, shape index: {}]   ;;  %s8008_s17 = inlined_call_operand.vmem [shape: f32[16,32], index: 17, kind: output, shape index: {}]  }
   0x1   :  { %8011 = sst [smem:[#allocation2_spill]] %s7991_s0  ;;  %5909 = vmatprep.subr.bf16.mxu0 %v6538_v14  ;;  %5913 = vmatprep.mubr.msk.bf16.mxu0 %vm6539_vm1, %v6538_v14  ;;  %v5656_v25 = vld [vmem:[%s7995_s1] ss:$0 sm:$0xff]  ;;  %v6380_v33 = vld [vmem:[%s7993_s4 + $0x8] sm:$0xff]   ;;  %v6543_v59 = vmov 1983009808  }
   0x2   :  { %8012 = sst [smem:[#allocation3_spill]] %s7992_s3  ;;  %5933 = vmatprep.subr.bf16.mxu1 %v6538_v14  ;;  %5935 = vmatprep.mubr.msk.bf16.mxu1 %vm6539_vm1, %v6538_v14  ;;  %v5657_v29 = vld [vmem:[%s7996_s2] ss:$0 sm:$0xff]  ;;  %v6382_v36 = vld [vmem:[%s7994_s5 + $0x8] sm:$0xff]   ;;  %v326_v60 = vunpack.c.l.s4 %v6543_v59  ;;  %vm1635_vm2 = vcmask 64512   ;;  %vm3108_vm3 = vcmask 9216  }
   0x3   :  { %s8013_s26 = sld [smem:[#allocation2_spill]]  ;;  %v6381_v35 = vld [vmem:[%s7993_s4] sm:$0xff]   ;;  %vm3497_vm4 = vcmask 1040384   ;;  %vm3493_vm5 = vcmask 15360   ;;  %s6546_s23 = smov 8   ;;  %vm5329_vm6 = vcmask 130048  }
   0x4   :  { %s8014_s30 = sld [smem:[#allocation3_spill]]  ;;  %v6383_v37 = vld [vmem:[%s7994_s5] sm:$0xff]   ;;  %s6547_s24 = smov 24   ;;  %vm5332_vm7 = vcmask 195584  }
   0x5   :  { %v5658_v41 = vld [vmem:[%s7997_s6] ss:$0 sm:$0xff]  ;;  %s6542_s6 = smov 104  }
   0x6   :  { %v5662_v43 = vld [vmem:[%s7998_s7] ss:$0 sm:$0xff] }
   0x9   :  { %v57_v0 = vld [vmem:[%s8013_s26] sm:$0xff]  ;;  %v58_v1 = vld [vmem:[%s8013_s26 + $0x8] sm:$0xff] }
   0xa   :  { %v62_v2 = vsel %vm61_vm0, %v57_v0, 0.0  ;;  %v65_v3 = vsel %vm61_vm0, %v58_v1, 0.0  ;;  %v6378_v15 = vld [vmem:[%s8014_s30 + $0x8] sm:$0xff]   ;;  %v6379_v16 = vld [vmem:[%s8014_s30] sm:$0xff]  }
   0xb   :  { %63 = vadd.xlane.f32.xlu0 %v62_v2  ;;  %5910 = vmatpush3.bf16.msra.mxu0 %v6378_v15  ;;  %v6544_v2 = vmov 1934713408  }
   0xc   :  { %5911 = vmatprep.subr.bf16.mxu0 %v6538_v14 }
   0xf   :  { %66 = vadd.xlane.f32.xlu0 %v65_v3  ;;  %5912 = vmatpush3.bf16.msra.mxu0 %v6379_v16  ;;  %v358_v3 = vunpack.c.l.s4 %v6544_v2 }
  0x10   :  { %5917 = vmatprep.subr.bf16.mxu0 %v6538_v14 }
  0x94   :  { %v64_v4 = vpop.xlane.xlu0 %63 }
  0x95   :  { %v69_v5 = vmul.f32 0.03125, %v64_v4 }
  0x97   :  { %v71_v6 = vsub.f32 %v57_v0, %v69_v5  ;;  %v327_v0 = vunpack.c.0.s8 %v326_v60 }
  0x98   :  { %v67_v7 = vpop.xlane.xlu0 %66 }
  0x99   :  { %v70_v8 = vmul.f32 0.03125, %v67_v7  ;;  %v73_v9 = vmul.f32 %v71_v6, %v71_v6 }
  0x9b   :  { %v72_v10 = vsub.f32 %v58_v1, %v70_v8  ;;  %v75_v11 = vsel %vm61_vm0, %v73_v9, 0.0  ;;  %v329_v1 = vshrl.u32 %v328_v61, 7  ;;  %v359_v9 = vunpack.c.0.s8 %v358_v3 }
  0x9c   :  { %76 = vadd.xlane.f32.xlu1 %v75_v11 }
  0x9d   :  { %v74_v12 = vmul.f32 %v72_v10, %v72_v10  ;;  %v6747_v16 = vsub.s32 %v359_v9, %v329_v1 }
  0x9f   :  { %v78_v13 = vsel %vm61_vm0, %v74_v12, 0.0 }
  0xa0   :  { %79 = vadd.xlane.f32.xlu1 %v78_v13 }
 0x125   :  { %v77_v17 = vpop.xlane.xlu1 %76 }
 0x126   :  { %v81_v18 = vmul.f32 0.03125, %v77_v17 }
 0x128   :  { %v83_v19 = vadd.f32 1e-05, %v81_v18 }
 0x129   :  { %v80_v20 = vpop.xlane.xlu1 %79 }
 0x12a   :  { %6396 = vrsqrt.f32 %v83_v19  ;;  %v82_v21 = vmul.f32 0.03125, %v80_v20 }
 0x12c   :  { %v84_v22 = vadd.f32 1e-05, %v82_v21 }
 0x12e   :  { %6398 = vrsqrt.f32 %v84_v22 }
 0x137   :  { %v6397_v23 = vpop.eup %6396 }
 0x138   :  { %v87_v24 = vmul.f32 %v6397_v23, %v71_v6  ;;  %v6737_v6 = vsub.s32 %v327_v0, %v329_v1 }
 0x13a   :  { %v95_v28 = vmul.f32 %v5656_v25, %v87_v24 }
 0x13b   :  { %v6399_v26 = vpop.eup %6398 }
 0x13c   :  { %v88_v27 = vmul.f32 %v6399_v26, %v72_v10  ;;  %v103_v31 = vadd.f32 %v5657_v29, %v95_v28 }
 0x13e   :  { %v96_v30 = vmul.f32 %v5656_v25, %v88_v27 }
 0x140   :  { %v104_v32 = vadd.f32 %v5657_v29, %v96_v30 }
 0x142   :  { %v105_v34 = vpack.c.bf16 %v104_v32, %v103_v31 }
 0x144   :  { %5914 = vmatmul.mubr.msk.bf16.vlgmr.msra.gmra.mxu0 %vm61_vm0, %v105_v34 }
 0x145   :  { %5918 = vmatpush3.bf16.msra.mxu0 %v6380_v33  ;;  %5921 = vmatprep.mubr.msk.bf16.mxu0 %vm6539_vm1, %v6538_v14 }
 0x146   :  { %5919 = vmatprep.subr.bf16.mxu0 %v6538_v14 }
 0x149   :  { %5920 = vmatpush3.bf16.msra.mxu0 %v6381_v35 }
 0x14a   :  { %5925 = vmatprep.subr.bf16.mxu0 %v6538_v14 }
 0x14c   :  { %5922 = vmatmul.mubr.msk.bf16.vlgmr.msra.gmra.mxu0 %vm61_vm0, %v105_v34 }
 0x14d   :  { %5926 = vmatpush3.bf16.msra.mxu0 %v6382_v36  ;;  %5929 = vmatprep.mubr.msk.bf16.mxu0 %vm6539_vm1, %v6538_v14 }
 0x14e   :  { %5927 = vmatprep.subr.bf16.mxu0 %v6538_v14 }
 0x151   :  { %5928 = vmatpush3.bf16.msra.mxu0 %v6383_v37 }
 0x152   :  { %5939 = vmatprep.subr.bf16.mxu0 %v6538_v14 }
 0x154   :  { %5930 = vmatmul.mubr.msk.bf16.vlgmr.msra.gmra.mxu0 %vm61_vm0, %v105_v34 }
 0x155   :  { %5941 = vmatprep.mubr.msk.bf16.mxu0 %vm6539_vm1, %v6538_v14 }
 0x204   :  { %v166_v38 = vpop.f32.mrf.mxu0 }
 0x205   :  { %v167_v45 = vadd.f32 %v5658_v41, %v166_v38 }
 0x206   :  { %v5915_v39 = vpop.f32.mrf.mxu0 }
 0x207   :  { %v6705_v49 = vmul.f32 0.35355338, %v167_v45 }
 0x208   :  { %v169_v40 = vpop.f32.mrf.mxu0 }
 0x209   :  { %v170_v55 = vadd.f32 %v5658_v41, %v169_v40 }
 0x20a   :  { %v5916_v42 = vpop.f32.mrf.mxu0 }
 0x20b   :  { %v6725_v57 = vmul.f32 0.35355338, %v170_v55 }
 0x20c   :  { %v230_v44 = vpop.f32.mrf.mxu0 }
 0x20d   :  { %v6699_v46 = vadd.f32 %v5662_v43, %v230_v44 }
 0x20e   :  { %v5923_v47 = vpop.f32.mrf.mxu0 }
 0x20f   :  { %755 = vrot.lane.b32.xlu1 %v6699_v46, %s6540_s18  ;;  %749 = vrot.lane.b32.xlu0 %v6699_v46, %s6541_s19 }
 0x210   :  { %v233_v48 = vpop.f32.mrf.mxu0 }
 0x211   :  { %v6713_v52 = vadd.f32 %v5662_v43, %v233_v48 }
 0x212   :  { %v5924_v50 = vpop.f32.mrf.mxu0 }
 0x213   :  { %761 = vrot.lane.b32.xlu1 %v6699_v46, %s6542_s6  ;;  %311 = vrot.lane.b32.xlu0 %v6705_v49, %s6540_s18 }
 0x214   :  { %v6711_v51 = vpop.f32.mrf.mxu0 }
 0x216   :  { %v5931_v53 = vpop.f32.mrf.mxu0 }
 0x217   :  { %305 = vrot.lane.b32.xlu1 %v6705_v49, %s6541_s19  ;;  %751 = vrot.lane.b32.xlu0 %v6713_v52, %s6541_s19 }
 0x218   :  { %v6719_v54 = vpop.f32.mrf.mxu0 }
 0x21a   :  { %v5932_v56 = vpop.f32.mrf.mxu0 }
 0x21b   :  { %317 = vrot.lane.b32.xlu1 %v6705_v49, %s6542_s6  ;;  %763 = vrot.lane.b32.xlu0 %v6713_v52, %s6542_s6 }
 0x21f   :  { %757 = vrot.lane.b32.xlu1 %v6713_v52, %s6540_s18  ;;  %313 = vrot.lane.b32.xlu0 %v6725_v57, %s6540_s18 }
 0x223   :  { %307 = vrot.lane.b32.xlu1 %v6725_v57, %s6541_s19 }
 0x227   :  { %319 = vrot.lane.b32.xlu1 %v6725_v57, %s6542_s6 }
 0x281   :  { %v756_v58 = vpop.permute.xlu1 %755  ;;  %v750_v62 = vpop.permute.xlu0 %749 }
 0x282   :  { %v767_v7 = vcombine.low %v6699_v46, %v756_v58  ;;  %v768_v37 = vcombine.high %v6699_v46, %v756_v58 }
 0x284   :  { %v775_v13 = vrot.slane %v767_v7, %v6737_v6  ;;  %v6772_v48 = vrot.slane %v768_v37, %v6737_v6 }
 0x285   :  { %v762_v63 = vpop.permute.xlu1 %761  ;;  %v6740_v8 = vpop.permute.xlu0 %311 }
 0x286   :  { %v783_v4 = vcombine.low %v750_v62, %v762_v63  ;;  %v323_v11 = vcombine.low %v6705_v49, %v6740_v8  ;;  %v784_v32 = vcombine.high %v750_v62, %v762_v63  ;;  %v324_v1 = vcombine.high %v6705_v49, %v6740_v8 }
 0x288   :  { %v791_v10 = vrot.slane %v783_v4, %v6737_v6  ;;  %v331_v18 = vrot.slane %v323_v11, %v6737_v6  ;;  %v6766_v42 = vrot.slane %v784_v32, %v6737_v6  ;;  %v6797_v49 = vrot.slane %v324_v1, %v6737_v6 }
 0x289   :  { %v6735_v5 = vpop.permute.xlu1 %305 }
 0x28a   :  { %v799_v17 = vcombine.low %v775_v13, %v791_v10  ;;  %v800_v24 = vcombine.high %v775_v13, %v791_v10  ;;  %v815_v56 = vcombine.low %v6772_v48, %v6766_v42 }
 0x28c   :  { %v807_v21 = vrot.slane %v799_v17, %v6747_v16  ;;  %v814_v27 = vrot.slane %v800_v24, %v6747_v16  ;;  %v823_v3 = vrot.slane %v815_v56, %v6747_v16 }
 0x28d   :  { %v318_v12 = vpop.permute.xlu1 %317 }
 0x28e   :  { %v339_v15 = vcombine.low %v6735_v5, %v318_v12  ;;  %v902_v23 = vcombine.high %v807_v21, %v6538_v14  ;;  %v901_v29 = vrot.slane %v807_v21, %v6737_v6  ;;  %v935_v33 = vcombine.high %v814_v27, %v6538_v14 }
 0x28f   :  { %v934_v46 = vrot.slane %v814_v27, %v6737_v6  ;;  %v340_v62 = vcombine.high %v6735_v5, %v318_v12  ;;  %v968_v8 = vcombine.high %v823_v3, %v6538_v14 }
 0x290   :  { %v347_v19 = vrot.slane %v339_v15, %v6737_v6  ;;  %v909_v26 = vrot.slane %v902_v23, %v6737_v6  ;;  %v942_v44 = vrot.slane %v935_v33, %v6737_v6 }
 0x291   :  { %v6792_v10 = vrot.slane %v340_v62, %v6737_v6 }
 0x292   :  { %v355_v20 = vcombine.low %v331_v18, %v347_v19  ;;  %v910_v31 = vcombine.low %v901_v29, %v909_v26  ;;  %v911_v36 = vcombine.high %v901_v29, %v909_v26  ;;  %v356_v38 = vcombine.high %v331_v18, %v347_v19 }
 0x293   :  { %v943_v59 = vcombine.low %v934_v46, %v942_v44  ;;  %v944_v18 = vcombine.high %v934_v46, %v942_v44  ;;  %v371_v19 = vcombine.low %v6797_v49, %v6792_v10  ;;  %v967_v26 = vrot.slane %v823_v3, %v6737_v6 }
 0x294   :  { %v363_v22 = vrot.slane %v355_v20, %v6747_v16  ;;  %v918_v34 = vrot.slane %v910_v31, %v6747_v16  ;;  %v925_v43 = vrot.slane %v911_v36, %v6747_v16  ;;  %v370_v50 = vrot.slane %v356_v38, %v6747_v16 }
 0x295   :  { %v951_v7 = vrot.slane %v943_v59, %v6747_v16  ;;  %v958_v24 = vrot.slane %v944_v18, %v6747_v16  ;;  %v816_v31 = vcombine.high %v6772_v48, %v6766_v42 }
 0x296   :  { %v458_v25 = vcombine.high %v363_v22, %v6538_v14  ;;  %v457_v30 = vrot.slane %v363_v22, %v6737_v6  ;;  %v1159_v39 = vpack.c.bf16 %v918_v34, %v918_v34  ;;  %v926_v40 = vcombine.high %v918_v34, %v6538_v14 }
 0x297   :  { %v927_v58 = vcombine.high %v925_v43, %v6538_v14  ;;  %v1161_v61 = vpack.c.bf16 %v925_v43, %v925_v43  ;;  %v491_v0 = vcombine.high %v370_v50, %v6538_v14  ;;  %v490_v12 = vrot.slane %v370_v50, %v6737_v6 }
 0x298   :  { %v465_v28 = vrot.slane %v458_v25, %v6737_v6  ;;  %v1640_v45 = vsel %vm1635_vm2, %v1159_v39, 0  ;;  %v1160_v47 = vpack.c.bf16 %v926_v40, %v926_v40  ;;  %v959_v15 = vcombine.high %v951_v7, %v6538_v14 }
 0x299   :  { %5934 = vmatpush3.bf16.xpose.msra.mxu1 %v1640_v45  ;;  %v1162_v4 = vpack.c.bf16 %v927_v58, %v927_v58  ;;  %v1732_v9 = vsel %vm1635_vm2, %v1161_v61, 0  ;;  %v498_v11 = vrot.slane %v491_v0, %v6737_v6  ;;  %v1163_v17 = vpack.c.bf16 %v951_v7, %v951_v7 }
 0x29a   :  { %v466_v35 = vcombine.low %v457_v30, %v465_v28  ;;  %v1686_v53 = vsel %vm1635_vm2, %v1160_v47, 0  ;;  %5945 = vmatprep.subr.bf16.mxu1 %v6538_v14  ;;  %v467_v63 = vcombine.high %v457_v30, %v465_v28  ;;  %v1164_v23 = vpack.c.bf16 %v959_v15, %v959_v15 }
 0x29b   :  { %5940 = vmatpush3.bf16.xpose.msra.mxu0 %v1686_v53  ;;  %v1778_v13 = vsel %vm1635_vm2, %v1162_v4, 0  ;;  %v499_v20 = vcombine.low %v490_v12, %v498_v11  ;;  %v975_v25 = vrot.slane %v968_v8, %v6737_v6  ;;  %v1824_v27 = vsel %vm1635_vm2, %v1163_v17, 0 }
 0x29c   :  { %v474_v41 = vrot.slane %v466_v35, %v6747_v16  ;;  %5951 = vmatprep.subr.bf16.mxu0 %v6538_v14  ;;  %v481_v5 = vrot.slane %v467_v63, %v6747_v16  ;;  %v379_v28 = vrot.slane %v371_v19, %v6747_v16  ;;  %v1870_v32 = vsel %vm1635_vm2, %v1164_v23, 0  ;;  %v6828_v35 = vpop.permute.xlu0 %751 }
 0x29d   :  { %v507_v29 = vrot.slane %v499_v20, %v6747_v16  ;;  %v960_v33 = vcombine.high %v958_v24, %v6538_v14  ;;  %v976_v34 = vcombine.low %v967_v26, %v975_v25  ;;  %v1165_v36 = vpack.c.bf16 %v958_v24, %v958_v24 }
 0x29e   :  { %v482_v55 = vcombine.high %v474_v41, %v6538_v14  ;;  %v715_v60 = vpack.c.bf16 %v474_v41, %v474_v41  ;;  %v483_v21 = vcombine.high %v481_v5, %v6538_v14  ;;  %v717_v22 = vpack.c.bf16 %v481_v5, %v481_v5  ;;  %v6836_v41 = vpop.permute.xlu1 %757 }
 0x29f   :  { %v500_v37 = vcombine.high %v490_v12, %v498_v11  ;;  %v524_v38 = vcombine.high %v379_v28, %v6538_v14  ;;  %v515_v39 = vcombine.high %v507_v29, %v6538_v14  ;;  %v830_v40 = vrot.slane %v816_v31, %v6747_v16 }
 0x2a0   :  { %v716_v2 = vpack.c.bf16 %v482_v55, %v482_v55  ;;  %5936 = vmatmul.mubr.msk.bf16.vlgmr.msra.gmra.mxu1 %vm1635_vm2, %v715_v60  ;;  %v718_v30 = vpack.c.bf16 %v483_v21, %v483_v21  ;;  %v719_v42 = vpack.c.bf16 %v507_v29, %v507_v29  ;;  %v1166_v43 = vpack.c.bf16 %v960_v33, %v960_v33  ;;  %v6846_v53 = vpop.permute.xlu0 %763 }
 0x2a1   :  { %5946 = vmatpush3.bf16.xpose.msra.mxu1 %v1732_v9  ;;  %5947 = vmatprep.mubr.msk.bf16.mxu1 %vm6539_vm1, %v6538_v14  ;;  %v984_v44 = vrot.slane %v976_v34, %v6747_v16  ;;  %v1916_v45 = vsel %vm1635_vm2, %v1165_v36, 0  ;;  %v514_v47 = vrot.slane %v500_v37, %v6747_v16  ;;  %v531_v48 = vrot.slane %v524_v38, %v6737_v6 }
 0x2a2   :  { %5942 = vmatmul.mubr.msk.bf16.vlgmr.msra.gmra.mxu0 %vm1635_vm2, %v716_v2  ;;  %5957 = vmatprep.subr.bf16.mxu1 %v6538_v14  ;;  %v720_v46 = vpack.c.bf16 %v515_v39, %v515_v39  ;;  %v1001_v50 = vcombine.high %v830_v40, %v6538_v14  ;;  %v831_v55 = vcombine.low %v6713_v52, %v6836_v41  ;;  %v1962_v58 = vsel %vm1635_vm2, %v1166_v43, 0  ;;  %v6857_v62 = vpop.permute.xlu1 %307 }
 0x2a3   :  { %5952 = vmatpush3.bf16.xpose.msra.mxu0 %v1778_v13  ;;  %5953 = vmatprep.mubr.msk.bf16.mxu0 %vm6539_vm1, %v6538_v14  ;;  %v523_v56 = vrot.slane %v379_v28, %v6737_v6  ;;  %v992_v59 = vcombine.high %v984_v44, %v6538_v14  ;;  %v977_v60 = vcombine.high %v967_v26, %v975_v25 }
 0x2a4   :  { %5963 = vmatprep.subr.bf16.mxu0 %v6538_v14  ;;  %v372_v61 = vcombine.high %v6797_v49, %v6792_v10  ;;  %v1167_v63 = vpack.c.bf16 %v984_v44, %v984_v44  ;;  %v847_v1 = vcombine.low %v6828_v35, %v6846_v53  ;;  %v516_v2 = vcombine.high %v514_v47, %v6538_v14  ;;  %v6885_v18 = vpop.permute.xlu0 %313 }
 0x2a5   :  { %v532_v0 = vcombine.low %v523_v56, %v531_v48  ;;  %v721_v3 = vpack.c.bf16 %v514_v47, %v514_v47  ;;  %v6866_v4 = vrot.slane %v831_v55, %v6737_v6  ;;  %v1168_v7 = vpack.c.bf16 %v992_v59, %v992_v59 }
 0x2a6   :  { %v991_v9 = vrot.slane %v977_v60, %v6747_v16  ;;  %v1008_v10 = vrot.slane %v1001_v50, %v6737_v6  ;;  %v1000_v5 = vrot.slane %v830_v40, %v6737_v6  ;;  %v386_v11 = vrot.slane %v372_v61, %v6747_v16  ;;  %v6880_v15 = vpop.permute.xlu1 %319 }
 0x2a7   :  { %v2008_v49 = vsel %vm1635_vm2, %v1167_v63, 0  ;;  %v540_v8 = vrot.slane %v532_v0, %v6747_v16  ;;  %v6876_v12 = vrot.slane %v847_v1, %v6737_v6  ;;  %v722_v13 = vpack.c.bf16 %v516_v2, %v516_v2 }
 0x2a8   :  { %5948 = vmatmul.mubr.msk.bf16.vlgmr.msra.gmra.mxu1 %vm1635_vm2, %v717_v22  ;;  %v2054_v19 = vsel %vm1635_vm2, %v1168_v7, 0  ;;  %v993_v20 = vcombine.high %v991_v9, %v6538_v14  ;;  %v1009_v21 = vcombine.low %v1000_v5, %v1008_v10  ;;  %v557_v22 = vcombine.high %v386_v11, %v6538_v14 }
 0x2a9   :  { %5958 = vmatpush3.bf16.xpose.msra.mxu1 %v1824_v27  ;;  %5959 = vmatprep.mubr.msk.bf16.mxu1 %vm6539_vm1, %v6538_v14  ;;  %v863_v17 = vcombine.low %v6866_v4, %v6876_v12  ;;  %v1169_v23 = vpack.c.bf16 %v991_v9, %v991_v9  ;;  %v533_v24 = vcombine.high %v523_v56, %v531_v48 }
 0x2aa   :  { %5969 = vmatprep.subr.bf16.mxu1 %v6538_v14  ;;  %5954 = vmatmul.mubr.msk.bf16.vlgmr.msra.gmra.mxu0 %vm1635_vm2, %v718_v30  ;;  %v403_v25 = vcombine.low %v6857_v62, %v6880_v15  ;;  %v548_v26 = vcombine.high %v540_v8, %v6538_v14  ;;  %v387_v27 = vcombine.low %v6725_v57, %v6885_v18 }
 0x2ab   :  { %5964 = vmatpush3.bf16.xpose.msra.mxu0 %v1870_v32  ;;  %5965 = vmatprep.mubr.msk.bf16.mxu0 %vm6539_vm1, %v6538_v14  ;;  %v723_v28 = vpack.c.bf16 %v540_v8, %v540_v8  ;;  %v871_v29 = vrot.slane %v863_v17, %v6747_v16  ;;  %v1170_v30 = vpack.c.bf16 %v993_v20, %v993_v20  ;;  %v2100_v33 = vsel %vm1635_vm2, %v1169_v23, 0 }
 0x2ac   :  { %5975 = vmatprep.subr.bf16.mxu0 %v6538_v14  ;;  %v1017_v31 = vrot.slane %v1009_v21, %v6747_v16  ;;  %v564_v32 = vrot.slane %v557_v22, %v6737_v6  ;;  %v547_v34 = vrot.slane %v533_v24, %v6747_v16  ;;  %v6906_v36 = vrot.slane %v403_v25, %v6737_v6 }
 0x2ad   :  { %v724_v37 = vpack.c.bf16 %v548_v26, %v548_v26  ;;  %v556_v38 = vrot.slane %v386_v11, %v6737_v6  ;;  %v6912_v39 = vrot.slane %v387_v27, %v6737_v6  ;;  %v1034_v40 = vcombine.high %v871_v29, %v6538_v14 }
 0x2ae   :  { %v1025_v43 = vcombine.high %v1017_v31, %v6538_v14  ;;  %v1010_v44 = vcombine.high %v1000_v5, %v1008_v10  ;;  %v725_v50 = vpack.c.bf16 %v547_v34, %v547_v34  ;;  %v1033_v59 = vrot.slane %v871_v29, %v6737_v6 }
 0x2af   :  { %v565_v47 = vcombine.low %v556_v38, %v564_v32  ;;  %v419_v48 = vcombine.low %v6912_v39, %v6906_v36  ;;  %v864_v1 = vcombine.high %v6866_v4, %v6876_v12  ;;  %v566_v10 = vcombine.high %v556_v38, %v564_v32 }
 0x2b0   :  { %5960 = vmatmul.mubr.msk.bf16.vlgmr.msra.gmra.mxu1 %vm1635_vm2, %v719_v42  ;;  %v2146_v42 = vsel %vm1635_vm2, %v1170_v30, 0  ;;  %v1172_v55 = vpack.c.bf16 %v1025_v43, %v1025_v43  ;;  %v1024_v56 = vrot.slane %v1010_v44, %v6747_v16  ;;  %v832_v21 = vcombine.high %v6713_v52, %v6836_v41 }
 0x2b1   :  { %5970 = vmatpush3.bf16.xpose.msra.mxu1 %v1916_v45  ;;  %5971 = vmatprep.mubr.msk.bf16.mxu1 %vm6539_vm1, %v6538_v14  ;;  %v1171_v45 = vpack.c.bf16 %v1017_v31, %v1017_v31  ;;  %v573_v61 = vrot.slane %v565_v47, %v6747_v16  ;;  %v427_v63 = vrot.slane %v419_v48, %v6747_v16 }
 0x2b2   :  { %5981 = vmatprep.subr.bf16.mxu1 %v6538_v14  ;;  %5966 = vmatmul.mubr.msk.bf16.vlgmr.msra.gmra.mxu0 %vm1635_vm2, %v720_v46  ;;  %v549_v46 = vcombine.high %v547_v34, %v6538_v14  ;;  %v2238_v2 = vsel %vm1635_vm2, %v1172_v55, 0  ;;  %v1173_v9 = vpack.c.bf16 %v1024_v56, %v1024_v56  ;;  %v878_v4 = vrot.slane %v864_v1, %v6747_v16 }
 0x2b3   :  { %5976 = vmatpush3.bf16.xpose.msra.mxu0 %v1962_v58  ;;  %5977 = vmatprep.mubr.msk.bf16.mxu0 %vm6539_vm1, %v6538_v14  ;;  %v1041_v58 = vrot.slane %v1034_v40, %v6737_v6  ;;  %v2192_v60 = vsel %vm1635_vm2, %v1171_v45, 0  ;;  %v590_v5 = vcombine.high %v427_v63, %v6538_v14  ;;  %v581_v11 = vcombine.high %v573_v61, %v6538_v14 }
 0x2b4   :  { %5987 = vmatprep.subr.bf16.mxu0 %v6538_v14  ;;  %v726_v0 = vpack.c.bf16 %v549_v46, %v549_v46  ;;  %v580_v17 = vrot.slane %v566_v10, %v6747_v16  ;;  %v1067_v22 = vcombine.high %v878_v4, %v6538_v14  ;;  %v589_v23 = vrot.slane %v427_v63, %v6737_v6 }
 0x2b5   :  { %v1042_v7 = vcombine.low %v1033_v59, %v1041_v58  ;;  %v728_v20 = vpack.c.bf16 %v581_v11, %v581_v11  ;;  %v1043_v26 = vcombine.high %v1033_v59, %v1041_v58  ;;  %v848_v27 = vcombine.high %v6828_v35, %v6846_v53 }
 0x2b6   :  { %v420_v41 = vcombine.high %v6912_v39, %v6906_v36  ;;  %v582_v29 = vcombine.high %v580_v17, %v6538_v14  ;;  %v6970_v30 = vrot.slane %v832_v21, %v6737_v6  ;;  %v729_v31 = vpack.c.bf16 %v580_v17, %v580_v17 }
 0x2b7   :  { %v1050_v12 = vrot.slane %v1042_v7, %v6747_v16  ;;  %v1057_v35 = vrot.slane %v1043_v26, %v6747_v16  ;;  %v1074_v53 = vrot.slane %v1067_v22, %v6737_v6  ;;  %v1066_v34 = vrot.slane %v878_v4, %v6737_v6 }
 0x2b8   :  { %5972 = vmatmul.mubr.msk.bf16.vlgmr.msra.gmra.mxu1 %vm1635_vm2, %v721_v3  ;;  %v1026_v3 = vcombine.high %v1024_v56, %v6538_v14  ;;  %v730_v39 = vpack.c.bf16 %v582_v29, %v582_v29  ;;  %v404_v45 = vcombine.high %v6857_v62, %v6880_v15  ;;  %v388_v56 = vcombine.high %v6725_v57, %v6885_v18 }
 0x2b9   :  { %5982 = vmatpush3.bf16.xpose.msra.mxu1 %v2008_v49  ;;  %5983 = vmatprep.mubr.msk.bf16.mxu1 %vm6539_vm1, %v6538_v14  ;;  %v727_v49 = vpack.c.bf16 %v573_v61, %v573_v61  ;;  %v1058_v25 = vcombine.high %v1050_v12, %v6538_v14  ;;  %v1175_v52 = vpack.c.bf16 %v1050_v12, %v1050_v12 }
 0x2ba   :  { %5993 = vmatprep.subr.bf16.mxu1 %v6538_v14  ;;  %5978 = vmatmul.mubr.msk.bf16.vlgmr.msra.gmra.mxu0 %vm1635_vm2, %v722_v13  ;;  %v1174_v8 = vpack.c.bf16 %v1026_v3, %v1026_v3  ;;  %v2284_v13 = vsel %vm1635_vm2, %v1173_v9, 0  ;;  %v1059_v43 = vcombine.high %v1057_v35, %v6538_v14  ;;  %v1075_v44 = vcombine.low %v1066_v34, %v1074_v53 }
 0x2bb   :  { %5988 = vmatpush3.bf16.xpose.msra.mxu0 %v2054_v19  ;;  %5989 = vmatprep.mubr.msk.bf16.mxu0 %vm6539_vm1, %v6538_v14  ;;  %v597_v19 = vrot.slane %v590_v5, %v6737_v6  ;;  %v1176_v32 = vpack.c.bf16 %v1058_v25, %v1058_v25  ;;  %v2376_v36 = vsel %vm1635_vm2, %v1175_v52, 0  ;;  %v1177_v47 = vpack.c.bf16 %v1057_v35, %v1057_v35 }
 0x2bc   :  { %5999 = vmatprep.subr.bf16.mxu0 %v6538_v14  ;;  %v2330_v24 = vsel %vm1635_vm2, %v1174_v8, 0  ;;  %v1178_v59 = vpack.c.bf16 %v1059_v43, %v1059_v43  ;;  %v1083_v62 = vrot.slane %v1075_v44, %v6747_v16  ;;  %v7002_v15 = vrot.slane %v404_v45, %v6737_v6 }
 0x2bd   :  { %v599_v48 = vcombine.high %v589_v23, %v597_v19  ;;  %v7012_v18 = vrot.slane %v388_v56, %v6737_v6  ;;  %v1076_v7 = vcombine.high %v1066_v34, %v1074_v53 }
 0x2be   :  { %v1091_v3 = vcombine.high %v1083_v62, %v6538_v14  ;;  %v1179_v9 = vpack.c.bf16 %v1083_v62, %v1083_v62 }
 0x2bf   :  { %v613_v61 = vrot.slane %v599_v48, %v6747_v16  ;;  %v435_v10 = vcombine.low %v7012_v18, %v7002_v15  ;;  %v1090_v8 = vrot.slane %v1076_v7, %v6747_v16 }
 0x2c0   :  { %5984 = vmatmul.mubr.msk.bf16.vlgmr.msra.gmra.mxu1 %vm1635_vm2, %v723_v28  ;;  %v598_v28 = vcombine.low %v589_v23, %v597_v19  ;;  %v2560_v17 = vsel %vm1635_vm2, %v1179_v9, 0 }
 0x2c1   :  { %5994 = vmatpush3.bf16.xpose.msra.mxu1 %v2100_v33  ;;  %5995 = vmatprep.mubr.msk.bf16.mxu1 %vm6539_vm1, %v6538_v14  ;;  %v6975_v33 = vrot.slane %v848_v27, %v6737_v6  ;;  %v615_v11 = vcombine.high %v613_v61, %v6538_v14  ;;  %v733_v4 = vpack.c.bf16 %v613_v61, %v613_v61 }
 0x2c2   :  { %6005 = vmatprep.subr.bf16.mxu1 %v6538_v14  ;;  %5990 = vmatmul.mubr.msk.bf16.vlgmr.msra.gmra.mxu0 %vm1635_vm2, %v724_v37  ;;  %v434_v37 = vrot.slane %v420_v41, %v6747_v16  ;;  %v606_v38 = vrot.slane %v598_v28, %v6747_v16  ;;  %v443_v19 = vrot.slane %v435_v10, %v6747_v16 }
 0x2c3   :  { %6000 = vmatpush3.bf16.xpose.msra.mxu0 %v2146_v42  ;;  %6001 = vmatprep.mubr.msk.bf16.mxu0 %vm6539_vm1, %v6538_v14  ;;  %v879_v40 = vcombine.low %v6970_v30, %v6975_v33  ;;  %v2422_v42 = vsel %vm1635_vm2, %v1176_v32, 0  ;;  %v734_v21 = vpack.c.bf16 %v615_v11, %v615_v11  ;;  %v880_v22 = vcombine.high %v6970_v30, %v6975_v33 }
 0x2c4   :  { %6011 = vmatprep.subr.bf16.mxu0 %v6538_v14  ;;  %v623_v46 = vcombine.high %v434_v37, %v6538_v14  ;;  %v731_v58 = vpack.c.bf16 %v606_v38, %v606_v38  ;;  %v622_v1 = vrot.slane %v434_v37, %v6737_v6  ;;  %v1181_v26 = vpack.c.bf16 %v1090_v8, %v1090_v8 }
 0x2c5   :  { %v887_v55 = vrot.slane %v879_v40, %v6747_v16  ;;  %v656_v52 = vcombine.high %v443_v19, %v6538_v14  ;;  %v894_v28 = vrot.slane %v880_v22, %v6747_v16 }
 0x2c6   :  { %v630_v63 = vrot.slane %v623_v46, %v6737_v6  ;;  %v2652_v32 = vsel %vm1635_vm2, %v1181_v26, 0 }
 0x2c7   :  { %v1100_v57 = vcombine.high %v887_v55, %v6538_v14  ;;  %v663_v53 = vrot.slane %v656_v52, %v6737_v6  ;;  %v1133_v34 = vcombine.high %v894_v28, %v6538_v14 }
 0x2c8   :  { %5996 = vmatmul.mubr.msk.bf16.vlgmr.msra.gmra.mxu1 %vm1635_vm2, %v725_v50  ;;  %v614_v50 = vcombine.high %v606_v38, %v6538_v14  ;;  %v631_v5 = vcombine.low %v622_v1, %v630_v63  ;;  %v632_v27 = vcombine.high %v622_v1, %v630_v63 }
 0x2c9   :  { %6006 = vmatpush3.bf16.xpose.msra.mxu1 %v2192_v60  ;;  %6007 = vmatprep.mubr.msk.bf16.mxu1 %vm6539_vm1, %v6538_v14  ;;  %v2468_v60 = vsel %vm1635_vm2, %v1177_v47, 0  ;;  %v1107_v12 = vrot.slane %v1100_v57, %v6737_v6  ;;  %v1140_v46 = vrot.slane %v1133_v34, %v6737_v6 }
 0x2ca   :  { %6017 = vmatprep.subr.bf16.mxu1 %v6538_v14  ;;  %6002 = vmatmul.mubr.msk.bf16.vlgmr.msra.gmra.mxu0 %vm1635_vm2, %v726_v0  ;;  %v732_v0 = vpack.c.bf16 %v614_v50, %v614_v50  ;;  %v646_v35 = vrot.slane %v632_v27, %v6747_v16  ;;  %v1132_v50 = vrot.slane %v894_v28, %v6737_v6 }
 0x2cb   :  { %6012 = vmatpush3.bf16.xpose.msra.mxu0 %v2238_v2  ;;  %6013 = vmatprep.mubr.msk.bf16.mxu0 %vm6539_vm1, %v6538_v14  ;;  %v2514_v2 = vsel %vm1635_vm2, %v1178_v59, 0 }
 0x2cc   :  { %6023 = vmatprep.subr.bf16.mxu0 %v6538_v14  ;;  %v648_v44 = vcombine.high %v646_v35, %v6538_v14  ;;  %v737_v45 = vpack.c.bf16 %v646_v35, %v646_v35 }
 0x2ce   :  { %v738_v59 = vpack.c.bf16 %v648_v44, %v648_v44 }
 0x2d0   :  { %6008 = vmatmul.mubr.msk.bf16.vlgmr.msra.gmra.mxu1 %vm1635_vm2, %v727_v49  ;;  %v1180_v49 = vpack.c.bf16 %v1091_v3, %v1091_v3 }
 0x2d1   :  { %6018 = vmatpush3.bf16.xpose.msra.mxu1 %v2284_v13  ;;  %6019 = vmatprep.mubr.msk.bf16.mxu1 %vm6539_vm1, %v6538_v14  ;;  %v1099_v13 = vrot.slane %v887_v55, %v6737_v6 }
 0x2d2   :  { %6029 = vmatprep.subr.bf16.mxu1 %v6538_v14  ;;  %6014 = vmatmul.mubr.msk.bf16.vlgmr.msra.gmra.mxu0 %vm1635_vm2, %v728_v20  ;;  %v639_v20 = vrot.slane %v631_v5, %v6747_v16  ;;  %v2606_v23 = vsel %vm1635_vm2, %v1180_v49, 0  ;;  %v1142_v49 = vcombine.high %v1132_v50, %v1140_v46 }
 0x2d3   :  { %6024 = vmatpush3.bf16.xpose.msra.mxu0 %v2330_v24  ;;  %6025 = vmatprep.mubr.msk.bf16.mxu0 %vm6539_vm1, %v6538_v14  ;;  %v1092_v24 = vcombine.high %v1090_v8, %v6538_v14  ;;  %v1108_v25 = vcombine.low %v1099_v13, %v1107_v12 }
 0x2d4   :  { %6035 = vmatprep.subr.bf16.mxu0 %v6538_v14  ;;  %v647_v41 = vcombine.high %v639_v20, %v6538_v14  ;;  %v735_v29 = vpack.c.bf16 %v639_v20, %v639_v20  ;;  %v1156_v20 = vrot.slane %v1142_v49, %v6747_v16 }
 0x2d5   :  { %v1182_v30 = vpack.c.bf16 %v1092_v24, %v1092_v24 }
 0x2d6   :  { %v736_v33 = vpack.c.bf16 %v647_v41, %v647_v41  ;;  %v1189_v26 = vpack.c.bf16 %v1156_v20, %v1156_v20 }
 0x2d7   :  { %v2698_v37 = vsel %vm1635_vm2, %v1182_v30, 0 }
 0x2d8   :  { %6020 = vmatmul.mubr.msk.bf16.vlgmr.msra.gmra.mxu1 %vm1635_vm2, %v729_v31  ;;  %v1116_v31 = vrot.slane %v1108_v25, %v6747_v16  ;;  %v1158_v25 = vcombine.high %v1156_v20, %v6538_v14 }
 0x2d9   :  { %6030 = vmatpush3.bf16.xpose.msra.mxu1 %v2376_v36  ;;  %6031 = vmatprep.mubr.msk.bf16.mxu1 %vm6539_vm1, %v6538_v14  ;;  %v655_v36 = vrot.slane %v443_v19, %v6737_v6 }
 0x2da   :  { %6041 = vmatprep.subr.bf16.mxu1 %v6538_v14  ;;  %6026 = vmatmul.mubr.msk.bf16.vlgmr.msra.gmra.mxu0 %vm1635_vm2, %v730_v39  ;;  %v1124_v38 = vcombine.high %v1116_v31, %v6538_v14  ;;  %v1109_v39 = vcombine.high %v1099_v13, %v1107_v12  ;;  %v1183_v40 = vpack.c.bf16 %v1116_v31, %v1116_v31 }
 0x2db   :  { %6036 = vmatpush3.bf16.xpose.msra.mxu0 %v2422_v42  ;;  %6037 = vmatprep.mubr.msk.bf16.mxu0 %vm6539_vm1, %v6538_v14  ;;  %v436_v42 = vcombine.high %v7012_v18, %v7002_v15  ;;  %v664_v43 = vcombine.low %v655_v36, %v663_v53  ;;  %v665_v63 = vcombine.high %v655_v36, %v663_v53 }
 0x2dc   :  { %6047 = vmatprep.subr.bf16.mxu0 %v6538_v14  ;;  %v1184_v47 = vpack.c.bf16 %v1124_v38, %v1124_v38  ;;  %v1123_v48 = vrot.slane %v1109_v39, %v6747_v16  ;;  %v2744_v55 = vsel %vm1635_vm2, %v1183_v40, 0  ;;  %v1190_v28 = vpack.c.bf16 %v1158_v25, %v1158_v25 }
 0x2dd   :  { %v450_v56 = vrot.slane %v436_v42, %v6747_v16  ;;  %v679_v7 = vrot.slane %v665_v63, %v6747_v16 }
 0x2de   :  { %v2790_v62 = vsel %vm1635_vm2, %v1184_v47, 0  ;;  %v1125_v15 = vcombine.high %v1123_v48, %v6538_v14  ;;  %v1185_v61 = vpack.c.bf16 %v1123_v48, %v1123_v48 }
 0x2df   :  { %v688_v5 = vrot.slane %v450_v56, %v6737_v6  ;;  %v681_v13 = vcombine.high %v679_v7, %v6538_v14 }
 0x2e0   :  { %6032 = vmatmul.mubr.msk.bf16.vlgmr.msra.gmra.mxu1 %vm1635_vm2, %v731_v58  ;;  %v672_v58 = vrot.slane %v664_v43, %v6747_v16  ;;  %v1186_v1 = vpack.c.bf16 %v1125_v15, %v1125_v15  ;;  %v2836_v3 = vsel %vm1635_vm2, %v1185_v61, 0  ;;  %v7150_v15 = vld [vmem:[%s7999_s8] ss:$0 sm:$0xff] }
 0x2e1   :  { %6042 = vmatpush3.bf16.xpose.msra.mxu1 %v2468_v60  ;;  %6043 = vmatprep.mubr.msk.bf16.mxu1 %vm6539_vm1, %v6538_v14  ;;  %v1141_v60 = vcombine.low %v1132_v50, %v1140_v46 }
 0x2e2   :  { %6053 = vmatprep.subr.bf16.mxu1 %v6538_v14  ;;  %6038 = vmatmul.mubr.msk.bf16.vlgmr.msra.gmra.mxu0 %vm1635_vm2, %v732_v0  ;;  %v689_v0 = vcombine.high %v450_v56, %v6538_v14  ;;  %v680_v57 = vcombine.high %v672_v58, %v6538_v14  ;;  %v739_v18 = vpack.c.bf16 %v672_v58, %v672_v58  ;;  %v2882_v11 = vsel %vm1635_vm2, %v1186_v1, 0 }
 0x2e3   :  { %6048 = vmatpush3.bf16.xpose.msra.mxu0 %v2514_v2  ;;  %6049 = vmatprep.mubr.msk.bf16.mxu0 %vm6539_vm1, %v6538_v14  ;;  %v1149_v2 = vrot.slane %v1141_v60, %v6747_v16 }
 0x2e4   :  { %6059 = vmatprep.subr.bf16.mxu0 %v6538_v14  ;;  %v696_v9 = vrot.slane %v689_v0, %v6737_v6  ;;  %v740_v10 = vpack.c.bf16 %v680_v57, %v680_v57  ;;  %v7156_v0 = vadd.f32 %v7150_v15, %v6711_v51 }
 0x2e5   :  { %v1187_v8 = vpack.c.bf16 %v1149_v2, %v1149_v2 }
 0x2e6   :  { %v697_v12 = vcombine.low %v688_v5, %v696_v9  ;;  %v698_v27 = vcombine.high %v688_v5, %v696_v9 }
 0x2e8   :  { %6044 = vmatmul.mubr.msk.bf16.vlgmr.msra.gmra.mxu1 %vm1635_vm2, %v733_v4  ;;  %v1157_v4 = vcombine.high %v1149_v2, %v6538_v14  ;;  %v705_v22 = vrot.slane %v697_v12, %v6747_v16  ;;  %v712_v30 = vrot.slane %v698_v27, %v6747_v16 }
 0x2e9   :  { %6054 = vmatpush3.bf16.xpose.msra.mxu1 %v2560_v17  ;;  %6055 = vmatprep.mubr.msk.bf16.mxu1 %vm6539_vm1, %v6538_v14  ;;  %v741_v17 = vpack.c.bf16 %v679_v7, %v679_v7 }
 0x2ea   :  { %6065 = vmatprep.subr.bf16.mxu1 %v6538_v14  ;;  %6050 = vmatmul.mubr.msk.bf16.vlgmr.msra.gmra.mxu0 %vm1635_vm2, %v734_v21  ;;  %v1188_v19 = vpack.c.bf16 %v1157_v4, %v1157_v4  ;;  %v2928_v21 = vsel %vm1635_vm2, %v1187_v8, 0  ;;  %v713_v52 = vcombine.high %v705_v22, %v6538_v14  ;;  %v743_v41 = vpack.c.bf16 %v705_v22, %v705_v22 }
 0x2eb   :  { %6060 = vmatpush3.bf16.xpose.msra.mxu0 %v2606_v23  ;;  %6061 = vmatprep.mubr.msk.bf16.mxu0 %vm6539_vm1, %v6538_v14  ;;  %v742_v23 = vpack.c.bf16 %v681_v13, %v681_v13  ;;  %v714_v35 = vcombine.high %v712_v30, %v6538_v14  ;;  %v745_v53 = vpack.c.bf16 %v712_v30, %v712_v30 }
 0x2ec   :  { %6071 = vmatprep.subr.bf16.mxu0 %v6538_v14  ;;  %v2974_v24 = vsel %vm1635_vm2, %v1188_v19, 0  ;;  %v744_v31 = vpack.c.bf16 %v713_v52, %v713_v52 }
 0x2f0   :  { %6056 = vmatmul.mubr.msk.bf16.vlgmr.msra.gmra.mxu1 %vm1635_vm2, %v735_v29  ;;  %v3020_v29 = vsel %vm1635_vm2, %v1189_v26, 0 }
 0x2f1   :  { %6066 = vmatpush3.bf16.xpose.msra.mxu1 %v2652_v32  ;;  %6067 = vmatprep.mubr.msk.bf16.mxu1 %vm6539_vm1, %v6538_v14  ;;  %v3066_v32 = vsel %vm1635_vm2, %v1190_v28, 0 }
 0x2f2   :  { %6077 = vmatprep.subr.bf16.mxu1 %v6538_v14  ;;  %6062 = vmatmul.mubr.msk.bf16.vlgmr.msra.gmra.mxu0 %vm1635_vm2, %v736_v33  ;;  %v746_v33 = vpack.c.bf16 %v714_v35, %v714_v35 }
 0x2f3   :  { %6072 = vmatpush3.bf16.xpose.msra.mxu0 %v2698_v37  ;;  %6073 = vmatprep.mubr.msk.bf16.mxu0 %vm6539_vm1, %v6538_v14 }
 0x2f4   :  { %6083 = vmatprep.subr.bf16.mxu0 %v6538_v14 }
 0x2f8   :  { %6068 = vmatmul.mubr.msk.bf16.vlgmr.msra.gmra.mxu1 %vm1635_vm2, %v737_v45 }
 0x2f9   :  { %6078 = vmatpush3.bf16.xpose.msra.mxu1 %v2744_v55  ;;  %6079 = vmatprep.mubr.msk.bf16.mxu1 %vm6539_vm1, %v6538_v14 }
 0x2fa   :  { %6089 = vmatprep.subr.bf16.mxu1 %v6538_v14  ;;  %6074 = vmatmul.mubr.msk.bf16.vlgmr.msra.gmra.mxu0 %vm1635_vm2, %v738_v59 }
 0x2fb   :  { %6084 = vmatpush3.bf16.xpose.msra.mxu0 %v2790_v62  ;;  %6085 = vmatprep.mubr.msk.bf16.mxu0 %vm6539_vm1, %v6538_v14 }
 0x2fc   :  { %6095 = vmatprep.subr.bf16.mxu0 %v6538_v14 }
 0x300   :  { %6080 = vmatmul.mubr.msk.bf16.vlgmr.msra.gmra.mxu1 %vm1635_vm2, %v739_v18 }
 0x301   :  { %6090 = vmatpush3.bf16.xpose.msra.mxu1 %v2836_v3  ;;  %6091 = vmatprep.mubr.msk.bf16.mxu1 %vm6539_vm1, %v6538_v14 }
 0x302   :  { %6101 = vmatprep.subr.bf16.mxu1 %v6538_v14  ;;  %6086 = vmatmul.mubr.msk.bf16.vlgmr.msra.gmra.mxu0 %vm1635_vm2, %v740_v10 }
 0x303   :  { %6096 = vmatpush3.bf16.xpose.msra.mxu0 %v2882_v11  ;;  %6097 = vmatprep.mubr.msk.bf16.mxu0 %vm6539_vm1, %v6538_v14 }
 0x304   :  { %6107 = vmatprep.subr.bf16.mxu0 %v6538_v14 }
 0x308   :  { %6092 = vmatmul.mubr.msk.bf16.vlgmr.msra.gmra.mxu1 %vm1635_vm2, %v741_v17 }
 0x309   :  { %6102 = vmatpush3.bf16.xpose.msra.mxu1 %v2928_v21  ;;  %6103 = vmatprep.mubr.msk.bf16.mxu1 %vm6539_vm1, %v6538_v14 }
 0x30a   :  { %6113 = vmatprep.subr.bf16.mxu1 %v6538_v14  ;;  %6098 = vmatmul.mubr.msk.bf16.vlgmr.msra.gmra.mxu0 %vm1635_vm2, %v742_v23 }
 0x30b   :  { %6108 = vmatpush3.bf16.xpose.msra.mxu0 %v2974_v24  ;;  %6109 = vmatprep.mubr.msk.bf16.mxu0 %vm6539_vm1, %v6538_v14 }
 0x30c   :  { %6119 = vmatprep.subr.bf16.mxu0 %v6538_v14 }
 0x310   :  { %6104 = vmatmul.mubr.msk.bf16.vlgmr.msra.gmra.mxu1 %vm1635_vm2, %v743_v41 }
 0x311   :  { %6114 = vmatpush3.bf16.xpose.msra.mxu1 %v3020_v29  ;;  %6115 = vmatprep.mubr.msk.bf16.mxu1 %vm6539_vm1, %v6538_v14 }
 0x312   :  { %6125 = vmatprep.subr.bf16.mxu1 %v6538_v14  ;;  %6110 = vmatmul.mubr.msk.bf16.vlgmr.msra.gmra.mxu0 %vm1635_vm2, %v744_v31 }
 0x313   :  { %6120 = vmatpush3.bf16.xpose.msra.mxu0 %v3066_v32  ;;  %6121 = vmatprep.mubr.msk.bf16.mxu0 %vm6539_vm1, %v6538_v14 }
 0x314   :  { %6131 = vmatprep.subr.bf16.mxu0 %v6538_v14 }
 0x318   :  { %6116 = vmatmul.mubr.msk.bf16.vlgmr.msra.gmra.mxu1 %vm1635_vm2, %v745_v53 }
 0x319   :  { %6127 = vmatprep.mubr.msk.bf16.mxu1 %vm6539_vm1, %v6538_v14 }
 0x31a   :  { %6122 = vmatmul.mubr.msk.bf16.vlgmr.msra.gmra.mxu0 %vm1635_vm2, %v746_v33 }
 0x31b   :  { %6133 = vmatprep.mubr.msk.bf16.mxu0 %vm6539_vm1, %v6538_v14 }
 0x360   :  { %v7131_v34 = vpop.f32.mrf.mxu1 }
 0x361   :  { %v3109_v36 = vsel %vm3108_vm3, %v7131_v34, -inf }
 0x362   :  { %v5937_v37 = vpop.f32.mrf.mxu1  ;;  %3110 = vmax.xlane.f32.xlu0 %v3109_v36  ;;  %v7135_v38 = vpop.f32.mrf.mxu0 }
 0x363   :  { %v3112_v39 = vsel %vm3108_vm3, %v7135_v38, -inf }
 0x364   :  { %v1679_v40 = vpop.f32.mrf.mxu1  ;;  %3113 = vmax.xlane.f32.xlu1 %v3112_v39  ;;  %v5943_v42 = vpop.f32.mrf.mxu0 }
 0x366   :  { %v5938_v43 = vpop.f32.mrf.mxu1  ;;  %v1725_v44 = vpop.f32.mrf.mxu0 }
 0x368   :  { %v5944_v45 = vpop.f32.mrf.mxu0  ;;  %v7139_v47 = vpop.f32.mrf.mxu1 }
 0x369   :  { %v3115_v48 = vsel %vm3108_vm3, %v7139_v47, -inf }
 0x36a   :  { %v5949_v46 = vpop.f32.mrf.mxu1  ;;  %3116 = vmax.xlane.f32.xlu0 %v3115_v48  ;;  %v7143_v50 = vpop.f32.mrf.mxu0 }
 0x36b   :  { %v3118_v58 = vsel %vm3108_vm3, %v7143_v50, -inf }
 0x36c   :  { %v1771_v55 = vpop.f32.mrf.mxu1  ;;  %v5955_v56 = vpop.f32.mrf.mxu0 }
 0x36e   :  { %v5950_v59 = vpop.f32.mrf.mxu1  ;;  %3119 = vmax.xlane.f32.xlu0 %v3118_v58  ;;  %v1817_v62 = vpop.f32.mrf.mxu0 }
 0x370   :  { %v7152_v60 = vpop.f32.mrf.mxu1  ;;  %v5956_v61 = vpop.f32.mrf.mxu0 }
 0x371   :  { %v3121_v62 = vsel %vm3108_vm3, %v7152_v60, -inf }
 0x372   :  { %v5961_v63 = vpop.f32.mrf.mxu1  ;;  %v7158_v57 = vpop.f32.mrf.mxu0 }
 0x373   :  { %v3124_v44 = vsel %vm3108_vm3, %v7158_v57, -inf }
 0x374   :  { %v1863_v18 = vpop.f32.mrf.mxu1  ;;  %v5967_v1 = vpop.f32.mrf.mxu0 }
 0x375   :  { %1199 = vrot.lane.b32.xlu1 %v7156_v0, %s6540_s18 }
 0x376   :  { %v5962_v2 = vpop.f32.mrf.mxu1  ;;  %v1909_v3 = vpop.f32.mrf.mxu0 }
 0x378   :  { %v7162_v7 = vpop.f32.mrf.mxu1  ;;  %v5968_v9 = vpop.f32.mrf.mxu0 }
 0x379   :  { %1205 = vrot.lane.b32.xlu1 %v7156_v0, %s6542_s6  ;;  %v3127_v2 = vsel %vm3108_vm3, %v7162_v7, -inf }
 0x37a   :  { %v5973_v10 = vpop.f32.mrf.mxu1  ;;  %v7166_v5 = vpop.f32.mrf.mxu0 }
 0x37b   :  { %v3130_v56 = vsel %vm3108_vm3, %v7166_v5, -inf }
 0x37c   :  { %v1955_v51 = vpop.f32.mrf.mxu1  ;;  %v5979_v11 = vpop.f32.mrf.mxu0 }
 0x37e   :  { %v5974_v4 = vpop.f32.mrf.mxu1  ;;  %v2001_v49 = vpop.f32.mrf.mxu0 }
 0x380   :  { %v7168_v8 = vpop.f32.mrf.mxu1  ;;  %v5980_v12 = vpop.f32.mrf.mxu0 }
 0x381   :  { %v3133_v11 = vsel %vm3108_vm3, %v7168_v8, -inf }
 0x382   :  { %v5985_v13 = vpop.f32.mrf.mxu1  ;;  %v7170_v17 = vpop.f32.mrf.mxu0 }
 0x384   :  { %v2047_v19 = vpop.f32.mrf.mxu1  ;;  %1193 = vrot.lane.b32.xlu0 %v7156_v0, %s6541_s19  ;;  %v5991_v20 = vpop.f32.mrf.mxu0 }
 0x386   :  { %v5986_v21 = vpop.f32.mrf.mxu1  ;;  %v2093_v22 = vpop.f32.mrf.mxu0 }
 0x387   :  { %v7208_v21 = vadd.f32 %v7150_v15, %v6719_v54 }
 0x388   :  { %v7174_v23 = vpop.f32.mrf.mxu1  ;;  %v5992_v24 = vpop.f32.mrf.mxu0 }
 0x389   :  { %v3139_v19 = vsel %vm3108_vm3, %v7174_v23, -inf }
 0x38a   :  { %v5997_v25 = vpop.f32.mrf.mxu1  ;;  %v7176_v26 = vpop.f32.mrf.mxu0 }
 0x38c   :  { %v2139_v27 = vpop.f32.mrf.mxu1  ;;  %v6003_v52 = vpop.f32.mrf.mxu0 }
 0x38e   :  { %v5998_v41 = vpop.f32.mrf.mxu1  ;;  %v2185_v28 = vpop.f32.mrf.mxu0 }
 0x390   :  { %v7178_v29 = vpop.f32.mrf.mxu1  ;;  %v6004_v30 = vpop.f32.mrf.mxu0 }
 0x391   :  { %v3145_v27 = vsel %vm3108_vm3, %v7178_v29, -inf }
 0x392   :  { %v6009_v31 = vpop.f32.mrf.mxu1  ;;  %v7180_v32 = vpop.f32.mrf.mxu0 }
 0x394   :  { %v2231_v35 = vpop.f32.mrf.mxu1  ;;  %v6015_v53 = vpop.f32.mrf.mxu0 }
 0x396   :  { %v6010_v33 = vpop.f32.mrf.mxu1  ;;  %v2277_v36 = vpop.f32.mrf.mxu0 }
 0x398   :  { %v7182_v37 = vpop.f32.mrf.mxu1  ;;  %v6016_v39 = vpop.f32.mrf.mxu0 }
 0x399   :  { %v3151_v54 = vsel %vm3108_vm3, %v7182_v37, -inf }
 0x39a   :  { %v6021_v40 = vpop.f32.mrf.mxu1  ;;  %v7184_v42 = vpop.f32.mrf.mxu0 }
 0x39c   :  { %v2323_v43 = vpop.f32.mrf.mxu1  ;;  %v6027_v45 = vpop.f32.mrf.mxu0 }
 0x39d   :  { %3125 = vmax.xlane.f32.xlu1 %v3124_v44 }
 0x39e   :  { %v6022_v48 = vpop.f32.mrf.mxu1  ;;  %v2369_v46 = vpop.f32.mrf.mxu0 }
 0x3a0   :  { %v7188_v55 = vpop.f32.mrf.mxu1  ;;  %v6028_v58 = vpop.f32.mrf.mxu0 }
 0x3a1   :  { %3131 = vmax.xlane.f32.xlu1 %v3130_v56  ;;  %v3157_v33 = vsel %vm3108_vm3, %v7188_v55, -inf }
 0x3a2   :  { %v6033_v59 = vpop.f32.mrf.mxu1  ;;  %v7194_v61 = vpop.f32.mrf.mxu0 }
 0x3a3   :  { %3122 = vmax.xlane.f32.xlu0 %v3121_v62 }
 0x3a4   :  { %v2415_v63 = vpop.f32.mrf.mxu1  ;;  %v6039_v18 = vpop.f32.mrf.mxu0 }
 0x3a6   :  { %v6034_v1 = vpop.f32.mrf.mxu1  ;;  %v2461_v3 = vpop.f32.mrf.mxu0 }
 0x3a7   :  { %3128 = vmax.xlane.f32.xlu0 %v3127_v2 }
 0x3a8   :  { %v7198_v9 = vpop.f32.mrf.mxu1  ;;  %v6040_v10 = vpop.f32.mrf.mxu0 }
 0x3a9   :  { %v3163_v44 = vsel %vm3108_vm3, %v7198_v9, -inf }
 0x3aa   :  { %v6045_v51 = vpop.f32.mrf.mxu1  ;;  %v7202_v4 = vpop.f32.mrf.mxu0 }
 0x3ab   :  { %3134 = vmax.xlane.f32.xlu0 %v3133_v11 }
 0x3ac   :  { %v2507_v49 = vpop.f32.mrf.mxu1  ;;  %v6051_v12 = vpop.f32.mrf.mxu0 }
 0x3ae   :  { %v6046_v13 = vpop.f32.mrf.mxu1  ;;  %v2553_v20 = vpop.f32.mrf.mxu0 }
 0x3af   :  { %3140 = vmax.xlane.f32.xlu0 %v3139_v19 }
 0x3b0   :  { %v7210_v22 = vpop.f32.mrf.mxu1  ;;  %v6052_v24 = vpop.f32.mrf.mxu0 }
 0x3b1   :  { %v3169_v58 = vsel %vm3108_vm3, %v7210_v22, -inf }
 0x3b2   :  { %v6057_v25 = vpop.f32.mrf.mxu1  ;;  %1195 = vrot.lane.b32.xlu1 %v7208_v21, %s6541_s19  ;;  %v7216_v52 = vpop.f32.mrf.mxu0 }
 0x3b3   :  { %3146 = vmax.xlane.f32.xlu0 %v3145_v27 }
 0x3b4   :  { %v2599_v41 = vpop.f32.mrf.mxu1  ;;  %v6063_v28 = vpop.f32.mrf.mxu0 }
 0x3b6   :  { %v6058_v30 = vpop.f32.mrf.mxu1  ;;  %v2645_v15 = vpop.f32.mrf.mxu0 }
 0x3b7   :  { %3152 = vmax.xlane.f32.xlu0 %v3151_v54 }
 0x3b8   :  { %v7220_v31 = vpop.f32.mrf.mxu1  ;;  %v6064_v35 = vpop.f32.mrf.mxu0 }
 0x3b9   :  { %v3175_v1 = vsel %vm3108_vm3, %v7220_v31, -inf  ;;  %v3136_v35 = vsel %vm3108_vm3, %v7170_v17, -inf }
 0x3ba   :  { %v6069_v53 = vpop.f32.mrf.mxu1  ;;  %v7224_v36 = vpop.f32.mrf.mxu0 }
 0x3bb   :  { %3158 = vmax.xlane.f32.xlu0 %v3157_v33 }
 0x3bc   :  { %v2691_v39 = vpop.f32.mrf.mxu1  ;;  %v6075_v40 = vpop.f32.mrf.mxu0 }
 0x3be   :  { %v6070_v43 = vpop.f32.mrf.mxu1  ;;  %v2737_v45 = vpop.f32.mrf.mxu0 }
 0x3bf   :  { %3164 = vmax.xlane.f32.xlu0 %v3163_v44  ;;  %v3142_v43 = vsel %vm3108_vm3, %v7176_v26, -inf }
 0x3c0   :  { %v7228_v48 = vpop.f32.mrf.mxu1  ;;  %v6076_v46 = vpop.f32.mrf.mxu0 }
 0x3c2   :  { %v6081_v56 = vpop.f32.mrf.mxu1  ;;  %v7232_v59 = vpop.f32.mrf.mxu0 }
 0x3c3   :  { %3170 = vmax.xlane.f32.xlu0 %v3169_v58  ;;  %v3184_v11 = vsel %vm3108_vm3, %v7232_v59, -inf }
 0x3c4   :  { %v2783_v62 = vpop.f32.mrf.mxu1  ;;  %v6087_v63 = vpop.f32.mrf.mxu0 }
 0x3c5   :  { %v3148_v62 = vsel %vm3108_vm3, %v7180_v32, -inf }
 0x3c6   :  { %v6082_v18 = vpop.f32.mrf.mxu1  ;;  %v2829_v2 = vpop.f32.mrf.mxu0 }
 0x3c7   :  { %3176 = vmax.xlane.f32.xlu0 %v3175_v1  ;;  %v3154_v2 = vsel %vm3108_vm3, %v7184_v42, -inf }
 0x3c8   :  { %v7236_v3 = vpop.f32.mrf.mxu1  ;;  %v6088_v10 = vpop.f32.mrf.mxu0 }
 0x3c9   :  { %v3160_v10 = vsel %vm3108_vm3, %v7194_v61, -inf }
 0x3ca   :  { %v6093_v51 = vpop.f32.mrf.mxu1  ;;  %v7240_v49 = vpop.f32.mrf.mxu0 }
 0x3cb   :  { %3185 = vmax.xlane.f32.xlu0 %v3184_v11  ;;  %v3190_v20 = vsel %vm3108_vm3, %v7240_v49, -inf  ;;  %v3166_v51 = vsel %vm3108_vm3, %v7202_v4, -inf }
 0x3cc   :  { %v2875_v12 = vpop.f32.mrf.mxu1  ;;  %v6099_v13 = vpop.f32.mrf.mxu0 }
 0x3ce   :  { %v6094_v19 = vpop.f32.mrf.mxu1  ;;  %v2921_v24 = vpop.f32.mrf.mxu0 }
 0x3cf   :  { %3191 = vmax.xlane.f32.xlu0 %v3190_v20  ;;  %v3172_v19 = vsel %vm3108_vm3, %v7216_v52, -inf }
 0x3d0   :  { %v7244_v25 = vpop.f32.mrf.mxu1  ;;  %v6100_v27 = vpop.f32.mrf.mxu0 }
 0x3d2   :  { %v6105_v41 = vpop.f32.mrf.mxu1  ;;  %v7246_v28 = vpop.f32.mrf.mxu0 }
 0x3d3   :  { %v3196_v54 = vsel %vm3108_vm3, %v7246_v28, -inf  ;;  %v3178_v41 = vsel %vm3108_vm3, %v7224_v36, -inf }
 0x3d4   :  { %v2967_v30 = vpop.f32.mrf.mxu1  ;;  %3197 = vmax.xlane.f32.xlu0 %v3196_v54  ;;  %v6111_v15 = vpop.f32.mrf.mxu0 }
 0x3d6   :  { %v6106_v53 = vpop.f32.mrf.mxu1  ;;  %3137 = vmax.xlane.f32.xlu1 %v3136_v35  ;;  %v3013_v33 = vpop.f32.mrf.mxu0 }
 0x3d8   :  { %v7252_v39 = vpop.f32.mrf.mxu1  ;;  %v6112_v40 = vpop.f32.mrf.mxu0 }
 0x3d9   :  { %v3187_v40 = vsel %vm3108_vm3, %v7236_v3, -inf }
 0x3da   :  { %v6117_v44 = vpop.f32.mrf.mxu1  ;;  %3143 = vmax.xlane.f32.xlu1 %v3142_v43  ;;  %v7256_v45 = vpop.f32.mrf.mxu0 }
 0x3db   :  { %v3202_v56 = vsel %vm3108_vm3, %v7256_v45, -inf }
 0x3dc   :  { %v3059_v46 = vpop.f32.mrf.mxu1  ;;  %3203 = vmax.xlane.f32.xlu0 %v3202_v56  ;;  %v6123_v58 = vpop.f32.mrf.mxu0 }
 0x3de   :  { %v6118_v63 = vpop.f32.mrf.mxu1  ;;  %3149 = vmax.xlane.f32.xlu1 %v3148_v62  ;;  %v3105_v18 = vpop.f32.mrf.mxu0 }
 0x3e0   :  { %v6124_v1 = vpop.f32.mrf.mxu0 }
 0x3e2   :  { %3155 = vmax.xlane.f32.xlu1 %v3154_v2 }
 0x3e6   :  { %3161 = vmax.xlane.f32.xlu1 %v3160_v10 }
 0x3ea   :  { %3167 = vmax.xlane.f32.xlu1 %v3166_v51 }
 0x3eb   :  { %v3111_v11 = vpop.xlane.xlu0 %3110 }
 0x3ec   :  { %v3205_v12 = vsub.f32 %v7131_v34, %v3111_v11  ;;  %v3181_v34 = vsel %vm3108_vm3, %v7228_v48, -inf }
 0x3ed   :  { %v3114_v13 = vpop.xlane.xlu1 %3113 }
 0x3ee   :  { %v3237_v20 = vmul.f32 1.442695, %v3205_v12  ;;  %v3206_v24 = vsub.f32 %v7135_v38, %v3114_v13  ;;  %3173 = vmax.xlane.f32.xlu1 %v3172_v19  ;;  %v3199_v13 = vsel %vm3108_vm3, %v7252_v39, -inf }
 0x3f0   :  { %6400 = vpow2.f32 %v3237_v20  ;;  %v3239_v27 = vmul.f32 1.442695, %v3206_v24 }
 0x3f1   :  { %v1200_v15 = vpop.permute.xlu1 %1199 }
 0x3f2   :  { %3179 = vmax.xlane.f32.xlu1 %v3178_v41  ;;  %6402 = vpow2.f32 %v3239_v27  ;;  %v1211_v33 = vcombine.low %v7156_v0, %v1200_v15  ;;  %v1212_v43 = vcombine.high %v7156_v0, %v1200_v15 }
 0x3f3   :  { %v3117_v30 = vpop.xlane.xlu0 %3116 }
 0x3f4   :  { %v3207_v54 = vsub.f32 %v7139_v47, %v3117_v30  ;;  %v7285_v63 = vrot.slane %v1211_v33, %v6737_v6  ;;  %v7290_v18 = vrot.slane %v1212_v43, %v6737_v6 }
 0x3f5   :  { %v1206_v47 = vpop.permute.xlu1 %1205 }
 0x3f6   :  { %v3241_v35 = vmul.f32 1.442695, %v3207_v54  ;;  %3182 = vmax.xlane.f32.xlu1 %v3181_v34 }
 0x3f7   :  { %v3120_v53 = vpop.xlane.xlu0 %3119 }
 0x3f8   :  { %6404 = vpow2.f32 %v3241_v35  ;;  %v3208_v38 = vsub.f32 %v7143_v50, %v3120_v53  ;;  %v3193_v50 = vsel %vm3108_vm3, %v7244_v25, -inf }
 0x3fa   :  { %v3243_v44 = vmul.f32 1.442695, %v3208_v38  ;;  %3188 = vmax.xlane.f32.xlu1 %v3187_v40 }
 0x3fb   :  { %v1194_v46 = vpop.permute.xlu0 %1193 }
 0x3fc   :  { %6406 = vpow2.f32 %v3243_v44  ;;  %v1227_v56 = vcombine.low %v1194_v46, %v1206_v47  ;;  %v1228_v58 = vcombine.high %v1194_v46, %v1206_v47 }
 0x3fd   :  { %v7282_v62 = vpop.eup %6400 }
 0x3fe   :  { %v7293_v0 = vrot.slane %v1227_v56, %v6737_v6  ;;  %v7296_v1 = vrot.slane %v1228_v58, %v6737_v6  ;;  %3194 = vmax.xlane.f32.xlu1 %v3193_v50  ;;  %v3301_v2 = vsel %vm3108_vm3, %v7282_v62, 0.0 }
 0x3ff   :  { %3302 = vadd.xlane.f32.xlu0 %v3301_v2  ;;  %v7310_v19 = vpop.eup %6402 }
 0x400   :  { %v1243_v10 = vcombine.low %v7285_v63, %v7293_v0  ;;  %v1244_v51 = vcombine.high %v7285_v63, %v7293_v0  ;;  %v1259_v11 = vcombine.low %v7290_v18, %v7296_v1  ;;  %v1260_v12 = vcombine.high %v7290_v18, %v7296_v1 }
 0x401   :  { %v3304_v41 = vsel %vm3108_vm3, %v7310_v19, 0.0 }
 0x402   :  { %v1251_v20 = vrot.slane %v1243_v10, %v6747_v16  ;;  %3200 = vmax.xlane.f32.xlu1 %v3199_v13 }
 0x404   :  { %v1346_v24 = vcombine.high %v1251_v20, %v6538_v14  ;;  %v7319_v30 = vrot.slane %v1251_v20, %v6737_v6 }
 0x405   :  { %v7314_v27 = vpop.eup %6404 }
 0x406   :  { %3305 = vadd.xlane.f32.xlu1 %v3304_v41  ;;  %v3307_v54 = vsel %vm3108_vm3, %v7314_v27, 0.0  ;;  %v7324_v15 = vrot.slane %v1346_v24, %v6737_v6 }
 0x407   :  { %3308 = vadd.xlane.f32.xlu0 %v3307_v54 }
 0x408   :  { %v1354_v34 = vcombine.low %v7319_v30, %v7324_v15  ;;  %v1355_v35 = vcombine.high %v7319_v30, %v7324_v15 }
 0x409   :  { %v7330_v53 = vpop.eup %6406 }
 0x40a   :  { %v3310_v38 = vsel %vm3108_vm3, %v7330_v53, 0.0  ;;  %v1362_v33 = vrot.slane %v1354_v34, %v6747_v16 }
 0x40b   :  { %3311 = vadd.xlane.f32.xlu0 %v3310_v38 }
 0x40c   :  { %v1603_v40 = vpack.c.bf16 %v1362_v33, %v1362_v33  ;;  %v1370_v43 = vcombine.high %v1362_v33, %v6538_v14 }
 0x40e   :  { %v3499_v44 = vsel %vm3497_vm4, %v1603_v40, 0  ;;  %v1604_v47 = vpack.c.bf16 %v1370_v43, %v1370_v43 }
 0x40f   :  { %6126 = vmatpush3.bf16.msra.mxu1 %v3499_v44 }
 0x410   :  { %v3545_v46 = vsel %vm3497_vm4, %v1604_v47, 0  ;;  %6137 = vmatprep.subr.bf16.mxu1 %v6538_v14 }
 0x411   :  { %6132 = vmatpush3.bf16.msra.mxu0 %v3545_v46 }
 0x412   :  { %6143 = vmatprep.subr.bf16.mxu0 %v6538_v14 }
 0x426   :  { %v3126_v56 = vpop.xlane.xlu1 %3125 }
 0x427   :  { %v3210_v58 = vsub.f32 %v7158_v57, %v3126_v56 }
 0x429   :  { %v3247_v50 = vmul.f32 1.442695, %v3210_v58 }
 0x42a   :  { %v3132_v2 = vpop.xlane.xlu1 %3131 }
 0x42b   :  { %6408 = vpow2.f32 %v3247_v50  ;;  %v3212_v10 = vsub.f32 %v7166_v5, %v3132_v2 }
 0x42c   :  { %v3123_v13 = vpop.xlane.xlu0 %3122 }
 0x42d   :  { %v3251_v20 = vmul.f32 1.442695, %v3212_v10  ;;  %v3209_v24 = vsub.f32 %v7152_v60, %v3123_v13 }
 0x42f   :  { %6410 = vpow2.f32 %v3251_v20  ;;  %v3245_v41 = vmul.f32 1.442695, %v3209_v24 }
 0x430   :  { %v3129_v54 = vpop.xlane.xlu0 %3128 }
 0x431   :  { %6412 = vpow2.f32 %v3245_v41  ;;  %v3211_v34 = vsub.f32 %v7162_v7, %v3129_v54 }
 0x433   :  { %v3249_v38 = vmul.f32 1.442695, %v3211_v34 }
 0x434   :  { %v3135_v33 = vpop.xlane.xlu0 %3134 }
 0x435   :  { %6414 = vpow2.f32 %v3249_v38  ;;  %v3213_v57 = vsub.f32 %v7168_v8, %v3135_v33 }
 0x437   :  { %v3253_v40 = vmul.f32 1.442695, %v3213_v57 }
 0x438   :  { %v7345_v43 = vpop.eup %6408  ;;  %v3141_v44 = vpop.xlane.xlu0 %3140 }
 0x439   :  { %6416 = vpow2.f32 %v3253_v40  ;;  %v3215_v5 = vsub.f32 %v7174_v23, %v3141_v44  ;;  %v3316_v60 = vsel %vm3108_vm3, %v7345_v43, 0.0 }
 0x43a   :  { %3317 = vadd.xlane.f32.xlu0 %v3316_v60 }
 0x43b   :  { %v3257_v47 = vmul.f32 1.442695, %v3215_v5 }
 0x43c   :  { %v7350_v46 = vpop.eup %6410  ;;  %v3147_v7 = vpop.xlane.xlu0 %3146 }
 0x43d   :  { %6418 = vpow2.f32 %v3257_v47  ;;  %v3217_v56 = vsub.f32 %v7178_v29, %v3147_v7  ;;  %v3322_v8 = vsel %vm3108_vm3, %v7350_v46, 0.0  ;;  %v7385_v47 = vpop.permute.xlu1 %1195 }
 0x43e   :  { %v7355_v58 = vpop.eup %6412  ;;  %3323 = vadd.xlane.f32.xlu0 %v3322_v8 }
 0x43f   :  { %v3261_v50 = vmul.f32 1.442695, %v3217_v56  ;;  %v3313_v23 = vsel %vm3108_vm3, %v7355_v58, 0.0 }
 0x440   :  { %v3153_v2 = vpop.xlane.xlu0 %3152  ;;  %3314 = vadd.xlane.f32.xlu1 %v3313_v23 }
 0x441   :  { %6420 = vpow2.f32 %v3261_v50  ;;  %v3219_v10 = vsub.f32 %v7182_v37, %v3153_v2 }
 0x442   :  { %v7360_v13 = vpop.eup %6414 }
 0x443   :  { %v3265_v20 = vmul.f32 1.442695, %v3219_v10  ;;  %v3319_v29 = vsel %vm3108_vm3, %v7360_v13, 0.0 }
 0x444   :  { %v3159_v24 = vpop.xlane.xlu0 %3158  ;;  %3320 = vadd.xlane.f32.xlu1 %v3319_v29 }
 0x445   :  { %6422 = vpow2.f32 %v3265_v20  ;;  %v3221_v41 = vsub.f32 %v7188_v55, %v3159_v24 }
 0x446   :  { %v7365_v54 = vpop.eup %6416 }
 0x447   :  { %v3269_v34 = vmul.f32 1.442695, %v3221_v41  ;;  %v3325_v38 = vsel %vm3108_vm3, %v7365_v54, 0.0 }
 0x448   :  { %3326 = vadd.xlane.f32.xlu1 %v3325_v38  ;;  %v3165_v8 = vpop.xlane.xlu0 %3164 }
 0x449   :  { %6424 = vpow2.f32 %v3269_v34 }
 0x44a   :  { %v7369_v37 = vpop.eup %6418 }
 0x44b   :  { %v3331_v33 = vsel %vm3108_vm3, %v7369_v37, 0.0 }
 0x44c   :  { %3332 = vadd.xlane.f32.xlu1 %v3331_v33  ;;  %v7389_v29 = vpop.xlane.xlu0 %3170 }
 0x44e   :  { %v7373_v57 = vpop.eup %6420 }
 0x44f   :  { %v3337_v40 = vsel %vm3108_vm3, %v7373_v57, 0.0 }
 0x450   :  { %3338 = vadd.xlane.f32.xlu1 %v3337_v40  ;;  %v7395_v38 = vpop.xlane.xlu0 %3176 }
 0x452   :  { %v7377_v55 = vpop.eup %6422 }
 0x453   :  { %v3343_v44 = vsel %vm3108_vm3, %v7377_v55, 0.0 }
 0x454   :  { %3344 = vadd.xlane.f32.xlu1 %v3343_v44 }
 0x456   :  { %v7381_v5 = vpop.eup %6424 }
 0x457   :  { %v3349_v60 = vsel %vm3108_vm3, %v7381_v5, 0.0 }
 0x458   :  { %3350 = vadd.xlane.f32.xlu1 %v3349_v60 }
 0x45f   :  { %v3138_v7 = vpop.xlane.xlu1 %3137 }
 0x460   :  { %v3214_v56 = vsub.f32 %v7170_v17, %v3138_v7 }
 0x462   :  { %v3255_v50 = vmul.f32 1.442695, %v3214_v56  ;;  %v3223_v56 = vsub.f32 %v7198_v9, %v3165_v8 }
 0x463   :  { %v3144_v23 = vpop.xlane.xlu1 %3143 }
 0x464   :  { %6426 = vpow2.f32 %v3255_v50  ;;  %v3216_v2 = vsub.f32 %v7176_v26, %v3144_v23  ;;  %v3186_v50 = vpop.xlane.xlu0 %3185 }
 0x466   :  { %v3259_v10 = vmul.f32 1.442695, %v3216_v2 }
 0x467   :  { %v3150_v20 = vpop.xlane.xlu1 %3149 }
 0x468   :  { %6428 = vpow2.f32 %v3259_v10  ;;  %v3218_v24 = vsub.f32 %v7180_v32, %v3150_v20 }
 0x469   :  { %1207 = vrot.lane.b32.xlu1 %v7208_v21, %s6542_s6 }
 0x46a   :  { %v3263_v41 = vmul.f32 1.442695, %v3218_v24  ;;  %v3192_v24 = vpop.xlane.xlu0 %3191 }
 0x46b   :  { %v3156_v34 = vpop.xlane.xlu1 %3155 }
 0x46c   :  { %6430 = vpow2.f32 %v3263_v41  ;;  %v3220_v17 = vsub.f32 %v7184_v42, %v3156_v34 }
 0x46e   :  { %v3267_v33 = vmul.f32 1.442695, %v3220_v17 }
 0x46f   :  { %v3162_v40 = vpop.xlane.xlu1 %3161 }
 0x470   :  { %6432 = vpow2.f32 %v3267_v33  ;;  %v3222_v26 = vsub.f32 %v7194_v61, %v3162_v40  ;;  %v3273_v61 = vmul.f32 1.442695, %v3223_v56 }
 0x471   :  { %v7398_v44 = vpop.eup %6426 }
 0x472   :  { %v3271_v60 = vmul.f32 1.442695, %v3222_v26  ;;  %v3328_v32 = vsel %vm3108_vm3, %v7398_v44, 0.0  ;;  %v3198_v26 = vpop.xlane.xlu0 %3197 }
 0x473   :  { %v7402_v7 = vpop.xlane.xlu1 %3167  ;;  %3329 = vadd.xlane.f32.xlu0 %v3328_v32 }
 0x474   :  { %6434 = vpow2.f32 %v3271_v60 }
 0x475   :  { %v7405_v42 = vpop.eup %6428  ;;  %6436 = vpow2.f32 %v3273_v61 }
 0x476   :  { %v3334_v23 = vsel %vm3108_vm3, %v7405_v42, 0.0  ;;  %v3204_v61 = vpop.xlane.xlu0 %3203 }
 0x477   :  { %v3174_v2 = vpop.xlane.xlu1 %3173  ;;  %3335 = vadd.xlane.f32.xlu0 %v3334_v23 }
 0x478   :  { %v3226_v10 = vsub.f32 %v7216_v52, %v3174_v2  ;;  %v3230_v52 = vsub.f32 %v7232_v59, %v3186_v50  ;;  %v3232_v2 = vsub.f32 %v7240_v49, %v3192_v24  ;;  %v3234_v50 = vsub.f32 %v7246_v28, %v3198_v26 }
 0x479   :  { %v7410_v20 = vpop.eup %6430  ;;  %v3236_v24 = vsub.f32 %v7256_v45, %v3204_v61  ;;  %v1369_v45 = vrot.slane %v1355_v35, %v6747_v16 }
 0x47a   :  { %v3340_v41 = vsel %vm3108_vm3, %v7410_v20, 0.0  ;;  %v3279_v9 = vmul.f32 1.442695, %v3226_v10  ;;  %v3291_v59 = vmul.f32 1.442695, %v3232_v2 }
 0x47b   :  { %v3180_v34 = vpop.xlane.xlu1 %3179  ;;  %3341 = vadd.xlane.f32.xlu0 %v3340_v41  ;;  %v3295_v49 = vmul.f32 1.442695, %v3234_v50  ;;  %v1605_v30 = vpack.c.bf16 %v1369_v45, %v1369_v45 }
 0x47c   :  { %v3228_v8 = vsub.f32 %v7224_v36, %v3180_v34  ;;  %6438 = vpow2.f32 %v3279_v9  ;;  %v3287_v36 = vmul.f32 1.442695, %v3230_v52  ;;  %v1258_v9 = vrot.slane %v1244_v51, %v6747_v16 }
 0x47d   :  { %v7415_v17 = vpop.eup %6432 }
 0x47e   :  { %v3346_v33 = vsel %vm3108_vm3, %v7415_v17, 0.0  ;;  %v3283_v60 = vmul.f32 1.442695, %v3228_v8  ;;  %v1379_v26 = vcombine.high %v1258_v9, %v6538_v14  ;;  %v7462_v50 = vrot.slane %v1258_v9, %v6737_v6 }
 0x47f   :  { %v7419_v40 = vpop.xlane.xlu1 %3182  ;;  %3347 = vadd.xlane.f32.xlu0 %v3346_v33  ;;  %v3591_v9 = vsel %vm3497_vm4, %v1605_v30, 0 }
 0x480   :  { %6440 = vpow2.f32 %v3283_v60  ;;  %v3299_v60 = vmul.f32 1.442695, %v3236_v24  ;;  %v7457_v2 = vrot.slane %v1379_v26, %v6737_v6 }
 0x481   :  { %v7422_v32 = vpop.eup %6434  ;;  %6442 = vpow2.f32 %v3287_v36 }
 0x482   :  { %v3352_v56 = vsel %vm3108_vm3, %v7422_v32, 0.0  ;;  %v7432_v34 = vpop.eup %6436  ;;  %v1387_v35 = vcombine.low %v7462_v50, %v7457_v2 }
 0x483   :  { %v7426_v23 = vpop.xlane.xlu1 %3188  ;;  %3353 = vadd.xlane.f32.xlu0 %v3352_v56  ;;  %v3355_v33 = vsel %vm3108_vm3, %v7432_v34, 0.0 }
 0x487   :  { %v7429_v10 = vpop.xlane.xlu1 %3194 }
 0x488   :  { %v3303_v41 = vpop.xlane.xlu0 %3302 }
 0x489   :  { %6444 = vrcp.f32 %v3303_v41  ;;  %v7443_v52 = vpop.eup %6438 }
 0x48a   :  { %6446 = vpow2.f32 %v3291_v59  ;;  %v3364_v63 = vsel %vm3108_vm3, %v7443_v52, 0.0 }
 0x48b   :  { %v7438_v8 = vpop.xlane.xlu1 %3200  ;;  %6448 = vpow2.f32 %v3295_v49 }
 0x48d   :  { %3356 = vadd.xlane.f32.xlu1 %v3355_v33  ;;  %v7448_v0 = vpop.eup %6440 }
 0x48e   :  { %v3370_v36 = vsel %vm3108_vm3, %v7448_v0, 0.0  ;;  %v7459_v61 = vpop.eup %6442 }
 0x48f   :  { %v3306_v28 = vpop.xlane.xlu1 %3305  ;;  %v3376_v15 = vsel %vm3108_vm3, %v7459_v61, 0.0 }
 0x490   :  { %v3309_v56 = vpop.xlane.xlu0 %3308  ;;  %6450 = vrcp.f32 %v3306_v28  ;;  %v1395_v28 = vrot.slane %v1387_v35, %v6747_v16 }
 0x491   :  { %3365 = vadd.xlane.f32.xlu1 %v3364_v63  ;;  %6452 = vrcp.f32 %v3309_v56  ;;  %v3224_v63 = vsub.f32 %v7202_v4, %v7402_v7 }
 0x492   :  { %6454 = vpow2.f32 %v3299_v60 }
 0x494   :  { %v3312_v51 = vpop.xlane.xlu0 %3311 }
 0x495   :  { %6456 = vrcp.f32 %v3312_v51  ;;  %3371 = vadd.xlane.f32.xlu1 %v3370_v36 }
 0x496   :  { %v6445_v59 = vpop.eup %6444 }
 0x497   :  { %v3398_v41 = vmul.f32 %v6445_v59, %v7282_v62  ;;  %v7469_v49 = vpop.eup %6446  ;;  %v1371_v62 = vcombine.high %v1369_v45, %v6538_v14 }
 0x498   :  { %v3382_v33 = vsel %vm3108_vm3, %v7469_v49, 0.0  ;;  %v7481_v26 = vpop.eup %6448 }
 0x499   :  { %3377 = vadd.xlane.f32.xlu1 %v3376_v15  ;;  %1201 = vrot.lane.b32.xlu0 %v7208_v21, %s6540_s18  ;;  %v3461_v24 = vpack.c.bf16 %v3398_v41, %v3398_v41  ;;  %v1606_v51 = vpack.c.bf16 %v1371_v62, %v1371_v62  ;;  %v3388_v36 = vsel %vm3108_vm3, %v7481_v26, 0.0  ;;  %v1607_v41 = vpack.c.bf16 %v1395_v28, %v1395_v28 }
 0x49b   :  { %6128 = vmatmul.mubr.msk.bf16.vlgmr.msra.gmra.mxu1 %vm3493_vm5, %v3461_v24  ;;  %v3637_v4 = vsel %vm3497_vm4, %v1606_v51, 0 }
 0x49c   :  { %6138 = vmatpush3.bf16.msra.mxu1 %v3591_v9  ;;  %6139 = vmatprep.mubr.msk.bf16.mxu1 %vm6539_vm1, %v6538_v14  ;;  %v3225_v9 = vsub.f32 %v7210_v22, %v7389_v29  ;;  %v3227_v29 = vsub.f32 %v7220_v31, %v7395_v38  ;;  %v3231_v38 = vsub.f32 %v7236_v3, %v7426_v23 }
 0x49d   :  { %3383 = vadd.xlane.f32.xlu1 %v3382_v33  ;;  %6149 = vmatprep.subr.bf16.mxu1 %v6538_v14  ;;  %v6451_v60 = vpop.eup %6450  ;;  %v3275_v33 = vmul.f32 1.442695, %v3224_v63 }
 0x49e   :  { %v6453_v56 = vpop.eup %6452  ;;  %v3400_v45 = vmul.f32 %v6451_v60, %v7310_v19  ;;  %v1403_v19 = vcombine.high %v1395_v28, %v6538_v14  ;;  %v3277_v22 = vmul.f32 1.442695, %v3225_v9 }
 0x49f   :  { %v3402_v59 = vmul.f32 %v6453_v56, %v7314_v27  ;;  %v7490_v30 = vpop.eup %6454  ;;  %v3683_v27 = vsel %vm3497_vm4, %v1607_v41, 0  ;;  %6458 = vpow2.f32 %v3275_v33  ;;  %v3281_v56 = vmul.f32 1.442695, %v3227_v29 }
 0x4a0   :  { %v3462_v15 = vpack.c.bf16 %v3400_v45, %v3400_v45  ;;  %v3394_v7 = vsel %vm3108_vm3, %v7490_v30, 0.0  ;;  %v1608_v28 = vpack.c.bf16 %v1403_v19, %v1403_v19  ;;  %6460 = vpow2.f32 %v3277_v22 }
 0x4a1   :  { %3389 = vadd.xlane.f32.xlu1 %v3388_v36  ;;  %v3463_v24 = vpack.c.bf16 %v3402_v59, %v3402_v59  ;;  %6462 = vpow2.f32 %v3281_v56  ;;  %v3289_v45 = vmul.f32 1.442695, %v3231_v38  ;;  %v3235_v36 = vsub.f32 %v7252_v39, %v7438_v8 }
 0x4a2   :  { %v6457_v35 = vpop.eup %6456  ;;  %6134 = vmatmul.mubr.msk.bf16.vlgmr.msra.gmra.mxu0 %vm3493_vm5, %v3462_v15  ;;  %v3729_v63 = vsel %vm3497_vm4, %v1608_v28, 0  ;;  %v1267_v39 = vrot.slane %v1259_v11, %v6747_v16  ;;  %v1388_v33 = vcombine.high %v7462_v50, %v7457_v2 }
 0x4a3   :  { %6144 = vmatpush3.bf16.msra.mxu0 %v3637_v4  ;;  %6140 = vmatmul.mubr.msk.bf16.vlgmr.msra.gmra.mxu1 %vm3493_vm5, %v3463_v24  ;;  %v3404_v62 = vmul.f32 %v6457_v35, %v7330_v53  ;;  %v3229_v53 = vsub.f32 %v7228_v48, %v7419_v40  ;;  %v3233_v48 = vsub.f32 %v7244_v25, %v7429_v10  ;;  %v3297_v3 = vmul.f32 1.442695, %v3235_v36 }
 0x4a4   :  { %6150 = vmatpush3.bf16.msra.mxu1 %v3683_v27  ;;  %6145 = vmatprep.mubr.msk.bf16.mxu0 %vm6539_vm1, %v6538_v14  ;;  %v1412_v9 = vcombine.high %v1267_v39, %v6538_v14  ;;  %v1411_v2 = vrot.slane %v1267_v39, %v6737_v6 }
 0x4a5   :  { %3395 = vadd.xlane.f32.xlu1 %v3394_v7  ;;  %6155 = vmatprep.subr.bf16.mxu0 %v6538_v14  ;;  %v3464_v60 = vpack.c.bf16 %v3404_v62, %v3404_v62  ;;  %v3285_v31 = vmul.f32 1.442695, %v3229_v53  ;;  %v3293_v51 = vmul.f32 1.442695, %v3233_v48  ;;  %v1402_v62 = vrot.slane %v1388_v33, %v6747_v16 }
 0x4a6   :  { %6151 = vmatprep.mubr.msk.bf16.mxu1 %vm6539_vm1, %v6538_v14  ;;  %6161 = vmatprep.subr.bf16.mxu1 %v6538_v14  ;;  %v1419_v7 = vrot.slane %v1412_v9, %v6737_v6  ;;  %v1274_v33 = vrot.slane %v1260_v12, %v6747_v16 }
 0x4a7   :  { %6464 = vpow2.f32 %v3285_v31  ;;  %v1404_v28 = vcombine.high %v1402_v62, %v6538_v14 }
 0x4a8   :  { %6466 = vpow2.f32 %v3289_v45  ;;  %v1445_v18 = vcombine.high %v1274_v33, %v6538_v14  ;;  %v1421_v12 = vcombine.high %v1411_v2, %v1419_v7 }
 0x4a9   :  { %6468 = vpow2.f32 %v3293_v51  ;;  %v1610_v31 = vpack.c.bf16 %v1404_v28, %v1404_v28 }
 0x4aa   :  { %6146 = vmatmul.mubr.msk.bf16.vlgmr.msra.gmra.mxu0 %vm3493_vm5, %v3464_v60  ;;  %6470 = vpow2.f32 %v3297_v3  ;;  %v1420_v60 = vcombine.low %v1411_v2, %v1419_v7  ;;  %v1435_v28 = vrot.slane %v1421_v12, %v6747_v16 }
 0x4ab   :  { %6156 = vmatpush3.bf16.msra.mxu0 %v3729_v63  ;;  %6157 = vmatprep.mubr.msk.bf16.mxu0 %vm6539_vm1, %v6538_v14  ;;  %v3821_v36 = vsel %vm3497_vm4, %v1610_v31, 0 }
 0x4ac   :  { %6167 = vmatprep.subr.bf16.mxu0 %v6538_v14  ;;  %v7521_v40 = vpop.eup %6458  ;;  %v1428_v38 = vrot.slane %v1420_v60, %v6747_v16  ;;  %v1444_v60 = vrot.slane %v1274_v33, %v6737_v6  ;;  %v1613_v2 = vpack.c.bf16 %v1435_v28, %v1435_v28 }
 0x4ad   :  { %v3358_v59 = vsel %vm3108_vm3, %v7521_v40, 0.0  ;;  %v7527_v41 = vpop.eup %6460 }
 0x4ae   :  { %v3361_v23 = vsel %vm3108_vm3, %v7527_v41, 0.0  ;;  %v7531_v15 = vpop.eup %6462  ;;  %v1611_v1 = vpack.c.bf16 %v1428_v38, %v1428_v38 }
 0x4af   :  { %v3367_v25 = vsel %vm3108_vm3, %v7531_v15, 0.0 }
 0x4b4   :  { %v7535_v10 = vpop.eup %6464 }
 0x4b5   :  { %v3373_v35 = vsel %vm3108_vm3, %v7535_v10, 0.0  ;;  %v7543_v24 = vpop.eup %6466 }
 0x4b6   :  { %v3379_v19 = vsel %vm3108_vm3, %v7543_v24, 0.0  ;;  %v7550_v27 = vpop.eup %6468 }
 0x4b7   :  { %v3385_v22 = vsel %vm3108_vm3, %v7550_v27, 0.0  ;;  %v7556_v29 = vpop.eup %6470 }
 0x4b8   :  { %3359 = vadd.xlane.f32.xlu0 %v3358_v59  ;;  %v3391_v56 = vsel %vm3108_vm3, %v7556_v29, 0.0  ;;  %v1436_v59 = vcombine.high %v1428_v38, %v6538_v14  ;;  %v3959_v38 = vsel %vm3497_vm4, %v1613_v2, 0 }
 0x4bc   :  { %3362 = vadd.xlane.f32.xlu0 %v3361_v23  ;;  %v1609_v23 = vpack.c.bf16 %v1402_v62, %v1402_v62 }
 0x4c0   :  { %3368 = vadd.xlane.f32.xlu0 %v3367_v25 }
 0x4c3   :  { %v3318_v8 = vpop.xlane.xlu0 %3317 }
 0x4c4   :  { %6472 = vrcp.f32 %v3318_v8  ;;  %3374 = vadd.xlane.f32.xlu0 %v3373_v35  ;;  %v1612_v8 = vpack.c.bf16 %v1436_v59, %v1436_v59 }
 0x4c7   :  { %v3324_v4 = vpop.xlane.xlu0 %3323 }
 0x4c8   :  { %6474 = vrcp.f32 %v3324_v4  ;;  %3380 = vadd.xlane.f32.xlu0 %v3379_v19  ;;  %v3775_v4 = vsel %vm3497_vm4, %v1609_v23, 0 }
 0x4c9   :  { %v3315_v11 = vpop.xlane.xlu1 %3314 }
 0x4ca   :  { %6476 = vrcp.f32 %v3315_v11 }
 0x4cc   :  { %3386 = vadd.xlane.f32.xlu0 %v3385_v22 }
 0x4cd   :  { %v3321_v50 = vpop.xlane.xlu1 %3320 }
 0x4ce   :  { %6478 = vrcp.f32 %v3321_v50  ;;  %v3867_v50 = vsel %vm3497_vm4, %v1611_v1, 0 }
 0x4d0   :  { %3392 = vadd.xlane.f32.xlu0 %v3391_v56 }
 0x4d1   :  { %v6473_v53 = vpop.eup %6472  ;;  %v3327_v45 = vpop.xlane.xlu1 %3326 }
 0x4d2   :  { %v3408_v63 = vmul.f32 %v6473_v53, %v7345_v43  ;;  %6480 = vrcp.f32 %v3327_v45 }
 0x4d4   :  { %v3466_v48 = vpack.c.bf16 %v3408_v63, %v3408_v63 }
 0x4d5   :  { %v6475_v51 = vpop.eup %6474  ;;  %v3333_v9 = vpop.xlane.xlu1 %3332 }
 0x4d6   :  { %6158 = vmatmul.mubr.msk.bf16.vlgmr.msra.gmra.mxu0 %vm3493_vm5, %v3466_v48  ;;  %v3412_v25 = vmul.f32 %v6475_v51, %v7350_v46  ;;  %6482 = vrcp.f32 %v3333_v9  ;;  %v3913_v46 = vsel %vm3497_vm4, %v1612_v8, 0 }
 0x4d7   :  { %v6477_v3 = vpop.eup %6476  ;;  %6168 = vmatpush3.bf16.msra.mxu0 %v3821_v36  ;;  %6169 = vmatprep.mubr.msk.bf16.mxu0 %vm6539_vm1, %v6538_v14 }
 0x4d8   :  { %v3406_v43 = vmul.f32 %v6477_v3, %v7355_v58  ;;  %6179 = vmatprep.subr.bf16.mxu0 %v6538_v14  ;;  %v3468_v19 = vpack.c.bf16 %v3412_v25, %v3412_v25 }
 0x4d9   :  { %v3339_v22 = vpop.xlane.xlu1 %3338 }
 0x4da   :  { %v3465_v39 = vpack.c.bf16 %v3406_v43, %v3406_v43  ;;  %6484 = vrcp.f32 %v3339_v22 }
 0x4db   :  { %v6479_v35 = vpop.eup %6478 }
 0x4dc   :  { %6152 = vmatmul.mubr.msk.bf16.vlgmr.msra.gmra.mxu1 %vm3493_vm5, %v3465_v39  ;;  %v3410_v58 = vmul.f32 %v6479_v35, %v7360_v13  ;;  %v1452_v13 = vrot.slane %v1445_v18, %v6737_v6 }
 0x4dd   :  { %6162 = vmatpush3.bf16.msra.mxu1 %v3775_v4  ;;  %6163 = vmatprep.mubr.msk.bf16.mxu1 %vm6539_vm1, %v6538_v14  ;;  %v3345_v31 = vpop.xlane.xlu1 %3344 }
 0x4de   :  { %6170 = vmatmul.mubr.msk.bf16.vlgmr.msra.gmra.mxu0 %vm3493_vm5, %v3468_v19  ;;  %6173 = vmatprep.subr.bf16.mxu1 %v6538_v14  ;;  %v3467_v11 = vpack.c.bf16 %v3410_v58, %v3410_v58  ;;  %v1453_v56 = vcombine.low %v1444_v60, %v1452_v13  ;;  %6486 = vrcp.f32 %v3345_v31  ;;  %v1454_v51 = vcombine.high %v1444_v60, %v1452_v13 }
 0x4df   :  { %6180 = vmatpush3.bf16.msra.mxu0 %v3913_v46  ;;  %6181 = vmatprep.mubr.msk.bf16.mxu0 %vm6539_vm1, %v6538_v14  ;;  %v6481_v62 = vpop.eup %6480  ;;  %v1437_v46 = vcombine.high %v1435_v28, %v6538_v14 }
 0x4e0   :  { %6191 = vmatprep.subr.bf16.mxu0 %v6538_v14  ;;  %v3414_v7 = vmul.f32 %v6481_v62, %v7365_v54  ;;  %v1461_v45 = vrot.slane %v1453_v56, %v6747_v16  ;;  %v1468_v43 = vrot.slane %v1454_v51, %v6747_v16 }
 0x4e1   :  { %v3351_v19 = vpop.xlane.xlu1 %3350 }
 0x4e2   :  { %v3469_v53 = vpack.c.bf16 %v3414_v7, %v3414_v7  ;;  %v1615_v48 = vpack.c.bf16 %v1461_v45, %v1461_v45  ;;  %v1617_v25 = vpack.c.bf16 %v1468_v43, %v1468_v43  ;;  %v1469_v28 = vcombine.high %v1461_v45, %v6538_v14 }
 0x4e3   :  { %v6483_v63 = vpop.eup %6482 }
 0x4e4   :  { %6164 = vmatmul.mubr.msk.bf16.vlgmr.msra.gmra.mxu1 %vm3493_vm5, %v3467_v11  ;;  %v3418_v54 = vmul.f32 %v6483_v63, %v7369_v37  ;;  %v4051_v3 = vsel %vm3497_vm4, %v1615_v48, 0  ;;  %v4143_v8 = vsel %vm3497_vm4, %v1617_v25, 0 }
 0x4e5   :  { %6174 = vmatpush3.bf16.msra.mxu1 %v3867_v50  ;;  %6175 = vmatprep.mubr.msk.bf16.mxu1 %vm6539_vm1, %v6538_v14  ;;  %v7622_v12 = vpop.permute.xlu1 %1207 }
 0x4e6   :  { %6185 = vmatprep.subr.bf16.mxu1 %v6538_v14  ;;  %v3471_v36 = vpack.c.bf16 %v3418_v54, %v3418_v54  ;;  %v1291_v50 = vcombine.low %v7385_v47, %v7622_v12 }
 0x4e7   :  { %v6485_v59 = vpop.eup %6484 }
 0x4e8   :  { %v3422_v23 = vmul.f32 %v6485_v59, %v7373_v57  ;;  %v1299_v2 = vrot.slane %v1291_v50, %v6737_v6 }
 0x4ea   :  { %v3473_v37 = vpack.c.bf16 %v3422_v23, %v3422_v23 }
 0x4eb   :  { %v6487_v39 = vpop.eup %6486 }
 0x4ec   :  { %6176 = vmatmul.mubr.msk.bf16.vlgmr.msra.gmra.mxu1 %vm3493_vm5, %v3469_v53  ;;  %v3426_v9 = vmul.f32 %v6487_v39, %v7377_v55  ;;  %v1614_v55 = vpack.c.bf16 %v1437_v46, %v1437_v46  ;;  %v1616_v53 = vpack.c.bf16 %v1469_v28, %v1469_v28 }
 0x4ed   :  { %6186 = vmatpush3.bf16.msra.mxu1 %v3959_v38  ;;  %6187 = vmatprep.mubr.msk.bf16.mxu1 %vm6539_vm1, %v6538_v14 }
 0x4ee   :  { %6197 = vmatprep.subr.bf16.mxu1 %v6538_v14  ;;  %v3475_v57 = vpack.c.bf16 %v3426_v9, %v3426_v9  ;;  %v4005_v13 = vsel %vm3497_vm4, %v1614_v55, 0 }
 0x4f4   :  { %6188 = vmatmul.mubr.msk.bf16.vlgmr.msra.gmra.mxu1 %vm3493_vm5, %v3471_v36  ;;  %v4097_v36 = vsel %vm3497_vm4, %v1616_v53, 0 }
 0x4f5   :  { %6198 = vmatpush3.bf16.msra.mxu1 %v4051_v3  ;;  %6199 = vmatprep.mubr.msk.bf16.mxu1 %vm6539_vm1, %v6538_v14 }
 0x4f6   :  { %6209 = vmatprep.subr.bf16.mxu1 %v6538_v14 }
 0x4fc   :  { %6200 = vmatmul.mubr.msk.bf16.vlgmr.msra.gmra.mxu1 %vm3493_vm5, %v3473_v37  ;;  %v3330_v35 = vpop.xlane.xlu0 %3329 }
 0x4fd   :  { %6210 = vmatpush3.bf16.msra.mxu1 %v4143_v8  ;;  %6488 = vrcp.f32 %v3330_v35  ;;  %6211 = vmatprep.mubr.msk.bf16.mxu1 %vm6539_vm1, %v6538_v14 }
 0x4fe   :  { %6221 = vmatprep.subr.bf16.mxu1 %v6538_v14 }
 0x500   :  { %v3336_v33 = vpop.xlane.xlu0 %3335 }
 0x501   :  { %6490 = vrcp.f32 %v3336_v33 }
 0x504   :  { %6212 = vmatmul.mubr.msk.bf16.vlgmr.msra.gmra.mxu1 %vm3493_vm5, %v3475_v57  ;;  %v3342_v4 = vpop.xlane.xlu0 %3341 }
 0x505   :  { %6223 = vmatprep.mubr.msk.bf16.mxu1 %vm6539_vm1, %v6538_v14  ;;  %6492 = vrcp.f32 %v3342_v4 }
 0x506   :  { %6494 = vrcp.f32 %v3351_v19 }
 0x508   :  { %v3348_v58 = vpop.xlane.xlu0 %3347 }
 0x509   :  { %6496 = vrcp.f32 %v3348_v58 }
 0x50a   :  { %v6489_v18 = vpop.eup %6488 }
 0x50b   :  { %v3416_v1 = vmul.f32 %v6489_v18, %v7398_v44 }
 0x50c   :  { %v3354_v11 = vpop.xlane.xlu0 %3353 }
 0x50d   :  { %v3470_v62 = vpack.c.bf16 %v3416_v1, %v3416_v1  ;;  %6498 = vrcp.f32 %v3354_v11 }
 0x50e   :  { %v6491_v22 = vpop.eup %6490 }
 0x50f   :  { %6182 = vmatmul.mubr.msk.bf16.vlgmr.msra.gmra.mxu0 %vm3493_vm5, %v3470_v62  ;;  %v3420_v7 = vmul.f32 %v6491_v22, %v7405_v42  ;;  %v1470_v42 = vcombine.high %v1468_v43, %v6538_v14 }
 0x510   :  { %6192 = vmatpush3.bf16.msra.mxu0 %v4005_v13  ;;  %v7629_v60 = vpop.permute.xlu0 %1201  ;;  %6193 = vmatprep.mubr.msk.bf16.mxu0 %vm6539_vm1, %v6538_v14 }
 0x511   :  { %v1275_v44 = vcombine.low %v7208_v21, %v7629_v60  ;;  %6203 = vmatprep.subr.bf16.mxu0 %v6538_v14  ;;  %v3472_v38 = vpack.c.bf16 %v3420_v7, %v3420_v7  ;;  %v1618_v37 = vpack.c.bf16 %v1470_v42, %v1470_v42 }
 0x512   :  { %v6493_v45 = vpop.eup %6492 }
 0x513   :  { %v1283_v56 = vrot.slane %v1275_v44, %v6737_v6  ;;  %v3424_v3 = vmul.f32 %v6493_v45, %v7410_v20  ;;  %v6495_v43 = vpop.eup %6494  ;;  %v4189_v57 = vsel %vm3497_vm4, %v1618_v37, 0 }
 0x514   :  { %v3430_v46 = vmul.f32 %v6495_v43, %v7381_v5 }
 0x515   :  { %v1307_v63 = vcombine.low %v1283_v56, %v1299_v2  ;;  %v1308_v31 = vcombine.high %v1283_v56, %v1299_v2  ;;  %v3474_v8 = vpack.c.bf16 %v3424_v3, %v3424_v3 }
 0x516   :  { %v3357_v54 = vpop.xlane.xlu1 %3356  ;;  %v6497_v33 = vpop.eup %6496  ;;  %v3477_v28 = vpack.c.bf16 %v3430_v46, %v3430_v46 }
 0x517   :  { %v1315_v48 = vrot.slane %v1307_v63, %v6747_v16  ;;  %v1322_v51 = vrot.slane %v1308_v31, %v6747_v16  ;;  %6194 = vmatmul.mubr.msk.bf16.vlgmr.msra.gmra.mxu0 %vm3493_vm5, %v3472_v38  ;;  %6500 = vrcp.f32 %v3357_v54  ;;  %v3428_v1 = vmul.f32 %v6497_v33, %v7415_v17 }
 0x518   :  { %6204 = vmatpush3.bf16.msra.mxu0 %v4097_v36  ;;  %6205 = vmatprep.mubr.msk.bf16.mxu0 %vm6539_vm1, %v6538_v14 }
 0x519   :  { %v1478_v59 = vcombine.high %v1315_v48, %v6538_v14  ;;  %6215 = vmatprep.subr.bf16.mxu0 %v6538_v14  ;;  %v1477_v23 = vrot.slane %v1315_v48, %v6737_v6  ;;  %v1511_v25 = vcombine.high %v1322_v51, %v6538_v14  ;;  %v7663_v58 = vrot.slane %v1322_v51, %v6737_v6 }
 0x51a   :  { %v6499_v13 = vpop.eup %6498  ;;  %v3476_v5 = vpack.c.bf16 %v3428_v1, %v3428_v1  ;;  %v3366_v3 = vpop.xlane.xlu1 %3365 }
 0x51b   :  { %v1485_v39 = vrot.slane %v1478_v59, %v6737_v6  ;;  %v7657_v19 = vrot.slane %v1511_v25, %v6737_v6  ;;  %v3432_v53 = vmul.f32 %v6499_v13, %v7422_v32  ;;  %v1276_v32 = vcombine.high %v7208_v21, %v7629_v60 }
 0x51d   :  { %v1486_v35 = vcombine.low %v1477_v23, %v1485_v39  ;;  %v1487_v9 = vcombine.high %v1477_v23, %v1485_v39  ;;  %v1519_v50 = vcombine.low %v7663_v58, %v7657_v19  ;;  %v3478_v45 = vpack.c.bf16 %v3432_v53, %v3432_v53 }
 0x51e   :  { %v1290_v36 = vrot.slane %v1276_v32, %v6737_v6  ;;  %v3372_v60 = vpop.xlane.xlu1 %3371 }
 0x51f   :  { %6206 = vmatmul.mubr.msk.bf16.vlgmr.msra.gmra.mxu0 %vm3493_vm5, %v3474_v8  ;;  %v1494_v4 = vrot.slane %v1486_v35, %v6747_v16  ;;  %v1501_v20 = vrot.slane %v1487_v9, %v6747_v16  ;;  %v1527_v56 = vrot.slane %v1519_v50, %v6747_v16 }
 0x520   :  { %6216 = vmatpush3.bf16.msra.mxu0 %v4189_v57  ;;  %6217 = vmatprep.mubr.msk.bf16.mxu0 %vm6539_vm1, %v6538_v14 }
 0x521   :  { %v1619_v18 = vpack.c.bf16 %v1494_v4, %v1494_v4  ;;  %6227 = vmatprep.subr.bf16.mxu0 %v6538_v14  ;;  %v1502_v55 = vcombine.high %v1494_v4, %v6538_v14  ;;  %v1621_v22 = vpack.c.bf16 %v1501_v20, %v1501_v20  ;;  %v1503_v2 = vcombine.high %v1501_v20, %v6538_v14 }
 0x522   :  { %v1623_v38 = vpack.c.bf16 %v1527_v56, %v1527_v56 }
 0x523   :  { %v4235_v11 = vsel %vm3497_vm4, %v1619_v18, 0  ;;  %v1620_v62 = vpack.c.bf16 %v1502_v55, %v1502_v55  ;;  %v4327_v17 = vsel %vm3497_vm4, %v1621_v22, 0  ;;  %v1622_v31 = vpack.c.bf16 %v1503_v2, %v1503_v2  ;;  %v3378_v55 = vpop.xlane.xlu1 %3377 }
 0x524   :  { %6222 = vmatpush3.bf16.msra.mxu1 %v4235_v11  ;;  %v6501_v7 = vpop.eup %6500  ;;  %v4419_v51 = vsel %vm3497_vm4, %v1623_v38, 0 }
 0x525   :  { %v4281_v44 = vsel %vm3497_vm4, %v1620_v62, 0  ;;  %6233 = vmatprep.subr.bf16.mxu1 %v6538_v14  ;;  %v3434_v63 = vmul.f32 %v6501_v7, %v7432_v34  ;;  %v4373_v48 = vsel %vm3497_vm4, %v1622_v31, 0  ;;  %v1292_v34 = vcombine.high %v7385_v47, %v7622_v12 }
 0x526   :  { %v1535_v47 = vcombine.high %v1527_v56, %v6538_v14  ;;  %v1520_v12 = vcombine.high %v7663_v58, %v7657_v19 }
 0x527   :  { %6218 = vmatmul.mubr.msk.bf16.vlgmr.msra.gmra.mxu0 %vm3493_vm5, %v3476_v5  ;;  %6224 = vmatmul.mubr.msk.bf16.vlgmr.msra.gmra.mxu1 %vm3493_vm5, %v3477_v28  ;;  %v3479_v54 = vpack.c.bf16 %v3434_v63, %v3434_v63  ;;  %v1306_v42 = vrot.slane %v1292_v34, %v6737_v6  ;;  %v3384_v53 = vpop.xlane.xlu1 %3383 }
 0x528   :  { %6228 = vmatpush3.bf16.msra.mxu0 %v4281_v44  ;;  %6234 = vmatpush3.bf16.msra.mxu1 %v4327_v17  ;;  %v1624_v33 = vpack.c.bf16 %v1535_v47, %v1535_v47  ;;  %v1534_v57 = vrot.slane %v1520_v12, %v6747_v16 }
 0x529   :  { %6229 = vmatprep.mubr.msk.bf16.mxu0 %vm6539_vm1, %v6538_v14  ;;  %6235 = vmatprep.mubr.msk.bf16.mxu1 %vm6539_vm1, %v6538_v14  ;;  %v1323_v23 = vcombine.low %v1290_v36, %v1306_v42  ;;  %v1324_v1 = vcombine.high %v1290_v36, %v1306_v42 }
 0x52a   :  { %6239 = vmatprep.subr.bf16.mxu0 %v6538_v14  ;;  %6245 = vmatprep.subr.bf16.mxu1 %v6538_v14  ;;  %v4465_v19 = vsel %vm3497_vm4, %v1624_v33, 0  ;;  %v1625_v62 = vpack.c.bf16 %v1534_v57, %v1534_v57 }
 0x52b   :  { %v1331_v37 = vrot.slane %v1323_v23, %v6747_v16  ;;  %v1338_v5 = vrot.slane %v1324_v1, %v6747_v16 }
 0x52d   :  { %v1544_v21 = vcombine.high %v1331_v37, %v6538_v14  ;;  %v1543_v4 = vrot.slane %v1331_v37, %v6737_v6  ;;  %v1577_v56 = vcombine.high %v1338_v5, %v6538_v14 }
 0x52f   :  { %6230 = vmatmul.mubr.msk.bf16.vlgmr.msra.gmra.mxu0 %vm3493_vm5, %v3478_v45  ;;  %6236 = vmatmul.mubr.msk.bf16.vlgmr.msra.gmra.mxu1 %vm3493_vm5, %v3479_v54  ;;  %v1551_v35 = vrot.slane %v1544_v21, %v6737_v6  ;;  %v7741_v23 = vrot.slane %v1577_v56, %v6737_v6 }
 0x530   :  { %6240 = vmatpush3.bf16.msra.mxu0 %v4373_v48  ;;  %6246 = vmatpush3.bf16.msra.mxu1 %v4419_v51 }
 0x531   :  { %6241 = vmatprep.mubr.msk.bf16.mxu0 %vm6539_vm1, %v6538_v14  ;;  %6251 = vmatprep.subr.bf16.mxu0 %v6538_v14  ;;  %v1552_v11 = vcombine.low %v1543_v4, %v1551_v35  ;;  %v1553_v54 = vcombine.high %v1543_v4, %v1551_v35 }
 0x532   :  { %6247 = vmatprep.mubr.msk.bf16.mxu1 %vm6539_vm1, %v6538_v14  ;;  %6257 = vmatprep.subr.bf16.mxu1 %v6538_v14 }
 0x533   :  { %v1560_v7 = vrot.slane %v1552_v11, %v6747_v16 }
 0x535   :  { %v1627_v38 = vpack.c.bf16 %v1560_v7, %v1560_v7  ;;  %v1568_v45 = vcombine.high %v1560_v7, %v6538_v14 }
 0x537   :  { %v4603_v42 = vsel %vm3497_vm4, %v1627_v38, 0 }
 0x541   :  { %v3360_v59 = vpop.xlane.xlu0 %3359 }
 0x542   :  { %6502 = vrcp.f32 %v3360_v59  ;;  %v1628_v59 = vpack.c.bf16 %v1568_v45, %v1568_v45 }
 0x543   :  { %6504 = vrcp.f32 %v3366_v3  ;;  %v1567_v3 = vrot.slane %v1553_v54, %v6747_v16 }
 0x545   :  { %v3363_v25 = vpop.xlane.xlu0 %3362  ;;  %v1569_v35 = vcombine.high %v1567_v3, %v6538_v14 }
 0x546   :  { %6506 = vrcp.f32 %v3363_v25 }
 0x549   :  { %v3369_v39 = vpop.xlane.xlu0 %3368 }
 0x54a   :  { %6508 = vrcp.f32 %v3369_v39 }
 0x54b   :  { %6510 = vrcp.f32 %v3372_v60  ;;  %v3390_v60 = vpop.xlane.xlu1 %3389 }
 0x54d   :  { %v3375_v8 = vpop.xlane.xlu0 %3374 }
 0x54e   :  { %6512 = vrcp.f32 %v3375_v8  ;;  %v1629_v8 = vpack.c.bf16 %v1567_v3, %v1567_v3 }
 0x54f   :  { %v6503_v43 = vpop.eup %6502  ;;  %6514 = vrcp.f32 %v3378_v55 }
 0x550   :  { %v3436_v9 = vmul.f32 %v6503_v43, %v7521_v40  ;;  %v6505_v20 = vpop.eup %6504  ;;  %v1536_v40 = vcombine.high %v1534_v57, %v6538_v14  ;;  %v4649_v43 = vsel %vm3497_vm4, %v1628_v59, 0  ;;  %v4695_v11 = vsel %vm3497_vm4, %v1629_v8, 0 }
 0x551   :  { %v3440_v22 = vmul.f32 %v6505_v20, %v7443_v52  ;;  %v3381_v28 = vpop.xlane.xlu0 %3380 }
 0x552   :  { %v3480_v46 = vpack.c.bf16 %v3436_v9, %v3436_v9  ;;  %v1626_v44 = vpack.c.bf16 %v1536_v40, %v1536_v40  ;;  %6516 = vrcp.f32 %v3381_v28  ;;  %v3396_v40 = vpop.xlane.xlu1 %3395 }
 0x553   :  { %v6507_v18 = vpop.eup %6506  ;;  %v3482_v52 = vpack.c.bf16 %v3440_v22, %v3440_v22  ;;  %6518 = vrcp.f32 %v3384_v53 }
 0x554   :  { %6242 = vmatmul.mubr.msk.bf16.vlgmr.msra.gmra.mxu0 %vm3493_vm5, %v3480_v46  ;;  %v3438_v58 = vmul.f32 %v6507_v18, %v7527_v41  ;;  %v4511_v41 = vsel %vm3497_vm4, %v1625_v62, 0  ;;  %v4557_v31 = vsel %vm3497_vm4, %v1626_v44, 0 }
 0x555   :  { %6252 = vmatpush3.bf16.msra.mxu0 %v4465_v19  ;;  %6253 = vmatprep.mubr.msk.bf16.mxu0 %vm6539_vm1, %v6538_v14  ;;  %v3387_v34 = vpop.xlane.xlu0 %3386  ;;  %v1630_v19 = vpack.c.bf16 %v1569_v35, %v1569_v35 }
 0x556   :  { %v3481_v50 = vpack.c.bf16 %v3438_v58, %v3438_v58  ;;  %6263 = vmatprep.subr.bf16.mxu0 %v6538_v14  ;;  %6520 = vrcp.f32 %v3387_v34 }
 0x557   :  { %v6509_v13 = vpop.eup %6508  ;;  %6522 = vrcp.f32 %v3390_v60  ;;  %v4741_v44 = vsel %vm3497_vm4, %v1630_v19, 0 }
 0x558   :  { %6248 = vmatmul.mubr.msk.bf16.vlgmr.msra.gmra.mxu1 %vm3493_vm5, %v3481_v50  ;;  %v3442_v17 = vmul.f32 %v6509_v13, %v7531_v15  ;;  %v6511_v2 = vpop.eup %6510 }
 0x559   :  { %6258 = vmatpush3.bf16.msra.mxu1 %v4511_v41  ;;  %6259 = vmatprep.mubr.msk.bf16.mxu1 %vm6539_vm1, %v6538_v14  ;;  %v3444_v15 = vmul.f32 %v6511_v2, %v7448_v0  ;;  %v7746_v0 = vrot.slane %v1338_v5, %v6737_v6  ;;  %v3393_v18 = vpop.xlane.xlu0 %3392 }
 0x55a   :  { %6269 = vmatprep.subr.bf16.mxu1 %v6538_v14  ;;  %v3483_v51 = vpack.c.bf16 %v3442_v17, %v3442_v17  ;;  %6524 = vrcp.f32 %v3393_v18 }
 0x55b   :  { %v7728_v63 = vpop.f32.mrf.mxu1  ;;  %v6513_v32 = vpop.eup %6512  ;;  %v3484_v37 = vpack.c.bf16 %v3444_v15, %v3444_v15  ;;  %v1585_v9 = vcombine.low %v7746_v0, %v7741_v23  ;;  %v1586_v28 = vcombine.high %v7746_v0, %v7741_v23  ;;  %6526 = vrcp.f32 %v3396_v40 }
 0x55c   :  { %6254 = vmatmul.mubr.msk.bf16.vlgmr.msra.gmra.mxu0 %vm3493_vm5, %v3482_v52  ;;  %v3446_v39 = vmul.f32 %v6513_v32, %v7535_v10  ;;  %v6515_v21 = vpop.eup %6514 }
 0x55d   :  { %6264 = vmatpush3.bf16.msra.mxu0 %v4557_v31  ;;  %v6129_v48 = vpop.f32.mrf.mxu1  ;;  %6265 = vmatprep.mubr.msk.bf16.mxu0 %vm6539_vm1, %v6538_v14  ;;  %v3448_v57 = vmul.f32 %v6515_v21, %v7459_v61  ;;  %v1593_v58 = vrot.slane %v1585_v9, %v6747_v16 }
 0x55e   :  { %6275 = vmatprep.subr.bf16.mxu0 %v6538_v14  ;;  %v3485_v4 = vpack.c.bf16 %v3446_v39, %v3446_v39 }
 0x55f   :  { %v3538_v36 = vpop.f32.mrf.mxu1  ;;  %v6517_v46 = vpop.eup %6516  ;;  %v3486_v61 = vpack.c.bf16 %v3448_v57, %v3448_v57  ;;  %v1631_v7 = vpack.c.bf16 %v1593_v58, %v1593_v58  ;;  %v1601_v52 = vcombine.high %v1593_v58, %v6538_v14 }
 0x560   :  { %6260 = vmatmul.mubr.msk.bf16.vlgmr.msra.gmra.mxu1 %vm3493_vm5, %v3483_v51  ;;  %v3450_v22 = vmul.f32 %v6517_v46, %v7543_v24  ;;  %v6519_v13 = vpop.eup %6518 }
 0x561   :  { %6270 = vmatpush3.bf16.msra.mxu1 %v4603_v42  ;;  %v6130_v25 = vpop.f32.mrf.mxu1  ;;  %6271 = vmatprep.mubr.msk.bf16.mxu1 %vm6539_vm1, %v6538_v14  ;;  %v3452_v24 = vmul.f32 %v6519_v13, %v7469_v49  ;;  %v4787_v45 = vsel %vm3497_vm4, %v1631_v7, 0  ;;  %v1632_v54 = vpack.c.bf16 %v1601_v52, %v1601_v52  ;;  %v1600_v49 = vrot.slane %v1586_v28, %v6747_v16 }
 0x562   :  { %6281 = vmatprep.subr.bf16.mxu1 %v6538_v14  ;;  %v3581_v47 = vpop.f32.mrf.mxu0  ;;  %v3487_v2 = vpack.c.bf16 %v3450_v22, %v3450_v22 }
 0x563   :  { %v3627_v12 = vpop.f32.mrf.mxu1  ;;  %v3488_v15 = vpack.c.bf16 %v3452_v24, %v3452_v24  ;;  %v4833_v34 = vsel %vm3497_vm4, %v1632_v54, 0  ;;  %v1633_v36 = vpack.c.bf16 %v1600_v49, %v1600_v49  ;;  %v1602_v42 = vcombine.high %v1600_v49, %v6538_v14 }
 0x564   :  { %6266 = vmatmul.mubr.msk.bf16.vlgmr.msra.gmra.mxu0 %vm3493_vm5, %v3484_v37  ;;  %v4967_v33 = vcombine.low %v7728_v63, %v3627_v12  ;;  %v6135_v10 = vpop.f32.mrf.mxu0  ;;  %v6521_v63 = vpop.eup %6520 }
 0x565   :  { %6276 = vmatpush3.bf16.msra.mxu0 %v4649_v43  ;;  %6277 = vmatprep.mubr.msk.bf16.mxu0 %vm6539_vm1, %v6538_v14  ;;  %v6141_v20 = vpop.f32.mrf.mxu1  ;;  %v3454_v51 = vmul.f32 %v6521_v63, %v7550_v27  ;;  %v6523_v32 = vpop.eup %6522  ;;  %v4879_v23 = vsel %vm3497_vm4, %v1633_v36, 0  ;;  %v1634_v25 = vpack.c.bf16 %v1602_v42, %v1602_v42 }
 0x566   :  { %6287 = vmatprep.subr.bf16.mxu0 %v6538_v14  ;;  %v3584_v1 = vpop.f32.mrf.mxu0  ;;  %v7776_v56 = vrot.slane %v4967_v33, %v6737_v6  ;;  %v3456_v59 = vmul.f32 %v6523_v32, %v7481_v26 }
 0x567   :  { %v3630_v55 = vpop.f32.mrf.mxu1  ;;  %v3489_v3 = vpack.c.bf16 %v3454_v51, %v3454_v51  ;;  %v6525_v27 = vpop.eup %6524  ;;  %v4925_v26 = vsel %vm3497_vm4, %v1634_v25, 0 }
 0x568   :  { %6272 = vmatmul.mubr.msk.bf16.vlgmr.msra.gmra.mxu1 %vm3493_vm5, %v3485_v4  ;;  %v6136_v62 = vpop.f32.mrf.mxu0  ;;  %v6527_v0 = vpop.eup %6526  ;;  %v3490_v37 = vpack.c.bf16 %v3456_v59, %v3456_v59  ;;  %v3458_v39 = vmul.f32 %v6525_v27, %v7556_v29 }
 0x569   :  { %6282 = vmatpush3.bf16.msra.mxu1 %v4695_v11  ;;  %6283 = vmatprep.mubr.msk.bf16.mxu1 %vm6539_vm1, %v6538_v14  ;;  %v6142_v50 = vpop.f32.mrf.mxu1  ;;  %v3460_v21 = vmul.f32 %v6527_v0, %v7490_v30 }
 0x56a   :  { %6293 = vmatprep.subr.bf16.mxu1 %v6538_v14  ;;  %v3673_v5 = vpop.f32.mrf.mxu0  ;;  %v3491_v60 = vpack.c.bf16 %v3458_v39, %v3458_v39 }
 0x56b   :  { %v4975_v41 = vcombine.low %v3581_v47, %v3673_v5  ;;  %v3492_v29 = vpack.c.bf16 %v3460_v21, %v3460_v21 }
 0x56c   :  { %6278 = vmatmul.mubr.msk.bf16.vlgmr.msra.gmra.mxu0 %vm3493_vm5, %v3486_v61  ;;  %v6147_v17 = vpop.f32.mrf.mxu0 }
 0x56d   :  { %6288 = vmatpush3.bf16.msra.mxu0 %v4741_v44  ;;  %6289 = vmatprep.mubr.msk.bf16.mxu0 %vm6539_vm1, %v6538_v14  ;;  %v7779_v53 = vrot.slane %v4975_v41, %v6737_v6 }
 0x56e   :  { %6299 = vmatprep.subr.bf16.mxu0 %v6538_v14  ;;  %v3676_v31 = vpop.f32.mrf.mxu0 }
 0x56f   :  { %v4983_v38 = vcombine.low %v7776_v56, %v7779_v53 }
 0x570   :  { %6284 = vmatmul.mubr.msk.bf16.vlgmr.msra.gmra.mxu1 %vm3493_vm5, %v3487_v2  ;;  %v6148_v48 = vpop.f32.mrf.mxu0 }
 0x571   :  { %6294 = vmatpush3.bf16.msra.mxu1 %v4787_v45  ;;  %6295 = vmatprep.mubr.msk.bf16.mxu1 %vm6539_vm1, %v6538_v14  ;;  %v4990_v40 = vrot.slane %v4983_v38, %v6747_v16 }
 0x572   :  { %6305 = vmatprep.subr.bf16.mxu1 %v6538_v14 }
 0x574   :  { %6290 = vmatmul.mubr.msk.bf16.vlgmr.msra.gmra.mxu0 %vm3493_vm5, %v3488_v15 }
 0x575   :  { %6300 = vmatpush3.bf16.msra.mxu0 %v4833_v34  ;;  %6301 = vmatprep.mubr.msk.bf16.mxu0 %vm6539_vm1, %v6538_v14 }
 0x576   :  { %6311 = vmatprep.subr.bf16.mxu0 %v6538_v14 }
 0x578   :  { %6296 = vmatmul.mubr.msk.bf16.vlgmr.msra.gmra.mxu1 %vm3493_vm5, %v3489_v3 }
 0x579   :  { %6306 = vmatpush3.bf16.msra.mxu1 %v4879_v23  ;;  %6307 = vmatprep.mubr.msk.bf16.mxu1 %vm6539_vm1, %v6538_v14 }
 0x57a   :  { %6317 = vmatprep.subr.bf16.mxu1 %v6538_v14 }
 0x57c   :  { %6302 = vmatmul.mubr.msk.bf16.vlgmr.msra.gmra.mxu0 %vm3493_vm5, %v3490_v37 }
 0x57d   :  { %6312 = vmatpush3.bf16.msra.mxu0 %v4925_v26  ;;  %6313 = vmatprep.mubr.msk.bf16.mxu0 %vm6539_vm1, %v6538_v14 }
 0x57e   :  { %6325 = vmatprep.subr.bf16.mxu0 %v6538_v14 }
 0x580   :  { %6308 = vmatmul.mubr.msk.bf16.vlgmr.msra.gmra.mxu1 %vm3493_vm5, %v3491_v60 }
 0x581   :  { %6321 = vmatprep.mubr.msk.bf16.mxu1 %vm6539_vm1, %v6538_v14 }
 0x584   :  { %6314 = vmatmul.mubr.msk.bf16.vlgmr.msra.gmra.mxu0 %vm3493_vm5, %v3492_v29 }
 0x585   :  { %6329 = vmatprep.mubr.msk.bf16.mxu0 %vm6539_vm1, %v6538_v14 }
 0x596   :  { %v3765_v47 = vpop.f32.mrf.mxu0 }
 0x598   :  { %v6159_v12 = vpop.f32.mrf.mxu0 }
 0x59a   :  { %v3768_v43 = vpop.f32.mrf.mxu0 }
 0x59c   :  { %v3719_v8 = vpop.f32.mrf.mxu1  ;;  %v6160_v35 = vpop.f32.mrf.mxu0 }
 0x59e   :  { %v6153_v30 = vpop.f32.mrf.mxu1  ;;  %v3857_v9 = vpop.f32.mrf.mxu0 }
 0x59f   :  { %v5000_v33 = vcombine.low %v3765_v47, %v3857_v9 }
 0x5a0   :  { %v3722_v10 = vpop.f32.mrf.mxu1  ;;  %v6171_v57 = vpop.f32.mrf.mxu0 }
 0x5a1   :  { %v5007_v11 = vrot.slane %v5000_v33, %v6737_v6 }
 0x5a2   :  { %v6154_v4 = vpop.f32.mrf.mxu1  ;;  %v3860_v20 = vpop.f32.mrf.mxu0 }
 0x5a4   :  { %v3811_v46 = vpop.f32.mrf.mxu1  ;;  %v6172_v18 = vpop.f32.mrf.mxu0 }
 0x5a5   :  { %v4992_v1 = vcombine.low %v3719_v8, %v3811_v46 }
 0x5a6   :  { %v6165_v55 = vpop.f32.mrf.mxu1 }
 0x5a7   :  { %v4999_v19 = vrot.slane %v4992_v1, %v6737_v6 }
 0x5a8   :  { %v3814_v58 = vpop.f32.mrf.mxu1 }
 0x5a9   :  { %v5008_v62 = vcombine.low %v4999_v19, %v5007_v11 }
 0x5aa   :  { %v6166_v61 = vpop.f32.mrf.mxu1 }
 0x5ab   :  { %v5015_v22 = vrot.slane %v5008_v62, %v6747_v16 }
 0x5ac   :  { %v3903_v50 = vpop.f32.mrf.mxu1 }
 0x5ad   :  { %v5167_v13 = vcombine.low %v4990_v40, %v5015_v22  ;;  %v5734_v5 = vcombine.high %v4990_v40, %v5015_v22 }
 0x5ae   :  { %v6177_v28 = vpop.f32.mrf.mxu1 }
 0x5af   :  { %v7824_v41 = vrot.slane %v5167_v13, %v6737_v6  ;;  %v7827_v44 = vrot.slane %v5734_v5, %v6737_v6 }
 0x5b0   :  { %v3906_v7 = vpop.f32.mrf.mxu1 }
 0x5b1   :  { %v5200_v52 = vcombine.high %v7824_v41, %v7827_v44  ;;  %v5199_v17 = vcombine.low %v7824_v41, %v7827_v44 }
 0x5b2   :  { %v6178_v24 = vpop.f32.mrf.mxu1 }
 0x5b4   :  { %v3995_v2 = vpop.f32.mrf.mxu1 }
 0x5b5   :  { %v5017_v56 = vcombine.low %v3903_v50, %v3995_v2 }
 0x5b6   :  { %v6189_v53 = vpop.f32.mrf.mxu1 }
 0x5b7   :  { %v5024_v0 = vrot.slane %v5017_v56, %v6737_v6  ;;  %v7842_v53 = vrot.slane %v5200_v52, %v6747_v16 }
 0x5b8   :  { %v3998_v63 = vpop.f32.mrf.mxu1 }
 0x5ba   :  { %v6190_v31 = vpop.f32.mrf.mxu1 }
 0x5bb   :  { %v7851_v31 = vrot.slane %v5199_v17, %v6747_v16 }
 0x5bc   :  { %v4087_v38 = vpop.f32.mrf.mxu1 }
 0x5be   :  { %v6201_v45 = vpop.f32.mrf.mxu1 }
 0x5c0   :  { %v4090_v54 = vpop.f32.mrf.mxu1 }
 0x5c2   :  { %v6202_v49 = vpop.f32.mrf.mxu1 }
 0x5c4   :  { %v4179_v48 = vpop.f32.mrf.mxu1 }
 0x5c5   :  { %v5042_v15 = vcombine.low %v4087_v38, %v4179_v48 }
 0x5c6   :  { %v6213_v51 = vpop.f32.mrf.mxu1 }
 0x5c7   :  { %v5049_v33 = vrot.slane %v5042_v15, %v6737_v6 }
 0x5c8   :  { %v4182_v32 = vpop.f32.mrf.mxu1 }
 0x5ca   :  { %v6214_v34 = vpop.f32.mrf.mxu1 }
 0x5cf   :  { %v3949_v36 = vpop.f32.mrf.mxu0 }
 0x5d1   :  { %v6183_v42 = vpop.f32.mrf.mxu0 }
 0x5d3   :  { %v3952_v59 = vpop.f32.mrf.mxu0 }
 0x5d5   :  { %v6184_v3 = vpop.f32.mrf.mxu0 }
 0x5d7   :  { %v4041_v27 = vpop.f32.mrf.mxu0 }
 0x5d8   :  { %v5025_v23 = vcombine.low %v3949_v36, %v4041_v27 }
 0x5d9   :  { %v6195_v25 = vpop.f32.mrf.mxu0 }
 0x5da   :  { %v5032_v37 = vrot.slane %v5025_v23, %v6737_v6 }
 0x5db   :  { %v4044_v39 = vpop.f32.mrf.mxu0 }
 0x5dc   :  { %v5033_v26 = vcombine.low %v5024_v0, %v5032_v37 }
 0x5dd   :  { %v6196_v21 = vpop.f32.mrf.mxu0 }
 0x5de   :  { %v5040_v1 = vrot.slane %v5033_v26, %v6747_v16 }
 0x5df   :  { %v4133_v60 = vpop.f32.mrf.mxu0 }
 0x5e1   :  { %v6207_v29 = vpop.f32.mrf.mxu0 }
 0x5e3   :  { %v4136_v47 = vpop.f32.mrf.mxu0 }
 0x5e5   :  { %v6208_v12 = vpop.f32.mrf.mxu0 }
 0x5e7   :  { %v4225_v43 = vpop.f32.mrf.mxu0  ;;  %v4271_v8 = vpop.f32.mrf.mxu1 }
 0x5e8   :  { %v5050_v35 = vcombine.low %v4133_v60, %v4225_v43 }
 0x5e9   :  { %v6219_v30 = vpop.f32.mrf.mxu0  ;;  %v6225_v9 = vpop.f32.mrf.mxu1 }
 0x5ea   :  { %v5057_v10 = vrot.slane %v5050_v35, %v6737_v6 }
 0x5eb   :  { %v4228_v57 = vpop.f32.mrf.mxu0  ;;  %v4274_v4 = vpop.f32.mrf.mxu1 }
 0x5ec   :  { %v5058_v20 = vcombine.low %v5049_v33, %v5057_v10 }
 0x5ed   :  { %v6220_v46 = vpop.f32.mrf.mxu0  ;;  %v6226_v18 = vpop.f32.mrf.mxu1 }
 0x5ee   :  { %v5065_v55 = vrot.slane %v5058_v20, %v6747_v16 }
 0x5ef   :  { %v4317_v11 = vpop.f32.mrf.mxu0  ;;  %v4363_v19 = vpop.f32.mrf.mxu1 }
 0x5f0   :  { %v5183_v58 = vcombine.low %v5040_v1, %v5065_v55  ;;  %v5735_v62 = vcombine.high %v5040_v1, %v5065_v55  ;;  %v5067_v61 = vcombine.low %v4271_v8, %v4363_v19 }
 0x5f1   :  { %v6231_v40 = vpop.f32.mrf.mxu0  ;;  %v6237_v22 = vpop.f32.mrf.mxu1 }
 0x5f2   :  { %v5190_v50 = vrot.slane %v5183_v58, %v6737_v6  ;;  %v5198_v13 = vrot.slane %v5735_v62, %v6737_v6  ;;  %v5074_v44 = vrot.slane %v5067_v61, %v6737_v6 }
 0x5f3   :  { %v4320_v5 = vpop.f32.mrf.mxu0  ;;  %v4366_v28 = vpop.f32.mrf.mxu1 }
 0x5f4   :  { %v5216_v7 = vcombine.high %v5190_v50, %v5198_v13  ;;  %v5215_v24 = vcombine.low %v5190_v50, %v5198_v13 }
 0x5f5   :  { %v6232_v2 = vpop.f32.mrf.mxu0  ;;  %v6238_v56 = vpop.f32.mrf.mxu1 }
 0x5f6   :  { %v7845_v63 = vrot.slane %v5216_v7, %v6747_v16  ;;  %v7854_v38 = vrot.slane %v5215_v24, %v6747_v16 }
 0x5f8   :  { %v5233_v45 = vcombine.low %v7842_v53, %v7845_v63  ;;  %v5231_v54 = vcombine.low %v7851_v31, %v7854_v38  ;;  %v5232_v52 = vcombine.high %v7851_v31, %v7854_v38  ;;  %v5234_v49 = vcombine.high %v7842_v53, %v7845_v63  ;;  %v5738_v31 = vld [vmem:[%s8001_s10] ss:$0 sm:$0xff] }
 0x614   :  { %v4409_v48 = vpop.f32.mrf.mxu0 }
 0x615   :  { %v5075_v15 = vcombine.low %v4317_v11, %v4409_v48 }
 0x616   :  { %v6243_v41 = vpop.f32.mrf.mxu0 }
 0x617   :  { %v5082_v17 = vrot.slane %v5075_v15, %v6737_v6 }
 0x618   :  { %v4412_v51 = vpop.f32.mrf.mxu0  ;;  %v4455_v32 = vpop.f32.mrf.mxu1 }
 0x619   :  { %v5083_v34 = vcombine.low %v5074_v44, %v5082_v17 }
 0x61a   :  { %v6244_v36 = vpop.f32.mrf.mxu0  ;;  %v6249_v42 = vpop.f32.mrf.mxu1 }
 0x61b   :  { %v5090_v36 = vrot.slane %v5083_v34, %v6747_v16 }
 0x61c   :  { %v4458_v59 = vpop.f32.mrf.mxu1  ;;  %v4501_v3 = vpop.f32.mrf.mxu0 }
 0x61e   :  { %v6250_v27 = vpop.f32.mrf.mxu1  ;;  %v6255_v23 = vpop.f32.mrf.mxu0 }
 0x620   :  { %v4504_v25 = vpop.f32.mrf.mxu0  ;;  %v4547_v0 = vpop.f32.mrf.mxu1 }
 0x621   :  { %v5092_v19 = vcombine.low %v4455_v32, %v4547_v0 }
 0x622   :  { %v6256_v37 = vpop.f32.mrf.mxu0  ;;  %v6261_v39 = vpop.f32.mrf.mxu1 }
 0x623   :  { %v5099_v50 = vrot.slane %v5092_v19, %v6737_v6 }
 0x624   :  { %v4550_v26 = vpop.f32.mrf.mxu1  ;;  %v4593_v21 = vpop.f32.mrf.mxu0 }
 0x625   :  { %v5100_v1 = vcombine.low %v4501_v3, %v4593_v21 }
 0x626   :  { %v6262_v60 = vpop.f32.mrf.mxu1  ;;  %v6267_v29 = vpop.f32.mrf.mxu0 }
 0x627   :  { %v5107_v61 = vrot.slane %v5100_v1, %v6737_v6 }
 0x628   :  { %v4596_v47 = vpop.f32.mrf.mxu0  ;;  %v4639_v12 = vpop.f32.mrf.mxu1 }
 0x629   :  { %v5108_v28 = vcombine.low %v5099_v50, %v5107_v61 }
 0x62a   :  { %v6268_v43 = vpop.f32.mrf.mxu0  ;;  %v6273_v8 = vpop.f32.mrf.mxu1 }
 0x62b   :  { %v5115_v41 = vrot.slane %v5108_v28, %v6747_v16 }
 0x62c   :  { %v4642_v35 = vpop.f32.mrf.mxu1  ;;  %v4685_v30 = vpop.f32.mrf.mxu0 }
 0x62d   :  { %v5235_v23 = vcombine.low %v5090_v36, %v5115_v41  ;;  %v5736_v37 = vcombine.high %v5090_v36, %v5115_v41 }
 0x62e   :  { %v6274_v9 = vpop.f32.mrf.mxu1  ;;  %v6279_v33 = vpop.f32.mrf.mxu0 }
 0x62f   :  { %v5250_v34 = vrot.slane %v5736_v37, %v6737_v6 }
 0x630   :  { %v4688_v10 = vpop.f32.mrf.mxu0  ;;  %v4731_v57 = vpop.f32.mrf.mxu1 }
 0x631   :  { %v5117_v15 = vcombine.low %v4639_v12, %v4731_v57  ;;  %v5242_v12 = vrot.slane %v5235_v23, %v6737_v6 }
 0x632   :  { %v6280_v4 = vpop.f32.mrf.mxu0  ;;  %v6285_v20 = vpop.f32.mrf.mxu1 }
 0x633   :  { %v5124_v3 = vrot.slane %v5117_v15, %v6737_v6  ;;  %v5268_v10 = vcombine.high %v5242_v12, %v5250_v34  ;;  %v5267_v57 = vcombine.low %v5242_v12, %v5250_v34  ;;  %v6384_v4 = vld [vmem:[%s8000_s9 + $0x8] sm:$0xff]  }
 0x634   :  { %v4734_v46 = vpop.f32.mrf.mxu1  ;;  %v4777_v18 = vpop.f32.mrf.mxu0  ;;  %6318 = vmatpush3.bf16.msra.mxu1 %v6384_v4  ;;  %v6386_v34 = vld [vmem:[%s8002_s13 + $0x8] sm:$0xff]  }
 0x635   :  { %v5125_v2 = vcombine.low %v4685_v30, %v4777_v18  ;;  %6319 = vmatprep.subr.bf16.mxu1 %v6538_v14  ;;  %v5282_v18 = vrot.slane %v5268_v10, %v6747_v16  ;;  %6326 = vmatpush3.bf16.msra.mxu0 %v6386_v34 }
 0x636   :  { %v6286_v55 = vpop.f32.mrf.mxu1  ;;  %v6291_v11 = vpop.f32.mrf.mxu0  ;;  %6327 = vmatprep.subr.bf16.mxu0 %v6538_v14 }
 0x637   :  { %v5132_v51 = vrot.slane %v5125_v2, %v6737_v6  ;;  %v5275_v55 = vrot.slane %v5267_v57, %v6747_v16 }
 0x638   :  { %v4780_v58 = vpop.f32.mrf.mxu0  ;;  %v4823_v62 = vpop.f32.mrf.mxu1 }
 0x639   :  { %v5133_v39 = vcombine.low %v5124_v3, %v5132_v51  ;;  %v6537_v3 = vld [vmem:[%s8013_s26 + $0x8] sm:$0xff] }
 0x63a   :  { %v6292_v40 = vpop.f32.mrf.mxu0  ;;  %v6297_v22 = vpop.f32.mrf.mxu1 }
 0x63b   :  { %v5140_v43 = vrot.slane %v5133_v39, %v6747_v16 }
 0x63c   :  { %v4826_v13 = vpop.f32.mrf.mxu1  ;;  %v4869_v5 = vpop.f32.mrf.mxu0 }
 0x63e   :  { %v6298_v7 = vpop.f32.mrf.mxu1  ;;  %v6303_v24 = vpop.f32.mrf.mxu0 }
 0x640   :  { %v4872_v56 = vpop.f32.mrf.mxu0  ;;  %v4915_v48 = vpop.f32.mrf.mxu1 }
 0x641   :  { %v5142_v32 = vcombine.low %v4823_v62, %v4915_v48 }
 0x642   :  { %v6304_v44 = vpop.f32.mrf.mxu0  ;;  %v6309_v17 = vpop.f32.mrf.mxu1 }
 0x643   :  { %v5149_v26 = vrot.slane %v5142_v32, %v6737_v6  ;;  %v6536_v17 = vld [vmem:[%s8013_s26] sm:$0xff] }
 0x644   :  { %v4918_v42 = vpop.f32.mrf.mxu1  ;;  %v4961_v59 = vpop.f32.mrf.mxu0 }
 0x645   :  { %v5150_v27 = vcombine.low %v4869_v5, %v4961_v59 }
 0x646   :  { %v6310_v25 = vpop.f32.mrf.mxu1  ;;  %v6315_v0 = vpop.f32.mrf.mxu0 }
 0x647   :  { %v5157_v21 = vrot.slane %v5150_v27, %v6737_v6 }
 0x648   :  { %v4964_v60 = vpop.f32.mrf.mxu0 }
 0x649   :  { %v5158_v29 = vcombine.low %v5149_v26, %v5157_v21 }
 0x64a   :  { %v6316_v47 = vpop.f32.mrf.mxu0 }
 0x64b   :  { %v5165_v8 = vrot.slane %v5158_v29, %v6747_v16 }
 0x64d   :  { %v5251_v35 = vcombine.low %v5140_v43, %v5165_v8  ;;  %v5737_v30 = vcombine.high %v5140_v43, %v5165_v8  ;;  %v6387_v43 = vld [vmem:[%s8002_s13] sm:$0xff]  }
 0x64e   :  { %6328 = vmatpush3.bf16.msra.mxu0 %v6387_v43 }
 0x64f   :  { %v5258_v9 = vrot.slane %v5251_v35, %v6737_v6  ;;  %v5266_v33 = vrot.slane %v5737_v30, %v6737_v6  ;;  %v6385_v6 = vld [vmem:[%s8000_s9] sm:$0xff]   ;;  %s6545_s9 = smov 16  }
 0x650   :  { %6320 = vmatpush3.bf16.msra.mxu1 %v6385_v6 }
 0x651   :  { %v5284_v20 = vcombine.high %v5258_v9, %v5266_v33  ;;  %v5283_v46 = vcombine.low %v5258_v9, %v5266_v33  ;;  %6333 = vmatprep.subr.bf16.mxu1 %v6538_v14 }
 0x653   :  { %v5298_v1 = vrot.slane %v5284_v20, %v6747_v16  ;;  %v5291_v11 = vrot.slane %v5283_v46, %v6747_v16  ;;  %v5742_v20 = vld [vmem:[%s8003_s11] ss:$0 sm:$0xff] }
 0x655   :  { %v5301_v19 = vcombine.low %v5282_v18, %v5298_v1  ;;  %v5300_v58 = vcombine.high %v5275_v55, %v5291_v11  ;;  %v5299_v62 = vcombine.low %v5275_v55, %v5291_v11  ;;  %v5302_v61 = vcombine.high %v5282_v18, %v5298_v1  ;;  %v5743_v55 = vld [vmem:[%s8004_s12] ss:$0 sm:$0xff] }
 0x657   :  { %v6368_v40 = vpack.i.bf16 %v5301_v19, %v5233_v45  ;;  %v6363_v22 = vpack.i.bf16 %v5300_v58, %v5232_v52  ;;  %v6373_v16 = vpack.i.bf16 %v5302_v61, %v5234_v49  ;;  %v6389_v61 = vld [vmem:[%s8005_s15 + $0x30] sm:$0xff]  }
 0x659   :  { %6369 = vrot.lane.b32.xlu1 %v6368_v40, %s6545_s9  ;;  %6364 = vrot.lane.b32.xlu0 %v6363_v22, %s6546_s23  ;;  %v6390_v40 = vld [vmem:[%s8005_s15 + $0x28] sm:$0xff]   ;;  %v6391_v22 = vld [vmem:[%s8005_s15 + $0x20] sm:$0xff]  }
 0x65d   :  { %6374 = vrot.lane.b32.xlu1 %v6373_v16, %s6547_s24  ;;  %v6392_v16 = vld [vmem:[%s8005_s15 + $0x18] sm:$0xff]  }
 0x6cb   :  { %v6370_v50 = vpop.permute.xlu1 %6369  ;;  %v6365_v13 = vpop.permute.xlu0 %6364 }
 0x6cc   :  { %v6367_v5 = vunpack.i.h.bf16 %v6365_v13  ;;  %v6366_v28 = vunpack.i.l.bf16 %v6365_v13  ;;  %v6372_v7 = vunpack.i.h.bf16 %v6370_v50  ;;  %v6371_v45 = vunpack.i.l.bf16 %v6370_v50  ;;  %v6393_v50 = vld [vmem:[%s8005_s15 + $0x10] sm:$0xff]   ;;  %v6394_v13 = vld [vmem:[%s8005_s15 + $0x8] sm:$0xff]  }
 0x6ce   :  { %v5327_v52 = vsel %vm1635_vm2, %v5231_v54, %v6366_v28  ;;  %v5328_v53 = vsel %vm1635_vm2, %v5299_v62, %v6367_v5  ;;  %v6388_v62 = vld [vmem:[%s8005_s15 + $0x38] sm:$0xff]   ;;  %v6395_v5 = vld [vmem:[%s8005_s15] sm:$0xff]  }
 0x6cf   :  { %v6375_v63 = vpop.permute.xlu1 %6374  ;;  %v5330_v2 = vsel %vm5329_vm6, %v5327_v52, %v6371_v45  ;;  %v5331_v56 = vsel %vm5329_vm6, %v5328_v53, %v6372_v7  ;;  %v5744_v28 = vld [vmem:[%s8006_s14] ss:$0 sm:$0xff] }
 0x6d0   :  { %v6377_v49 = vunpack.i.h.bf16 %v6375_v63  ;;  %v6376_v24 = vunpack.i.l.bf16 %v6375_v63 }
 0x6d2   :  { %v5333_v48 = vsel %vm5332_vm7, %v5330_v2, %v6376_v24  ;;  %v5334_v15 = vsel %vm5332_vm7, %v5331_v56, %v6377_v49 }
 0x6d3   :  { %v5335_v41 = vpack.c.bf16 %v5334_v15, %v5333_v48 }
 0x6d5   :  { %6322 = vmatmul.mubr.msk.bf16.vlgmr.msra.gmra.mxu1 %vm61_vm0, %v5335_v41 }
 0x6d6   :  { %6349 = vmatprep.mubr.msk.bf16.mxu1 %vm6539_vm1, %v6538_v14  ;;  %6334 = vmatpush3.bf16.msra.mxu1 %v6388_v62 }
 0x6d7   :  { %6335 = vmatprep.subr.bf16.mxu1 %v6538_v14 }
 0x6da   :  { %6336 = vmatpush3.bf16.msra.mxu1 %v6389_v61 }
 0x6db   :  { %6337 = vmatprep.subr.bf16.mxu1 %v6538_v14 }
 0x6de   :  { %6338 = vmatpush3.bf16.msra.mxu1 %v6390_v40 }
 0x6df   :  { %6339 = vmatprep.subr.bf16.mxu1 %v6538_v14 }
 0x6e2   :  { %6340 = vmatpush3.bf16.msra.mxu1 %v6391_v22 }
 0x6e3   :  { %6341 = vmatprep.subr.bf16.mxu1 %v6538_v14 }
 0x6e6   :  { %6342 = vmatpush3.bf16.msra.mxu1 %v6392_v16 }
 0x6e7   :  { %6343 = vmatprep.subr.bf16.mxu1 %v6538_v14 }
 0x6ea   :  { %6344 = vmatpush3.bf16.msra.mxu1 %v6393_v50 }
 0x6eb   :  { %6345 = vmatprep.subr.bf16.mxu1 %v6538_v14 }
 0x6ee   :  { %6346 = vmatpush3.bf16.msra.mxu1 %v6394_v13 }
 0x6ef   :  { %6347 = vmatprep.subr.bf16.mxu1 %v6538_v14 }
 0x6f2   :  { %6348 = vmatpush3.bf16.msra.mxu1 %v6395_v5 }
 0x795   :  { %v5396_v38 = vpop.f32.mrf.mxu1 }
 0x796   :  { %v5397_v54 = vadd.f32 %v5738_v31, %v5396_v38 }
 0x797   :  { %v6323_v44 = vpop.f32.mrf.mxu1 }
 0x798   :  { %v7915_v51 = vadd.f32 %v6536_v17, %v5397_v54 }
 0x799   :  { %v5399_v32 = vpop.f32.mrf.mxu1 }
 0x79a   :  { %v5400_v36 = vadd.f32 %v5738_v31, %v5399_v32  ;;  %v5407_v42 = vsel %vm61_vm0, %v7915_v51, 0.0 }
 0x79b   :  { %5408 = vadd.xlane.f32.xlu1 %v5407_v42  ;;  %v6324_v59 = vpop.f32.mrf.mxu1 }
 0x79c   :  { %v7922_v27 = vadd.f32 %v6537_v3, %v5400_v36 }
 0x79e   :  { %v5410_v23 = vsel %vm61_vm0, %v7922_v27, 0.0 }
 0x79f   :  { %5411 = vadd.xlane.f32.xlu0 %v5410_v23 }
 0x824   :  { %v5409_v25 = vpop.xlane.xlu1 %5408 }
 0x825   :  { %v5413_v0 = vmul.f32 0.03125, %v5409_v25 }
 0x827   :  { %v5415_v37 = vsub.f32 %v7915_v51, %v5413_v0  ;;  %v5748_v0 = vld [vmem:[%s8007_s16] ss:$0 sm:$0xff] }
 0x828   :  { %v5412_v39 = vpop.xlane.xlu0 %5411 }
 0x829   :  { %v5414_v26 = vmul.f32 0.03125, %v5412_v39  ;;  %v5417_v21 = vmul.f32 %v5415_v37, %v5415_v37 }
 0x82b   :  { %v5416_v60 = vsub.f32 %v7922_v27, %v5414_v26  ;;  %v5419_v29 = vsel %vm61_vm0, %v5417_v21, 0.0 }
 0x82c   :  { %5420 = vadd.xlane.f32.xlu0 %v5419_v29 }
 0x82d   :  { %v5418_v47 = vmul.f32 %v5416_v60, %v5416_v60 }
 0x82f   :  { %v5422_v12 = vsel %vm61_vm0, %v5418_v47, 0.0 }
 0x830   :  { %5423 = vadd.xlane.f32.xlu0 %v5422_v12 }
 0x8b5   :  { %v5421_v8 = vpop.xlane.xlu0 %5420 }
 0x8b6   :  { %v5425_v35 = vmul.f32 0.03125, %v5421_v8 }
 0x8b8   :  { %v5427_v30 = vadd.f32 1e-05, %v5425_v35 }
 0x8b9   :  { %v5424_v9 = vpop.xlane.xlu0 %5423 }
 0x8ba   :  { %6528 = vrsqrt.f32 %v5427_v30  ;;  %v5426_v33 = vmul.f32 0.03125, %v5424_v9 }
 0x8bc   :  { %v5428_v10 = vadd.f32 1e-05, %v5426_v33 }
 0x8be   :  { %6530 = vrsqrt.f32 %v5428_v10 }
 0x8c7   :  { %v6529_v57 = vpop.eup %6528 }
 0x8c8   :  { %v5431_v4 = vmul.f32 %v6529_v57, %v5415_v37 }
 0x8ca   :  { %v5439_v18 = vmul.f32 %v5742_v20, %v5431_v4 }
 0x8cb   :  { %v6531_v46 = vpop.eup %6530 }
 0x8cc   :  { %v5432_v1 = vmul.f32 %v6531_v46, %v5416_v60  ;;  %v5447_v19 = vadd.f32 %v5743_v55, %v5439_v18 }
 0x8ce   :  { %v5440_v11 = vmul.f32 %v5742_v20, %v5432_v1 }
 0x8d0   :  { %v5448_v6 = vadd.f32 %v5743_v55, %v5440_v11 }
 0x8d2   :  { %v5449_v58 = vpack.c.bf16 %v5448_v6, %v5447_v19 }
 0x8d4   :  { %6330 = vmatmul.mubr.msk.bf16.vlgmr.msra.gmra.mxu0 %vm61_vm0, %v5449_v58 }
 0x994   :  { %v5510_v7 = vpop.f32.mrf.mxu0 }
 0x995   :  { %v5511_v45 = vadd.f32 %v5744_v28, %v5510_v7 }
 0x996   :  { %v6331_v52 = vpop.f32.mrf.mxu0 }
 0x997   :  { %v5519_v53 = vmul.f32 0.044715, %v5511_v45  ;;  %v5517_v36 = vmul.f32 0.5, %v5511_v45 }
 0x998   :  { %v5513_v63 = vpop.f32.mrf.mxu0 }
 0x999   :  { %v5521_v49 = vmul.f32 %v5519_v53, %v5511_v45  ;;  %v5514_v24 = vadd.f32 %v5744_v28, %v5513_v63 }
 0x99a   :  { %v6332_v2 = vpop.f32.mrf.mxu0 }
 0x99b   :  { %v5523_v56 = vmul.f32 %v5521_v49, %v5511_v45  ;;  %v5520_v48 = vmul.f32 0.044715, %v5514_v24  ;;  %v5518_v42 = vmul.f32 0.5, %v5514_v24 }
 0x99d   :  { %v5525_v15 = vadd.f32 %v5523_v56, %v5511_v45  ;;  %v5522_v41 = vmul.f32 %v5520_v48, %v5514_v24 }
 0x99f   :  { %v5527_v31 = vmul.f32 0.7978846, %v5525_v15  ;;  %v5524_v38 = vmul.f32 %v5522_v41, %v5514_v24 }
 0x9a1   :  { %6532 = vtanh.f32 %v5527_v31  ;;  %v5526_v14 = vadd.f32 %v5524_v38, %v5514_v24 }
 0x9a3   :  { %v5528_v54 = vmul.f32 0.7978846, %v5526_v14 }
 0x9a5   :  { %6534 = vtanh.f32 %v5528_v54 }
 0x9ae   :  { %v6533_v44 = vpop.eup %6532 }
 0x9af   :  { %v5531_v17 = vadd.f32 1.0, %v6533_v44 }
 0x9b1   :  { %v5533_v3 = vmul.f32 %v5531_v17, %v5517_v36 }
 0x9b2   :  { %v6535_v32 = vpop.eup %6534 }
 0x9b3   :  { %v5532_v59 = vadd.f32 1.0, %v6535_v32 }
 0x9b5   :  { %v5534_v23 = vmul.f32 %v5532_v59, %v5518_v42 }
 0x9b7   :  { %v5535_v25 = vpack.c.bf16 %v5534_v23, %v5533_v3 }
 0x9b9   :  { %6350 = vmatmul.mubr.bf16.vlgmr.msra.gmra.mxu1 %v5535_v25 }
 0xa79   :  { %v5641_v37 = vpop.f32.mrf.mxu1 }
 0xa7a   :  { %v5642_v39 = vadd.f32 %v5748_v0, %v5641_v37 }
 0xa7b   :  { %v6351_v26 = vpop.f32.mrf.mxu1 }
 0xa7c   :  { %v5648_v21 = vadd.f32 %v5642_v39, %v7915_v51 }
 0xa7d   :  { %v5644_v60 = vpop.f32.mrf.mxu1 }
 0xa7e   :  { %5650 = vst.msk [vmem:[%s8008_s17] sm:$0xff] %vm61_vm0, %v5648_v21  ;;  %v5645_v29 = vadd.f32 %v5748_v0, %v5644_v60 }
 0xa7f   :  { %v6352_v47 = vpop.f32.mrf.mxu1 }
 0xa80   :  { %v5649_v12 = vadd.f32 %v5645_v29, %v7922_v27 }
 0xa82   :  { %5651 = vst.msk [vmem:[%s8008_s17 + $0x8] sm:$0xff] %vm61_vm0, %v5649_v12 }

</bundles_post_ra>
